<compile_context>
chip_gen: v7x
topology: tpu7x:2x2x1
jax: 0.10.0
libtpu: 0.0.40
codegen_flags: <defaults>
</compile_context>

<pallas_src>
import jax
import jax.numpy as jnp
from jax import lax
from jax.experimental import pallas as pl
from jax.experimental.pallas import tpu as pltpu


def resnet_block_kernel(x_ref, w1_ref, b1_ref, w2_ref, b2_ref, o_ref,
                        xpad_ref, mid_ref):
    # x_ref:        (1, H, W, Cp)   f32   unpadded input block (one batch elem)
    # w1_ref/w2_ref:(9, Cp, Cp)     bf16  per-tap repacked 3x3 kernels
    # b1_ref/b2_ref:(1, Cp)         f32   biases
    # o_ref:        (1, H, W, Cp)   f32   output block
    # xpad_ref:     (H+2, W+2, Cp)  bf16  VMEM scratch, spatially padded input
    # mid_ref:      (H+2, W+2, Cp)  bf16  VMEM scratch, padded intermediate act.
    H = o_ref.shape[1]
    W = o_ref.shape[2]
    Cp = o_ref.shape[3]

    # ---- zero only the 1-element halo ring, and only on the first grid step.
    # Valid because the scratch persists across steps, the interior is fully
    # overwritten every step, and the halo is never written afterwards.
    @pl.when(pl.program_id(0) == 0)
    def _zero_halo():
        zrow = jnp.zeros((1, W + 2, Cp), jnp.bfloat16)
        zcol = jnp.zeros((H, 1, Cp), jnp.bfloat16)
        for buf in (xpad_ref, mid_ref):
            buf[0:1, :, :] = zrow
            buf[H + 1:H + 2, :, :] = zrow
            buf[1:H + 1, 0:1, :] = zcol
            buf[1:H + 1, W + 1:W + 2, :] = zcol

    # ---- stage input into the padded scratch (bf16 operand for the MXU) ----
    xpad_ref[1:H + 1, 1:W + 1, :] = x_ref[0].astype(jnp.bfloat16)

    def conv3x3(src_ref, w_ref):
        # 9 per-tap matmuls (K = Cp) accumulated in f32 — no im2col buffer.
        acc = jnp.zeros((H * W, Cp), jnp.float32)
        for dy in range(3):
            for dx in range(3):
                t = dy * 3 + dx
                patch = src_ref[dy:dy + H, dx:dx + W, :].reshape(H * W, Cp)
                acc = acc + jnp.dot(patch, w_ref[t],
                                    preferred_element_type=jnp.float32)
        return acc                                    # (H*W, Cp) f32

    # ---- conv1 + bias + ReLU (Dropout(0.5) is inference identity: no-op) ----
    h = jnp.maximum(conv3x3(xpad_ref, w1_ref) + b1_ref[...], 0.0)
    mid_ref[1:H + 1, 1:W + 1, :] = h.reshape(H, W, Cp).astype(jnp.bfloat16)

    # ---- conv2 + bias + residual add (re-read x at point of use) ----
    y = conv3x3(mid_ref, w2_ref) + b2_ref[...]
    o_ref[0] = x_ref[0] + y.reshape(H, W, Cp)


@jax.jit
def resnet_block(x_nchw, w1, b1, w2, b2):
    """x_nchw: (N, C, H, W) float32. w1/w2: (C, C, 3, 3). b1/b2: (C,)."""
    N, C, H, W = x_nchw.shape
    Cp = ((C + 127) // 128) * 128                 # lane-dense channel count

    # NCHW -> NHWC, pad channels to Cp (fused under this jit)
    x_nhwc = jnp.transpose(x_nchw, (0, 2, 3, 1)).astype(jnp.float32)
    x_nhwc = jnp.pad(x_nhwc, ((0, 0), (0, 0), (0, 0), (0, Cp - C)))

    def repack(w):
        # (Cout, Cin, kh, kw) -> zero-pad channels -> (kh, kw, Cin, Cout)
        # -> per-tap (9, Cp, Cp) weight slabs, bf16 MXU operands.
        wf = jnp.pad(w.astype(jnp.float32),
                     ((0, Cp - C), (0, Cp - C), (0, 0), (0, 0)))
        return jnp.transpose(wf, (2, 3, 1, 0)).reshape(9, Cp, Cp).astype(jnp.bfloat16)

    w1p, w2p = repack(w1), repack(w2)
    b1p = jnp.pad(b1.astype(jnp.float32), (0, Cp - C)).reshape(1, Cp)
    b2p = jnp.pad(b2.astype(jnp.float32), (0, Cp - C)).reshape(1, Cp)

    out_nhwc = pl.pallas_call(
        resnet_block_kernel,
        out_shape=jax.ShapeDtypeStruct((N, H, W, Cp), jnp.float32),
        grid_spec=pltpu.PrefetchScalarGridSpec(
            num_scalar_prefetch=0,
            grid=(N,),
            in_specs=[
                pl.BlockSpec((1, H, W, Cp), lambda n: (n, 0, 0, 0)),
                # grid-invariant operands: single-buffered
                pl.BlockSpec((9, Cp, Cp), lambda n: (0, 0, 0),
                             pipeline_mode=pl.Buffered(1)),
                pl.BlockSpec((1, Cp), lambda n: (0, 0),
                             pipeline_mode=pl.Buffered(1)),
                pl.BlockSpec((9, Cp, Cp), lambda n: (0, 0, 0),
                             pipeline_mode=pl.Buffered(1)),
                pl.BlockSpec((1, Cp), lambda n: (0, 0),
                             pipeline_mode=pl.Buffered(1)),
            ],
            out_specs=pl.BlockSpec((1, H, W, Cp), lambda n: (n, 0, 0, 0)),
            scratch_shapes=[
                pltpu.VMEM((H + 2, W + 2, Cp), jnp.bfloat16),  # padded input
                pltpu.VMEM((H + 2, W + 2, Cp), jnp.bfloat16),  # padded mid act
            ],
        ),
        compiler_params=pltpu.CompilerParams(
            dimension_semantics=("parallel",),
            vmem_limit_bytes=32 * 1024 * 1024,
        ),
    )(x_nhwc, w1p, b1p, w2p, b2p)

    # drop padded channels, NHWC -> NCHW
    return jnp.transpose(out_nhwc[..., :C], (0, 3, 1, 2))


def _reference(x_nchw, w1, b1, w2, b2):
    """Pure-JAX f32 reference (lax.conv) for validation."""
    dn = lax.conv_dimension_numbers(x_nchw.shape, w1.shape, ('NCHW', 'OIHW', 'NCHW'))
    h = lax.conv_general_dilated(x_nchw, w1, (1, 1), ((1, 1), (1, 1)),
                                 dimension_numbers=dn)
    h = jnp.maximum(h + b1[None, :, None, None], 0.0)
    y = lax.conv_general_dilated(h, w2, (1, 1), ((1, 1), (1, 1)),
                                 dimension_numbers=dn)
    y = y + b2[None, :, None, None]
    return x_nchw + y


if __name__ == "__main__":
    key = jax.random.PRNGKey(0)
    N, C, H, W = 2, 4, 16, 16  # dim = 4

    k_x, k_w1, k_b1, k_w2, k_b2 = jax.random.split(key, 5)
    x = jax.random.normal(k_x, (N, C, H, W), dtype=jnp.float32)
    # Deterministic synthetic Conv2d parameters (nn.Conv2d(dim, dim, 3, padding=1))
    w1 = jax.random.normal(k_w1, (C, C, 3, 3), dtype=jnp.float32) * 0.1
    b1 = jax.random.normal(k_b1, (C,), dtype=jnp.float32) * 0.1
    w2 = jax.random.normal(k_w2, (C, C, 3, 3), dtype=jnp.float32) * 0.1
    b2 = jax.random.normal(k_b2, (C,), dtype=jnp.float32) * 0.1

    out = resnet_block(x, w1, b1, w2, b2)
    out = jax.block_until_ready(out)

    ref = _reference(x, w1, b1, w2, b2)
    assert out.shape == (N, C, H, W)
    # bf16 matmul operands (f32 accumulation) -> looser tolerance than pure f32
    assert jnp.allclose(out, ref, atol=3e-2, rtol=3e-2), "mismatch vs JAX reference"

    print("KERNEL_OK")
</pallas_src>

<mosaic_0001>
module attributes {stable_mosaic.version = 11 : i64} {
  func.func @resnet_block_kernel(%arg0: i32, %arg1: memref<1x16x16x128xf32, #tpu.memory_space<vmem>>, %arg2: memref<9x128x128xbf16, #tpu.memory_space<vmem>>, %arg3: memref<1x128xf32, #tpu.memory_space<vmem>>, %arg4: memref<9x128x128xbf16, #tpu.memory_space<vmem>>, %arg5: memref<1x128xf32, #tpu.memory_space<vmem>>, %arg6: memref<1x16x16x128xf32, #tpu.memory_space<vmem>>, %arg7: memref<18x18x128xbf16, #tpu.memory_space<vmem>>, %arg8: memref<18x18x128xbf16, #tpu.memory_space<vmem>>) attributes {dimension_semantics = [#tpu.dimension_semantics<parallel>], iteration_bounds = array<i64: 2>, scalar_prefetch = 0 : i64, scratch_operands = 2 : i64, tpu.core_type = #tpu.core_type<tc>, window_params = [{transform_indices = @transform_0, window_bounds = array<i64: 1, 16, 16, 128>}, {pipeline_mode = #tpu.pipeline_mode<synchronous>, transform_indices = @transform_1, window_bounds = array<i64: 9, 128, 128>}, {pipeline_mode = #tpu.pipeline_mode<synchronous>, transform_indices = @transform_2, window_bounds = array<i64: 1, 128>}, {pipeline_mode = #tpu.pipeline_mode<synchronous>, transform_indices = @transform_3, window_bounds = array<i64: 9, 128, 128>}, {pipeline_mode = #tpu.pipeline_mode<synchronous>, transform_indices = @transform_4, window_bounds = array<i64: 1, 128>}, {transform_indices = @transform_5, window_bounds = array<i64: 1, 16, 16, 128>}]} {
    %c0_i32 = arith.constant 0 : i32
    %0 = arith.cmpi eq, %arg0, %c0_i32 : i32
    %1 = arith.extui %0 : i1 to i32
    %c0_i32_0 = arith.constant 0 : i32
    %2 = arith.cmpi ne, %1, %c0_i32_0 : i32
    scf.if %2 {
      %cst_142 = arith.constant 0.000000e+00 : bf16
      %135 = vector.broadcast %cst_142 : bf16 to vector<1x18x128xbf16>
      %cst_143 = arith.constant 0.000000e+00 : bf16
      %136 = vector.broadcast %cst_143 : bf16 to vector<16x1x128xbf16>
      %c0_144 = arith.constant 0 : index
      %c0_145 = arith.constant 0 : index
      %c0_146 = arith.constant 0 : index
      %137 = vector.load %arg7[%c0_144, %c0_145, %c0_146] : memref<18x18x128xbf16, #tpu.memory_space<vmem>>, vector<1x18x128xbf16>
      tpu.vector_store %arg7[%c0_144, %c0_145, %c0_146], %135 {strides = array<i32>} : memref<18x18x128xbf16, #tpu.memory_space<vmem>>, vector<1x18x128xbf16>,
      %c17 = arith.constant 17 : index
      %c0_147 = arith.constant 0 : index
      %c0_148 = arith.constant 0 : index
      %138 = vector.load %arg7[%c17, %c0_147, %c0_148] : memref<18x18x128xbf16, #tpu.memory_space<vmem>>, vector<1x18x128xbf16>
      tpu.vector_store %arg7[%c17, %c0_147, %c0_148], %135 {strides = array<i32>} : memref<18x18x128xbf16, #tpu.memory_space<vmem>>, vector<1x18x128xbf16>,
      %c1_149 = arith.constant 1 : index
      %c0_150 = arith.constant 0 : index
      %c0_151 = arith.constant 0 : index
      %139 = vector.load %arg7[%c1_149, %c0_150, %c0_151] : memref<18x18x128xbf16, #tpu.memory_space<vmem>>, vector<16x1x128xbf16>
      tpu.vector_store %arg7[%c1_149, %c0_150, %c0_151], %136 {strides = array<i32>} : memref<18x18x128xbf16, #tpu.memory_space<vmem>>, vector<16x1x128xbf16>,
      %c1_152 = arith.constant 1 : index
      %c17_153 = arith.constant 17 : index
      %c0_154 = arith.constant 0 : index
      %140 = vector.load %arg7[%c1_152, %c17_153, %c0_154] : memref<18x18x128xbf16, #tpu.memory_space<vmem>>, vector<16x1x128xbf16>
      tpu.vector_store %arg7[%c1_152, %c17_153, %c0_154], %136 {strides = array<i32>} : memref<18x18x128xbf16, #tpu.memory_space<vmem>>, vector<16x1x128xbf16>,
      %c0_155 = arith.constant 0 : index
      %c0_156 = arith.constant 0 : index
      %c0_157 = arith.constant 0 : index
      %141 = vector.load %arg8[%c0_155, %c0_156, %c0_157] : memref<18x18x128xbf16, #tpu.memory_space<vmem>>, vector<1x18x128xbf16>
      tpu.vector_store %arg8[%c0_155, %c0_156, %c0_157], %135 {strides = array<i32>} : memref<18x18x128xbf16, #tpu.memory_space<vmem>>, vector<1x18x128xbf16>,
      %c17_158 = arith.constant 17 : index
      %c0_159 = arith.constant 0 : index
      %c0_160 = arith.constant 0 : index
      %142 = vector.load %arg8[%c17_158, %c0_159, %c0_160] : memref<18x18x128xbf16, #tpu.memory_space<vmem>>, vector<1x18x128xbf16>
      tpu.vector_store %arg8[%c17_158, %c0_159, %c0_160], %135 {strides = array<i32>} : memref<18x18x128xbf16, #tpu.memory_space<vmem>>, vector<1x18x128xbf16>,
      %c1_161 = arith.constant 1 : index
      %c0_162 = arith.constant 0 : index
      %c0_163 = arith.constant 0 : index
      %143 = vector.load %arg8[%c1_161, %c0_162, %c0_163] : memref<18x18x128xbf16, #tpu.memory_space<vmem>>, vector<16x1x128xbf16>
      tpu.vector_store %arg8[%c1_161, %c0_162, %c0_163], %136 {strides = array<i32>} : memref<18x18x128xbf16, #tpu.memory_space<vmem>>, vector<16x1x128xbf16>,
      %c1_164 = arith.constant 1 : index
      %c17_165 = arith.constant 17 : index
      %c0_166 = arith.constant 0 : index
      %144 = vector.load %arg8[%c1_164, %c17_165, %c0_166] : memref<18x18x128xbf16, #tpu.memory_space<vmem>>, vector<16x1x128xbf16>
      tpu.vector_store %arg8[%c1_164, %c17_165, %c0_166], %136 {strides = array<i32>} : memref<18x18x128xbf16, #tpu.memory_space<vmem>>, vector<16x1x128xbf16>,
    } else {
    }
    %c0 = arith.constant 0 : index
    %c0_1 = arith.constant 0 : index
    %c0_2 = arith.constant 0 : index
    %c0_3 = arith.constant 0 : index
    %3 = vector.load %arg1[%c0, %c0_1, %c0_2, %c0_3] : memref<1x16x16x128xf32, #tpu.memory_space<vmem>>, vector<1x16x16x128xf32>
    %4 = vector.shape_cast %3 : vector<1x16x16x128xf32> to vector<16x16x128xf32>
    %5 = arith.truncf %4 : vector<16x16x128xf32> to vector<16x16x128xbf16>
    %c1 = arith.constant 1 : index
    %c1_4 = arith.constant 1 : index
    %c0_5 = arith.constant 0 : index
    %6 = vector.load %arg7[%c1, %c1_4, %c0_5] : memref<18x18x128xbf16, #tpu.memory_space<vmem>>, vector<16x16x128xbf16>
    tpu.vector_store %arg7[%c1, %c1_4, %c0_5], %5 {strides = array<i32>} : memref<18x18x128xbf16, #tpu.memory_space<vmem>>, vector<16x16x128xbf16>,
    %cst = arith.constant 0.000000e+00 : f32
    %7 = vector.broadcast %cst : f32 to vector<256x128xf32>
    %c0_6 = arith.constant 0 : index
    %c0_7 = arith.constant 0 : index
    %c0_8 = arith.constant 0 : index
    %8 = vector.load %arg7[%c0_6, %c0_7, %c0_8] : memref<18x18x128xbf16, #tpu.memory_space<vmem>>, vector<16x16x128xbf16>
    %9 = vector.shape_cast %8 : vector<16x16x128xbf16> to vector<256x128xbf16>
    %c0_9 = arith.constant 0 : index
    %c0_10 = arith.constant 0 : index
    %c0_11 = arith.constant 0 : index
    %10 = vector.load %arg2[%c0_9, %c0_10, %c0_11] : memref<9x128x128xbf16, #tpu.memory_space<vmem>>, vector<1x128x128xbf16>
    %11 = vector.shape_cast %10 : vector<1x128x128xbf16> to vector<128x128xbf16>
    %cst_12 = arith.constant dense<0.000000e+00> : vector<256x128xf32>
    %12 = tpu.matmul %9, %11, %cst_12 {dimension_numbers = #tpu.dot_dimension_numbers<[1], [0], [0], [1], [0, 0, 1, 1], [], []>} : vector<256x128xbf16>, vector<128x128xbf16>, vector<256x128xf32> -> vector<256x128xf32>
    %13 = arith.addf %7, %12 : vector<256x128xf32>
    %c0_13 = arith.constant 0 : index
    %c1_14 = arith.constant 1 : index
    %c0_15 = arith.constant 0 : index
    %14 = vector.load %arg7[%c0_13, %c1_14, %c0_15] : memref<18x18x128xbf16, #tpu.memory_space<vmem>>, vector<16x16x128xbf16>
    %15 = vector.shape_cast %14 : vector<16x16x128xbf16> to vector<256x128xbf16>
    %c1_16 = arith.constant 1 : index
    %c0_17 = arith.constant 0 : index
    %c0_18 = arith.constant 0 : index
    %16 = vector.load %arg2[%c1_16, %c0_17, %c0_18] : memref<9x128x128xbf16, #tpu.memory_space<vmem>>, vector<1x128x128xbf16>
    %17 = vector.shape_cast %16 : vector<1x128x128xbf16> to vector<128x128xbf16>
    %cst_19 = arith.constant dense<0.000000e+00> : vector<256x128xf32>
    %18 = tpu.matmul %15, %17, %cst_19 {dimension_numbers = #tpu.dot_dimension_numbers<[1], [0], [0], [1], [0, 0, 1, 1], [], []>} : vector<256x128xbf16>, vector<128x128xbf16>, vector<256x128xf32> -> vector<256x128xf32>
    %19 = arith.addf %13, %18 : vector<256x128xf32>
    %c0_20 = arith.constant 0 : index
    %c2 = arith.constant 2 : index
    %c0_21 = arith.constant 0 : index
    %20 = vector.load %arg7[%c0_20, %c2, %c0_21] : memref<18x18x128xbf16, #tpu.memory_space<vmem>>, vector<16x16x128xbf16>
    %21 = vector.shape_cast %20 : vector<16x16x128xbf16> to vector<256x128xbf16>
    %c2_22 = arith.constant 2 : index
    %c0_23 = arith.constant 0 : index
    %c0_24 = arith.constant 0 : index
    %22 = vector.load %arg2[%c2_22, %c0_23, %c0_24] : memref<9x128x128xbf16, #tpu.memory_space<vmem>>, vector<1x128x128xbf16>
    %23 = vector.shape_cast %22 : vector<1x128x128xbf16> to vector<128x128xbf16>
    %cst_25 = arith.constant dense<0.000000e+00> : vector<256x128xf32>
    %24 = tpu.matmul %21, %23, %cst_25 {dimension_numbers = #tpu.dot_dimension_numbers<[1], [0], [0], [1], [0, 0, 1, 1], [], []>} : vector<256x128xbf16>, vector<128x128xbf16>, vector<256x128xf32> -> vector<256x128xf32>
    %25 = arith.addf %19, %24 : vector<256x128xf32>
    %c1_26 = arith.constant 1 : index
    %c0_27 = arith.constant 0 : index
    %c0_28 = arith.constant 0 : index
    %26 = vector.load %arg7[%c1_26, %c0_27, %c0_28] : memref<18x18x128xbf16, #tpu.memory_space<vmem>>, vector<16x16x128xbf16>
    %27 = vector.shape_cast %26 : vector<16x16x128xbf16> to vector<256x128xbf16>
    %c3 = arith.constant 3 : index
    %c0_29 = arith.constant 0 : index
    %c0_30 = arith.constant 0 : index
    %28 = vector.load %arg2[%c3, %c0_29, %c0_30] : memref<9x128x128xbf16, #tpu.memory_space<vmem>>, vector<1x128x128xbf16>
    %29 = vector.shape_cast %28 : vector<1x128x128xbf16> to vector<128x128xbf16>
    %cst_31 = arith.constant dense<0.000000e+00> : vector<256x128xf32>
    %30 = tpu.matmul %27, %29, %cst_31 {dimension_numbers = #tpu.dot_dimension_numbers<[1], [0], [0], [1], [0, 0, 1, 1], [], []>} : vector<256x128xbf16>, vector<128x128xbf16>, vector<256x128xf32> -> vector<256x128xf32>
    %31 = arith.addf %25, %30 : vector<256x128xf32>
    %c1_32 = arith.constant 1 : index
    %c1_33 = arith.constant 1 : index
    %c0_34 = arith.constant 0 : index
    %32 = vector.load %arg7[%c1_32, %c1_33, %c0_34] : memref<18x18x128xbf16, #tpu.memory_space<vmem>>, vector<16x16x128xbf16>
    %33 = vector.shape_cast %32 : vector<16x16x128xbf16> to vector<256x128xbf16>
    %c4 = arith.constant 4 : index
    %c0_35 = arith.constant 0 : index
    %c0_36 = arith.constant 0 : index
    %34 = vector.load %arg2[%c4, %c0_35, %c0_36] : memref<9x128x128xbf16, #tpu.memory_space<vmem>>, vector<1x128x128xbf16>
    %35 = vector.shape_cast %34 : vector<1x128x128xbf16> to vector<128x128xbf16>
    %cst_37 = arith.constant dense<0.000000e+00> : vector<256x128xf32>
    %36 = tpu.matmul %33, %35, %cst_37 {dimension_numbers = #tpu.dot_dimension_numbers<[1], [0], [0], [1], [0, 0, 1, 1], [], []>} : vector<256x128xbf16>, vector<128x128xbf16>, vector<256x128xf32> -> vector<256x128xf32>
    %37 = arith.addf %31, %36 : vector<256x128xf32>
    %c1_38 = arith.constant 1 : index
    %c2_39 = arith.constant 2 : index
    %c0_40 = arith.constant 0 : index
    %38 = vector.load %arg7[%c1_38, %c2_39, %c0_40] : memref<18x18x128xbf16, #tpu.memory_space<vmem>>, vector<16x16x128xbf16>
    %39 = vector.shape_cast %38 : vector<16x16x128xbf16> to vector<256x128xbf16>
    %c5 = arith.constant 5 : index
    %c0_41 = arith.constant 0 : index
    %c0_42 = arith.constant 0 : index
    %40 = vector.load %arg2[%c5, %c0_41, %c0_42] : memref<9x128x128xbf16, #tpu.memory_space<vmem>>, vector<1x128x128xbf16>
    %41 = vector.shape_cast %40 : vector<1x128x128xbf16> to vector<128x128xbf16>
    %cst_43 = arith.constant dense<0.000000e+00> : vector<256x128xf32>
    %42 = tpu.matmul %39, %41, %cst_43 {dimension_numbers = #tpu.dot_dimension_numbers<[1], [0], [0], [1], [0, 0, 1, 1], [], []>} : vector<256x128xbf16>, vector<128x128xbf16>, vector<256x128xf32> -> vector<256x128xf32>
    %43 = arith.addf %37, %42 : vector<256x128xf32>
    %c2_44 = arith.constant 2 : index
    %c0_45 = arith.constant 0 : index
    %c0_46 = arith.constant 0 : index
    %44 = vector.load %arg7[%c2_44, %c0_45, %c0_46] : memref<18x18x128xbf16, #tpu.memory_space<vmem>>, vector<16x16x128xbf16>
    %45 = vector.shape_cast %44 : vector<16x16x128xbf16> to vector<256x128xbf16>
    %c6 = arith.constant 6 : index
    %c0_47 = arith.constant 0 : index
    %c0_48 = arith.constant 0 : index
    %46 = vector.load %arg2[%c6, %c0_47, %c0_48] : memref<9x128x128xbf16, #tpu.memory_space<vmem>>, vector<1x128x128xbf16>
    %47 = vector.shape_cast %46 : vector<1x128x128xbf16> to vector<128x128xbf16>
    %cst_49 = arith.constant dense<0.000000e+00> : vector<256x128xf32>
    %48 = tpu.matmul %45, %47, %cst_49 {dimension_numbers = #tpu.dot_dimension_numbers<[1], [0], [0], [1], [0, 0, 1, 1], [], []>} : vector<256x128xbf16>, vector<128x128xbf16>, vector<256x128xf32> -> vector<256x128xf32>
    %49 = arith.addf %43, %48 : vector<256x128xf32>
    %c2_50 = arith.constant 2 : index
    %c1_51 = arith.constant 1 : index
    %c0_52 = arith.constant 0 : index
    %50 = vector.load %arg7[%c2_50, %c1_51, %c0_52] : memref<18x18x128xbf16, #tpu.memory_space<vmem>>, vector<16x16x128xbf16>
    %51 = vector.shape_cast %50 : vector<16x16x128xbf16> to vector<256x128xbf16>
    %c7 = arith.constant 7 : index
    %c0_53 = arith.constant 0 : index
    %c0_54 = arith.constant 0 : index
    %52 = vector.load %arg2[%c7, %c0_53, %c0_54] : memref<9x128x128xbf16, #tpu.memory_space<vmem>>, vector<1x128x128xbf16>
    %53 = vector.shape_cast %52 : vector<1x128x128xbf16> to vector<128x128xbf16>
    %cst_55 = arith.constant dense<0.000000e+00> : vector<256x128xf32>
    %54 = tpu.matmul %51, %53, %cst_55 {dimension_numbers = #tpu.dot_dimension_numbers<[1], [0], [0], [1], [0, 0, 1, 1], [], []>} : vector<256x128xbf16>, vector<128x128xbf16>, vector<256x128xf32> -> vector<256x128xf32>
    %55 = arith.addf %49, %54 : vector<256x128xf32>
    %c2_56 = arith.constant 2 : index
    %c2_57 = arith.constant 2 : index
    %c0_58 = arith.constant 0 : index
    %56 = vector.load %arg7[%c2_56, %c2_57, %c0_58] : memref<18x18x128xbf16, #tpu.memory_space<vmem>>, vector<16x16x128xbf16>
    %57 = vector.shape_cast %56 : vector<16x16x128xbf16> to vector<256x128xbf16>
    %c8 = arith.constant 8 : index
    %c0_59 = arith.constant 0 : index
    %c0_60 = arith.constant 0 : index
    %58 = vector.load %arg2[%c8, %c0_59, %c0_60] : memref<9x128x128xbf16, #tpu.memory_space<vmem>>, vector<1x128x128xbf16>
    %59 = vector.shape_cast %58 : vector<1x128x128xbf16> to vector<128x128xbf16>
    %cst_61 = arith.constant dense<0.000000e+00> : vector<256x128xf32>
    %60 = tpu.matmul %57, %59, %cst_61 {dimension_numbers = #tpu.dot_dimension_numbers<[1], [0], [0], [1], [0, 0, 1, 1], [], []>} : vector<256x128xbf16>, vector<128x128xbf16>, vector<256x128xf32> -> vector<256x128xf32>
    %61 = arith.addf %55, %60 : vector<256x128xf32>
    %c0_62 = arith.constant 0 : index
    %c0_63 = arith.constant 0 : index
    %62 = vector.load %arg3[%c0_62, %c0_63] : memref<1x128xf32, #tpu.memory_space<vmem>>, vector<1x128xf32>
    %63 = vector.broadcast %62 : vector<1x128xf32> to vector<256x128xf32>
    %64 = arith.addf %61, %63 : vector<256x128xf32>
    %cst_64 = arith.constant 0.000000e+00 : f32
    %65 = vector.broadcast %cst_64 : f32 to vector<256x128xf32>
    %66 = arith.maximumf %64, %65 : vector<256x128xf32>
    %67 = vector.shape_cast %66 : vector<256x128xf32> to vector<16x16x128xf32>
    %68 = arith.truncf %67 : vector<16x16x128xf32> to vector<16x16x128xbf16>
    %c1_65 = arith.constant 1 : index
    %c1_66 = arith.constant 1 : index
    %c0_67 = arith.constant 0 : index
    %69 = vector.load %arg8[%c1_65, %c1_66, %c0_67] : memref<18x18x128xbf16, #tpu.memory_space<vmem>>, vector<16x16x128xbf16>
    tpu.vector_store %arg8[%c1_65, %c1_66, %c0_67], %68 {strides = array<i32>} : memref<18x18x128xbf16, #tpu.memory_space<vmem>>, vector<16x16x128xbf16>,
    %cst_68 = arith.constant 0.000000e+00 : f32
    %70 = vector.broadcast %cst_68 : f32 to vector<256x128xf32>
    %c0_69 = arith.constant 0 : index
    %c0_70 = arith.constant 0 : index
    %c0_71 = arith.constant 0 : index
    %71 = vector.load %arg8[%c0_69, %c0_70, %c0_71] : memref<18x18x128xbf16, #tpu.memory_space<vmem>>, vector<16x16x128xbf16>
    %72 = vector.shape_cast %71 : vector<16x16x128xbf16> to vector<256x128xbf16>
    %c0_72 = arith.constant 0 : index
    %c0_73 = arith.constant 0 : index
    %c0_74 = arith.constant 0 : index
    %73 = vector.load %arg4[%c0_72, %c0_73, %c0_74] : memref<9x128x128xbf16, #tpu.memory_space<vmem>>, vector<1x128x128xbf16>
    %74 = vector.shape_cast %73 : vector<1x128x128xbf16> to vector<128x128xbf16>
    %cst_75 = arith.constant dense<0.000000e+00> : vector<256x128xf32>
    %75 = tpu.matmul %72, %74, %cst_75 {dimension_numbers = #tpu.dot_dimension_numbers<[1], [0], [0], [1], [0, 0, 1, 1], [], []>} : vector<256x128xbf16>, vector<128x128xbf16>, vector<256x128xf32> -> vector<256x128xf32>
    %76 = arith.addf %70, %75 : vector<256x128xf32>
    %c0_76 = arith.constant 0 : index
    %c1_77 = arith.constant 1 : index
    %c0_78 = arith.constant 0 : index
    %77 = vector.load %arg8[%c0_76, %c1_77, %c0_78] : memref<18x18x128xbf16, #tpu.memory_space<vmem>>, vector<16x16x128xbf16>
    %78 = vector.shape_cast %77 : vector<16x16x128xbf16> to vector<256x128xbf16>
    %c1_79 = arith.constant 1 : index
    %c0_80 = arith.constant 0 : index
    %c0_81 = arith.constant 0 : index
    %79 = vector.load %arg4[%c1_79, %c0_80, %c0_81] : memref<9x128x128xbf16, #tpu.memory_space<vmem>>, vector<1x128x128xbf16>
    %80 = vector.shape_cast %79 : vector<1x128x128xbf16> to vector<128x128xbf16>
    %cst_82 = arith.constant dense<0.000000e+00> : vector<256x128xf32>
    %81 = tpu.matmul %78, %80, %cst_82 {dimension_numbers = #tpu.dot_dimension_numbers<[1], [0], [0], [1], [0, 0, 1, 1], [], []>} : vector<256x128xbf16>, vector<128x128xbf16>, vector<256x128xf32> -> vector<256x128xf32>
    %82 = arith.addf %76, %81 : vector<256x128xf32>
    %c0_83 = arith.constant 0 : index
    %c2_84 = arith.constant 2 : index
    %c0_85 = arith.constant 0 : index
    %83 = vector.load %arg8[%c0_83, %c2_84, %c0_85] : memref<18x18x128xbf16, #tpu.memory_space<vmem>>, vector<16x16x128xbf16>
    %84 = vector.shape_cast %83 : vector<16x16x128xbf16> to vector<256x128xbf16>
    %c2_86 = arith.constant 2 : index
    %c0_87 = arith.constant 0 : index
    %c0_88 = arith.constant 0 : index
    %85 = vector.load %arg4[%c2_86, %c0_87, %c0_88] : memref<9x128x128xbf16, #tpu.memory_space<vmem>>, vector<1x128x128xbf16>
    %86 = vector.shape_cast %85 : vector<1x128x128xbf16> to vector<128x128xbf16>
    %cst_89 = arith.constant dense<0.000000e+00> : vector<256x128xf32>
    %87 = tpu.matmul %84, %86, %cst_89 {dimension_numbers = #tpu.dot_dimension_numbers<[1], [0], [0], [1], [0, 0, 1, 1], [], []>} : vector<256x128xbf16>, vector<128x128xbf16>, vector<256x128xf32> -> vector<256x128xf32>
    %88 = arith.addf %82, %87 : vector<256x128xf32>
    %c1_90 = arith.constant 1 : index
    %c0_91 = arith.constant 0 : index
    %c0_92 = arith.constant 0 : index
    %89 = vector.load %arg8[%c1_90, %c0_91, %c0_92] : memref<18x18x128xbf16, #tpu.memory_space<vmem>>, vector<16x16x128xbf16>
    %90 = vector.shape_cast %89 : vector<16x16x128xbf16> to vector<256x128xbf16>
    %c3_93 = arith.constant 3 : index
    %c0_94 = arith.constant 0 : index
    %c0_95 = arith.constant 0 : index
    %91 = vector.load %arg4[%c3_93, %c0_94, %c0_95] : memref<9x128x128xbf16, #tpu.memory_space<vmem>>, vector<1x128x128xbf16>
    %92 = vector.shape_cast %91 : vector<1x128x128xbf16> to vector<128x128xbf16>
    %cst_96 = arith.constant dense<0.000000e+00> : vector<256x128xf32>
    %93 = tpu.matmul %90, %92, %cst_96 {dimension_numbers = #tpu.dot_dimension_numbers<[1], [0], [0], [1], [0, 0, 1, 1], [], []>} : vector<256x128xbf16>, vector<128x128xbf16>, vector<256x128xf32> -> vector<256x128xf32>
    %94 = arith.addf %88, %93 : vector<256x128xf32>
    %c1_97 = arith.constant 1 : index
    %c1_98 = arith.constant 1 : index
    %c0_99 = arith.constant 0 : index
    %95 = vector.load %arg8[%c1_97, %c1_98, %c0_99] : memref<18x18x128xbf16, #tpu.memory_space<vmem>>, vector<16x16x128xbf16>
    %96 = vector.shape_cast %95 : vector<16x16x128xbf16> to vector<256x128xbf16>
    %c4_100 = arith.constant 4 : index
    %c0_101 = arith.constant 0 : index
    %c0_102 = arith.constant 0 : index
    %97 = vector.load %arg4[%c4_100, %c0_101, %c0_102] : memref<9x128x128xbf16, #tpu.memory_space<vmem>>, vector<1x128x128xbf16>
    %98 = vector.shape_cast %97 : vector<1x128x128xbf16> to vector<128x128xbf16>
    %cst_103 = arith.constant dense<0.000000e+00> : vector<256x128xf32>
    %99 = tpu.matmul %96, %98, %cst_103 {dimension_numbers = #tpu.dot_dimension_numbers<[1], [0], [0], [1], [0, 0, 1, 1], [], []>} : vector<256x128xbf16>, vector<128x128xbf16>, vector<256x128xf32> -> vector<256x128xf32>
    %100 = arith.addf %94, %99 : vector<256x128xf32>
    %c1_104 = arith.constant 1 : index
    %c2_105 = arith.constant 2 : index
    %c0_106 = arith.constant 0 : index
    %101 = vector.load %arg8[%c1_104, %c2_105, %c0_106] : memref<18x18x128xbf16, #tpu.memory_space<vmem>>, vector<16x16x128xbf16>
    %102 = vector.shape_cast %101 : vector<16x16x128xbf16> to vector<256x128xbf16>
    %c5_107 = arith.constant 5 : index
    %c0_108 = arith.constant 0 : index
    %c0_109 = arith.constant 0 : index
    %103 = vector.load %arg4[%c5_107, %c0_108, %c0_109] : memref<9x128x128xbf16, #tpu.memory_space<vmem>>, vector<1x128x128xbf16>
    %104 = vector.shape_cast %103 : vector<1x128x128xbf16> to vector<128x128xbf16>
    %cst_110 = arith.constant dense<0.000000e+00> : vector<256x128xf32>
    %105 = tpu.matmul %102, %104, %cst_110 {dimension_numbers = #tpu.dot_dimension_numbers<[1], [0], [0], [1], [0, 0, 1, 1], [], []>} : vector<256x128xbf16>, vector<128x128xbf16>, vector<256x128xf32> -> vector<256x128xf32>
    %106 = arith.addf %100, %105 : vector<256x128xf32>
    %c2_111 = arith.constant 2 : index
    %c0_112 = arith.constant 0 : index
    %c0_113 = arith.constant 0 : index
    %107 = vector.load %arg8[%c2_111, %c0_112, %c0_113] : memref<18x18x128xbf16, #tpu.memory_space<vmem>>, vector<16x16x128xbf16>
    %108 = vector.shape_cast %107 : vector<16x16x128xbf16> to vector<256x128xbf16>
    %c6_114 = arith.constant 6 : index
    %c0_115 = arith.constant 0 : index
    %c0_116 = arith.constant 0 : index
    %109 = vector.load %arg4[%c6_114, %c0_115, %c0_116] : memref<9x128x128xbf16, #tpu.memory_space<vmem>>, vector<1x128x128xbf16>
    %110 = vector.shape_cast %109 : vector<1x128x128xbf16> to vector<128x128xbf16>
    %cst_117 = arith.constant dense<0.000000e+00> : vector<256x128xf32>
    %111 = tpu.matmul %108, %110, %cst_117 {dimension_numbers = #tpu.dot_dimension_numbers<[1], [0], [0], [1], [0, 0, 1, 1], [], []>} : vector<256x128xbf16>, vector<128x128xbf16>, vector<256x128xf32> -> vector<256x128xf32>
    %112 = arith.addf %106, %111 : vector<256x128xf32>
    %c2_118 = arith.constant 2 : index
    %c1_119 = arith.constant 1 : index
    %c0_120 = arith.constant 0 : index
    %113 = vector.load %arg8[%c2_118, %c1_119, %c0_120] : memref<18x18x128xbf16, #tpu.memory_space<vmem>>, vector<16x16x128xbf16>
    %114 = vector.shape_cast %113 : vector<16x16x128xbf16> to vector<256x128xbf16>
    %c7_121 = arith.constant 7 : index
    %c0_122 = arith.constant 0 : index
    %c0_123 = arith.constant 0 : index
    %115 = vector.load %arg4[%c7_121, %c0_122, %c0_123] : memref<9x128x128xbf16, #tpu.memory_space<vmem>>, vector<1x128x128xbf16>
    %116 = vector.shape_cast %115 : vector<1x128x128xbf16> to vector<128x128xbf16>
    %cst_124 = arith.constant dense<0.000000e+00> : vector<256x128xf32>
    %117 = tpu.matmul %114, %116, %cst_124 {dimension_numbers = #tpu.dot_dimension_numbers<[1], [0], [0], [1], [0, 0, 1, 1], [], []>} : vector<256x128xbf16>, vector<128x128xbf16>, vector<256x128xf32> -> vector<256x128xf32>
    %118 = arith.addf %112, %117 : vector<256x128xf32>
    %c2_125 = arith.constant 2 : index
    %c2_126 = arith.constant 2 : index
    %c0_127 = arith.constant 0 : index
    %119 = vector.load %arg8[%c2_125, %c2_126, %c0_127] : memref<18x18x128xbf16, #tpu.memory_space<vmem>>, vector<16x16x128xbf16>
    %120 = vector.shape_cast %119 : vector<16x16x128xbf16> to vector<256x128xbf16>
    %c8_128 = arith.constant 8 : index
    %c0_129 = arith.constant 0 : index
    %c0_130 = arith.constant 0 : index
    %121 = vector.load %arg4[%c8_128, %c0_129, %c0_130] : memref<9x128x128xbf16, #tpu.memory_space<vmem>>, vector<1x128x128xbf16>
    %122 = vector.shape_cast %121 : vector<1x128x128xbf16> to vector<128x128xbf16>
    %cst_131 = arith.constant dense<0.000000e+00> : vector<256x128xf32>
    %123 = tpu.matmul %120, %122, %cst_131 {dimension_numbers = #tpu.dot_dimension_numbers<[1], [0], [0], [1], [0, 0, 1, 1], [], []>} : vector<256x128xbf16>, vector<128x128xbf16>, vector<256x128xf32> -> vector<256x128xf32>
    %124 = arith.addf %118, %123 : vector<256x128xf32>
    %c0_132 = arith.constant 0 : index
    %c0_133 = arith.constant 0 : index
    %125 = vector.load %arg5[%c0_132, %c0_133] : memref<1x128xf32, #tpu.memory_space<vmem>>, vector<1x128xf32>
    %126 = vector.broadcast %125 : vector<1x128xf32> to vector<256x128xf32>
    %127 = arith.addf %124, %126 : vector<256x128xf32>
    %c0_134 = arith.constant 0 : index
    %c0_135 = arith.constant 0 : index
    %c0_136 = arith.constant 0 : index
    %c0_137 = arith.constant 0 : index
    %128 = vector.load %arg1[%c0_134, %c0_135, %c0_136, %c0_137] : memref<1x16x16x128xf32, #tpu.memory_space<vmem>>, vector<1x16x16x128xf32>
    %129 = vector.shape_cast %128 : vector<1x16x16x128xf32> to vector<16x16x128xf32>
    %130 = vector.shape_cast %127 : vector<256x128xf32> to vector<16x16x128xf32>
    %131 = arith.addf %129, %130 : vector<16x16x128xf32>
    %c0_138 = arith.constant 0 : index
    %c0_139 = arith.constant 0 : index
    %c0_140 = arith.constant 0 : index
    %c0_141 = arith.constant 0 : index
    %132 = vector.load %arg6[%c0_138, %c0_139, %c0_140, %c0_141] : memref<1x16x16x128xf32, #tpu.memory_space<vmem>>, vector<1x16x16x128xf32>
    %133 = vector.shape_cast %132 : vector<1x16x16x128xf32> to vector<16x16x128xf32>
    %134 = vector.shape_cast %131 : vector<16x16x128xf32> to vector<1x16x16x128xf32>
    tpu.vector_store %arg6[%c0_138, %c0_139, %c0_140, %c0_141], %134 {strides = array<i32>} : memref<1x16x16x128xf32, #tpu.memory_space<vmem>>, vector<1x16x16x128xf32>,
    return
  }
  func.func @transform_0(%arg0: i32) -> (i32, i32, i32, i32) {
    %c0_i32 = arith.constant 0 : i32
    %c0_i32_0 = arith.constant 0 : i32
    %c0_i32_1 = arith.constant 0 : i32
    %c0_i32_2 = arith.constant 0 : i32
    return %arg0, %c0_i32, %c0_i32_0, %c0_i32_1 : i32, i32, i32, i32
  }
  func.func @transform_1(%arg0: i32) -> (i32, i32, i32) {
    %c0_i32 = arith.constant 0 : i32
    %c0_i32_0 = arith.constant 0 : i32
    %c0_i32_1 = arith.constant 0 : i32
    %c0_i32_2 = arith.constant 0 : i32
    return %c0_i32, %c0_i32_0, %c0_i32_1 : i32, i32, i32
  }
  func.func @transform_2(%arg0: i32) -> (i32, i32) {
    %c0_i32 = arith.constant 0 : i32
    %c0_i32_0 = arith.constant 0 : i32
    %c0_i32_1 = arith.constant 0 : i32
    return %c0_i32, %c0_i32_0 : i32, i32
  }
  func.func @transform_3(%arg0: i32) -> (i32, i32, i32) {
    %c0_i32 = arith.constant 0 : i32
    %c0_i32_0 = arith.constant 0 : i32
    %c0_i32_1 = arith.constant 0 : i32
    %c0_i32_2 = arith.constant 0 : i32
    return %c0_i32, %c0_i32_0, %c0_i32_1 : i32, i32, i32
  }
  func.func @transform_4(%arg0: i32) -> (i32, i32) {
    %c0_i32 = arith.constant 0 : i32
    %c0_i32_0 = arith.constant 0 : i32
    %c0_i32_1 = arith.constant 0 : i32
    return %c0_i32, %c0_i32_0 : i32, i32
  }
  func.func @transform_5(%arg0: i32) -> (i32, i32, i32, i32) {
    %c0_i32 = arith.constant 0 : i32
    %c0_i32_0 = arith.constant 0 : i32
    %c0_i32_1 = arith.constant 0 : i32
    %c0_i32_2 = arith.constant 0 : i32
    return %arg0, %c0_i32, %c0_i32_0, %c0_i32_1 : i32, i32, i32, i32
  }
}

</mosaic_0001>

<bundles_post_ra>
// kernel: resnet_block.1
= control target key start
LH: loop header
LB: loop body
LE: loop exit
PB: predicated region body
PF: predicated region fallthrough
CT: control target
= control target key end

     0   :  { %s14507_s18 = smov 0   ;;  %s18194_s0 = inlined_call_operand.vmem [shape: f32[2,16,16,128], index: 0, kind: input, shape index: {}]   ;;  %s18195_s1 = inlined_call_operand.vmem [shape: bf16[9,128,128], index: 1, kind: input, shape index: {}]   ;;  %s18196_s2 = inlined_call_operand.vmem [shape: f32[1,128], index: 2, kind: input, shape index: {}]   ;;  %s18197_s3 = inlined_call_operand.vmem [shape: bf16[9,128,128], index: 3, kind: input, shape index: {}]   ;;  %s18198_s4 = inlined_call_operand.vmem [shape: f32[1,128], index: 4, kind: input, shape index: {}]   ;;  %s18199_s5 = inlined_call_operand.vmem [shape: f32[2,16,16,128], index: 5, kind: output, shape index: {}]  }
   0x1 LB: > { %s11412_s19 = sadd.s32 4294967295, %s14474_s18   ;;  %p11416_p0 = scmp.ge.s32.totalorder %s14474_s18, 1  ;;  %s14474_s18 = sphi %s14507_s18, %s15_s18  }
   0x2   : > { %p187_p1 = scmp.lt.s32.totalorder %s14474_s18, 3 }
   0x4   : > { %p188_p2 = pnand %p11416_p0, %p187_p1 }
   0x6   : > { %191 = sbr.rel (%p188_p2) target bundleno = 1769 (0x6e9), region = 40 }
   0xd   : > { %p215_p3 = scmp.lt.s32.totalorder %s11412_s19, 1  ;;  %p11421_p4 = scmp.ne.s32.totalorder %s11412_s19, 0 }
   0xe   : > { %vm238_vm0 = vcmask (!%p11421_p4), 1040384   ;;  %vm239_vm1 = vsmask.f32 (!%p11421_p4), 256  ;;  %v241_v0 = vld [vmem:[#allocation2 + $0xc] sm:$0x1] (!%p11421_p4)  ;;  %v14476_v1 = vmov (!%p11421_p4), 0  }
   0xf   : > { %s216_s20 = scalar_select %p215_p3, %s11412_s19, 1 }
  0x10   : > { %229 = sbr.rel (%p11421_p4) target bundleno = 75 (0x4b), region = 44  ;;  %230 = vst [vmem:[#allocation2] sm:$0xf] (!%p11421_p4), %v14476_v1  ;;  %231 = vst [vmem:[#allocation2 + $0x4] sm:$0xf] (!%p11421_p4), %v14476_v1 }
  0x11   : > { %s12274_s21 = sshll.u32 %s216_s20, 8  ;;  %232 = vst [vmem:[#allocation2 + $0x8] sm:$0x1] (!%p11421_p4), %v14476_v1  ;;  %234 = vst [vmem:[#allocation2 + $0xcc] sm:$0xf] (!%p11421_p4), %v14476_v1 }
  0x12   : > { %s14518_s24 = scalar_lea.vmem %s18194_s0, %s12274_s21  ;;  %s14523_s27 = scalar_lea.vmem %s18199_s5, %s12274_s21  ;;  %235 = vst [vmem:[#allocation2 + $0xd0] sm:$0xf] (!%p11421_p4), %v14476_v1  ;;  %236 = vst [vmem:[#allocation2 + $0xd4] sm:$0x1] (!%p11421_p4), %v14476_v1  ;;  %v244_v3 = vld [vmem:[#allocation2 + $0x18] sm:$0x1] (!%p11421_p4) }
  0x13   : > { %339 = vst [vmem:[#allocation3] sm:$0xf] (!%p11421_p4), %v14476_v1  ;;  %340 = vst [vmem:[#allocation3 + $0x4] sm:$0xf] (!%p11421_p4), %v14476_v1  ;;  %v247_v4 = vld [vmem:[#allocation2 + $0x24] sm:$0x1] (!%p11421_p4) }
  0x14   : > { %341 = vst [vmem:[#allocation3 + $0x8] sm:$0x1] (!%p11421_p4), %v14476_v1  ;;  %343 = vst [vmem:[#allocation3 + $0xcc] sm:$0xf] (!%p11421_p4), %v14476_v1  ;;  %vm289_vm3 = vsmask.f32 (!%p11421_p4), 7938 }
  0x15   : > { %344 = vst [vmem:[#allocation3 + $0xd0] sm:$0xf] (!%p11421_p4), %v14476_v1  ;;  %345 = vst [vmem:[#allocation3 + $0xd4] sm:$0x1] (!%p11421_p4), %v14476_v1  ;;  %v250_v8 = vld [vmem:[#allocation2 + $0x30] sm:$0x1] (!%p11421_p4) }
  0x16   : > { %vm14527_vm2 = vmand (!%p11421_p4), %vm238_vm0, %vm239_vm1  ;;  %v253_v10 = vld [vmem:[#allocation2 + $0x3c] sm:$0x1] (!%p11421_p4)  ;;  %v256_v11 = vld [vmem:[#allocation2 + $0x48] sm:$0x1] (!%p11421_p4) }
  0x17   : > { %v242_v5 = vsel %vm14527_vm2, 0, %v241_v0  ;;  %v245_v6 = vsel %vm14527_vm2, 0, %v244_v3  ;;  %v248_v7 = vsel %vm14527_vm2, 0, %v247_v4  ;;  %v251_v9 = vsel %vm14527_vm2, 0, %v250_v8  ;;  %v259_v14 = vld [vmem:[#allocation2 + $0x54] sm:$0x1]  ;;  %vm14557_vm4 = vmand %vm238_vm0, %vm289_vm3 }
  0x18   : > { %243 = vst [vmem:[#allocation2 + $0xc] sm:$0x1] %v242_v5  ;;  %246 = vst [vmem:[#allocation2 + $0x18] sm:$0x1] %v245_v6  ;;  %v254_v12 = vsel %vm14527_vm2, 0, %v253_v10  ;;  %v257_v13 = vsel %vm14527_vm2, 0, %v256_v11 }
  0x19   : > { %249 = vst [vmem:[#allocation2 + $0x24] sm:$0x1] %v248_v7  ;;  %252 = vst [vmem:[#allocation2 + $0x30] sm:$0x1] %v251_v9  ;;  %v262_v15 = vld [vmem:[#allocation2 + $0x60] sm:$0x1] }
  0x1a   : > { %255 = vst [vmem:[#allocation2 + $0x3c] sm:$0x1] %v254_v12  ;;  %258 = vst [vmem:[#allocation2 + $0x48] sm:$0x1] %v257_v13  ;;  %v260_v16 = vsel %vm14527_vm2, 0, %v259_v14  ;;  %v263_v17 = vsel %vm14527_vm2, 0, %v262_v15 }
  0x1b   : > { %v265_v18 = vld [vmem:[#allocation2 + $0x6c] sm:$0x1]  ;;  %v268_v19 = vld [vmem:[#allocation2 + $0x78] sm:$0x1]  ;;  %261 = vst [vmem:[#allocation2 + $0x54] sm:$0x1] %v260_v16 }
  0x1c   : > { %264 = vst [vmem:[#allocation2 + $0x60] sm:$0x1] %v263_v17  ;;  %v266_v20 = vsel %vm14527_vm2, 0, %v265_v18  ;;  %v269_v21 = vsel %vm14527_vm2, 0, %v268_v19  ;;  %v271_v22 = vld [vmem:[#allocation2 + $0x84] sm:$0x1] }
  0x1d   : > { %v274_v23 = vld [vmem:[#allocation2 + $0x90] sm:$0x1]  ;;  %267 = vst [vmem:[#allocation2 + $0x6c] sm:$0x1] %v266_v20  ;;  %270 = vst [vmem:[#allocation2 + $0x78] sm:$0x1] %v269_v21 }
  0x1e   : > { %v272_v24 = vsel %vm14527_vm2, 0, %v271_v22  ;;  %v275_v25 = vsel %vm14527_vm2, 0, %v274_v23  ;;  %v277_v26 = vld [vmem:[#allocation2 + $0x9c] sm:$0x1]  ;;  %v280_v27 = vld [vmem:[#allocation2 + $0xa8] sm:$0x1] }
  0x1f   : > { %273 = vst [vmem:[#allocation2 + $0x84] sm:$0x1] %v272_v24  ;;  %276 = vst [vmem:[#allocation2 + $0x90] sm:$0x1] %v275_v25  ;;  %v278_v29 = vsel %vm14527_vm2, 0, %v277_v26  ;;  %v281_v30 = vsel %vm14527_vm2, 0, %v280_v27 }
  0x20   : > { %v283_v31 = vld [vmem:[#allocation2 + $0xb4] sm:$0x1]  ;;  %v286_v32 = vld [vmem:[#allocation2 + $0xc0] sm:$0x1]  ;;  %279 = vst [vmem:[#allocation2 + $0x9c] sm:$0x1] %v278_v29 }
  0x21   : > { %282 = vst [vmem:[#allocation2 + $0xa8] sm:$0x1] %v281_v30  ;;  %v284_v33 = vsel %vm14527_vm2, 0, %v283_v31  ;;  %v287_v34 = vsel %vm14527_vm2, 0, %v286_v32  ;;  %v291_v35 = vld [vmem:[#allocation2 + $0x14] sm:$0x1] }
  0x22   : > { %v294_v36 = vld [vmem:[#allocation2 + $0x20] sm:$0x1]  ;;  %285 = vst [vmem:[#allocation2 + $0xb4] sm:$0x1] %v284_v33  ;;  %288 = vst [vmem:[#allocation2 + $0xc0] sm:$0x1] %v287_v34 }
  0x23   : > { %v292_v37 = vsel %vm14557_vm4, 0, %v291_v35  ;;  %v295_v38 = vsel %vm14557_vm4, 0, %v294_v36  ;;  %v297_v39 = vld [vmem:[#allocation2 + $0x2c] sm:$0x1]  ;;  %v300_v40 = vld [vmem:[#allocation2 + $0x38] sm:$0x1] }
  0x24   : > { %293 = vst [vmem:[#allocation2 + $0x14] sm:$0x1] %v292_v37  ;;  %296 = vst [vmem:[#allocation2 + $0x20] sm:$0x1] %v295_v38  ;;  %v298_v41 = vsel %vm14557_vm4, 0, %v297_v39  ;;  %v301_v42 = vsel %vm14557_vm4, 0, %v300_v40 }
  0x25   : > { %v303_v43 = vld [vmem:[#allocation2 + $0x44] sm:$0x1]  ;;  %v306_v44 = vld [vmem:[#allocation2 + $0x50] sm:$0x1]  ;;  %299 = vst [vmem:[#allocation2 + $0x2c] sm:$0x1] %v298_v41 }
  0x26   : > { %302 = vst [vmem:[#allocation2 + $0x38] sm:$0x1] %v301_v42  ;;  %v304_v45 = vsel %vm14557_vm4, 0, %v303_v43  ;;  %v307_v46 = vsel %vm14557_vm4, 0, %v306_v44  ;;  %v309_v47 = vld [vmem:[#allocation2 + $0x5c] sm:$0x1] }
  0x27   : > { %v312_v48 = vld [vmem:[#allocation2 + $0x68] sm:$0x1]  ;;  %305 = vst [vmem:[#allocation2 + $0x44] sm:$0x1] %v304_v45  ;;  %308 = vst [vmem:[#allocation2 + $0x50] sm:$0x1] %v307_v46 }
  0x28   : > { %v310_v49 = vsel %vm14557_vm4, 0, %v309_v47  ;;  %v313_v50 = vsel %vm14557_vm4, 0, %v312_v48  ;;  %v315_v51 = vld [vmem:[#allocation2 + $0x74] sm:$0x1]  ;;  %v318_v52 = vld [vmem:[#allocation2 + $0x80] sm:$0x1] }
  0x29   : > { %311 = vst [vmem:[#allocation2 + $0x5c] sm:$0x1] %v310_v49  ;;  %314 = vst [vmem:[#allocation2 + $0x68] sm:$0x1] %v313_v50  ;;  %v316_v53 = vsel %vm14557_vm4, 0, %v315_v51  ;;  %v319_v54 = vsel %vm14557_vm4, 0, %v318_v52 }
  0x2a   : > { %v321_v55 = vld [vmem:[#allocation2 + $0x8c] sm:$0x1]  ;;  %v324_v56 = vld [vmem:[#allocation2 + $0x98] sm:$0x1]  ;;  %317 = vst [vmem:[#allocation2 + $0x74] sm:$0x1] %v316_v53 }
  0x2b   : > { %320 = vst [vmem:[#allocation2 + $0x80] sm:$0x1] %v319_v54  ;;  %v322_v57 = vsel %vm14557_vm4, 0, %v321_v55  ;;  %v325_v58 = vsel %vm14557_vm4, 0, %v324_v56  ;;  %v327_v59 = vld [vmem:[#allocation2 + $0xa4] sm:$0x1] }
  0x2c   : > { %v330_v60 = vld [vmem:[#allocation2 + $0xb0] sm:$0x1]  ;;  %323 = vst [vmem:[#allocation2 + $0x8c] sm:$0x1] %v322_v57  ;;  %326 = vst [vmem:[#allocation2 + $0x98] sm:$0x1] %v325_v58 }
  0x2d   : > { %v328_v61 = vsel %vm14557_vm4, 0, %v327_v59  ;;  %v331_v62 = vsel %vm14557_vm4, 0, %v330_v60  ;;  %v333_v63 = vld [vmem:[#allocation2 + $0xbc] sm:$0x1]  ;;  %v336_v0 = vld [vmem:[#allocation2 + $0xc8] sm:$0x1] }
  0x2e   : > { %329 = vst [vmem:[#allocation2 + $0xa4] sm:$0x1] %v328_v61  ;;  %332 = vst [vmem:[#allocation2 + $0xb0] sm:$0x1] %v331_v62  ;;  %v334_v1 = vsel %vm14557_vm4, 0, %v333_v63  ;;  %v337_v3 = vsel %vm14557_vm4, 0, %v336_v0 }
  0x2f   : > { %v347_v4 = vld [vmem:[#allocation3 + $0xc] sm:$0x1]  ;;  %v350_v5 = vld [vmem:[#allocation3 + $0x18] sm:$0x1]  ;;  %335 = vst [vmem:[#allocation2 + $0xbc] sm:$0x1] %v334_v1 }
  0x30   : > { %338 = vst [vmem:[#allocation2 + $0xc8] sm:$0x1] %v337_v3  ;;  %v348_v6 = vsel %vm14527_vm2, 0, %v347_v4  ;;  %v351_v7 = vsel %vm14527_vm2, 0, %v350_v5  ;;  %v353_v8 = vld [vmem:[#allocation3 + $0x24] sm:$0x1] }
  0x31   : > { %v356_v9 = vld [vmem:[#allocation3 + $0x30] sm:$0x1]  ;;  %349 = vst [vmem:[#allocation3 + $0xc] sm:$0x1] %v348_v6  ;;  %352 = vst [vmem:[#allocation3 + $0x18] sm:$0x1] %v351_v7 }
  0x32   : > { %v354_v10 = vsel %vm14527_vm2, 0, %v353_v8  ;;  %v357_v11 = vsel %vm14527_vm2, 0, %v356_v9  ;;  %v359_v12 = vld [vmem:[#allocation3 + $0x3c] sm:$0x1]  ;;  %v362_v13 = vld [vmem:[#allocation3 + $0x48] sm:$0x1] }
  0x33   : > { %355 = vst [vmem:[#allocation3 + $0x24] sm:$0x1] %v354_v10  ;;  %358 = vst [vmem:[#allocation3 + $0x30] sm:$0x1] %v357_v11  ;;  %v360_v14 = vsel %vm14527_vm2, 0, %v359_v12  ;;  %v363_v15 = vsel %vm14527_vm2, 0, %v362_v13 }
  0x34   : > { %v365_v16 = vld [vmem:[#allocation3 + $0x54] sm:$0x1]  ;;  %v368_v17 = vld [vmem:[#allocation3 + $0x60] sm:$0x1]  ;;  %361 = vst [vmem:[#allocation3 + $0x3c] sm:$0x1] %v360_v14 }
  0x35   : > { %364 = vst [vmem:[#allocation3 + $0x48] sm:$0x1] %v363_v15  ;;  %v366_v18 = vsel %vm14527_vm2, 0, %v365_v16  ;;  %v369_v19 = vsel %vm14527_vm2, 0, %v368_v17  ;;  %v371_v20 = vld [vmem:[#allocation3 + $0x6c] sm:$0x1] }
  0x36   : > { %v374_v21 = vld [vmem:[#allocation3 + $0x78] sm:$0x1]  ;;  %367 = vst [vmem:[#allocation3 + $0x54] sm:$0x1] %v366_v18  ;;  %370 = vst [vmem:[#allocation3 + $0x60] sm:$0x1] %v369_v19 }
  0x37   : > { %v372_v22 = vsel %vm14527_vm2, 0, %v371_v20  ;;  %v375_v23 = vsel %vm14527_vm2, 0, %v374_v21  ;;  %v377_v24 = vld [vmem:[#allocation3 + $0x84] sm:$0x1]  ;;  %v380_v25 = vld [vmem:[#allocation3 + $0x90] sm:$0x1] }
  0x38   : > { %373 = vst [vmem:[#allocation3 + $0x6c] sm:$0x1] %v372_v22  ;;  %376 = vst [vmem:[#allocation3 + $0x78] sm:$0x1] %v375_v23  ;;  %v378_v26 = vsel %vm14527_vm2, 0, %v377_v24  ;;  %v381_v27 = vsel %vm14527_vm2, 0, %v380_v25 }
  0x39   : > { %v383_v29 = vld [vmem:[#allocation3 + $0x9c] sm:$0x1]  ;;  %v386_v30 = vld [vmem:[#allocation3 + $0xa8] sm:$0x1]  ;;  %379 = vst [vmem:[#allocation3 + $0x84] sm:$0x1] %v378_v26 }
  0x3a   : > { %382 = vst [vmem:[#allocation3 + $0x90] sm:$0x1] %v381_v27  ;;  %v384_v31 = vsel %vm14527_vm2, 0, %v383_v29  ;;  %v387_v32 = vsel %vm14527_vm2, 0, %v386_v30  ;;  %v389_v33 = vld [vmem:[#allocation3 + $0xb4] sm:$0x1] }
  0x3b   : > { %v392_v34 = vld [vmem:[#allocation3 + $0xc0] sm:$0x1]  ;;  %385 = vst [vmem:[#allocation3 + $0x9c] sm:$0x1] %v384_v31  ;;  %388 = vst [vmem:[#allocation3 + $0xa8] sm:$0x1] %v387_v32 }
  0x3c   : > { %v390_v35 = vsel %vm14527_vm2, 0, %v389_v33  ;;  %v393_v36 = vsel %vm14527_vm2, 0, %v392_v34  ;;  %v395_v37 = vld [vmem:[#allocation3 + $0x14] sm:$0x1]  ;;  %v398_v38 = vld [vmem:[#allocation3 + $0x20] sm:$0x1] }
  0x3d   : > { %391 = vst [vmem:[#allocation3 + $0xb4] sm:$0x1] %v390_v35  ;;  %394 = vst [vmem:[#allocation3 + $0xc0] sm:$0x1] %v393_v36  ;;  %v396_v39 = vsel %vm14557_vm4, 0, %v395_v37  ;;  %v399_v40 = vsel %vm14557_vm4, 0, %v398_v38 }
  0x3e   : > { %v401_v41 = vld [vmem:[#allocation3 + $0x2c] sm:$0x1]  ;;  %v404_v42 = vld [vmem:[#allocation3 + $0x38] sm:$0x1]  ;;  %397 = vst [vmem:[#allocation3 + $0x14] sm:$0x1] %v396_v39 }
  0x3f   : > { %400 = vst [vmem:[#allocation3 + $0x20] sm:$0x1] %v399_v40  ;;  %v402_v43 = vsel %vm14557_vm4, 0, %v401_v41  ;;  %v405_v2 = vsel %vm14557_vm4, 0, %v404_v42  ;;  %v407_v44 = vld [vmem:[#allocation3 + $0x44] sm:$0x1] }
  0x40   : > { %v410_v45 = vld [vmem:[#allocation3 + $0x50] sm:$0x1]  ;;  %403 = vst [vmem:[#allocation3 + $0x2c] sm:$0x1] %v402_v43  ;;  %406 = vst [vmem:[#allocation3 + $0x38] sm:$0x1] %v405_v2 }
  0x41   : > { %v408_v46 = vsel %vm14557_vm4, 0, %v407_v44  ;;  %v411_v47 = vsel %vm14557_vm4, 0, %v410_v45  ;;  %v413_v48 = vld [vmem:[#allocation3 + $0x5c] sm:$0x1]  ;;  %v416_v49 = vld [vmem:[#allocation3 + $0x68] sm:$0x1] }
  0x42   : > { %409 = vst [vmem:[#allocation3 + $0x44] sm:$0x1] %v408_v46  ;;  %412 = vst [vmem:[#allocation3 + $0x50] sm:$0x1] %v411_v47  ;;  %v414_v50 = vsel %vm14557_vm4, 0, %v413_v48  ;;  %v417_v51 = vsel %vm14557_vm4, 0, %v416_v49 }
  0x43   : > { %v419_v52 = vld [vmem:[#allocation3 + $0x74] sm:$0x1]  ;;  %v422_v53 = vld [vmem:[#allocation3 + $0x80] sm:$0x1]  ;;  %415 = vst [vmem:[#allocation3 + $0x5c] sm:$0x1] %v414_v50 }
  0x44   : > { %418 = vst [vmem:[#allocation3 + $0x68] sm:$0x1] %v417_v51  ;;  %v420_v54 = vsel %vm14557_vm4, 0, %v419_v52  ;;  %v423_v55 = vsel %vm14557_vm4, 0, %v422_v53  ;;  %v425_v56 = vld [vmem:[#allocation3 + $0x8c] sm:$0x1] }
  0x45   : > { %v428_v57 = vld [vmem:[#allocation3 + $0x98] sm:$0x1]  ;;  %421 = vst [vmem:[#allocation3 + $0x74] sm:$0x1] %v420_v54  ;;  %424 = vst [vmem:[#allocation3 + $0x80] sm:$0x1] %v423_v55 }
  0x46   : > { %v426_v58 = vsel %vm14557_vm4, 0, %v425_v56  ;;  %v429_v59 = vsel %vm14557_vm4, 0, %v428_v57  ;;  %v431_v60 = vld [vmem:[#allocation3 + $0xa4] sm:$0x1]  ;;  %v434_v61 = vld [vmem:[#allocation3 + $0xb0] sm:$0x1] }
  0x47   : > { %427 = vst [vmem:[#allocation3 + $0x8c] sm:$0x1] %v426_v58  ;;  %430 = vst [vmem:[#allocation3 + $0x98] sm:$0x1] %v429_v59  ;;  %v432_v62 = vsel %vm14557_vm4, 0, %v431_v60  ;;  %v435_v63 = vsel %vm14557_vm4, 0, %v434_v61 }
  0x48   : > { %v437_v0 = vld [vmem:[#allocation3 + $0xbc] sm:$0x1]  ;;  %v440_v1 = vld [vmem:[#allocation3 + $0xc8] sm:$0x1]  ;;  %433 = vst [vmem:[#allocation3 + $0xa4] sm:$0x1] %v432_v62 }
  0x49   : > { %436 = vst [vmem:[#allocation3 + $0xb0] sm:$0x1] %v435_v63  ;;  %v438_v3 = vsel %vm14557_vm4, 0, %v437_v0  ;;  %v441_v4 = vsel %vm14557_vm4, 0, %v440_v1 }
  0x4a   : > { %439 = vst [vmem:[#allocation3 + $0xbc] sm:$0x1] %v438_v3  ;;  %442 = vst [vmem:[#allocation3 + $0xc8] sm:$0x1] %v441_v4 }
  0x4b PF: > { %v14157_v5 = vld [vmem:[%s18195_s1 + $0x40] sm:$0xff]   ;;  %v14158_v6 = vld [vmem:[%s18195_s1 + $0x48] sm:$0xff]   ;;  %v14159_v28 = vld [vmem:[%s18195_s1 + $0x50] sm:$0xff]   ;;  %vm895_vm5 = vcmask 1043456   ;;  %vm1076_vm6 = vsmask.f32 3328 }
  0x4c   : > { %12772 = vmatprep.subr.bf16.mxu0 %v14157_v5  ;;  %v14160_v7 = vld [vmem:[%s18195_s1 + $0x58] sm:$0xff]   ;;  %v1012_v8 = vld [vmem:[#allocation2] sm:$0xf]  ;;  %v1013_v9 = vld [vmem:[#allocation2 + $0x4] sm:$0xf]  ;;  %vm902_vm8 = vcmask 1040384  }
  0x4d   : > { %12773 = vmatpush3.bf16.msra.mxu0 %v14157_v5  ;;  %v1060_v10 = vld [vmem:[#allocation2 + $0x8] sm:$0x1]  ;;  %vm1077_vm7 = vsmask.f32 7440  ;;  %v1080_v11 = vshrl.u32 %v1012_v8, 16  ;;  %v1083_v12 = vshll.u32 %v1012_v8, 16 }
  0x4e   : > { %12774 = vmatprep.subr.bf16.mxu0 %v14158_v6  ;;  %v1089_v13 = vshll.u32 %v1013_v9, 16  ;;  %v1093_v14 = vshrl.u32 %v1013_v9, 16  ;;  %v1099_v15 = vshll.u32 %v1060_v10, 16  ;;  %v443_v16 = vld [vmem:[%s14518_s24] sm:$0xff]  ;;  %v444_v17 = vld [vmem:[%s14518_s24 + $0x8] sm:$0xff]  ;;  %vm14684_vm11 = vmor %vm1076_vm6, %vm1077_vm7  ;;  %v18310_v36 = vmov 0 }
  0x4f   : > { %v1082_v18 = vrot.slane %v1080_v11, 4  ;;  %v1085_v19 = vrot.slane %v1083_v12, 5  ;;  %v12276_v20 = vpack.c.bf16 %v443_v16, %v443_v16  ;;  %v12277_v21 = vpack.c.bf16 %v444_v17, %v444_v17  ;;  %v14161_v22 = vld [vmem:[%s18195_s1 + $0x60] sm:$0xff]   ;;  %v445_v37 = vld [vmem:[%s14518_s24 + $0x10] sm:$0xff]  ;;  %v446_v38 = vld [vmem:[%s14518_s24 + $0x18] sm:$0xff] }
  0x50   : > { %v1091_v23 = vrot.slane %v1089_v13, 5  ;;  %v1095_v24 = vrot.slane %v1093_v14, 4  ;;  %v1101_v25 = vrot.slane %v1099_v15, 5  ;;  %vm571_vm9 = vsmask.f32 256  ;;  %v14162_v39 = vld [vmem:[%s18195_s1 + $0x68] sm:$0xff]  }
  0x51   : > { %12775 = vmatpush3.bf16.msra.mxu0 %v14158_v6  ;;  %v1086_v26 = vor.u32 %v1085_v19, %v1082_v18  ;;  %vm572_vm10 = vsmask.f32 4368  ;;  %v575_v27 = vshrl.u32 %v12276_v20, 16  ;;  %v578_v29 = vshll.u32 %v12276_v20, 16  ;;  %vm14690_vm13 = vmand %vm902_vm8, %vm571_vm9  ;;  %v898_v43 = vld [vmem:[#allocation2 + $0xc] sm:$0xf] }
  0x52   : > { %12776 = vmatprep.subr.bf16.mxu0 %v14159_v28  ;;  %v1096_v31 = vor.u32 %v1095_v24, %v1091_v23  ;;  %v583_v32 = vshrl.u32 %v12277_v21, 16  ;;  %v586_v33 = vshll.u32 %v12277_v21, 16  ;;  %vm896_vm12 = vsmask.f32 7938  ;;  %vm14708_vm15 = vmor %vm571_vm9, %vm572_vm10  ;;  %v904_v49 = vld [vmem:[#allocation2 + $0x14] sm:$0x1] }
  0x53   : > { %v1087_v34 = vrot.slane %v1086_v26, 4  ;;  %v577_v35 = vrot.slane %v575_v27, 7  ;;  %v18311_v36 = vsel %vm14690_vm13, 4294967295, %v18310_v36  ;;  %vm14700_vm14 = vmand %vm895_vm5, %vm896_vm12  ;;  %v18313_v42 = vmov 0  ;;  %v447_v54 = vld [vmem:[%s14518_s24 + $0x20] sm:$0xff]  ;;  %v448_v55 = vld [vmem:[%s14518_s24 + $0x28] sm:$0xff] }
  0x54   : > { %18312 = vst [vmem:[#allocation4_spill] sm:$0xff] %v18311_v36  ;;  %v1097_v40 = vrot.slane %v1096_v31, 4  ;;  %v585_v41 = vrot.slane %v583_v32, 7  ;;  %v18314_v42 = vsel %vm14700_vm14, 4294967295, %v18313_v42  ;;  %v12278_v2 = vpack.c.bf16 %v445_v37, %v445_v37  ;;  %v449_v60 = vld [vmem:[%s14518_s24 + $0x30] sm:$0xff]  ;;  %v450_v3 = vld [vmem:[%s14518_s24 + $0x38] sm:$0xff] }
  0x55   : > { %12777 = vmatpush3.bf16.msra.mxu0 %v14159_v28  ;;  %18315 = vst [vmem:[#allocation5_spill] sm:$0xff] %v18314_v42  ;;  %v12279_v44 = vpack.c.bf16 %v446_v38, %v446_v38  ;;  %v1092_v45 = vsel %vm14684_vm11, %v1087_v34, %v1091_v23  ;;  %v18316_v46 = vmov 0  ;;  %v580_v47 = vor.u32 %v578_v29, %v577_v35  ;;  %v14163_v61 = vld [vmem:[%s18195_s1 + $0x70] sm:$0xff]   ;;  %v451_v4 = vld [vmem:[%s14518_s24 + $0x40] sm:$0xff]  ;;  %v907_v6 = vld [vmem:[#allocation2 + $0x18] sm:$0xf] }
  0x56   : > { %12778 = vmatprep.subr.bf16.mxu0 %v14160_v7  ;;  %v18317_v46 = vsel %vm14708_vm15, 4294967295, %v18316_v46  ;;  %v581_v48 = vrot.slane %v577_v35, 4  ;;  %v1102_v50 = vsel %vm14684_vm11, %v1097_v40, %v1101_v25  ;;  %v588_v51 = vor.u32 %v586_v33, %v585_v41  ;;  %v911_v11 = vld [vmem:[#allocation2 + $0x20] sm:$0x1]  ;;  %v14164_v18 = vld [vmem:[%s18195_s1 + $0x78] sm:$0xff]   ;;  %v452_v27 = vld [vmem:[%s14518_s24 + $0x48] sm:$0xff] }
  0x57   : > { %18318 = vst [vmem:[#allocation6_spill] sm:$0xff] %v18317_v46  ;;  %v590_v52 = vrot.slane %v585_v41, 4  ;;  %v592_v53 = vshrl.u32 %v12278_v2, 16  ;;  %v11470_v56 = vcombine.low %v1092_v45, %v1102_v50  ;;  %v899_v57 = vsel %vm14700_vm14, %v580_v47, %v898_v43  ;;  %v914_v31 = vld [vmem:[#allocation2 + $0x24] sm:$0xf] }
  0x58   : > { %v595_v58 = vshll.u32 %v12278_v2, 16  ;;  %v600_v59 = vshrl.u32 %v12279_v44, 16  ;;  %v589_v62 = vsel %vm14708_vm15, %v581_v48, %v588_v51  ;;  %900 = vst [vmem:[#allocation2 + $0xc] sm:$0xf] %v899_v57  ;;  %v603_v1 = vshll.u32 %v12279_v44, 16  ;;  %v14748_v35 = vld [vmem:[%s18195_s1] sm:$0xff]  }
  0x59   : > { %12779 = vmatpush3.bf16.msra.mxu0 %v14160_v7  ;;  %v905_v63 = vsel %vm14690_vm13, %v590_v52, %v904_v49  ;;  %v594_v0 = vrot.slane %v592_v53, 7  ;;  %12788 = vmatprep.mubr.bf16.mxu0 %v11470_v56  ;;  %901 = vst [vmem:[#allocation2 + $0x10] sm:$0xf] %v589_v62  ;;  %v12280_v28 = vpack.c.bf16 %v447_v54, %v447_v54  ;;  %v921_v48 = vld [vmem:[#allocation2 + $0x30] sm:$0xf]  ;;  %vm2106_vm0 = vcmask 1042432  }
  0x5a   : > { %12780 = vmatprep.subr.bf16.mxu0 %v14161_v22  ;;  %906 = vst [vmem:[#allocation2 + $0x14] sm:$0x1] %v905_v63  ;;  %v602_v5 = vrot.slane %v600_v59, 7  ;;  %v12281_v7 = vpack.c.bf16 %v448_v55, %v448_v55  ;;  %v12282_v8 = vpack.c.bf16 %v449_v60, %v449_v60  ;;  %v14728_v12 = vpack.c.bf16 %v450_v3, %v450_v3 }
  0x5b   : > { %v597_v9 = vor.u32 %v595_v58, %v594_v0  ;;  %v598_v10 = vrot.slane %v594_v0, 4  ;;  %v14730_v13 = vpack.c.bf16 %v451_v4, %v451_v4  ;;  %v609_v16 = vshrl.u32 %v12280_v28, 16 }
  0x5c   : > { %v605_v14 = vor.u32 %v603_v1, %v602_v5  ;;  %v607_v15 = vrot.slane %v602_v5, 4  ;;  %v612_v17 = vshll.u32 %v12280_v28, 16  ;;  %v617_v20 = vshrl.u32 %v12281_v7, 16 }
  0x5d   : > { %12781 = vmatpush3.bf16.msra.mxu0 %v14161_v22  ;;  %v908_v19 = vsel %vm14700_vm14, %v597_v9, %v907_v6  ;;  %v620_v21 = vshll.u32 %v12281_v7, 16  ;;  %v626_v22 = vshrl.u32 %v12282_v8, 16  ;;  %v611_v25 = vrot.slane %v609_v16, 7 }
  0x5e   : > { %12782 = vmatprep.subr.bf16.mxu0 %v14162_v39  ;;  %v606_v23 = vsel %vm14708_vm15, %v598_v10, %v605_v14  ;;  %909 = vst [vmem:[#allocation2 + $0x18] sm:$0xf] %v908_v19  ;;  %v912_v24 = vsel %vm14690_vm13, %v607_v15, %v911_v11  ;;  %v629_v26 = vshll.u32 %v12282_v8, 16  ;;  %v619_v29 = vrot.slane %v617_v20, 7 }
  0x5f   : > { %910 = vst [vmem:[#allocation2 + $0x1c] sm:$0xf] %v606_v23  ;;  %913 = vst [vmem:[#allocation2 + $0x20] sm:$0x1] %v912_v24  ;;  %v14742_v32 = vrot.slane %v626_v22, 7  ;;  %v634_v33 = vshrl.u32 %v14728_v12, 16  ;;  %v614_v37 = vor.u32 %v612_v17, %v611_v25  ;;  %v14752_v49 = vpack.c.bf16 %v452_v27, %v452_v27 }
  0x60   : > { %v1014_v34 = vld [vmem:[#allocation2 + $0xc] sm:$0xf]  ;;  %v615_v38 = vrot.slane %v611_v25, 4  ;;  %v637_v40 = vshll.u32 %v14728_v12, 16  ;;  %v643_v41 = vshrl.u32 %v14730_v13, 16  ;;  %v622_v47 = vor.u32 %v620_v21, %v619_v29 }
  0x61   : > { %12783 = vmatpush3.bf16.msra.mxu0 %v14162_v39  ;;  %v918_v39 = vld [vmem:[#allocation2 + $0x2c] sm:$0x1]  ;;  %v1015_v43 = vld [vmem:[#allocation2 + $0x10] sm:$0xf]  ;;  %v1061_v2 = vld [vmem:[#allocation2 + $0x14] sm:$0x1]  ;;  %v631_v53 = vor.u32 %v629_v26, %v14742_v32 }
  0x62   : > { %12784 = vmatprep.subr.bf16.mxu0 %v14163_v61  ;;  %v1104_v44 = vshrl.u32 %v1014_v34, 16  ;;  %v1107_v45 = vshll.u32 %v1014_v34, 16  ;;  %v1113_v50 = vshll.u32 %v1015_v43, 16  ;;  %v1117_v51 = vshrl.u32 %v1015_v43, 16  ;;  %v925_v22 = vld [vmem:[#allocation2 + $0x38] sm:$0x1] }
  0x63   : > { %v1123_v52 = vshll.u32 %v1061_v2, 16  ;;  %v623_v56 = vsel %vm14708_vm15, %v615_v38, %v622_v47  ;;  %v624_v57 = vrot.slane %v619_v29, 4  ;;  %v632_v1 = vrot.slane %v14742_v32, 4  ;;  %v14166_v32 = vld [vmem:[%s18195_s1 + $0x8] sm:$0xff]  }
  0x64   : > { %v1106_v54 = vrot.slane %v1104_v44, 4  ;;  %v1109_v55 = vrot.slane %v1107_v45, 5  ;;  %v1115_v58 = vrot.slane %v1113_v50, 5  ;;  %v1119_v59 = vrot.slane %v1117_v51, 4  ;;  %917 = vst [vmem:[#allocation2 + $0x28] sm:$0xf] %v623_v56 }
  0x65   : > { %12785 = vmatpush3.bf16.msra.mxu0 %v14163_v61  ;;  %v1125_v60 = vrot.slane %v1123_v52, 5  ;;  %v915_v61 = vsel %vm14700_vm14, %v614_v37, %v914_v31  ;;  %v1016_v63 = vld [vmem:[#allocation2 + $0x18] sm:$0xf]  ;;  %v919_v0 = vsel %vm14690_vm13, %v624_v57, %v918_v39  ;;  %v636_v3 = vrot.slane %v634_v33, 7  ;;  %v928_v57 = vld [vmem:[#allocation2 + $0x3c] sm:$0xf] }
  0x66   : > { %12786 = vmatprep.subr.bf16.mxu0 %v14164_v18  ;;  %v1110_v62 = vor.u32 %v1109_v55, %v1106_v54  ;;  %916 = vst [vmem:[#allocation2 + $0x24] sm:$0xf] %v915_v61  ;;  %v1120_v4 = vor.u32 %v1119_v59, %v1115_v58  ;;  %v1017_v5 = vld [vmem:[#allocation2 + $0x1c] sm:$0xf]  ;;  %v1062_v6 = vld [vmem:[#allocation2 + $0x20] sm:$0x1]  ;;  %v922_v8 = vsel %vm14700_vm14, %v631_v53, %v921_v48 }
  0x67   : > { %v1128_v28 = vshrl.u32 %v1016_v63, 16  ;;  %v1131_v7 = vshll.u32 %v1016_v63, 16  ;;  %920 = vst [vmem:[#allocation2 + $0x2c] sm:$0x1] %v919_v0  ;;  %v1137_v10 = vshll.u32 %v1017_v5, 16  ;;  %v1141_v11 = vshrl.u32 %v1017_v5, 16 }
  0x68   : > { %v1111_v9 = vrot.slane %v1110_v62, 4  ;;  %v1147_v12 = vshll.u32 %v1062_v6, 16  ;;  %923 = vst [vmem:[#allocation2 + $0x30] sm:$0xf] %v922_v8  ;;  %v1121_v14 = vrot.slane %v1120_v4, 4  ;;  %v639_v17 = vor.u32 %v637_v40, %v636_v3  ;;  %v454_v4 = vld [vmem:[%s14518_s24 + $0x58] sm:$0xff] }
  0x69   : > { %12787 = vmatpush3.bf16.msra.mxu0 %v14164_v18  ;;  %v1130_v15 = vrot.slane %v1128_v28, 4  ;;  %v1133_v16 = vrot.slane %v1131_v7, 5  ;;  %v1139_v19 = vrot.slane %v1137_v10, 5  ;;  %v1143_v20 = vrot.slane %v1141_v11, 4 }
  0x6a   : > { %12820 = vmatprep.subr.bf16.mxu0 %v14748_v35  ;;  %v1116_v18 = vsel %vm14684_vm11, %v1111_v9, %v1115_v58  ;;  %v1149_v21 = vrot.slane %v1147_v12, 5  ;;  %v1126_v23 = vsel %vm14684_vm11, %v1121_v14, %v1125_v60  ;;  %v640_v25 = vsel %vm14708_vm15, %v632_v1, %v639_v17  ;;  %v14168_v9 = vld [vmem:[%s18195_s1 + $0x18] sm:$0xff]  }
  0x6b   : > { %v1134_v24 = vor.u32 %v1133_v16, %v1130_v15  ;;  %v641_v26 = vrot.slane %v636_v3, 4  ;;  %v11471_v27 = vcombine.low %v1116_v18, %v1126_v23  ;;  %v1144_v29 = vor.u32 %v1143_v20, %v1139_v19  ;;  %v1019_v31 = vld [vmem:[#allocation2 + $0x28] sm:$0xf]  ;;  %924 = vst [vmem:[#allocation2 + $0x34] sm:$0xf] %v640_v25  ;;  %v453_v3 = vld [vmem:[%s14518_s24 + $0x50] sm:$0xff] }
  0x6c   : > { %v14774_v33 = vrot.slane %v643_v41, 7  ;;  %v646_v34 = vshll.u32 %v14730_v13, 16  ;;  %v1161_v39 = vshll.u32 %v1019_v31, 16  ;;  %v1165_v40 = vshrl.u32 %v1019_v31, 16  ;;  %v932_v23 = vld [vmem:[#allocation2 + $0x44] sm:$0x1] }
  0x6d   : > { %v1135_v37 = vrot.slane %v1134_v24, 4  ;;  %v1018_v38 = vld [vmem:[#allocation2 + $0x24] sm:$0xf]  ;;  %v926_v43 = vsel %vm14690_vm13, %v641_v26, %v925_v22  ;;  %12789 = vmatmul.mubr.bf16.vlgmr.msra.gmra.mrb[0].mxu0 %v11471_v27  ;;  %v1145_v2 = vrot.slane %v1144_v29, 4  ;;  %v651_v1 = vshrl.u32 %v14752_v49, 16  ;;  %v456_v31 = vld [vmem:[%s14518_s24 + $0x68] sm:$0xff] }
  0x6e   : > { %v1063_v44 = vld [vmem:[#allocation2 + $0x2c] sm:$0x1]  ;;  %v1152_v45 = vshrl.u32 %v1018_v38, 16  ;;  %v1155_v47 = vshll.u32 %v1018_v38, 16  ;;  %927 = vst [vmem:[#allocation2 + $0x38] sm:$0x1] %v926_v43  ;;  %v648_v48 = vor.u32 %v646_v34, %v14774_v33  ;;  %12821 = vmatpush3.bf16.msra.mxu0 %v14748_v35  ;;  %v12286_v17 = vpack.c.bf16 %v453_v3, %v453_v3 }
  0x6f   : > { %v1140_v13 = vsel %vm14684_vm11, %v1135_v37, %v1139_v19  ;;  %v1163_v41 = vrot.slane %v1161_v39, 5  ;;  %v1167_v50 = vrot.slane %v1165_v40, 4  ;;  %v1171_v51 = vshll.u32 %v1063_v44, 16  ;;  %v1020_v52 = vld [vmem:[#allocation2 + $0x30] sm:$0xf]  ;;  %12822 = vmatprep.subr.bf16.mxu0 %v14166_v32  ;;  %v455_v24 = vld [vmem:[%s14518_s24 + $0x60] sm:$0xff] }
  0x70   : > { %v1150_v53 = vsel %vm14684_vm11, %v1145_v2, %v1149_v21  ;;  %v1154_v54 = vrot.slane %v1152_v45, 4  ;;  %v1157_v55 = vrot.slane %v1155_v47, 5  ;;  %v1176_v56 = vshrl.u32 %v1020_v52, 16  ;;  %v14167_v35 = vld [vmem:[%s18195_s1 + $0x10] sm:$0xff]   ;;  %v14169_v40 = vld [vmem:[%s18195_s1 + $0x20] sm:$0xff]  }
  0x71   : > { %v11472_v58 = vcombine.low %v1140_v13, %v1150_v53  ;;  %v1168_v59 = vor.u32 %v1167_v50, %v1163_v41  ;;  %v1173_v60 = vrot.slane %v1171_v51, 5  ;;  %v1179_v61 = vshll.u32 %v1020_v52, 16  ;;  %v939_v53 = vld [vmem:[#allocation2 + $0x50] sm:$0x1] }
  0x72   : > { %v1158_v62 = vor.u32 %v1157_v55, %v1154_v54  ;;  %v1178_v63 = vrot.slane %v1176_v56, 4  ;;  %v649_v0 = vrot.slane %v14774_v33, 4  ;;  %12823 = vmatpush3.bf16.msra.mxu0 %v14166_v32  ;;  %v1021_v6 = vld [vmem:[#allocation2 + $0x34] sm:$0xf]  ;;  %v654_v7 = vshll.u32 %v14752_v49, 16  ;;  %v458_v33 = vld [vmem:[%s14518_s24 + $0x78] sm:$0xff] }
  0x73   : > { %12792 = vmatprep.mubr.bf16.mxu0 %v11472_v58  ;;  %v1169_v5 = vrot.slane %v1168_v59, 4  ;;  %v1181_v28 = vrot.slane %v1179_v61, 5  ;;  %v929_v8 = vsel %vm14700_vm14, %v648_v48, %v928_v57  ;;  %v1185_v11 = vshll.u32 %v1021_v6, 16  ;;  %12824 = vmatprep.subr.bf16.mxu0 %v14167_v35  ;;  %v457_v32 = vld [vmem:[%s14518_s24 + $0x70] sm:$0xff] }
  0x74   : > { %v1159_v10 = vrot.slane %v1158_v62, 4  ;;  %v1189_v12 = vshrl.u32 %v1021_v6, 16  ;;  %v653_v14 = vrot.slane %v651_v1, 7  ;;  %930 = vst [vmem:[#allocation2 + $0x3c] sm:$0xf] %v929_v8  ;;  %v12287_v18 = vpack.c.bf16 %v454_v4, %v454_v4  ;;  %v459_v1 = vld [vmem:[%s14518_s24 + $0x80] sm:$0xff] }
  0x75   : > { %v1174_v15 = vsel %vm14684_vm11, %v1169_v5, %v1173_v60  ;;  %v1064_v16 = vld [vmem:[#allocation2 + $0x38] sm:$0x1]  ;;  %v1182_v49 = vor.u32 %v1181_v28, %v1178_v63  ;;  %v1187_v20 = vrot.slane %v1185_v11, 5  ;;  %v660_v38 = vshrl.u32 %v12286_v17, 16  ;;  %v14170_v60 = vld [vmem:[%s18195_s1 + $0x28] sm:$0xff]  }
  0x76   : > { %v1164_v19 = vsel %vm14684_vm11, %v1159_v10, %v1163_v41  ;;  %v1191_v21 = vrot.slane %v1189_v12, 4  ;;  %v1195_v22 = vshll.u32 %v1064_v16, 16  ;;  %v656_v27 = vor.u32 %v654_v7, %v653_v14  ;;  %12825 = vmatpush3.bf16.msra.mxu0 %v14167_v35  ;;  %v935_v41 = vld [vmem:[#allocation2 + $0x48] sm:$0xf]  ;;  %v946_v16 = vld [vmem:[#allocation2 + $0x5c] sm:$0x1] }
  0x77   : > { %v11473_v25 = vcombine.low %v1164_v19, %v1174_v15  ;;  %v1183_v26 = vrot.slane %v1182_v49, 4  ;;  %v658_v29 = vrot.slane %v653_v14, 4  ;;  %v663_v39 = vshll.u32 %v12286_v17, 16  ;;  %12826 = vmatprep.subr.bf16.mxu0 %v14168_v9  ;;  %v460_v28 = vld [vmem:[%s14518_s24 + $0x88] sm:$0xff]  ;;  %v942_v15 = vld [vmem:[#allocation2 + $0x54] sm:$0xf] }
  0x78   : > { %v1192_v34 = vor.u32 %v1191_v21, %v1187_v20  ;;  %v1197_v37 = vrot.slane %v1195_v22, 5  ;;  %v657_v2 = vsel %vm14708_vm15, %v649_v0, %v656_v27  ;;  %v668_v45 = vshrl.u32 %v12287_v18, 16  ;;  %v14171_v17 = vld [vmem:[%s18195_s1 + $0x30] sm:$0xff]  }
  0x79   : > { %12793 = vmatmul.mubr.bf16.gmra.mrb[4].mxu0 %v11473_v25  ;;  %v1188_v43 = vsel %vm14684_vm11, %v1183_v26, %v1187_v20  ;;  %v933_v44 = vsel %vm14690_vm13, %v658_v29, %v932_v23  ;;  %931 = vst [vmem:[#allocation2 + $0x40] sm:$0xf] %v657_v2  ;;  %v662_v48 = vrot.slane %v660_v38, 7  ;;  %v671_v13 = vshll.u32 %v12287_v18, 16  ;;  %v461_v29 = vld [vmem:[%s14518_s24 + $0x90] sm:$0xff] }
  0x7a   : > { %v1193_v47 = vrot.slane %v1192_v34, 4  ;;  %934 = vst [vmem:[#allocation2 + $0x44] sm:$0x1] %v933_v44  ;;  %v12288_v50 = vpack.c.bf16 %v455_v24, %v455_v24  ;;  %v670_v52 = vrot.slane %v668_v45, 7  ;;  %v12289_v54 = vpack.c.bf16 %v456_v31, %v456_v31  ;;  %12827 = vmatpush3.bf16.msra.mxu0 %v14168_v9  ;;  %v462_v31 = vld [vmem:[%s14518_s24 + $0x98] sm:$0xff] }
  0x7b   : > { %v1022_v51 = vld [vmem:[#allocation2 + $0x3c] sm:$0xf]  ;;  %v14815_v55 = vpack.c.bf16 %v457_v32, %v457_v32  ;;  %v14817_v56 = vpack.c.bf16 %v458_v33, %v458_v33  ;;  %v665_v59 = vor.u32 %v663_v39, %v662_v48  ;;  %12828 = vmatprep.subr.bf16.mxu0 %v14169_v40  ;;  %v666_v62 = vrot.slane %v662_v48, 4 }
  0x7c   : > { %v1198_v57 = vsel %vm14684_vm11, %v1193_v47, %v1197_v37  ;;  %v1200_v35 = vshrl.u32 %v1022_v51, 16  ;;  %v1203_v58 = vshll.u32 %v1022_v51, 16  ;;  %v673_v63 = vor.u32 %v671_v13, %v670_v52  ;;  %v14172_v32 = vld [vmem:[%s18195_s1 + $0x38] sm:$0xff]  }
  0x7d   : > { %v11474_v61 = vcombine.low %v1188_v43, %v1198_v57  ;;  %v675_v0 = vrot.slane %v670_v52, 4  ;;  %v936_v5 = vsel %vm14700_vm14, %v665_v59, %v935_v41  ;;  %v677_v6 = vshrl.u32 %v12288_v50, 16 }
  0x7e   : > { %v1202_v3 = vrot.slane %v1200_v35, 4  ;;  %v1205_v4 = vrot.slane %v1203_v58, 5  ;;  %v674_v7 = vsel %vm14708_vm15, %v666_v62, %v673_v63  ;;  %937 = vst [vmem:[#allocation2 + $0x48] sm:$0xf] %v936_v5  ;;  %v680_v9 = vshll.u32 %v12288_v50, 16  ;;  %12829 = vmatpush3.bf16.msra.mxu0 %v14169_v40 }
  0x7f   : > { %12796 = vmatprep.mubr.bf16.mxu0 %v11474_v61  ;;  %v940_v8 = vsel %vm14690_vm13, %v675_v0, %v939_v53  ;;  %v685_v10 = vshrl.u32 %v12289_v54, 16  ;;  %938 = vst [vmem:[#allocation2 + $0x4c] sm:$0xf] %v674_v7  ;;  %v679_v12 = vrot.slane %v677_v6, 7  ;;  %v688_v14 = vshll.u32 %v12289_v54, 16  ;;  %12830 = vmatprep.subr.bf16.mxu0 %v14170_v60  ;;  %v14858_v53 = vld [vmem:[%s18195_s1 + $0x80] sm:$0xff]  }
  0x80   : > { %v1206_v11 = vor.u32 %v1205_v4, %v1202_v3  ;;  %941 = vst [vmem:[#allocation2 + $0x50] sm:$0x1] %v940_v8  ;;  %v694_v49 = vshrl.u32 %v14815_v55, 16  ;;  %v1023_v18 = vld [vmem:[#allocation2 + $0x40] sm:$0xf]  ;;  %v697_v21 = vshll.u32 %v14815_v55, 16  ;;  %v14837_v22 = vpack.c.bf16 %v459_v1, %v459_v1 }
  0x81   : > { %v1065_v19 = vld [vmem:[#allocation2 + $0x44] sm:$0x1]  ;;  %v687_v20 = vrot.slane %v685_v10, 7  ;;  %v14839_v23 = vpack.c.bf16 %v460_v28, %v460_v28  ;;  %v1209_v25 = vshll.u32 %v1023_v18, 16  ;;  %v1213_v26 = vshrl.u32 %v1023_v18, 16 }
  0x82   : > { %v1207_v24 = vrot.slane %v1206_v11, 4  ;;  %v1219_v27 = vshll.u32 %v1065_v19, 16  ;;  %v682_v33 = vor.u32 %v680_v9, %v679_v12  ;;  %v683_v34 = vrot.slane %v679_v12, 4  ;;  %12831 = vmatpush3.bf16.msra.mxu0 %v14170_v60  ;;  %v949_v58 = vld [vmem:[#allocation2 + $0x60] sm:$0xf] }
  0x83   : > { %v690_v37 = vor.u32 %v688_v14, %v687_v20  ;;  %v692_v38 = vrot.slane %v687_v20, 4  ;;  %v1211_v39 = vrot.slane %v1209_v25, 5  ;;  %v1215_v40 = vrot.slane %v1213_v26, 4  ;;  %12832 = vmatprep.subr.bf16.mxu0 %v14171_v17  ;;  %v953_v1 = vld [vmem:[#allocation2 + $0x68] sm:$0x1] }
  0x84   : > { %v1221_v43 = vrot.slane %v1219_v27, 5  ;;  %v696_v2 = vrot.slane %v694_v49, 7  ;;  %v943_v45 = vsel %vm14700_vm14, %v682_v33, %v942_v15  ;;  %v702_v48 = vshrl.u32 %v14817_v56, 16 }
  0x85   : > { %v691_v44 = vsel %vm14708_vm15, %v683_v34, %v690_v37  ;;  %v947_v47 = vsel %vm14690_vm13, %v692_v38, %v946_v16  ;;  %v1212_v13 = vsel %vm14684_vm11, %v1207_v24, %v1211_v39  ;;  %v1216_v41 = vor.u32 %v1215_v40, %v1211_v39  ;;  %v1024_v50 = vld [vmem:[#allocation2 + $0x48] sm:$0xf]  ;;  %944 = vst [vmem:[#allocation2 + $0x54] sm:$0xf] %v943_v45 }
  0x86   : > { %945 = vst [vmem:[#allocation2 + $0x58] sm:$0xf] %v691_v44  ;;  %948 = vst [vmem:[#allocation2 + $0x5c] sm:$0x1] %v947_v47  ;;  %v699_v51 = vor.u32 %v697_v21, %v696_v2  ;;  %v700_v52 = vrot.slane %v696_v2, 4  ;;  %v1224_v57 = vshrl.u32 %v1024_v50, 16  ;;  %v14860_v59 = vpack.c.bf16 %v461_v29, %v461_v29  ;;  %12833 = vmatpush3.bf16.msra.mxu0 %v14171_v17 }
  0x87   : > { %v1025_v54 = vld [vmem:[#allocation2 + $0x4c] sm:$0xf]  ;;  %v1066_v55 = vld [vmem:[#allocation2 + $0x50] sm:$0x1]  ;;  %v1227_v35 = vshll.u32 %v1024_v50, 16  ;;  %v14862_v60 = vpack.c.bf16 %v462_v31, %v462_v31  ;;  %v1217_v61 = vrot.slane %v1216_v41, 4  ;;  %12834 = vmatprep.subr.bf16.mxu0 %v14172_v32 }
  0x88   : > { %v1233_v62 = vshll.u32 %v1025_v54, 16  ;;  %v1237_v63 = vshrl.u32 %v1025_v54, 16  ;;  %v1243_v0 = vshll.u32 %v1066_v55, 16  ;;  %v1226_v3 = vrot.slane %v1224_v57, 4  ;;  %v956_v31 = vld [vmem:[#allocation2 + $0x6c] sm:$0xf] }
  0x89   : > { %v1229_v4 = vrot.slane %v1227_v35, 5  ;;  %v704_v5 = vrot.slane %v702_v48, 7  ;;  %v705_v6 = vshll.u32 %v14817_v56, 16  ;;  %v1222_v28 = vsel %vm14684_vm11, %v1217_v61, %v1221_v43  ;;  %v463_v2 = vld [vmem:[%s14518_s24 + $0xa0] sm:$0xff] }
  0x8a   : > { %v1235_v7 = vrot.slane %v1233_v62, 5  ;;  %v1239_v8 = vrot.slane %v1237_v63, 4  ;;  %v1245_v9 = vrot.slane %v1243_v0, 5  ;;  %v11475_v10 = vcombine.low %v1212_v13, %v1222_v28  ;;  %12835 = vmatpush3.bf16.msra.mxu0 %v14172_v32  ;;  %v960_v0 = vld [vmem:[#allocation2 + $0x74] sm:$0x1] }
  0x8b   : > { %v1230_v11 = vor.u32 %v1229_v4, %v1226_v3  ;;  %v707_v12 = vor.u32 %v705_v6, %v704_v5  ;;  %v709_v14 = vrot.slane %v704_v5, 4  ;;  %v950_v16 = vsel %vm14700_vm14, %v699_v51, %v949_v58  ;;  %12868 = vmatprep.subr.bf16.mxu0 %v14858_v53 }
  0x8c   : > { %v1240_v15 = vor.u32 %v1239_v8, %v1235_v7  ;;  %v711_v49 = vshrl.u32 %v14837_v22, 16  ;;  %v714_v17 = vshll.u32 %v14837_v22, 16  ;;  %12797 = vmatmul.mubr.bf16.gmra.mrb[8].mxu0 %v11475_v10  ;;  %v1026_v18 = vld [vmem:[#allocation2 + $0x54] sm:$0xf]  ;;  %951 = vst [vmem:[#allocation2 + $0x60] sm:$0xf] %v950_v16  ;;  %v12296_v6 = vpack.c.bf16 %v463_v2, %v463_v2 }
  0x8d   : > { %v1231_v56 = vrot.slane %v1230_v11, 4  ;;  %v1027_v19 = vld [vmem:[#allocation2 + $0x58] sm:$0xf]  ;;  %v708_v20 = vsel %vm14708_vm15, %v700_v52, %v707_v12  ;;  %v954_v21 = vsel %vm14690_vm13, %v709_v14, %v953_v1  ;;  %v719_v24 = vshrl.u32 %v14839_v23, 16  ;;  %v1067_v26 = vld [vmem:[#allocation2 + $0x5c] sm:$0x1] }
  0x8e   : > { %v1241_v25 = vrot.slane %v1240_v15, 4  ;;  %v1248_v27 = vshrl.u32 %v1026_v18, 16  ;;  %v1251_v22 = vshll.u32 %v1026_v18, 16  ;;  %v1257_v29 = vshll.u32 %v1027_v19, 16  ;;  %952 = vst [vmem:[#allocation2 + $0x64] sm:$0xf] %v708_v20 }
  0x8f   : > { %955 = vst [vmem:[#allocation2 + $0x68] sm:$0x1] %v954_v21  ;;  %v1236_v32 = vsel %vm14684_vm11, %v1231_v56, %v1235_v7  ;;  %v1261_v33 = vshrl.u32 %v1027_v19, 16  ;;  %v1267_v34 = vshll.u32 %v1067_v26, 16  ;;  %v713_v37 = vrot.slane %v711_v49, 7  ;;  %v464_v52 = vld [vmem:[%s14518_s24 + $0xa8] sm:$0xff] }
  0x90   : > { %v1246_v38 = vsel %vm14684_vm11, %v1241_v25, %v1245_v9  ;;  %v1250_v39 = vrot.slane %v1248_v27, 4  ;;  %v1253_v40 = vrot.slane %v1251_v22, 5  ;;  %v1259_v43 = vrot.slane %v1257_v29, 5  ;;  %v963_v26 = vld [vmem:[#allocation2 + $0x78] sm:$0xf]  ;;  %v465_v2 = vld [vmem:[%s14518_s24 + $0xb0] sm:$0xff] }
  0x91   : > { %v11476_v44 = vcombine.low %v1236_v32, %v1246_v38  ;;  %v1263_v45 = vrot.slane %v1261_v33, 4  ;;  %v1269_v47 = vrot.slane %v1267_v34, 5  ;;  %v716_v48 = vor.u32 %v714_v17, %v713_v37  ;;  %v967_v27 = vld [vmem:[#allocation2 + $0x80] sm:$0x1] }
  0x92   : > { %v1254_v13 = vor.u32 %v1253_v40, %v1250_v39  ;;  %v717_v41 = vrot.slane %v713_v37, 4  ;;  %v721_v50 = vrot.slane %v719_v24, 7  ;;  %v722_v51 = vshll.u32 %v14839_v23, 16 }
  0x93   : > { %12800 = vmatprep.mubr.bf16.mxu0 %v11476_v44  ;;  %v1264_v54 = vor.u32 %v1263_v45, %v1259_v43  ;;  %v957_v55 = vsel %vm14700_vm14, %v716_v48, %v956_v31  ;;  %v728_v57 = vshrl.u32 %v14860_v59, 16  ;;  %v731_v35 = vshll.u32 %v14860_v59, 16  ;;  %v1028_v61 = vld [vmem:[#allocation2 + $0x60] sm:$0xf]  ;;  %v466_v48 = vld [vmem:[%s14518_s24 + $0xb8] sm:$0xff] }
  0x94   : > { %v1255_v58 = vrot.slane %v1254_v13, 4  ;;  %v724_v62 = vor.u32 %v722_v51, %v721_v50  ;;  %v726_v63 = vrot.slane %v721_v50, 4  ;;  %958 = vst [vmem:[#allocation2 + $0x6c] sm:$0xf] %v957_v55  ;;  %v736_v1 = vshrl.u32 %v14862_v60, 16 }
  0x95   : > { %v1265_v3 = vrot.slane %v1264_v54, 4  ;;  %v1029_v23 = vld [vmem:[#allocation2 + $0x64] sm:$0xf]  ;;  %v1272_v5 = vshrl.u32 %v1028_v61, 16  ;;  %v14889_v28 = vpack.c.bf16 %v464_v52, %v464_v52  ;;  %v1275_v8 = vshll.u32 %v1028_v61, 16 }
  0x96   : > { %v1068_v4 = vld [vmem:[#allocation2 + $0x68] sm:$0x1]  ;;  %v1260_v7 = vsel %vm14684_vm11, %v1255_v58, %v1259_v43  ;;  %v1281_v59 = vshll.u32 %v1029_v23, 16  ;;  %v1285_v9 = vshrl.u32 %v1029_v23, 16  ;;  %v725_v14 = vsel %vm14708_vm15, %v717_v41, %v724_v62  ;;  %v970_v43 = vld [vmem:[#allocation2 + $0x84] sm:$0xf] }
  0x97   : > { %v1270_v10 = vsel %vm14684_vm11, %v1265_v3, %v1269_v47  ;;  %v1274_v11 = vrot.slane %v1272_v5, 4  ;;  %v1291_v12 = vshll.u32 %v1068_v4, 16  ;;  %v1277_v16 = vrot.slane %v1275_v8, 5  ;;  %959 = vst [vmem:[#allocation2 + $0x70] sm:$0xf] %v725_v14 }
  0x98   : > { %v11477_v15 = vcombine.low %v1260_v7, %v1270_v10  ;;  %v1283_v49 = vrot.slane %v1281_v59, 5  ;;  %v1287_v17 = vrot.slane %v1285_v9, 4  ;;  %v961_v18 = vsel %vm14690_vm13, %v726_v63, %v960_v0  ;;  %v467_v59 = vld [vmem:[%s14518_s24 + $0xc0] sm:$0xff] }
  0x99   : > { %v1293_v56 = vrot.slane %v1291_v12, 5  ;;  %v730_v19 = vrot.slane %v728_v57, 7  ;;  %v738_v20 = vrot.slane %v736_v1, 7  ;;  %v1278_v21 = vor.u32 %v1277_v16, %v1274_v11  ;;  %962 = vst [vmem:[#allocation2 + $0x74] sm:$0x1] %v961_v18 }
  0x9a   : > { %12801 = vmatmul.mubr.bf16.gmra.mrb[12].mxu0 %v11477_v15  ;;  %v1288_v24 = vor.u32 %v1287_v17, %v1283_v49  ;;  %v739_v25 = vshll.u32 %v14862_v60, 16  ;;  %v745_v22 = vshrl.u32 %v12296_v6, 16  ;;  %v748_v34 = vshll.u32 %v12296_v6, 16  ;;  %v974_v16 = vld [vmem:[#allocation2 + $0x8c] sm:$0x1] }
  0x9b   : > { %v14900_v29 = vld [vmem:[#allocation2 + $0x6c] sm:$0xf]  ;;  %v733_v31 = vor.u32 %v731_v35, %v730_v19  ;;  %v734_v32 = vrot.slane %v730_v19, 4  ;;  %v743_v33 = vrot.slane %v738_v20, 4  ;;  %v1279_v37 = vrot.slane %v1278_v21, 4 }
  0x9c   : > { %v1289_v38 = vrot.slane %v1288_v24, 4  ;;  %v1296_v39 = vshrl.u32 %v14900_v29, 16  ;;  %v1299_v40 = vshll.u32 %v14900_v29, 16  ;;  %v741_v44 = vor.u32 %v739_v25, %v738_v20 }
  0x9d   : > { %v964_v60 = vsel %vm14700_vm14, %v733_v31, %v963_v26  ;;  %v968_v45 = vsel %vm14690_vm13, %v743_v33, %v967_v27  ;;  %v747_v47 = vrot.slane %v745_v22, 7  ;;  %v1284_v13 = vsel %vm14684_vm11, %v1279_v37, %v1283_v49  ;;  %v977_v22 = vld [vmem:[#allocation2 + $0x90] sm:$0xf] }
  0x9e   : > { %v1294_v41 = vsel %vm14684_vm11, %v1289_v38, %v1293_v56  ;;  %v1298_v50 = vrot.slane %v1296_v39, 4  ;;  %v1301_v51 = vrot.slane %v1299_v40, 5  ;;  %965 = vst [vmem:[#allocation2 + $0x78] sm:$0xf] %v964_v60  ;;  %969 = vst [vmem:[#allocation2 + $0x80] sm:$0x1] %v968_v45  ;;  %v742_v55 = vsel %vm14708_vm15, %v734_v32, %v741_v44 }
  0x9f   : > { %v11478_v52 = vcombine.low %v1284_v13, %v1294_v41  ;;  %v14914_v54 = vld [vmem:[#allocation2 + $0x70] sm:$0xf]  ;;  %v750_v57 = vor.u32 %v748_v34, %v747_v47  ;;  %v751_v35 = vrot.slane %v747_v47, 4  ;;  %966 = vst [vmem:[#allocation2 + $0x7c] sm:$0xf] %v742_v55  ;;  %v753_v63 = vshrl.u32 %v14889_v28, 16 }
  0xa0   : > { %v1302_v58 = vor.u32 %v1301_v51, %v1298_v50  ;;  %v1305_v61 = vshll.u32 %v14914_v54, 16  ;;  %v1309_v62 = vshrl.u32 %v14914_v54, 16  ;;  %v14921_v0 = vld [vmem:[#allocation2 + $0x74] sm:$0x1]  ;;  %v756_v1 = vshll.u32 %v14889_v28, 16 }
  0xa1   : > { %12804 = vmatprep.mubr.bf16.mxu0 %v11478_v52  ;;  %v971_v3 = vsel %vm14700_vm14, %v750_v57, %v970_v43  ;;  %v12298_v23 = vpack.c.bf16 %v465_v2, %v465_v2  ;;  %v12299_v4 = vpack.c.bf16 %v466_v48, %v466_v48  ;;  %v1315_v8 = vshll.u32 %v14921_v0, 16  ;;  %v468_v48 = vld [vmem:[%s14518_s24 + $0xc8] sm:$0xff]  ;;  %v981_v52 = vld [vmem:[#allocation2 + $0x98] sm:$0x1] }
  0xa2   : > { %v1303_v5 = vrot.slane %v1302_v58, 4  ;;  %v1307_v6 = vrot.slane %v1305_v61, 5  ;;  %v1311_v7 = vrot.slane %v1309_v62, 4  ;;  %972 = vst [vmem:[#allocation2 + $0x84] sm:$0xf] %v971_v3  ;;  %v755_v9 = vrot.slane %v753_v63, 7 }
  0xa3   : > { %v762_v10 = vshrl.u32 %v12298_v23, 16  ;;  %v765_v11 = vshll.u32 %v12298_v23, 16  ;;  %v770_v12 = vshrl.u32 %v12299_v4, 16  ;;  %v1317_v15 = vrot.slane %v1315_v8, 5  ;;  %v469_v61 = vld [vmem:[%s14518_s24 + $0xd0] sm:$0xff]  ;;  %v470_v23 = vld [vmem:[%s14518_s24 + $0xd8] sm:$0xff] }
  0xa4   : > { %v1308_v14 = vsel %vm14684_vm11, %v1303_v5, %v1307_v6  ;;  %v1312_v28 = vor.u32 %v1311_v7, %v1307_v6  ;;  %v773_v49 = vshll.u32 %v12299_v4, 16  ;;  %v758_v18 = vor.u32 %v756_v1, %v755_v9 }
  0xa5   : > { %v14930_v17 = vld [vmem:[#allocation2 + $0x78] sm:$0xf]  ;;  %v14932_v56 = vld [vmem:[#allocation2 + $0x80] sm:$0x1]  ;;  %v760_v19 = vrot.slane %v755_v9, 4  ;;  %v764_v20 = vrot.slane %v762_v10, 7  ;;  %v14934_v21 = vpack.c.bf16 %v467_v59, %v467_v59  ;;  %v12301_v3 = vpack.c.bf16 %v468_v48, %v468_v48 }
  0xa6   : > { %v1313_v24 = vrot.slane %v1312_v28, 4  ;;  %v1320_v25 = vshrl.u32 %v14930_v17, 16  ;;  %v1323_v26 = vshll.u32 %v14930_v17, 16  ;;  %v1339_v27 = vshll.u32 %v14932_v56, 16  ;;  %v14939_v31 = vld [vmem:[#allocation2 + $0x7c] sm:$0xf] }
  0xa7   : > { %v759_v32 = vsel %vm14708_vm15, %v751_v35, %v758_v18  ;;  %v975_v33 = vsel %vm14690_vm13, %v760_v19, %v974_v16  ;;  %v767_v34 = vor.u32 %v765_v11, %v764_v20  ;;  %v768_v37 = vrot.slane %v764_v20, 4  ;;  %v984_v11 = vld [vmem:[#allocation2 + $0x9c] sm:$0xf] }
  0xa8   : > { %v1318_v38 = vsel %vm14684_vm11, %v1313_v24, %v1317_v15  ;;  %v1322_v39 = vrot.slane %v1320_v25, 4  ;;  %v1325_v40 = vrot.slane %v1323_v26, 5  ;;  %v1329_v43 = vshll.u32 %v14939_v31, 16  ;;  %973 = vst [vmem:[#allocation2 + $0x88] sm:$0xf] %v759_v32 }
  0xa9   : > { %976 = vst [vmem:[#allocation2 + $0x8c] sm:$0x1] %v975_v33  ;;  %v11479_v2 = vcombine.low %v1308_v14, %v1318_v38  ;;  %v1333_v44 = vshrl.u32 %v14939_v31, 16  ;;  %v1341_v60 = vrot.slane %v1339_v27, 5  ;;  %v14949_v45 = vld [vmem:[#allocation2 + $0x84] sm:$0xf]  ;;  %v978_v58 = vsel %vm14700_vm14, %v767_v34, %v977_v22 }
  0xaa   : > { %v772_v47 = vrot.slane %v770_v12, 7  ;;  %v1326_v13 = vor.u32 %v1325_v40, %v1322_v39  ;;  %v1331_v41 = vrot.slane %v1329_v43, 5  ;;  %v1344_v50 = vshrl.u32 %v14949_v45, 16  ;;  %979 = vst [vmem:[#allocation2 + $0x90] sm:$0xf] %v978_v58 }
  0xab   : > { %v1347_v51 = vshll.u32 %v14949_v45, 16  ;;  %12805 = vmatmul.mubr.bf16.gmra.mrb[16].mxu0 %v11479_v2  ;;  %v1335_v55 = vrot.slane %v1333_v44, 4  ;;  %v779_v7 = vshrl.u32 %v14934_v21, 16  ;;  %v782_v9 = vshll.u32 %v14934_v21, 16 }
  0xac   : > { %v775_v57 = vor.u32 %v773_v49, %v772_v47  ;;  %v777_v35 = vrot.slane %v772_v47, 4  ;;  %v1327_v62 = vrot.slane %v1326_v13, 4  ;;  %v1346_v63 = vrot.slane %v1344_v50, 4 }
  0xad   : > { %v1349_v1 = vrot.slane %v1347_v51, 5  ;;  %v1336_v4 = vor.u32 %v1335_v55, %v1331_v41  ;;  %v787_v10 = vshrl.u32 %v12301_v3, 16  ;;  %v781_v15 = vrot.slane %v779_v7, 7 }
  0xae   : > { %v776_v5 = vsel %vm14708_vm15, %v768_v37, %v775_v57  ;;  %v982_v6 = vsel %vm14690_vm13, %v777_v35, %v981_v52  ;;  %v1332_v8 = vsel %vm14684_vm11, %v1327_v62, %v1331_v41  ;;  %v12302_v16 = vpack.c.bf16 %v469_v61, %v469_v61  ;;  %v988_v37 = vld [vmem:[#allocation2 + $0xa4] sm:$0x1]  ;;  %v991_v57 = vld [vmem:[#allocation2 + $0xa8] sm:$0xf] }
  0xaf   : > { %v1350_v59 = vor.u32 %v1349_v1, %v1346_v63  ;;  %980 = vst [vmem:[#allocation2 + $0x94] sm:$0xf] %v776_v5  ;;  %983 = vst [vmem:[#allocation2 + $0x98] sm:$0x1] %v982_v6  ;;  %v1337_v12 = vrot.slane %v1336_v4, 4  ;;  %v14970_v49 = vpack.c.bf16 %v470_v23, %v470_v23  ;;  %v784_v25 = vor.u32 %v782_v9, %v781_v15  ;;  %v471_v35 = vld [vmem:[%s14518_s24 + $0xe0] sm:$0xff] }
  0xb0   : > { %v14966_v14 = vld [vmem:[#allocation2 + $0x88] sm:$0xf]  ;;  %v14968_v28 = vld [vmem:[#allocation2 + $0x8c] sm:$0x1]  ;;  %v785_v26 = vrot.slane %v781_v15, 4  ;;  %v789_v27 = vrot.slane %v787_v10, 7 }
  0xb1   : > { %v1351_v18 = vrot.slane %v1350_v59, 4  ;;  %v1353_v19 = vshll.u32 %v14966_v14, 16  ;;  %v1357_v20 = vshrl.u32 %v14966_v14, 16  ;;  %v1363_v24 = vshll.u32 %v14968_v28, 16  ;;  %v14977_v38 = vld [vmem:[#allocation2 + $0x90] sm:$0xf] }
  0xb2   : > { %v1342_v21 = vsel %vm14684_vm11, %v1337_v12, %v1341_v60  ;;  %v790_v39 = vshll.u32 %v12301_v3, 16  ;;  %v794_v40 = vrot.slane %v789_v27, 4  ;;  %v985_v43 = vsel %vm14700_vm14, %v784_v25, %v984_v11  ;;  %v995_v25 = vld [vmem:[#allocation2 + $0xb0] sm:$0x1] }
  0xb3   : > { %v11480_v22 = vcombine.low %v1332_v8, %v1342_v21  ;;  %v1355_v32 = vrot.slane %v1353_v19, 5  ;;  %v1359_v33 = vrot.slane %v1357_v20, 4  ;;  %v1365_v34 = vrot.slane %v1363_v24, 5  ;;  %986 = vst [vmem:[#allocation2 + $0x9c] sm:$0xf] %v985_v43  ;;  %v472_v8 = vld [vmem:[%s14518_s24 + $0xe8] sm:$0xff] }
  0xb4   : > { %v796_v2 = vshrl.u32 %v12302_v16, 16  ;;  %v1368_v47 = vshrl.u32 %v14977_v38, 16  ;;  %v1371_v48 = vshll.u32 %v14977_v38, 16  ;;  %v792_v50 = vor.u32 %v790_v39, %v789_v27 }
  0xb5   : > { %12808 = vmatprep.mubr.bf16.mxu0 %v11480_v22  ;;  %v1356_v44 = vsel %vm14684_vm11, %v1351_v18, %v1355_v32  ;;  %v1360_v60 = vor.u32 %v1359_v33, %v1355_v32  ;;  %v989_v51 = vsel %vm14690_vm13, %v794_v40, %v988_v37  ;;  %v799_v55 = vshll.u32 %v12302_v16, 16 }
  0xb6   : > { %v14985_v13 = vld [vmem:[#allocation2 + $0x94] sm:$0xf]  ;;  %v14987_v41 = vld [vmem:[#allocation2 + $0x98] sm:$0x1]  ;;  %v798_v52 = vrot.slane %v796_v2, 7  ;;  %v1370_v61 = vrot.slane %v1368_v47, 4  ;;  %v793_v23 = vsel %vm14708_vm15, %v785_v26, %v792_v50  ;;  %v12304_v18 = vpack.c.bf16 %v471_v35, %v471_v35 }
  0xb7   : > { %v1361_v58 = vrot.slane %v1360_v60, 4  ;;  %v1373_v62 = vrot.slane %v1371_v48, 5  ;;  %v1377_v63 = vshll.u32 %v14985_v13, 16  ;;  %990 = vst [vmem:[#allocation2 + $0xa4] sm:$0x1] %v989_v51  ;;  %v1381_v1 = vshrl.u32 %v14985_v13, 16 }
  0xb8   : > { %v1387_v3 = vshll.u32 %v14987_v41, 16  ;;  %v801_v4 = vor.u32 %v799_v55, %v798_v52  ;;  %987 = vst [vmem:[#allocation2 + $0xa0] sm:$0xf] %v793_v23  ;;  %v802_v10 = vrot.slane %v798_v52, 4  ;;  %v804_v11 = vshrl.u32 %v14970_v49, 16 }
  0xb9   : > { %v1366_v5 = vsel %vm14684_vm11, %v1361_v58, %v1365_v34  ;;  %v1374_v6 = vor.u32 %v1373_v62, %v1370_v61  ;;  %v1379_v7 = vrot.slane %v1377_v63, 5  ;;  %v1383_v9 = vrot.slane %v1381_v1, 4  ;;  %v998_v47 = vld [vmem:[#allocation2 + $0xb4] sm:$0xf] }
  0xba   : > { %v11481_v59 = vcombine.low %v1356_v44, %v1366_v5  ;;  %v807_v15 = vshll.u32 %v14970_v49, 16  ;;  %v992_v16 = vsel %vm14700_vm14, %v801_v4, %v991_v57  ;;  %v1389_v20 = vrot.slane %v1387_v3, 5  ;;  %v15004_v24 = vld [vmem:[#allocation2 + $0x9c] sm:$0xf] }
  0xbb   : > { %v1375_v12 = vrot.slane %v1374_v6, 4  ;;  %v1384_v19 = vor.u32 %v1383_v9, %v1379_v7  ;;  %v806_v21 = vrot.slane %v804_v11, 7  ;;  %993 = vst [vmem:[#allocation2 + $0xa8] sm:$0xf] %v992_v16  ;;  %v12305_v26 = vpack.c.bf16 %v472_v8, %v472_v8  ;;  %v1002_v3 = vld [vmem:[#allocation2 + $0xbc] sm:$0x1] }
  0xbc   : > { %12809 = vmatmul.mubr.bf16.gmra.mrb[20].mxu0 %v11481_v59  ;;  %v1392_v22 = vshrl.u32 %v15004_v24, 16  ;;  %v1395_v49 = vshll.u32 %v15004_v24, 16  ;;  %v813_v32 = vshrl.u32 %v12304_v18, 16  ;;  %v816_v40 = vshll.u32 %v12304_v18, 16 }
  0xbd   : > { %v1380_v27 = vsel %vm14684_vm11, %v1375_v12, %v1379_v7  ;;  %v1385_v33 = vrot.slane %v1384_v19, 4  ;;  %v809_v37 = vor.u32 %v807_v15, %v806_v21  ;;  %v811_v39 = vrot.slane %v806_v21, 4 }
  0xbe   : > { %v15010_v34 = vld [vmem:[#allocation2 + $0xa4] sm:$0x1]  ;;  %v1394_v43 = vrot.slane %v1392_v22, 4  ;;  %v1397_v2 = vrot.slane %v1395_v49, 5  ;;  %v815_v60 = vrot.slane %v813_v32, 7  ;;  %v821_v55 = vshrl.u32 %v12305_v26, 16 }
  0xbf   : > { %v1411_v44 = vshll.u32 %v15010_v34, 16  ;;  %v1390_v48 = vsel %vm14684_vm11, %v1385_v33, %v1389_v20  ;;  %v15015_v50 = vld [vmem:[#allocation2 + $0xa0] sm:$0xf]  ;;  %v810_v51 = vsel %vm14708_vm15, %v802_v10, %v809_v37  ;;  %v996_v52 = vsel %vm14690_vm13, %v811_v39, %v995_v25 }
  0xc0   : > { %v11482_v57 = vcombine.low %v1380_v27, %v1390_v48  ;;  %v1398_v35 = vor.u32 %v1397_v2, %v1394_v43  ;;  %v1401_v58 = vshll.u32 %v15015_v50, 16  ;;  %v1405_v61 = vshrl.u32 %v15015_v50, 16  ;;  %994 = vst [vmem:[#allocation2 + $0xac] sm:$0xf] %v810_v51  ;;  %997 = vst [vmem:[#allocation2 + $0xb0] sm:$0x1] %v996_v52 }
  0xc1   : > { %v818_v62 = vor.u32 %v816_v40, %v815_v60  ;;  %v819_v63 = vrot.slane %v815_v60, 4  ;;  %v823_v1 = vrot.slane %v821_v55, 7  ;;  %v824_v7 = vshll.u32 %v12305_v26, 16 }
  0xc2   : > { %12812 = vmatprep.mubr.bf16.mxu0 %v11482_v57  ;;  %v1399_v23 = vrot.slane %v1398_v35, 4  ;;  %v1403_v4 = vrot.slane %v1401_v58, 5  ;;  %v1407_v5 = vrot.slane %v1405_v61, 4  ;;  %v15023_v6 = vld [vmem:[#allocation2 + $0xa8] sm:$0xf]  ;;  %v1413_v12 = vrot.slane %v1411_v44, 5 }
  0xc3   : > { %v1416_v8 = vshrl.u32 %v15023_v6, 16  ;;  %v1419_v59 = vshll.u32 %v15023_v6, 16  ;;  %v828_v9 = vrot.slane %v823_v1, 4  ;;  %v999_v10 = vsel %vm14700_vm14, %v818_v62, %v998_v47 }
  0xc4   : > { %v1408_v11 = vor.u32 %v1407_v5, %v1403_v4  ;;  %v826_v15 = vor.u32 %v824_v7, %v823_v1  ;;  %1000 = vst [vmem:[#allocation2 + $0xb4] sm:$0xf] %v999_v10  ;;  %v1404_v20 = vsel %vm14684_vm11, %v1399_v23, %v1403_v4  ;;  %v11503_v43 = vcombine.low %v14900_v29, %v14914_v54 }
  0xc5   : > { %v1418_v16 = vrot.slane %v1416_v8, 4  ;;  %v1421_v18 = vrot.slane %v1419_v59, 5  ;;  %v1003_v19 = vsel %vm14690_vm13, %v828_v9, %v1002_v3  ;;  %v11504_v47 = vcombine.low %v14930_v17, %v14939_v31 }
  0xc6   : > { %v1409_v21 = vrot.slane %v1408_v11, 4  ;;  %v827_v25 = vsel %vm14708_vm15, %v819_v63, %v826_v15  ;;  %1004 = vst [vmem:[#allocation2 + $0xbc] sm:$0x1] %v1003_v19  ;;  %v11505_v51 = vcombine.low %v14949_v45, %v14966_v14  ;;  %v11506_v52 = vcombine.low %v14977_v38, %v14985_v13  ;;  %v2059_v38 = vld [vmem:[#allocation2 + $0xc] sm:$0xe] }
  0xc7   : > { %v15035_v26 = vld [vmem:[#allocation2 + $0xac] sm:$0xf]  ;;  %v15037_v27 = vld [vmem:[#allocation2 + $0xb0] sm:$0x1]  ;;  %v1422_v22 = vor.u32 %v1421_v18, %v1418_v16  ;;  %1001 = vst [vmem:[#allocation2 + $0xb8] sm:$0xf] %v827_v25  ;;  %v11507_v55 = vcombine.low %v15004_v24, %v15015_v50 }
  0xc8   : > { %v1414_v49 = vsel %vm14684_vm11, %v1409_v21, %v1413_v12  ;;  %v1425_v32 = vshll.u32 %v15035_v26, 16  ;;  %v1429_v33 = vshrl.u32 %v15035_v26, 16  ;;  %v1435_v37 = vshll.u32 %v15037_v27, 16 }
  0xc9   : > { %v11483_v39 = vcombine.low %v1404_v20, %v1414_v49  ;;  %v1423_v40 = vrot.slane %v1422_v22, 4  ;;  %v11508_v57 = vcombine.low %v15023_v6, %v15035_v26  ;;  %v14397_v22 = vld [vmem:[#allocation2] sm:$0xf]  ;;  %v15077_v49 = vld [vmem:[#allocation2 + $0x4] sm:$0xf]  ;;  %vm2107_vm1 = vcmask 1046532  }
  0xca   : > { %v1427_v2 = vrot.slane %v1425_v32, 5  ;;  %v1431_v44 = vrot.slane %v1429_v33, 4  ;;  %v1437_v60 = vrot.slane %v1435_v37, 5  ;;  %v11494_v32 = vcombine.low %v14397_v22, %v15077_v49  ;;  %v2067_v37 = vld [vmem:[#allocation2 + $0x6c] sm:$0xe]  ;;  %vm15090_vm2 = vmor %vm2106_vm0, %vm2107_vm1 }
  0xcb   : > { %12813 = vmatmul.mubr.bf16.gmra.mrb[24].mxu0 %v11483_v39  ;;  %v15048_v48 = vld [vmem:[#allocation2 + $0xb4] sm:$0xf]  ;;  %v2068_v39 = vld [vmem:[#allocation2 + $0x78] sm:$0xe]  ;;  %v2184_v22 = vrot.slane %v14932_v56, 5 }
  0xcc   : > { %v1432_v35 = vor.u32 %v1431_v44, %v1427_v2  ;;  %v1440_v58 = vshrl.u32 %v15048_v48, 16  ;;  %v1443_v61 = vshll.u32 %v15048_v48, 16  ;;  %v1428_v62 = vsel %vm14684_vm11, %v1423_v40, %v1427_v2  ;;  %v14399_v40 = vld [vmem:[#allocation2 + $0xc] sm:$0xf]  ;;  %v15080_v2 = vld [vmem:[#allocation2 + $0x10] sm:$0xf] }
  0xcd   : > { %v15062_v63 = vld [vmem:[#allocation2 + $0xbc] sm:$0x1]  ;;  %v11495_v44 = vcombine.low %v14399_v40, %v15080_v2  ;;  %v2191_v40 = vrot.slane %v14968_v28, 5  ;;  %v2198_v28 = vrot.slane %v14987_v41, 5  ;;  %v2205_v41 = vrot.slane %v15010_v34, 5 }
  0xce   : > { %v1433_v1 = vrot.slane %v1432_v35, 4  ;;  %v15064_v3 = vld [vmem:[#allocation2 + $0xb8] sm:$0xf]  ;;  %v1442_v23 = vrot.slane %v1440_v58, 4  ;;  %v1445_v4 = vrot.slane %v1443_v61, 5  ;;  %v1459_v5 = vshll.u32 %v15062_v63, 16 }
  0xcf   : > { %v1449_v7 = vshll.u32 %v15064_v3, 16  ;;  %v1453_v8 = vshrl.u32 %v15064_v3, 16  ;;  %v11509_v59 = vcombine.low %v15048_v48, %v15064_v3  ;;  %v14401_v35 = vld [vmem:[#allocation2 + $0x18] sm:$0xf]  ;;  %v15086_v58 = vld [vmem:[#allocation2 + $0x1c] sm:$0xf] }
  0xd0   : > { %v1438_v9 = vsel %vm14684_vm11, %v1433_v1, %v1437_v60  ;;  %v1446_v10 = vor.u32 %v1445_v4, %v1442_v23  ;;  %v1461_v19 = vrot.slane %v1459_v5, 5  ;;  %v14178_v60 = vld [vmem:[%s18195_s1 + $0x88] sm:$0xff]   ;;  %v11496_v61 = vcombine.low %v14401_v35, %v15086_v58  ;;  %v2070_v4 = vld [vmem:[#allocation2 + $0x90] sm:$0xe] }
  0xd1   : > { %v11484_v11 = vcombine.low %v1428_v62, %v1438_v9  ;;  %v1451_v12 = vrot.slane %v1449_v7, 5  ;;  %v1455_v15 = vrot.slane %v1453_v8, 4  ;;  %v2069_v62 = vld [vmem:[#allocation2 + $0x84] sm:$0xe]  ;;  %v11527_v1 = vrot.slane %v2067_v37, 9 }
  0xd2   : > { %v1447_v16 = vrot.slane %v1446_v10, 4  ;;  %v2174_v23 = vrot.slane %v14914_v54, 5  ;;  %v2177_v7 = vrot.slane %v14921_v0, 5  ;;  %v11528_v8 = vrot.slane %v2068_v39, 9  ;;  %v15096_v10 = vld [vmem:[#allocation2 + $0x28] sm:$0xf] }
  0xd3   : > { %12816 = vmatprep.mubr.bf16.mxu0 %v11484_v11  ;;  %v1456_v18 = vor.u32 %v1455_v15, %v1451_v12  ;;  %v2181_v9 = vrot.slane %v14939_v31, 5  ;;  %v14404_v11 = vld [vmem:[#allocation2 + $0x24] sm:$0xf]  ;;  %v15104_v0 = vld [vmem:[#allocation2 + $0x34] sm:$0xf]  ;;  %v11529_v37 = vrot.slane %v2069_v62, 9 }
  0xd4   : > { %v1452_v20 = vsel %vm14684_vm11, %v1447_v16, %v1451_v12  ;;  %v11497_v12 = vcombine.low %v14404_v11, %v15096_v10  ;;  %v15101_v15 = vsel %vm15090_vm2, %v11527_v1, %v2174_v23  ;;  %v2176_v16 = vrot.slane %v2174_v23, 4 }
  0xd5   : > { %v1457_v21 = vrot.slane %v1456_v18, 4  ;;  %v2071_v18 = vld [vmem:[#allocation2 + $0x9c] sm:$0xe]  ;;  %v2188_v39 = vrot.slane %v14966_v14, 5  ;;  %v11530_v35 = vrot.slane %v2070_v4, 9  ;;  %v2202_v11 = vrot.slane %v15015_v50, 5 }
  0xd6   : > { %v11531_v4 = vrot.slane %v2071_v18, 9  ;;  %v11519_v50 = vrot.slane %v2059_v38, 9  ;;  %v2139_v48 = vrot.slane %v15104_v0, 5 }
  0xd7   : > { %v1462_v25 = vsel %vm14684_vm11, %v1457_v21, %v1461_v19  ;;  %v14405_v19 = vld [vmem:[#allocation2 + $0x30] sm:$0xf]  ;;  %v15109_v21 = vsel %vm15090_vm2, %v11528_v8, %v2181_v9  ;;  %v15132_v62 = vsel %vm15090_vm2, %v11529_v37, %v2188_v39  ;;  %v2190_v23 = vrot.slane %v2188_v39, 4 }
  0xd8   : > { %v11485_v33 = vcombine.low %v1452_v20, %v1462_v25  ;;  %v11498_v20 = vcombine.low %v14405_v19, %v15104_v0  ;;  %v2183_v25 = vrot.slane %v2181_v9, 4  ;;  %v15157_v37 = vsel %vm15090_vm2, %v11531_v4, %v2202_v11 }
  0xd9   : > { %v15145_v19 = vsel %vm15090_vm2, %v2190_v23, %v2191_v40  ;;  %v2204_v39 = vrot.slane %v2202_v11, 4  ;;  %v14407_v11 = vld [vmem:[#allocation2 + $0x3c] sm:$0xf] }
  0xda   : > { %12817 = vmatmul.mubr.bf16.gmra.mrb[28].mxu0 %v11485_v33  ;;  %v14181_v33 = vld [vmem:[%s18195_s1 + $0x90] sm:$0xff]   ;;  %v15125_v56 = vsel %vm15090_vm2, %v2183_v25, %v2184_v22  ;;  %v2209_v25 = vrot.slane %v15035_v26, 5  ;;  %v11561_v22 = vcombine.low %v15132_v62, %v15145_v19  ;;  %v2061_v26 = vld [vmem:[#allocation2 + $0x24] sm:$0xe]  ;;  %v14210_v62 = vld [vmem:[%s18195_s1 + $0x108] sm:$0xff]  }
  0xdb   : > { %12836 = vmatprep.mubr.bf16.mxu0 %v11494_v32  ;;  %v2072_v32 = vld [vmem:[#allocation2 + $0xa8] sm:$0xe]  ;;  %v11560_v1 = vcombine.low %v15109_v21, %v15125_v56  ;;  %v15171_v23 = vsel %vm15090_vm2, %v2204_v39, %v2205_v41  ;;  %v15187_v41 = vld [vmem:[#allocation2 + $0x40] sm:$0xf]  ;;  %v15193_v39 = vld [vmem:[#allocation2 + $0x4c] sm:$0xf] }
  0xdc   : > { %v11563_v4 = vcombine.low %v15157_v37, %v15171_v23  ;;  %v14206_v56 = vld [vmem:[#allocation2 + $0x18] sm:$0xff]   ;;  %v14213_v19 = vld [vmem:[%s18195_s1 + $0x110] sm:$0xff]   ;;  %v2929_v37 = vld [vmem:[#allocation2 + $0xc] sm:$0xf] }
  0xdd   : > { %v15358_v23 = vld [vmem:[#allocation2 + $0x4c] sm:$0xf] }
  0xe2   : > { %12837 = vmatmul.mubr.bf16.vlgmr.msra.gmra.mrb[0].mxu0 %v11495_v44 }
  0xe3   : > { %12869 = vmatpush3.bf16.msra.mxu0 %v14858_v53  ;;  %12840 = vmatprep.mubr.bf16.mxu0 %v11496_v61  ;;  %v15117_v53 = vsel %vm15090_vm2, %v2176_v16, %v2177_v7  ;;  %v2195_v61 = vrot.slane %v14985_v13, 5  ;;  %v2073_v7 = vld [vmem:[#allocation2 + $0xb4] sm:$0xe]  ;;  %v14184_v16 = vld [vmem:[%s18195_s1 + $0x98] sm:$0xff]  }
  0xe4   : > { %12870 = vmatprep.subr.bf16.mxu0 %v14178_v60  ;;  %v11559_v44 = vcombine.low %v15101_v15, %v15117_v53  ;;  %v2060_v13 = vld [vmem:[#allocation2 + $0x18] sm:$0xe]  ;;  %v14205_v53 = vld [vmem:[#allocation2 + $0xc] sm:$0xff]  }
  0xe5   : > { %v15137_v8 = vsel %vm15090_vm2, %v11530_v35, %v2195_v61  ;;  %v2197_v9 = vrot.slane %v2195_v61, 4  ;;  %v2212_v35 = vrot.slane %v15037_v27, 5  ;;  %v14187_v61 = vld [vmem:[%s18195_s1 + $0xa0] sm:$0xff]  }
  0xe7   : > { %12871 = vmatpush3.bf16.msra.mxu0 %v14178_v60  ;;  %v11532_v60 = vrot.slane %v2072_v32, 9  ;;  %v15153_v18 = vsel %vm15090_vm2, %v2197_v9, %v2198_v28  ;;  %v2211_v32 = vrot.slane %v2209_v25, 4  ;;  %v2216_v28 = vrot.slane %v15064_v3, 5 }
  0xe8   : > { %12872 = vmatprep.subr.bf16.mxu0 %v14181_v33  ;;  %v11562_v40 = vcombine.low %v15137_v8, %v15153_v18  ;;  %v2219_v9 = vrot.slane %v15062_v63, 5  ;;  %v11499_v63 = vcombine.low %v14407_v11, %v15187_v41  ;;  %v14411_v11 = vld [vmem:[#allocation2 + $0x54] sm:$0xf]  ;;  %v14216_v18 = vld [vmem:[%s18195_s1 + $0x118] sm:$0xff]  }
  0xe9   : > { %v15163_v34 = vsel %vm15090_vm2, %v11532_v60, %v2209_v25  ;;  %v15179_v27 = vsel %vm15090_vm2, %v2211_v32, %v2212_v35  ;;  %v14190_v60 = vld [vmem:[%s18195_s1 + $0xa8] sm:$0xff]   ;;  %v14209_v8 = vld [vmem:[#allocation2 + $0x30] sm:$0xff]  }
  0xea   : > { %12841 = vmatmul.mubr.bf16.gmra.mrb[4].mxu0 %v11497_v12  ;;  %v11533_v12 = vrot.slane %v2073_v7, 9  ;;  %v2218_v7 = vrot.slane %v2216_v28, 4  ;;  %v14409_v25 = vld [vmem:[#allocation2 + $0x48] sm:$0xf]  ;;  %v18321_v15 = vcombine.low %v15163_v34, %v15179_v27  ;;  %v14219_v34 = vld [vmem:[%s18195_s1 + $0x120] sm:$0xff]   ;;  %v2978_v27 = vshrl.u32 %v2929_v37, 16 }
  0xeb   : > { %12844 = vmatprep.mubr.bf16.mxu0 %v11498_v20  ;;  %12873 = vmatpush3.bf16.msra.mxu0 %v14181_v33  ;;  %v11500_v32 = vcombine.low %v14409_v25, %v15193_v39  ;;  %v15205_v20 = vld [vmem:[#allocation2 + $0x58] sm:$0xf]  ;;  %v15217_v25 = vld [vmem:[%s18195_s1 + $0xc0] sm:$0xff]  }
  0xec   : > { %12874 = vmatprep.subr.bf16.mxu0 %v14184_v16  ;;  %v15185_v33 = vsel %vm15090_vm2, %v11533_v12, %v2216_v28  ;;  %v15198_v35 = vsel %vm15090_vm2, %v2218_v7, %v2219_v9  ;;  %v14193_v28 = vld [vmem:[%s18195_s1 + $0xb0] sm:$0xff]   ;;  %v14196_v9 = vld [vmem:[%s18195_s1 + $0xb8] sm:$0xff]   ;;  %v14413_v7 = vld [vmem:[#allocation2 + $0x60] sm:$0xf] }
  0xed   : > { %v14415_v12 = vld [vmem:[#allocation2 + $0x8] sm:$0x1] }
  0xee   : > { %v2114_v29 = vrot.slane %v14415_v12, 5 }
  0xef   : > { %12875 = vmatpush3.bf16.msra.mxu0 %v14184_v16  ;;  %v11501_v16 = vcombine.low %v14411_v11, %v15205_v20 }
  0xf0   : > { %12876 = vmatprep.subr.bf16.mxu0 %v14187_v61 }
  0xf2   : > { %12845 = vmatmul.mubr.bf16.gmra.mrb[8].mxu0 %v11499_v63  ;;  %v15211_v63 = vld [vmem:[#allocation2 + $0x64] sm:$0xf] }
  0xf3   : > { %12848 = vmatprep.mubr.bf16.mxu0 %v11500_v32  ;;  %12877 = vmatpush3.bf16.msra.mxu0 %v14187_v61  ;;  %v11502_v61 = vcombine.low %v14413_v7, %v15211_v63  ;;  %v473_v32 = vld [vmem:[%s14518_s24 + $0xf0] sm:$0xff] }
  0xf4   : > { %12878 = vmatprep.subr.bf16.mxu0 %v14190_v60  ;;  %v12306_v11 = vpack.c.bf16 %v473_v32, %v473_v32 }
  0xf6   : > { %v830_v7 = vshrl.u32 %v12306_v11, 16  ;;  %v833_v31 = vshll.u32 %v12306_v11, 16 }
  0xf7   : > { %12879 = vmatpush3.bf16.msra.mxu0 %v14190_v60  ;;  %v2058_v60 = vld [vmem:[#allocation2] sm:$0xe] }
  0xf8   : > { %12880 = vmatprep.subr.bf16.mxu0 %v14193_v28  ;;  %v11518_v54 = vrot.slane %v2058_v60, 9  ;;  %v832_v17 = vrot.slane %v830_v7, 7  ;;  %v2125_v60 = vrot.slane %v15086_v58, 5  ;;  %v14416_v7 = vld [vmem:[#allocation2 + $0x14] sm:$0x1] }
  0xfa   : > { %12849 = vmatmul.mubr.bf16.gmra.mrb[12].mxu0 %v11501_v16  ;;  %v836_v45 = vrot.slane %v832_v17, 4 }
  0xfb   : > { %12852 = vmatprep.mubr.bf16.mxu0 %v11502_v61  ;;  %12881 = vmatpush3.bf16.msra.mxu0 %v14193_v28  ;;  %v474_v28 = vld [vmem:[%s14518_s24 + $0xf8] sm:$0xff] }
  0xfc   : > { %12882 = vmatprep.subr.bf16.mxu0 %v14196_v9  ;;  %v12307_v16 = vpack.c.bf16 %v474_v28, %v474_v28  ;;  %v835_v28 = vor.u32 %v833_v31, %v832_v17  ;;  %v11520_v17 = vrot.slane %v2060_v13, 9  ;;  %v2127_v31 = vrot.slane %v2125_v60, 4 }
  0xfe   : > { %v838_v61 = vshrl.u32 %v12307_v16, 16 }
  0xff   : > { %12883 = vmatpush3.bf16.msra.mxu0 %v14196_v9  ;;  %v2111_v9 = vrot.slane %v15077_v49, 5 }
 0x100   : > { %12916 = vmatprep.subr.bf16.mxu0 %v15217_v25 }
 0x101   : > { %v2113_v32 = vrot.slane %v2111_v9, 4  ;;  %v2112_v11 = vsel %vm15090_vm2, %v11518_v54, %v2111_v9  ;;  %v2132_v9 = vrot.slane %v15096_v10, 5  ;;  %v2141_v10 = vrot.slane %v2139_v48, 4 }
 0x102   : > { %12853 = vmatmul.mubr.bf16.gmra.mrb[16].mxu0 %v11503_v43  ;;  %v15235_v43 = vrot.slane %v838_v61, 7  ;;  %v2121_v61 = vrot.slane %v14416_v7, 5  ;;  %v2153_v7 = vrot.slane %v15193_v39, 5 }
 0x103   : > { %12856 = vmatprep.mubr.bf16.mxu0 %v11504_v47  ;;  %v841_v47 = vshll.u32 %v12307_v16, 16  ;;  %v2115_v16 = vsel %vm15090_vm2, %v2113_v32, %v2114_v29  ;;  %v2126_v29 = vsel %vm15090_vm2, %v11520_v17, %v2125_v60  ;;  %v14420_v17 = vld [vmem:[#allocation2 + $0x44] sm:$0x1] }
 0x104   : > { %v11550_v24 = vcombine.low %v2112_v11, %v2115_v16  ;;  %v2063_v16 = vld [vmem:[#allocation2 + $0x3c] sm:$0xe] }
 0x105   : > { %v843_v14 = vor.u32 %v841_v47, %v15235_v43  ;;  %v14417_v47 = vld [vmem:[#allocation2 + $0x20] sm:$0x1] }
 0x106   : > { %v2128_v6 = vrot.slane %v14417_v47, 5 }
 0x107   : > { %v844_v49 = vsel %vm14708_vm15, %v836_v45, %v843_v14  ;;  %v14418_v45 = vld [vmem:[#allocation2 + $0x2c] sm:$0x1] }
 0x108   : > { %1008 = vst [vmem:[#allocation2 + $0xc4] sm:$0xf] %v844_v49  ;;  %v2129_v54 = vsel %vm15090_vm2, %v2127_v31, %v2128_v6  ;;  %v2135_v14 = vrot.slane %v14418_v45, 5  ;;  %v2149_v31 = vrot.slane %v14420_v17, 5  ;;  %v2155_v6 = vrot.slane %v2153_v7, 4  ;;  %v14212_v17 = vld [vmem:[#allocation2 + $0x48] sm:$0xff]  }
 0x109   : > { %v11552_v32 = vcombine.low %v2126_v29, %v2129_v54  ;;  %v2160_v29 = vrot.slane %v15205_v20, 5 }
 0x10a   : > { %12857 = vmatmul.mubr.bf16.gmra.mrb[20].mxu0 %v11505_v51  ;;  %v1005_v51 = vld [vmem:[#allocation2 + $0xc0] sm:$0xf] }
 0x10b   : > { %12860 = vmatprep.mubr.bf16.mxu0 %v11506_v52  ;;  %v1006_v12 = vsel %vm14700_vm14, %v835_v28, %v1005_v51  ;;  %v2118_v52 = vrot.slane %v15080_v2, 5  ;;  %v2134_v28 = vrot.slane %v2132_v9, 4  ;;  %v14198_v51 = vld [vmem:[%s18195_s1 + $0xc8] sm:$0xff]  }
 0x10c   : > { %1007 = vst [vmem:[#allocation2 + $0xc0] sm:$0xf] %v1006_v12  ;;  %v14419_v12 = vld [vmem:[#allocation2 + $0x38] sm:$0x1] }
 0x10d   : > { %v2119_v2 = vsel %vm15090_vm2, %v11519_v50, %v2118_v52  ;;  %v2142_v38 = vrot.slane %v14419_v12, 5  ;;  %v2136_v13 = vsel %vm15090_vm2, %v2134_v28, %v2135_v14 }
 0x10f   : > { %v2143_v11 = vsel %vm15090_vm2, %v2141_v10, %v2142_v38  ;;  %v14423_v38 = vld [vmem:[#allocation2 + $0x68] sm:$0x1] }
 0x112   : > { %12861 = vmatmul.mubr.bf16.gmra.mrb[24].mxu0 %v11507_v55  ;;  %v2120_v55 = vrot.slane %v2118_v52, 4  ;;  %v2146_v52 = vrot.slane %v15187_v41, 5 }
 0x113   : > { %12864 = vmatprep.mubr.bf16.mxu0 %v11508_v57  ;;  %v2062_v57 = vld [vmem:[#allocation2 + $0x30] sm:$0xe] }
 0x114   : > { %v2122_v58 = vsel %vm15090_vm2, %v2120_v55, %v2121_v61  ;;  %v11522_v49 = vrot.slane %v2062_v57, 9  ;;  %v2064_v61 = vld [vmem:[#allocation2 + $0x48] sm:$0xe]  ;;  %v11523_v55 = vrot.slane %v2063_v16, 9  ;;  %v2148_v41 = vrot.slane %v2146_v52, 4  ;;  %v14203_v16 = vld [vmem:[%s18195_s1 + $0xf0] sm:$0xff]  }
 0x115   : > { %v11551_v3 = vcombine.low %v2119_v2, %v2122_v58  ;;  %v11524_v47 = vrot.slane %v2064_v61, 9  ;;  %v14200_v2 = vld [vmem:[%s18195_s1 + $0xd8] sm:$0xff]  }
 0x116   : > { %v2140_v60 = vsel %vm15090_vm2, %v11522_v49, %v2139_v48  ;;  %v2147_v39 = vsel %vm15090_vm2, %v11523_v55, %v2146_v52  ;;  %v2150_v58 = vsel %vm15090_vm2, %v2148_v41, %v2149_v31  ;;  %v14422_v49 = vld [vmem:[#allocation2 + $0x5c] sm:$0x1]  ;;  %v1009_v55 = vld [vmem:[#allocation2 + $0xc8] sm:$0x1] }
 0x117   : > { %v11554_v50 = vcombine.low %v2140_v60, %v2143_v11  ;;  %v2154_v54 = vsel %vm15090_vm2, %v11524_v47, %v2153_v7  ;;  %v11555_v28 = vcombine.low %v2147_v39, %v2150_v58  ;;  %v2163_v20 = vrot.slane %v14422_v49, 5  ;;  %v14204_v61 = vld [vmem:[%s18195_s1 + $0xf8] sm:$0xff]   ;;  %v14222_v39 = vld [vmem:[%s18195_s1 + $0x128] sm:$0xff]  }
 0x11a   : > { %12865 = vmatmul.mubr.bf16.gmra.mrb[28].mxu0 %v11509_v59  ;;  %v11521_v59 = vrot.slane %v2061_v26, 9  ;;  %v14421_v26 = vld [vmem:[#allocation2 + $0x50] sm:$0x1] }
 0x11b   : > { %12884 = vmatprep.mubr.bf16.mxu0 %v11550_v24  ;;  %v2156_v57 = vrot.slane %v14421_v26, 5 }
 0x11c   : > { %v2133_v0 = vsel %vm15090_vm2, %v11521_v59, %v2132_v9  ;;  %v2065_v9 = vld [vmem:[#allocation2 + $0x54] sm:$0xe]  ;;  %v14201_v59 = vld [vmem:[%s18195_s1 + $0xe0] sm:$0xff]  }
 0x11d   : > { %v11553_v24 = vcombine.low %v2133_v0, %v2136_v13  ;;  %v2157_v48 = vsel %vm15090_vm2, %v2155_v6, %v2156_v57  ;;  %v11525_v14 = vrot.slane %v2065_v9, 9  ;;  %v2170_v0 = vrot.slane %v14423_v38, 5  ;;  %v14214_v6 = vld [vmem:[#allocation2 + $0x54] sm:$0xff]   ;;  %v15373_v9 = vld [vmem:[#allocation2 + $0x1c] sm:$0xf] }
 0x11e   : > { %v11556_v45 = vcombine.low %v2154_v54, %v2157_v48  ;;  %v2932_v57 = vld [vmem:[#allocation2 + $0x18] sm:$0xf]  ;;  %v14225_v48 = vld [vmem:[%s18195_s1 + $0x130] sm:$0xff]  }
 0x11f   : > { %v2161_v13 = vsel %vm15090_vm2, %v11525_v14, %v2160_v29 }
 0x122   : > { %12885 = vmatmul.mubr.bf16.vlgmr.msra.gmra.mrb[0].mxu0 %v11551_v3  ;;  %v2167_v3 = vrot.slane %v15211_v63, 5  ;;  %v14202_v63 = vld [vmem:[%s18195_s1 + $0xe8] sm:$0xff]  }
 0x123   : > { %12917 = vmatpush3.bf16.msra.mxu0 %v15217_v25  ;;  %12888 = vmatprep.mubr.bf16.mxu0 %v11552_v32  ;;  %v14199_v25 = vld [vmem:[%s18195_s1 + $0xd0] sm:$0xff]   ;;  %v2066_v32 = vld [vmem:[#allocation2 + $0x60] sm:$0xe] }
 0x124   : > { %12918 = vmatprep.subr.bf16.mxu0 %v14198_v51  ;;  %v11526_v10 = vrot.slane %v2066_v32, 9  ;;  %v2169_v12 = vrot.slane %v2167_v3, 4  ;;  %v15384_v32 = vld [vmem:[#allocation2 + $0x64] sm:$0xf] }
 0x125   : > { %v3798_v49 = vrot.slane %v15384_v32, 5 }
 0x126   : > { %v2168_v60 = vsel %vm15090_vm2, %v11526_v10, %v2167_v3  ;;  %v2171_v11 = vsel %vm15090_vm2, %v2169_v12, %v2170_v0  ;;  %v3002_v3 = vshrl.u32 %v2932_v57, 16  ;;  %v14215_v10 = vld [vmem:[#allocation2 + $0x60] sm:$0xff]   ;;  %v3011_v12 = vshll.u32 %v15373_v9, 16  ;;  %v14217_v0 = vld [vmem:[#allocation2 + $0x6c] sm:$0xff]  }
 0x127   : > { %12919 = vmatpush3.bf16.msra.mxu0 %v14198_v51  ;;  %v2162_v51 = vrot.slane %v2160_v29, 4  ;;  %v11558_v7 = vcombine.low %v2168_v60, %v2171_v11  ;;  %v14228_v60 = vld [vmem:[%s18195_s1 + $0x138] sm:$0xff]   ;;  %v2935_v11 = vld [vmem:[#allocation2 + $0x24] sm:$0xf] }
 0x128   : > { %12920 = vmatprep.subr.bf16.mxu0 %v14199_v25 }
 0x129   : > { %v2164_v52 = vsel %vm15090_vm2, %v2162_v51, %v2163_v20  ;;  %v3690_v51 = vld [vmem:[#allocation2 + $0x60] sm:$0xe] }
 0x12a   : > { %12889 = vmatmul.mubr.bf16.gmra.mrb[4].mxu0 %v11553_v24  ;;  %v14207_v24 = vld [vmem:[%s18195_s1 + $0x100] sm:$0xff]   ;;  %v11661_v38 = vrot.slane %v3690_v51, 9  ;;  %v15447_v51 = vld [vmem:[#allocation2 + $0x2c] sm:$0x1] }
 0x12b   : > { %12892 = vmatprep.mubr.bf16.mxu0 %v11554_v50  ;;  %12921 = vmatpush3.bf16.msra.mxu0 %v14199_v25  ;;  %v11557_v25 = vcombine.low %v2161_v13, %v2164_v52  ;;  %v845_v50 = vrot.slane %v15235_v43, 4  ;;  %v3784_v43 = vrot.slane %v15358_v23, 5  ;;  %v3015_v13 = vshrl.u32 %v15373_v9, 16 }
 0x12c   : > { %12922 = vmatprep.subr.bf16.mxu0 %v14200_v2  ;;  %v3800_v52 = vrot.slane %v3798_v49, 4 }
 0x12d   : > { %v1010_v21 = vsel %vm14690_vm13, %v845_v50, %v1009_v55  ;;  %v15409_v50 = vld [vmem:[#allocation2 + $0x20] sm:$0x1]  ;;  %v3004_v55 = vrot.slane %v3002_v3, 4 }
 0x12e   : > { %1011 = vst [vmem:[#allocation2 + $0xc8] sm:$0x1] %v1010_v21 }
 0x12f   : > { %12923 = vmatpush3.bf16.msra.mxu0 %v14200_v2  ;;  %v3786_v2 = vrot.slane %v3784_v43, 4 }
 0x130   : > { %12924 = vmatprep.subr.bf16.mxu0 %v14201_v59 }
 0x132   : > { %12893 = vmatmul.mubr.bf16.gmra.mrb[8].mxu0 %v11555_v28  ;;  %v15386_v28 = vld [vmem:[#allocation2 + $0x68] sm:$0x1] }
 0x133   : > { %12896 = vmatprep.mubr.bf16.mxu0 %v11556_v45  ;;  %12925 = vmatpush3.bf16.msra.mxu0 %v14201_v59  ;;  %v3005_v59 = vshll.u32 %v2932_v57, 16  ;;  %v2980_v45 = vrot.slane %v2978_v27, 4  ;;  %v3801_v20 = vrot.slane %v15386_v28, 5 }
 0x134   : > { %12926 = vmatprep.subr.bf16.mxu0 %v14202_v63 }
 0x135   : > { %v3007_v21 = vrot.slane %v3005_v59, 5  ;;  %v2938_v59 = vld [vmem:[#allocation2 + $0x30] sm:$0xf] }
 0x137   : > { %12927 = vmatpush3.bf16.msra.mxu0 %v14202_v63  ;;  %v15391_v63 = vld [vmem:[#allocation2 + $0x14] sm:$0x1] }
 0x138   : > { %12928 = vmatprep.subr.bf16.mxu0 %v14203_v16 }
 0x13a   : > { %12897 = vmatmul.mubr.bf16.gmra.mrb[12].mxu0 %v11557_v25  ;;  %v15403_v25 = vsel %vm15090_vm2, %v3800_v52, %v3801_v20  ;;  %v15450_v20 = vld [vmem:[#allocation2 + $0x34] sm:$0xf]  ;;  %v3050_v52 = vshrl.u32 %v2938_v59, 16 }
 0x13b   : > { %12900 = vmatprep.mubr.bf16.mxu0 %v11558_v7  ;;  %12929 = vmatpush3.bf16.msra.mxu0 %v14203_v16  ;;  %v15399_v16 = vsel %vm15090_vm2, %v11661_v38, %v3798_v49  ;;  %18326 = vst [vmem:[#allocation10_spill] sm:$0xff] %v15403_v25  ;;  %v15455_v38 = vld [vmem:[#allocation2 + $0x94] sm:$0xf]  ;;  %v3696_v7 = vld [vmem:[#allocation2 + $0xa8] sm:$0xe] }
 0x13c   : > { %12930 = vmatprep.subr.bf16.mxu0 %v14204_v61  ;;  %18325 = vst [vmem:[#allocation9_spill] sm:$0xff] %v15399_v16  ;;  %v2944_v25 = vld [vmem:[#allocation2 + $0x48] sm:$0xf]  ;;  %v14227_v16 = vld [vmem:[#allocation2 + $0xc0] sm:$0xff]  }
 0x13f   : > { %12931 = vmatpush3.bf16.msra.mxu0 %v14204_v61 }
 0x140   : > { %12964 = vmatprep.subr.bf16.mxu0 %v14207_v24 }
 0x142   : > { %12901 = vmatmul.mubr.bf16.gmra.mrb[16].mxu0 %v11559_v44  ;;  %v18322_v44 = vcombine.low %v15185_v33, %v15198_v35  ;;  %v2981_v33 = vshll.u32 %v2929_v37, 16  ;;  %v3688_v35 = vld [vmem:[#allocation2 + $0x48] sm:$0xe]  ;;  %v3017_v37 = vrot.slane %v3015_v13, 4 }
 0x143   : > { %12904 = vmatprep.mubr.bf16.mxu0 %v11560_v1  ;;  %v14208_v1 = vld [vmem:[#allocation2 + $0x24] sm:$0xff]   ;;  %v11659_v47 = vrot.slane %v3688_v35, 9 }
 0x144   : > { %v2983_v14 = vrot.slane %v2981_v33, 5 }
 0x145   : > { %v15371_v58 = vsel %vm15090_vm2, %v11659_v47, %v3784_v43  ;;  %v14218_v43 = vld [vmem:[#allocation2 + $0x78] sm:$0xff]   ;;  %v14220_v47 = vld [vmem:[#allocation2 + $0x84] sm:$0xff]  }
 0x146   : > { %18323 = vst [vmem:[#allocation7_spill] sm:$0xff] %v15371_v58 }
 0x14a   : > { %12905 = vmatmul.mubr.bf16.gmra.mrb[20].mxu0 %v11561_v22  ;;  %v14211_v22 = vld [vmem:[#allocation2 + $0x3c] sm:$0xff]  }
 0x14b   : > { %12908 = vmatprep.mubr.bf16.mxu0 %v11562_v40  ;;  %v15353_v40 = vld [vmem:[#allocation2 + $0x10] sm:$0xf] }
 0x14c   : > { %v2987_v31 = vshll.u32 %v15353_v40, 16  ;;  %v2991_v26 = vshrl.u32 %v15353_v40, 16 }
 0x14e   : > { %v15407_v61 = vrot.slane %v2987_v31, 5 }
 0x152   : > { %12909 = vmatmul.mubr.bf16.gmra.mrb[24].mxu0 %v11563_v4  ;;  %v15360_v4 = vld [vmem:[#allocation2 + $0x50] sm:$0x1] }
 0x153   : > { %12912 = vmatprep.mubr.bf16.mxu0 %v18321_v15  ;;  %v3787_v41 = vrot.slane %v15360_v4, 5  ;;  %v2997_v15 = vshll.u32 %v15391_v63, 16 }
 0x155   : > { %v15377_v29 = vsel %vm15090_vm2, %v3786_v2, %v3787_v41  ;;  %v3021_v41 = vshll.u32 %v15409_v50, 16 }
 0x156   : > { %18324 = vst [vmem:[#allocation8_spill] sm:$0xff] %v15377_v29  ;;  %v3107_v29 = vshll.u32 %v15358_v23, 16 }
 0x15a   : > { %12913 = vmatmul.mubr.bf16.gmra.mrb[28].mxu0 %v18322_v44  ;;  %v15414_v44 = vld [vmem:[#allocation2 + $0x80] sm:$0x1] }
 0x15b   : > { %12932 = vmatprep.mubr.bf16.mxu0 %v14205_v53  ;;  %v15412_v53 = vld [vmem:[#allocation2 + $0x7c] sm:$0xf] }
 0x162   : > { %12933 = vmatmul.mubr.bf16.vlgmr.msra.gmra.mrb[0].mxu0 %v14206_v56  ;;  %v3026_v56 = vshrl.u32 %v2935_v11, 16 }
 0x163   : > { %12965 = vmatpush3.bf16.msra.mxu0 %v14207_v24  ;;  %12936 = vmatprep.mubr.bf16.mxu0 %v14208_v1  ;;  %v2993_v24 = vrot.slane %v2991_v26, 4  ;;  %v3029_v1 = vshll.u32 %v2935_v11, 16  ;;  %v3826_v11 = vrot.slane %v15455_v38, 5 }
 0x164   : > { %12966 = vmatprep.subr.bf16.mxu0 %v14210_v62  ;;  %v3028_v26 = vrot.slane %v3026_v56, 4 }
 0x165   : > { %v2994_v33 = vor.u32 %v2993_v24, %v15407_v61  ;;  %v3031_v57 = vrot.slane %v3029_v1, 5 }
 0x167   : > { %12967 = vmatpush3.bf16.msra.mxu0 %v14210_v62  ;;  %v3692_v62 = vld [vmem:[#allocation2 + $0x78] sm:$0xe]  ;;  %v3032_v13 = vor.u32 %v3031_v57, %v3028_v26  ;;  %v3063_v26 = vshrl.u32 %v15450_v20, 16 }
 0x168   : > { %12968 = vmatprep.subr.bf16.mxu0 %v14213_v19  ;;  %v11663_v27 = vrot.slane %v3692_v62, 9  ;;  %v15468_v62 = vld [vmem:[#allocation2 + $0x38] sm:$0x1] }
 0x16a   : > { %12937 = vmatmul.mubr.bf16.gmra.mrb[4].mxu0 %v14209_v8  ;;  %v3812_v8 = vrot.slane %v15412_v53, 5 }
 0x16b   : > { %12940 = vmatprep.mubr.bf16.mxu0 %v14211_v22  ;;  %12969 = vmatpush3.bf16.msra.mxu0 %v14213_v19  ;;  %v3815_v19 = vrot.slane %v15414_v44, 5  ;;  %v2984_v22 = vor.u32 %v2983_v14, %v2980_v45  ;;  %v15445_v14 = vrot.slane %v2994_v33, 4  ;;  %v3059_v33 = vshll.u32 %v15450_v20, 16 }
 0x16c   : > { %12970 = vmatprep.subr.bf16.mxu0 %v14216_v18  ;;  %v3814_v35 = vrot.slane %v3812_v8, 4  ;;  %v15431_v31 = vsel %vm15090_vm2, %v11663_v27, %v3812_v8  ;;  %v2941_v8 = vld [vmem:[#allocation2 + $0x3c] sm:$0xf]  ;;  %v3053_v27 = vshll.u32 %v2938_v59, 16  ;;  %v15487_v59 = vld [vmem:[#allocation2 + $0x40] sm:$0xf] }
 0x16d   : > { %18327 = vst [vmem:[#allocation11_spill] sm:$0xff] %v15431_v31  ;;  %v3083_v36 = vshll.u32 %v15487_v59, 16  ;;  %v15514_v42 = vrot.slane %v3059_v33, 5 }
 0x16e   : > { %v15437_v2 = vsel %vm15090_vm2, %v3814_v35, %v3815_v19  ;;  %v3828_v19 = vrot.slane %v3826_v11, 4  ;;  %v3055_v46 = vrot.slane %v3053_v27, 5 }
 0x16f   : > { %12971 = vmatpush3.bf16.msra.mxu0 %v14216_v18  ;;  %v15418_v18 = vrot.slane %v3011_v12, 5  ;;  %18328 = vst [vmem:[#allocation12_spill] sm:$0xff] %v15437_v2 }
 0x170   : > { %12972 = vmatprep.subr.bf16.mxu0 %v14219_v34 }
 0x171   : > { %v3018_v3 = vor.u32 %v3017_v37, %v15418_v18 }
 0x172   : > { %12941 = vmatmul.mubr.bf16.gmra.mrb[8].mxu0 %v14212_v17  ;;  %v15427_v17 = vld [vmem:[#allocation2 + $0x28] sm:$0xf] }
 0x173   : > { %12944 = vmatprep.mubr.bf16.mxu0 %v14214_v6  ;;  %12973 = vmatpush3.bf16.msra.mxu0 %v14219_v34  ;;  %v15423_v34 = vld [vmem:[%s18195_s1 + $0x140] sm:$0xff]   ;;  %v15433_v6 = vrot.slane %v2997_v15, 5  ;;  %v3035_v49 = vshll.u32 %v15427_v17, 16  ;;  %v3039_v12 = vshrl.u32 %v15427_v17, 16  ;;  %v15463_v15 = vrot.slane %v3018_v3, 4 }
 0x174   : > { %12974 = vmatprep.subr.bf16.mxu0 %v14222_v39  ;;  %v3069_v3 = vshll.u32 %v15468_v62, 16 }
 0x175   : > { %v15466_v1 = vrot.slane %v3035_v49, 5  ;;  %v3041_v37 = vrot.slane %v3039_v12, 4  ;;  %v3074_v49 = vshrl.u32 %v2941_v8, 16 }
 0x176   : > { %v15530_v27 = vrot.slane %v3069_v3, 5 }
 0x177   : > { %12975 = vmatpush3.bf16.msra.mxu0 %v14222_v39  ;;  %v15439_v39 = vrot.slane %v2984_v22, 4  ;;  %v14221_v22 = vld [vmem:[#allocation2 + $0x90] sm:$0xff]   ;;  %v3076_v33 = vrot.slane %v3074_v49, 4 }
 0x178   : > { %12976 = vmatprep.subr.bf16.mxu0 %v14225_v48 }
 0x17a   : > { %12945 = vmatmul.mubr.bf16.gmra.mrb[12].mxu0 %v14215_v10  ;;  %v15452_v10 = vrot.slane %v3021_v41, 5  ;;  %v15475_v41 = vrot.slane %v3032_v13, 4  ;;  %v2990_v13 = vsel %vm14684_vm11, %v15439_v39, %v15407_v61  ;;  %v3077_v39 = vshll.u32 %v2941_v8, 16 }
 0x17b   : > { %12948 = vmatprep.mubr.bf16.mxu0 %v14217_v0  ;;  %12977 = vmatpush3.bf16.msra.mxu0 %v14225_v48  ;;  %v3008_v48 = vor.u32 %v3007_v21, %v3004_v55  ;;  %v15457_v0 = vld [vmem:[#allocation2 + $0x98] sm:$0x1]  ;;  %v3045_v21 = vshll.u32 %v15447_v51, 16 }
 0x17c   : > { %12978 = vmatprep.subr.bf16.mxu0 %v14228_v60  ;;  %v3829_v24 = vrot.slane %v15457_v0, 5 }
 0x17d   : > { %v15461_v55 = vrot.slane %v3008_v48, 4  ;;  %v15484_v48 = vrot.slane %v3045_v21, 5  ;;  %v3042_v21 = vor.u32 %v3041_v37, %v15466_v1  ;;  %v11667_v37 = vrot.slane %v3696_v7, 9  ;;  %v14226_v7 = vld [vmem:[#allocation2 + $0xb4] sm:$0xff]  }
 0x17e   : > { %v15482_v57 = vsel %vm15090_vm2, %v3828_v19, %v3829_v24  ;;  %v3000_v24 = vsel %vm14684_vm11, %v15445_v14, %v15433_v6  ;;  %v3695_v19 = vld [vmem:[#allocation2 + $0x9c] sm:$0xe]  ;;  %v3087_v6 = vshrl.u32 %v15487_v59, 16 }
 0x17f   : > { %12979 = vmatpush3.bf16.msra.mxu0 %v14228_v60  ;;  %v3694_v60 = vld [vmem:[#allocation2 + $0x90] sm:$0xe]  ;;  %18330 = vst [vmem:[#allocation14_spill] sm:$0xff] %v15482_v57  ;;  %v11666_v45 = vrot.slane %v3695_v19, 9  ;;  %v15520_v19 = vrot.slane %v3042_v21, 4  ;;  %v3079_v21 = vrot.slane %v3077_v39, 5  ;;  %v11630_v3 = vcombine.low %v2990_v13, %v3000_v24 }
 0x180   : > { %13012 = vmatprep.subr.bf16.mxu0 %v15423_v34  ;;  %v11665_v56 = vrot.slane %v3694_v60, 9  ;;  %v15497_v60 = vld [vmem:[#allocation2 + $0xa4] sm:$0x1]  ;;  %v3014_v49 = vsel %vm14684_vm11, %v15461_v55, %v15418_v18  ;;  %v15556_v39 = vld [vmem:[#allocation2 + $0xb8] sm:$0xf] }
 0x181   : > { %v3836_v61 = vrot.slane %v15497_v60, 5  ;;  %v15560_v13 = vld [vmem:[#allocation2 + $0xc4] sm:$0xf]  ;;  %v15564_v55 = vld [vmem:[#allocation2 + $0xc8] sm:$0x1] }
 0x182   : > { %12949 = vmatmul.mubr.bf16.gmra.mrb[16].mxu0 %v14218_v43  ;;  %v15473_v35 = vsel %vm15090_vm2, %v11665_v56, %v3826_v11  ;;  %v14223_v43 = vld [vmem:[#allocation2 + $0x9c] sm:$0xff]   ;;  %v15499_v11 = vld [vmem:[#allocation2 + $0xac] sm:$0xf]  ;;  %v15506_v56 = vld [vmem:[#allocation2 + $0xb0] sm:$0x1] }
 0x183   : > { %12952 = vmatprep.mubr.bf16.mxu0 %v14220_v47  ;;  %18329 = vst [vmem:[#allocation13_spill] sm:$0xff] %v15473_v35  ;;  %v15477_v47 = vrot.slane %v3050_v52, 4  ;;  %v15495_v52 = vld [vmem:[#allocation2 + $0xa0] sm:$0xf]  ;;  %v3843_v54 = vrot.slane %v15506_v56, 5  ;;  %v3065_v35 = vrot.slane %v3063_v26, 4 }
 0x184   : > { %v3833_v12 = vrot.slane %v15495_v52, 5  ;;  %v15538_v26 = vld [vmem:[#allocation2 + $0x44] sm:$0x1] }
 0x185   : > { %18335 = vst [vmem:[#allocation19_spill] sm:$0xff] %v15538_v26  ;;  %v3056_v24 = vor.u32 %v3055_v46, %v15477_v47  ;;  %v3066_v18 = vor.u32 %v3065_v35, %v15514_v42  ;;  %v3093_v46 = vshll.u32 %v15538_v26, 16  ;;  %v2947_v47 = vld [vmem:[#allocation2 + $0x54] sm:$0xf] }
 0x186   : > { %v3835_v14 = vrot.slane %v3833_v12, 4  ;;  %v15518_v57 = vsel %vm15090_vm2, %v11666_v45, %v3833_v12  ;;  %v3857_v45 = vrot.slane %v15564_v55, 5 }
 0x187   : > { %18331 = vst [vmem:[#allocation15_spill] sm:$0xff] %v15518_v57  ;;  %v15572_v57 = vld [vmem:[#allocation2 + $0x58] sm:$0xf]  ;;  %v15594_v58 = vrot.slane %v3056_v24, 4  ;;  %v3095_v24 = vrot.slane %v3093_v46, 5  ;;  %v3159_v46 = vshrl.u32 %v15384_v32, 16 }
 0x188   : > { %v15524_v2 = vsel %vm15090_vm2, %v3835_v14, %v3836_v61  ;;  %v15540_v61 = vrot.slane %v3083_v36, 5  ;;  %v3089_v14 = vrot.slane %v3087_v6, 4  ;;  %v3038_v36 = vsel %vm14684_vm11, %v15475_v41, %v15466_v1  ;;  %v15558_v6 = vld [vmem:[#allocation2 + $0xbc] sm:$0x1]  ;;  %18336 = vst [vmem:[#allocation20_spill] sm:$0xff] %v15572_v57 }
 0x189   : > { %18332 = vst [vmem:[#allocation16_spill] sm:$0xff] %v15524_v2  ;;  %v3098_v1 = vshrl.u32 %v2944_v25, 16  ;;  %v3101_v2 = vshll.u32 %v2944_v25, 16  ;;  %v3122_v25 = vshrl.u32 %v2947_v47, 16 }
 0x18a   : > { %12953 = vmatmul.mubr.bf16.gmra.mrb[20].mxu0 %v14221_v22  ;;  %v3840_v22 = vrot.slane %v15499_v11, 5 }
 0x18b   : > { %12956 = vmatprep.mubr.bf16.mxu0 %v14223_v43  ;;  %v14224_v43 = vld [vmem:[#allocation2 + $0xa8] sm:$0xff]  }
 0x18c   : > { %v3842_v8 = vrot.slane %v3840_v22, 4  ;;  %v15528_v31 = vsel %vm15090_vm2, %v11667_v37, %v3840_v22  ;;  %v3697_v37 = vld [vmem:[#allocation2 + $0xb4] sm:$0xe]  ;;  %v3854_v22 = vrot.slane %v15560_v13, 5 }
 0x18d   : > { %18333 = vst [vmem:[#allocation17_spill] sm:$0xff] %v15528_v31  ;;  %v11668_v41 = vrot.slane %v3697_v37, 9  ;;  %v3090_v31 = vor.u32 %v3089_v14, %v15540_v61 }
 0x18e   : > { %v15536_v12 = vsel %vm15090_vm2, %v3842_v8, %v3843_v54  ;;  %v3024_v54 = vsel %vm14684_vm11, %v15463_v15, %v15452_v10  ;;  %v3847_v10 = vrot.slane %v15556_v39, 5  ;;  %v3850_v15 = vrot.slane %v15558_v6, 5  ;;  %v3698_v8 = vld [vmem:[#allocation2 + $0xc0] sm:$0xe] }
 0x18f   : > { %18334 = vst [vmem:[#allocation18_spill] sm:$0xff] %v15536_v12  ;;  %v11669_v12 = vrot.slane %v3698_v8, 9  ;;  %v3856_v37 = vrot.slane %v3854_v22, 4  ;;  %v3125_v8 = vshll.u32 %v2947_v47, 16  ;;  %v11631_v26 = vcombine.low %v3014_v49, %v3024_v54 }
 0x190   : > { %v3849_v35 = vrot.slane %v3847_v10, 4 }
 0x191   : > { %v15586_v14 = vsel %vm15090_vm2, %v11669_v12, %v3854_v22  ;;  %v3048_v12 = vsel %vm14684_vm11, %v15520_v19, %v15484_v48  ;;  %v15604_v22 = vrot.slane %v3066_v18, 4  ;;  %v15611_v19 = vld [vmem:[#allocation2 + $0x5c] sm:$0x1] }
 0x192   : > { %12957 = vmatmul.mubr.bf16.gmra.mrb[24].mxu0 %v14224_v43  ;;  %v3080_v43 = vor.u32 %v3079_v21, %v3076_v33  ;;  %v3111_v33 = vshrl.u32 %v15358_v23, 16  ;;  %v15582_v21 = vsel %vm15090_vm2, %v3849_v35, %v3850_v15  ;;  %18339 = vst [vmem:[#allocation23_spill] sm:$0xff] %v15586_v14  ;;  %v3131_v23 = vshll.u32 %v15572_v57, 16 }
 0x193   : > { %12960 = vmatprep.mubr.bf16.mxu0 %v14226_v7  ;;  %v15576_v7 = vsel %vm15090_vm2, %v11668_v41, %v3847_v10  ;;  %18338 = vst [vmem:[#allocation22_spill] sm:$0xff] %v15582_v21  ;;  %v15592_v41 = vsel %vm15090_vm2, %v3856_v37, %v3857_v45  ;;  %v3135_v15 = vshrl.u32 %v15572_v57, 16  ;;  %v3100_v45 = vrot.slane %v3098_v1, 4 }
 0x194   : > { %18337 = vst [vmem:[#allocation21_spill] sm:$0xff] %v15576_v7  ;;  %18340 = vst [vmem:[#allocation24_spill] sm:$0xff] %v15592_v41  ;;  %v15606_v47 = vrot.slane %v3080_v43, 4  ;;  %v3103_v37 = vrot.slane %v3101_v2, 5  ;;  %v15608_v10 = vrot.slane %v3107_v29, 5  ;;  %v3113_v21 = vrot.slane %v3111_v33, 4 }
 0x195   : > { %v2950_v7 = vld [vmem:[#allocation2 + $0x60] sm:$0xf]  ;;  %v3091_v57 = vrot.slane %v3090_v31, 4  ;;  %v3117_v35 = vshll.u32 %v15360_v4, 16  ;;  %v3124_v41 = vrot.slane %v3122_v25, 4  ;;  %v3127_v14 = vrot.slane %v3125_v8, 5 }
 0x196   : > { %v11632_v48 = vcombine.low %v3038_v36, %v3048_v12  ;;  %v15613_v18 = vrot.slane %v3131_v23, 5  ;;  %v3137_v1 = vrot.slane %v3135_v15, 4  ;;  %v3146_v43 = vshrl.u32 %v2950_v7, 16  ;;  %v14230_v25 = vld [vmem:[%s18195_s1 + $0x148] sm:$0xff]   ;;  %v2956_v15 = vld [vmem:[#allocation2 + $0x78] sm:$0xf] }
 0x197   : > { %v3149_v2 = vshll.u32 %v2950_v7, 16  ;;  %v3155_v29 = vshll.u32 %v15384_v32, 16  ;;  %v3062_v4 = vsel %vm14684_vm11, %v15594_v58, %v15514_v42  ;;  %v3072_v31 = vsel %vm14684_vm11, %v15604_v22, %v15530_v27  ;;  %v15627_v7 = vld [vmem:[#allocation2 + $0x70] sm:$0xf] }
 0x198   : > { %v3114_v49 = vor.u32 %v3113_v21, %v15608_v10  ;;  %v3128_v54 = vor.u32 %v3127_v14, %v3124_v41  ;;  %v3141_v36 = vshll.u32 %v15611_v19, 16  ;;  %v3086_v42 = vsel %vm14684_vm11, %v15606_v47, %v15540_v61 }
 0x199   : > { %v3096_v58 = vsel %vm14684_vm11, %v3091_v57, %v3095_v24  ;;  %v15638_v27 = vrot.slane %v3117_v35, 5  ;;  %v3138_v21 = vor.u32 %v3137_v1, %v15613_v18  ;;  %v3148_v14 = vrot.slane %v3146_v43, 4 }
 0x19a   : > { %12961 = vmatmul.mubr.bf16.gmra.mrb[28].mxu0 %v14227_v16  ;;  %v2953_v16 = vld [vmem:[#allocation2 + $0x6c] sm:$0xf]  ;;  %v3151_v8 = vrot.slane %v3149_v2, 5  ;;  %v15641_v41 = vrot.slane %v3155_v29, 5  ;;  %v3161_v23 = vrot.slane %v3159_v46, 4  ;;  %v3115_v22 = vrot.slane %v3114_v49, 4 }
 0x19b   : > { %12980 = vmatprep.mubr.bf16.mxu0 %v11630_v3  ;;  %v3104_v3 = vor.u32 %v3103_v37, %v3100_v45  ;;  %v3170_v33 = vshrl.u32 %v2953_v16, 16  ;;  %v3173_v32 = vshll.u32 %v2953_v16, 16  ;;  %v3179_v45 = vshll.u32 %v15627_v7, 16  ;;  %v14231_v37 = vld [vmem:[%s18195_s1 + $0x150] sm:$0xff]  }
 0x19c   : > { %v3183_v61 = vshrl.u32 %v15627_v7, 16  ;;  %v3129_v57 = vrot.slane %v3128_v54, 4  ;;  %v3143_v35 = vrot.slane %v3141_v36, 5  ;;  %v3194_v1 = vshrl.u32 %v2956_v15, 16 }
 0x19d   : > { %v3105_v12 = vrot.slane %v3104_v3, 4  ;;  %v3172_v47 = vrot.slane %v3170_v33, 4  ;;  %v3175_v24 = vrot.slane %v3173_v32, 5  ;;  %v3203_v16 = vshll.u32 %v15412_v53, 16  ;;  %v2959_v32 = vld [vmem:[#allocation2 + $0x84] sm:$0xf] }
 0x19e   : > { %v3207_v43 = vshrl.u32 %v15412_v53, 16  ;;  %v3139_v2 = vrot.slane %v3138_v21, 4  ;;  %v3152_v29 = vor.u32 %v3151_v8, %v3148_v14  ;;  %v11633_v46 = vcombine.low %v3062_v4, %v3072_v31  ;;  %v15667_v4 = vld [vmem:[#allocation2 + $0x74] sm:$0x1]  ;;  %v15671_v21 = vld [vmem:[#allocation2 + $0x88] sm:$0xf] }
 0x19f   : > { %v11634_v3 = vcombine.low %v3086_v42, %v3096_v58  ;;  %v15653_v49 = vrot.slane %v3179_v45, 5  ;;  %v3185_v54 = vrot.slane %v3183_v61, 4  ;;  %v3110_v36 = vsel %vm14684_vm11, %v3105_v12, %v15608_v10 }
 0x1a0   : > { %v3120_v53 = vsel %vm14684_vm11, %v3115_v22, %v15638_v27  ;;  %v3134_v33 = vsel %vm14684_vm11, %v3129_v57, %v15613_v18  ;;  %v3176_v31 = vor.u32 %v3175_v24, %v3172_v47  ;;  %v15669_v10 = vrot.slane %v3203_v16, 5 }
 0x1a1   : > { %v3209_v58 = vrot.slane %v3207_v43, 4  ;;  %v3144_v27 = vsel %vm14684_vm11, %v3139_v2, %v3143_v35  ;;  %v3153_v18 = vrot.slane %v3152_v29, 4  ;;  %v3218_v12 = vshrl.u32 %v2959_v32, 16 }
 0x1a2   : > { %12981 = vmatmul.mubr.bf16.vlgmr.msra.gmra.mrb[0].mxu0 %v11631_v26  ;;  %v3197_v26 = vshll.u32 %v2956_v15, 16  ;;  %v3189_v15 = vshll.u32 %v15667_v4, 16  ;;  %v3221_v22 = vshll.u32 %v2959_v32, 16  ;;  %v3227_v45 = vshll.u32 %v15671_v21, 16 }
 0x1a3   : > { %13013 = vmatpush3.bf16.msra.mxu0 %v15423_v34  ;;  %12984 = vmatprep.mubr.bf16.mxu0 %v11632_v48  ;;  %v3162_v34 = vor.u32 %v3161_v23, %v15641_v41  ;;  %v3165_v48 = vshll.u32 %v15386_v28, 16  ;;  %v14232_v28 = vld [vmem:[%s18195_s1 + $0x158] sm:$0xff]   ;;  %v3186_v23 = vor.u32 %v3185_v54, %v15653_v49  ;;  %v3231_v61 = vshrl.u32 %v15671_v21, 16 }
 0x1a4   : > { %13014 = vmatprep.subr.bf16.mxu0 %v14230_v25  ;;  %v3199_v42 = vrot.slane %v3197_v26, 5  ;;  %v3177_v57 = vrot.slane %v3176_v31, 4  ;;  %v3210_v35 = vor.u32 %v3209_v58, %v15669_v10  ;;  %v3213_v24 = vshll.u32 %v15414_v44, 16  ;;  %v2962_v26 = vld [vmem:[#allocation2 + $0x90] sm:$0xf] }
 0x1a5   : > { %v3163_v14 = vrot.slane %v3162_v34, 4  ;;  %v3167_v8 = vrot.slane %v3165_v48, 5  ;;  %v11635_v16 = vcombine.low %v3110_v36, %v3120_v53  ;;  %v11636_v43 = vcombine.low %v3134_v33, %v3144_v27  ;;  %v15689_v44 = vld [vmem:[#allocation2 + $0x8c] sm:$0x1] }
 0x1a6   : > { %v3187_v29 = vrot.slane %v3186_v23, 4  ;;  %v3191_v34 = vrot.slane %v3189_v15, 5  ;;  %v3220_v48 = vrot.slane %v3218_v12, 4  ;;  %v15691_v54 = vrot.slane %v3227_v45, 5 }
 0x1a7   : > { %13015 = vmatpush3.bf16.msra.mxu0 %v14230_v25  ;;  %v3196_v25 = vrot.slane %v3194_v1, 4  ;;  %v14233_v1 = vld [vmem:[%s18195_s1 + $0x160] sm:$0xff]   ;;  %v3168_v2 = vsel %vm14684_vm11, %v3163_v14, %v3167_v8  ;;  %v3233_v31 = vrot.slane %v3231_v61, 4  ;;  %v3242_v36 = vshrl.u32 %v2962_v26, 16 }
 0x1a8   : > { %13016 = vmatprep.subr.bf16.mxu0 %v14231_v37  ;;  %v3245_v53 = vshll.u32 %v2962_v26, 16  ;;  %v3211_v32 = vrot.slane %v3210_v35, 4  ;;  %v3255_v58 = vshrl.u32 %v15455_v38, 16  ;;  %v3192_v14 = vsel %vm14684_vm11, %v3187_v29, %v3191_v34 }
 0x1a9   : > { %v3200_v47 = vor.u32 %v3199_v42, %v3196_v25  ;;  %v3215_v25 = vrot.slane %v3213_v24, 5  ;;  %v14234_v42 = vld [vmem:[%s18195_s1 + $0x168] sm:$0xff]   ;;  %v3275_v8 = vshll.u32 %v15495_v52, 16  ;;  %v3279_v23 = vshrl.u32 %v15495_v52, 16  ;;  %v14235_v52 = vld [vmem:[%s18195_s1 + $0x170] sm:$0xff]  }
 0x1aa   : > { %12985 = vmatmul.mubr.bf16.gmra.mrb[4].mxu0 %v11633_v46  ;;  %v3223_v46 = vrot.slane %v3221_v22, 5  ;;  %v3234_v12 = vor.u32 %v3233_v31, %v15691_v54  ;;  %v3244_v22 = vrot.slane %v3242_v36, 4  ;;  %v3247_v45 = vrot.slane %v3245_v53, 5 }
 0x1ab   : > { %12988 = vmatprep.mubr.bf16.mxu0 %v11634_v3  ;;  %13017 = vmatpush3.bf16.msra.mxu0 %v14231_v37  ;;  %v3158_v37 = vsel %vm14684_vm11, %v3153_v18, %v15641_v41  ;;  %v2965_v3 = vld [vmem:[#allocation2 + $0x9c] sm:$0xf]  ;;  %v3182_v41 = vsel %vm14684_vm11, %v3177_v57, %v15653_v49  ;;  %v3201_v33 = vrot.slane %v3200_v47, 4  ;;  %v3237_v49 = vshll.u32 %v15689_v44, 16 }
 0x1ac   : > { %13018 = vmatprep.subr.bf16.mxu0 %v14232_v28  ;;  %v3266_v27 = vshrl.u32 %v2965_v3, 16  ;;  %v3269_v18 = vshll.u32 %v2965_v3, 16  ;;  %v3224_v15 = vor.u32 %v3223_v46, %v3220_v48  ;;  %v3216_v57 = vsel %vm14684_vm11, %v3211_v32, %v3215_v25  ;;  %v14236_v3 = vld [vmem:[%s18195_s1 + $0x178] sm:$0xff]  }
 0x1ad   : > { %v3206_v61 = vsel %vm14684_vm11, %v3201_v33, %v15669_v10  ;;  %v3257_v35 = vrot.slane %v3255_v58, 4  ;;  %v11638_v26 = vcombine.low %v3182_v41, %v3192_v14  ;;  %v3235_v29 = vrot.slane %v3234_v12, 4  ;;  %v2971_v33 = vld [vmem:[#allocation2 + $0xb4] sm:$0xf] }
 0x1ae   : > { %v3268_v24 = vrot.slane %v3266_v27, 4  ;;  %v3225_v10 = vrot.slane %v3224_v15, 4  ;;  %v3248_v34 = vor.u32 %v3247_v45, %v3244_v22  ;;  %v3261_v48 = vshll.u32 %v15457_v0, 16 }
 0x1af   : > { %13019 = vmatpush3.bf16.msra.mxu0 %v14232_v28  ;;  %v3251_v28 = vshll.u32 %v15455_v38, 16  ;;  %v11637_v38 = vcombine.low %v3158_v37, %v3168_v2  ;;  %v3281_v37 = vrot.slane %v3279_v23, 4  ;;  %v2968_v2 = vld [vmem:[#allocation2 + $0xa8] sm:$0xf]  ;;  %v11639_v46 = vcombine.low %v3206_v61, %v3216_v57 }
 0x1b0   : > { %13020 = vmatprep.subr.bf16.mxu0 %v14233_v1  ;;  %v3285_v53 = vshll.u32 %v15497_v60, 16  ;;  %v3290_v41 = vshrl.u32 %v2968_v2, 16  ;;  %v3293_v25 = vshll.u32 %v2968_v2, 16  ;;  %v3299_v0 = vshll.u32 %v15499_v11, 16 }
 0x1b1   : > { %v15715_v47 = vrot.slane %v3251_v28, 5  ;;  %v3230_v28 = vsel %vm14684_vm11, %v3225_v10, %v15691_v54  ;;  %v3249_v27 = vrot.slane %v3248_v34, 4  ;;  %v3263_v60 = vrot.slane %v3261_v48, 5 }
 0x1b2   : > { %12989 = vmatmul.mubr.bf16.gmra.mrb[8].mxu0 %v11635_v16  ;;  %v3239_v16 = vrot.slane %v3237_v49, 5  ;;  %v3317_v14 = vshll.u32 %v2971_v33, 16  ;;  %v3323_v49 = vshll.u32 %v15556_v39, 16  ;;  %v3287_v15 = vrot.slane %v3285_v53, 5 }
 0x1b3   : > { %12992 = vmatprep.mubr.bf16.mxu0 %v11636_v43  ;;  %13021 = vmatpush3.bf16.msra.mxu0 %v14233_v1  ;;  %v3271_v1 = vrot.slane %v3269_v18, 5  ;;  %v15717_v43 = vrot.slane %v3275_v8, 5  ;;  %v3258_v31 = vor.u32 %v3257_v35, %v15715_v47  ;;  %v3314_v18 = vshrl.u32 %v2971_v33, 16 }
 0x1b4   : > { %13022 = vmatprep.subr.bf16.mxu0 %v14234_v42  ;;  %v3240_v58 = vsel %vm14684_vm11, %v3235_v29, %v3239_v16  ;;  %v3327_v8 = vshrl.u32 %v15556_v39, 16  ;;  %v3292_v12 = vrot.slane %v3290_v41, 4  ;;  %v3295_v45 = vrot.slane %v3293_v25, 5 }
 0x1b5   : > { %v3272_v36 = vor.u32 %v3271_v1, %v3268_v24  ;;  %v3282_v32 = vor.u32 %v3281_v37, %v15717_v43  ;;  %v3259_v23 = vrot.slane %v3258_v31, 4  ;;  %v11640_v57 = vcombine.low %v3230_v28, %v3240_v58  ;;  %v2974_v1 = vld [vmem:[#allocation2 + $0xc0] sm:$0xf] }
 0x1b6   : > { %v3319_v35 = vrot.slane %v3317_v14, 5  ;;  %v3325_v24 = vrot.slane %v3323_v49, 5  ;;  %v3329_v39 = vrot.slane %v3327_v8, 4  ;;  %v3309_v37 = vshll.u32 %v15506_v56, 16 }
 0x1b7   : > { %13023 = vmatpush3.bf16.msra.mxu0 %v14234_v42  ;;  %v3303_v42 = vshrl.u32 %v15499_v11, 16  ;;  %v15738_v11 = vld [vmem:[%s18195_s1 + $0x180] sm:$0xff]   ;;  %v3273_v54 = vrot.slane %v3272_v36, 4  ;;  %v3283_v22 = vrot.slane %v3282_v32, 4  ;;  %v3264_v16 = vsel %vm14684_vm11, %v3259_v23, %v3263_v60 }
 0x1b8   : > { %13024 = vmatprep.subr.bf16.mxu0 %v14235_v52  ;;  %v3296_v29 = vor.u32 %v3295_v45, %v3292_v12  ;;  %v3338_v48 = vshrl.u32 %v2974_v1, 16  ;;  %v3351_v31 = vshrl.u32 %v15560_v13, 16  ;;  %v3330_v53 = vor.u32 %v3329_v39, %v3325_v24 }
 0x1b9   : > { %v3305_v61 = vrot.slane %v3303_v42, 4  ;;  %v3278_v2 = vsel %vm14684_vm11, %v3273_v54, %v15717_v43  ;;  %v3288_v10 = vsel %vm14684_vm11, %v3283_v22, %v3287_v15  ;;  %v3333_v56 = vshll.u32 %v15558_v6, 16  ;;  %v3683_v15 = vld [vmem:[#allocation2 + $0xc] sm:$0xe] }
 0x1ba   : > { %12993 = vmatmul.mubr.bf16.gmra.mrb[12].mxu0 %v11637_v38  ;;  %v3301_v38 = vrot.slane %v3299_v0, 5  ;;  %v11642_v41 = vcombine.low %v3278_v2, %v3288_v10  ;;  %v3297_v33 = vrot.slane %v3296_v29, 4  ;;  %v3311_v32 = vrot.slane %v3309_v37, 5 }
 0x1bb   : > { %12996 = vmatprep.mubr.bf16.mxu0 %v11638_v26  ;;  %13025 = vmatpush3.bf16.msra.mxu0 %v14235_v52  ;;  %v3316_v52 = vrot.slane %v3314_v18, 4  ;;  %v3254_v26 = vsel %vm14684_vm11, %v3249_v27, %v15715_v47  ;;  %v3347_v47 = vshll.u32 %v15560_v13, 16  ;;  %v3340_v25 = vrot.slane %v3338_v48, 4 }
 0x1bc   : > { %13026 = vmatprep.subr.bf16.mxu0 %v14236_v3  ;;  %v3306_v34 = vor.u32 %v3305_v61, %v3301_v38  ;;  %v3353_v28 = vrot.slane %v3351_v31, 4  ;;  %v3331_v27 = vrot.slane %v3330_v53, 4  ;;  %v3335_v60 = vrot.slane %v3333_v56, 5  ;;  %v3686_v53 = vld [vmem:[#allocation2 + $0x30] sm:$0xe] }
 0x1bd   : > { %v3320_v36 = vor.u32 %v3319_v35, %v3316_v52  ;;  %v3349_v42 = vrot.slane %v3347_v47, 5  ;;  %v3302_v13 = vsel %vm14684_vm11, %v3297_v33, %v3301_v38  ;;  %v3357_v49 = vshll.u32 %v15564_v55, 16 }
 0x1be   : > { %v3307_v43 = vrot.slane %v3306_v34, 4  ;;  %v3336_v23 = vsel %vm14684_vm11, %v3331_v27, %v3335_v60  ;;  %v3749_v54 = vrot.slane %v15353_v40, 5  ;;  %v3752_v35 = vrot.slane %v15391_v63, 5  ;;  %v3685_v63 = vld [vmem:[#allocation2 + $0x24] sm:$0xe]  ;;  %v14239_v60 = vld [vmem:[%s18195_s1 + $0x190] sm:$0xff]  }
 0x1bf   : > { %13027 = vmatpush3.bf16.msra.mxu0 %v14236_v3  ;;  %v3341_v3 = vshll.u32 %v2974_v1, 16  ;;  %v3321_v58 = vrot.slane %v3320_v36, 4  ;;  %v3354_v14 = vor.u32 %v3353_v28, %v3349_v42  ;;  %v3359_v61 = vrot.slane %v3357_v49, 5 }
 0x1c0   : > { %13060 = vmatprep.subr.bf16.mxu0 %v15738_v11  ;;  %v3312_v6 = vsel %vm14684_vm11, %v3307_v43, %v3311_v32  ;;  %v3751_v52 = vrot.slane %v3749_v54, 4  ;;  %v3756_v40 = vrot.slane %v15373_v9, 5  ;;  %v3759_v34 = vrot.slane %v15409_v50, 5 }
 0x1c1   : > { %v3343_v0 = vrot.slane %v3341_v3, 5  ;;  %v3326_v8 = vsel %vm14684_vm11, %v3321_v58, %v3325_v24  ;;  %v11643_v12 = vcombine.low %v3302_v13, %v3312_v6  ;;  %v3355_v38 = vrot.slane %v3354_v14, 4  ;;  %v18342_v13 = vld [vmem:[#allocation20_spill] sm:$0xff] }
 0x1c2   : > { %12997 = vmatmul.mubr.bf16.gmra.mrb[16].mxu0 %v11639_v46  ;;  %v11641_v46 = vcombine.low %v3254_v26, %v3264_v16  ;;  %v11644_v22 = vcombine.low %v3326_v8, %v3336_v23  ;;  %v3753_v1 = vsel %vm15090_vm2, %v3751_v52, %v3752_v35  ;;  %v3684_v26 = vld [vmem:[#allocation2 + $0x18] sm:$0xe]  ;;  %v3763_v16 = vrot.slane %v15427_v17, 5  ;;  %v3689_v6 = vld [vmem:[#allocation2 + $0x54] sm:$0xe]  ;;  %v14242_v35 = vld [vmem:[%s18195_s1 + $0x1a8] sm:$0xff]  }
 0x1c3   : > { %13000 = vmatprep.mubr.bf16.mxu0 %v11640_v57  ;;  %v3344_v18 = vor.u32 %v3343_v0, %v3340_v25  ;;  %v11654_v57 = vrot.slane %v3683_v15, 9  ;;  %v3360_v24 = vsel %vm14684_vm11, %v3355_v38, %v3359_v61  ;;  %v11655_v10 = vrot.slane %v3684_v26, 9  ;;  %v3693_v26 = vld [vmem:[#allocation2 + $0x84] sm:$0xe] }
 0x1c4   : > { %v3758_v29 = vrot.slane %v3756_v40, 4  ;;  %v11656_v48 = vrot.slane %v3685_v63, 9  ;;  %v3765_v3 = vrot.slane %v3763_v16, 4  ;;  %v3766_v9 = vrot.slane %v15447_v51, 5  ;;  %v3687_v51 = vld [vmem:[#allocation2 + $0x3c] sm:$0xe] }
 0x1c5   : > { %v3345_v45 = vrot.slane %v3344_v18, 4  ;;  %v3750_v39 = vsel %vm15090_vm2, %v11654_v57, %v3749_v54  ;;  %v3757_v47 = vsel %vm15090_vm2, %v11655_v10, %v3756_v40  ;;  %v3770_v17 = vrot.slane %v15450_v20, 5  ;;  %v14238_v20 = vld [vmem:[%s18195_s1 + $0x188] sm:$0xff]   ;;  %v14240_v54 = vld [vmem:[%s18195_s1 + $0x198] sm:$0xff]  }
 0x1c6   : > { %v11686_v2 = vcombine.low %v3750_v39, %v3753_v1  ;;  %v3760_v31 = vsel %vm15090_vm2, %v3758_v29, %v3759_v34  ;;  %v3764_v36 = vsel %vm15090_vm2, %v11656_v48, %v3763_v16  ;;  %v3767_v50 = vsel %vm15090_vm2, %v3765_v3, %v3766_v9  ;;  %v14244_v10 = vld [vmem:[%s18195_s1 + $0x1b8] sm:$0xff]   ;;  %v18347_v34 = vld [vmem:[#allocation10_spill] sm:$0xff] }
 0x1c7   : > { %v3350_v55 = vsel %vm14684_vm11, %v3345_v45, %v3349_v42  ;;  %v3777_v56 = vrot.slane %v15487_v59, 5  ;;  %v11657_v33 = vrot.slane %v3686_v53, 9  ;;  %v3772_v43 = vrot.slane %v3770_v17, 4  ;;  %v18341_v42 = vld [vmem:[#allocation19_spill] sm:$0xff]  ;;  %v18346_v29 = vld [vmem:[#allocation9_spill] sm:$0xff] }
 0x1c8   : > { %v11645_v37 = vcombine.low %v3350_v55, %v3360_v24  ;;  %v3773_v32 = vrot.slane %v15468_v62, 5  ;;  %v11658_v25 = vrot.slane %v3687_v51, 9  ;;  %v3780_v28 = vrot.slane %v18341_v42, 5  ;;  %v3691_v45 = vld [vmem:[#allocation2 + $0x6c] sm:$0xe]  ;;  %v18344_v24 = vld [vmem:[#allocation8_spill] sm:$0xff] }
 0x1c9   : > { %v3779_v0 = vrot.slane %v3777_v56, 4  ;;  %v3771_v59 = vsel %vm15090_vm2, %v11657_v33, %v3770_v17  ;;  %v11660_v49 = vrot.slane %v3689_v6, 9  ;;  %v3794_v23 = vrot.slane %v15611_v19, 5  ;;  %v14241_v19 = vld [vmem:[%s18195_s1 + $0x1a0] sm:$0xff]   ;;  %v18343_v55 = vld [vmem:[#allocation7_spill] sm:$0xff]  ;;  %v18356_v51 = vld [vmem:[#allocation16_spill] sm:$0xff] }
 0x1ca   : > { %13001 = vmatmul.mubr.bf16.gmra.mrb[20].mxu0 %v11641_v46  ;;  %v11687_v46 = vcombine.low %v3757_v47, %v3760_v31  ;;  %v3774_v58 = vsel %vm15090_vm2, %v3772_v43, %v3773_v32  ;;  %v3778_v62 = vsel %vm15090_vm2, %v11658_v25, %v3777_v56  ;;  %v11662_v61 = vrot.slane %v3691_v45, 9  ;;  %v18349_v47 = vld [vmem:[#allocation11_spill] sm:$0xff]  ;;  %v18350_v31 = vld [vmem:[#allocation12_spill] sm:$0xff]  ;;  %v18359_v33 = vld [vmem:[#allocation18_spill] sm:$0xff] }
 0x1cb   : > { %13004 = vmatprep.mubr.bf16.mxu0 %v11642_v41  ;;  %v11688_v41 = vcombine.low %v3764_v36, %v3767_v50  ;;  %v3781_v27 = vsel %vm15090_vm2, %v3779_v0, %v3780_v28  ;;  %v11689_v18 = vcombine.low %v3771_v59, %v3774_v58  ;;  %v3808_v52 = vrot.slane %v15667_v4, 5  ;;  %v14243_v4 = vld [vmem:[%s18195_s1 + $0x1b0] sm:$0xff]   ;;  %v18352_v36 = vld [vmem:[#allocation13_spill] sm:$0xff]  ;;  %v18353_v50 = vld [vmem:[#allocation14_spill] sm:$0xff] }
 0x1cc   : > { %v11690_v14 = vcombine.low %v3778_v62, %v3781_v27  ;;  %v18345_v40 = vcombine.low %v18343_v55, %v18344_v24  ;;  %v3819_v1 = vrot.slane %v15671_v21, 5  ;;  %v11664_v63 = vrot.slane %v3693_v26, 9  ;;  %v18355_v56 = vld [vmem:[#allocation15_spill] sm:$0xff]  ;;  %v18361_v32 = vld [vmem:[#allocation21_spill] sm:$0xff]  ;;  %v18365_v28 = vld [vmem:[#allocation24_spill] sm:$0xff] }
 0x1cd   : > { %v18348_v21 = vcombine.low %v18346_v29, %v18347_v34  ;;  %v18351_v17 = vcombine.low %v18349_v47, %v18350_v31  ;;  %v18354_v53 = vcombine.low %v18352_v36, %v18353_v50  ;;  %v14245_v0 = vld [vmem:[#allocation2 + $0x18] sm:$0xff]   ;;  %v18364_v42 = vld [vmem:[#allocation23_spill] sm:$0xff]  ;;  %v14248_v62 = vld [vmem:[#allocation2 + $0x30] sm:$0xff]  }
 0x1ce   : > { %v3820_v48 = vsel %vm15090_vm2, %v11664_v63, %v3819_v1  ;;  %v18366_v59 = vcombine.low %v18364_v42, %v18365_v28  ;;  %v14246_v58 = vld [vmem:[#allocation2 + $0x24] sm:$0xff]   ;;  %v14256_v6 = vld [vmem:[%s18195_s1 + $0x1d8] sm:$0xff]   ;;  %v15904_v63 = vld [vmem:[#allocation2 + $0x74] sm:$0x1] }
 0x1cf   : > { %v14250_v27 = vld [vmem:[%s18195_s1 + $0x1c8] sm:$0xff]   ;;  %v15883_v45 = vld [vmem:[#allocation2 + $0x1c] sm:$0xf]  ;;  %v5440_v34 = vrot.slane %v15904_v63, 5  ;;  %v15915_v36 = vld [vmem:[#allocation2 + $0x20] sm:$0x1] }
 0x1d0   : > { %v15896_v24 = vld [vmem:[#allocation2 + $0x28] sm:$0xf]  ;;  %v4636_v28 = vshll.u32 %v15915_v36, 16 }
 0x1d2   : > { %13005 = vmatmul.mubr.bf16.gmra.mrb[24].mxu0 %v11643_v12 }
 0x1d3   : > { %13008 = vmatprep.mubr.bf16.mxu0 %v11644_v22  ;;  %v3805_v22 = vrot.slane %v15627_v7, 5 }
 0x1d5   : > { %v3807_v57 = vrot.slane %v3805_v22, 4  ;;  %v3806_v7 = vsel %vm15090_vm2, %v11662_v61, %v3805_v22  ;;  %v14254_v61 = vld [vmem:[#allocation2 + $0x60] sm:$0xff]  }
 0x1d7   : > { %v3809_v39 = vsel %vm15090_vm2, %v3807_v57, %v3808_v52  ;;  %v4571_v57 = vld [vmem:[#allocation2 + $0x24] sm:$0xf] }
 0x1d8   : > { %v11694_v16 = vcombine.low %v3806_v7, %v3809_v39  ;;  %v4626_v39 = vshll.u32 %v15883_v45, 16  ;;  %v4644_v26 = vshll.u32 %v4571_v57, 16 }
 0x1da   : > { %13009 = vmatmul.mubr.bf16.gmra.mrb[28].mxu0 %v11645_v37  ;;  %v3821_v37 = vrot.slane %v3819_v1, 4  ;;  %v4630_v1 = vshrl.u32 %v15883_v45, 16 }
 0x1db   : > { %13028 = vmatprep.mubr.bf16.mxu0 %v11686_v2  ;;  %v3822_v2 = vrot.slane %v15689_v44, 5  ;;  %v14247_v44 = vld [vmem:[%s18195_s1 + $0x1c0] sm:$0xff]  }
 0x1dc   : > { %v4632_v47 = vrot.slane %v4630_v1, 4  ;;  %v14260_v1 = vld [vmem:[#allocation2 + $0x90] sm:$0xff]  }
 0x1dd   : > { %v3823_v3 = vsel %vm15090_vm2, %v3821_v37, %v3822_v2  ;;  %v4650_v37 = vshll.u32 %v15896_v24, 16  ;;  %v4654_v2 = vshrl.u32 %v15896_v24, 16 }
 0x1de   : > { %v11696_v9 = vcombine.low %v3820_v48, %v3823_v3 }
 0x1e2   : > { %13029 = vmatmul.mubr.bf16.vlgmr.msra.gmra.mrb[0].mxu0 %v11687_v46  ;;  %v18357_v46 = vcombine.low %v18355_v56, %v18356_v51  ;;  %v14257_v51 = vld [vmem:[#allocation2 + $0x78] sm:$0xff]  }
 0x1e3   : > { %13061 = vmatpush3.bf16.msra.mxu0 %v15738_v11  ;;  %13032 = vmatprep.mubr.bf16.mxu0 %v11688_v41  ;;  %v3791_v11 = vrot.slane %v18342_v13, 5  ;;  %v18358_v41 = vld [vmem:[#allocation17_spill] sm:$0xff] }
 0x1e4   : > { %13062 = vmatprep.subr.bf16.mxu0 %v14238_v20  ;;  %v18360_v43 = vcombine.low %v18358_v41, %v18359_v33  ;;  %v14249_v13 = vld [vmem:[#allocation2 + $0x3c] sm:$0xff]   ;;  %v15923_v41 = vrot.slane %v4650_v37, 5  ;;  %v4656_v33 = vrot.slane %v4654_v2, 4 }
 0x1e5   : > { %v3793_v8 = vrot.slane %v3791_v11, 4  ;;  %v3792_v15 = vsel %vm15090_vm2, %v11660_v49, %v3791_v11  ;;  %v14251_v11 = vld [vmem:[#allocation2 + $0x48] sm:$0xff]   ;;  %v5327_v49 = vld [vmem:[#allocation2 + $0x54] sm:$0xe] }
 0x1e7   : > { %13063 = vmatpush3.bf16.msra.mxu0 %v14238_v20  ;;  %v3795_v12 = vsel %vm15090_vm2, %v3793_v8, %v3794_v23  ;;  %v18362_v20 = vld [vmem:[#allocation22_spill] sm:$0xff] }
 0x1e8   : > { %13064 = vmatprep.subr.bf16.mxu0 %v14239_v60  ;;  %v11692_v38 = vcombine.low %v3792_v15, %v3795_v12  ;;  %v18363_v25 = vcombine.low %v18361_v32, %v18362_v20  ;;  %v11795_v15 = vrot.slane %v5327_v49, 9  ;;  %v4568_v12 = vld [vmem:[#allocation2 + $0x18] sm:$0xf]  ;;  %v4574_v20 = vld [vmem:[#allocation2 + $0x30] sm:$0xf] }
 0x1e9   : > { %v4617_v55 = vshrl.u32 %v4568_v12, 16  ;;  %v4620_v7 = vshll.u32 %v4568_v12, 16  ;;  %v14268_v32 = vld [vmem:[%s18195_s1 + $0x1f8] sm:$0xff]  }
 0x1ea   : > { %13033 = vmatmul.mubr.bf16.gmra.mrb[4].mxu0 %v11689_v18  ;;  %v15874_v18 = vld [vmem:[#allocation2 + $0x58] sm:$0xf] }
 0x1eb   : > { %13036 = vmatprep.mubr.bf16.mxu0 %v11690_v14  ;;  %13065 = vmatpush3.bf16.msra.mxu0 %v14239_v60  ;;  %v14253_v60 = vld [vmem:[%s18195_s1 + $0x1d0] sm:$0xff]   ;;  %v15876_v14 = vld [vmem:[#allocation2 + $0x5c] sm:$0x1]  ;;  %v5423_v8 = vrot.slane %v15874_v18, 5  ;;  %v4619_v48 = vrot.slane %v4617_v55, 4 }
 0x1ec   : > { %13066 = vmatprep.subr.bf16.mxu0 %v14240_v54  ;;  %v5426_v23 = vrot.slane %v15876_v14, 5 }
 0x1ed   : > { %v5425_v22 = vrot.slane %v5423_v8, 4 }
 0x1ef   : > { %13067 = vmatpush3.bf16.msra.mxu0 %v14240_v54  ;;  %v14259_v54 = vld [vmem:[%s18195_s1 + $0x1e0] sm:$0xff]   ;;  %v15891_v52 = vsel %vm15090_vm2, %v5425_v22, %v5426_v23  ;;  %v15949_v23 = vld [vmem:[#allocation2 + $0x34] sm:$0xf]  ;;  %v15955_v22 = vrot.slane %v4636_v28, 5 }
 0x1f0   : > { %13068 = vmatprep.subr.bf16.mxu0 %v14241_v19  ;;  %18368 = vst [vmem:[#allocation20_spill] sm:$0xff] %v15891_v52  ;;  %v4674_v37 = vshll.u32 %v15949_v23, 16  ;;  %v4583_v52 = vld [vmem:[#allocation2 + $0x54] sm:$0xf] }
 0x1f2   : > { %13037 = vmatmul.mubr.bf16.gmra.mrb[8].mxu0 %v18345_v40  ;;  %v5335_v40 = vld [vmem:[#allocation2 + $0xb4] sm:$0xe] }
 0x1f3   : > { %13040 = vmatprep.mubr.bf16.mxu0 %v11692_v38  ;;  %13069 = vmatpush3.bf16.msra.mxu0 %v14241_v19  ;;  %v14252_v19 = vld [vmem:[#allocation2 + $0x54] sm:$0xff]   ;;  %v15887_v38 = vsel %vm15090_vm2, %v11795_v15, %v5423_v8  ;;  %v15947_v8 = vld [vmem:[%s18195_s1 + $0x200] sm:$0xff]  }
 0x1f4   : > { %13070 = vmatprep.subr.bf16.mxu0 %v14242_v35  ;;  %18367 = vst [vmem:[#allocation19_spill] sm:$0xff] %v15887_v38  ;;  %v14267_v38 = vld [vmem:[#allocation2 + $0xcc] sm:$0xff]  }
 0x1f7   : > { %13071 = vmatpush3.bf16.msra.mxu0 %v14242_v35  ;;  %v14262_v35 = vld [vmem:[%s18195_s1 + $0x1e8] sm:$0xff]  }
 0x1f8   : > { %13072 = vmatprep.subr.bf16.mxu0 %v14243_v4 }
 0x1fa   : > { %13041 = vmatmul.mubr.bf16.gmra.mrb[12].mxu0 %v18348_v21  ;;  %v14265_v21 = vld [vmem:[%s18195_s1 + $0x1f0] sm:$0xff]  }
 0x1fb   : > { %13044 = vmatprep.mubr.bf16.mxu0 %v11694_v16  ;;  %13073 = vmatpush3.bf16.msra.mxu0 %v14243_v4  ;;  %v4641_v4 = vshrl.u32 %v4571_v57, 16  ;;  %v15902_v16 = vld [vmem:[#allocation2 + $0x70] sm:$0xf]  ;;  %v14258_v57 = vld [vmem:[#allocation2 + $0x84] sm:$0xff]  }
 0x1fc   : > { %13074 = vmatprep.subr.bf16.mxu0 %v14244_v10  ;;  %v5437_v29 = vrot.slane %v15902_v16, 5 }
 0x1fd   : > { %v4643_v50 = vrot.slane %v4641_v4, 4 }
 0x1fe   : > { %v5439_v31 = vrot.slane %v5437_v29, 4 }
 0x1ff   : > { %13075 = vmatpush3.bf16.msra.mxu0 %v14244_v10  ;;  %v5329_v10 = vld [vmem:[#allocation2 + $0x6c] sm:$0xe] }
 0x200   : > { %13108 = vmatprep.subr.bf16.mxu0 %v14247_v44  ;;  %v11797_v3 = vrot.slane %v5329_v10, 9  ;;  %v4678_v10 = vshrl.u32 %v15949_v23, 16 }
 0x202   : > { %13045 = vmatmul.mubr.bf16.gmra.mrb[16].mxu0 %v18351_v17  ;;  %v14255_v17 = vld [vmem:[#allocation2 + $0x6c] sm:$0xff]   ;;  %v15919_v56 = vsel %vm15090_vm2, %v11797_v3, %v5437_v29  ;;  %v15976_v29 = vld [vmem:[#allocation2 + $0x40] sm:$0xf]  ;;  %v15980_v3 = vld [vmem:[#allocation2 + $0x38] sm:$0x1] }
 0x203   : > { %13048 = vmatprep.mubr.bf16.mxu0 %v11696_v9  ;;  %v15913_v9 = vrot.slane %v4626_v39, 5  ;;  %18369 = vst [vmem:[#allocation7_spill] sm:$0xff] %v15919_v56 }
 0x205   : > { %v4633_v42 = vor.u32 %v4632_v47, %v15913_v9  ;;  %v15984_v47 = vld [vmem:[#allocation2 + $0x98] sm:$0x1] }
 0x207   : > { %v15953_v12 = vrot.slane %v4633_v42, 4 }
 0x20a   : > { %13049 = vmatmul.mubr.bf16.gmra.mrb[20].mxu0 %v18354_v53  ;;  %v4646_v53 = vrot.slane %v4644_v26, 5 }
 0x20b   : > { %13052 = vmatprep.mubr.bf16.mxu0 %v18357_v46  ;;  %v15921_v46 = vld [vmem:[#allocation2 + $0x2c] sm:$0x1] }
 0x212   : > { %13053 = vmatmul.mubr.bf16.gmra.mrb[24].mxu0 %v18360_v43  ;;  %v15927_v43 = vsel %vm15090_vm2, %v5439_v31, %v5440_v34  ;;  %v15986_v31 = vld [vmem:[#allocation2 + $0xa0] sm:$0xf] }
 0x213   : > { %13056 = vmatprep.mubr.bf16.mxu0 %v18363_v25  ;;  %18370 = vst [vmem:[#allocation8_spill] sm:$0xff] %v15927_v43  ;;  %v5334_v25 = vld [vmem:[#allocation2 + $0xa8] sm:$0xe] }
 0x21a   : > { %13057 = vmatmul.mubr.bf16.gmra.mrb[28].mxu0 %v18366_v59  ;;  %v4647_v59 = vor.u32 %v4646_v53, %v4643_v50  ;;  %v5332_v50 = vld [vmem:[#allocation2 + $0x90] sm:$0xe] }
 0x21b   : > { %13076 = vmatprep.mubr.bf16.mxu0 %v14245_v0 }
 0x222   : > { %13077 = vmatmul.mubr.bf16.vlgmr.msra.gmra.mrb[0].mxu0 %v14246_v58  ;;  %v4660_v58 = vshll.u32 %v15921_v46, 16 }
 0x223   : > { %13109 = vmatpush3.bf16.msra.mxu0 %v14247_v44  ;;  %13080 = vmatprep.mubr.bf16.mxu0 %v14248_v62  ;;  %v4622_v44 = vrot.slane %v4620_v7, 5  ;;  %v15937_v62 = vld [vmem:[#allocation2 + $0x88] sm:$0xf]  ;;  %v4668_v7 = vshll.u32 %v4574_v20, 16 }
 0x224   : > { %13110 = vmatprep.subr.bf16.mxu0 %v14250_v27  ;;  %v15959_v55 = vrot.slane %v4660_v58, 5 }
 0x225   : > { %v4623_v0 = vor.u32 %v4622_v44, %v4619_v48  ;;  %v15982_v44 = vld [vmem:[#allocation2 + $0x94] sm:$0xf]  ;;  %v4670_v28 = vrot.slane %v4668_v7, 5  ;;  %v16046_v48 = vld [vmem:[#allocation2 + $0xbc] sm:$0x1] }
 0x226   : > { %v5458_v53 = vrot.slane %v15982_v44, 5 }
 0x227   : > { %13111 = vmatpush3.bf16.msra.mxu0 %v14250_v27  ;;  %v15939_v27 = vld [vmem:[#allocation2 + $0x8c] sm:$0x1]  ;;  %v15951_v15 = vrot.slane %v4623_v0, 4  ;;  %v5465_v0 = vrot.slane %v15986_v31, 5 }
 0x228   : > { %13112 = vmatprep.subr.bf16.mxu0 %v14253_v60  ;;  %v5454_v49 = vrot.slane %v15939_v27, 5  ;;  %v5460_v58 = vrot.slane %v5458_v53, 4 }
 0x22a   : > { %13081 = vmatmul.mubr.bf16.gmra.mrb[4].mxu0 %v14249_v13  ;;  %v4665_v13 = vshrl.u32 %v4574_v20, 16  ;;  %v5333_v20 = vld [vmem:[#allocation2 + $0x9c] sm:$0xe] }
 0x22b   : > { %13084 = vmatprep.mubr.bf16.mxu0 %v14251_v11  ;;  %13113 = vmatpush3.bf16.msra.mxu0 %v14253_v60  ;;  %v4657_v60 = vor.u32 %v4656_v33, %v15923_v41  ;;  %v5331_v11 = vld [vmem:[#allocation2 + $0x84] sm:$0xe]  ;;  %v4698_v33 = vshll.u32 %v15976_v29, 16 }
 0x22c   : > { %13114 = vmatprep.subr.bf16.mxu0 %v14256_v6  ;;  %v15967_v26 = vrot.slane %v4665_v13, 4  ;;  %v4680_v13 = vrot.slane %v4678_v10, 4 }
 0x22d   : > { %v15965_v4 = vrot.slane %v4657_v60, 4  ;;  %v11801_v60 = vrot.slane %v5333_v20, 9  ;;  %v16026_v20 = vld [vmem:[#allocation2 + $0x4c] sm:$0xf] }
 0x22e   : > { %18378 = vst [vmem:[#allocation16_spill] sm:$0xff] %v16026_v20 }
 0x22f   : > { %13115 = vmatpush3.bf16.msra.mxu0 %v14256_v6  ;;  %v5451_v6 = vrot.slane %v15937_v62, 5 }
 0x230   : > { %13116 = vmatprep.subr.bf16.mxu0 %v14259_v54 }
 0x232   : > { %13085 = vmatmul.mubr.bf16.gmra.mrb[8].mxu0 %v14252_v19  ;;  %v4577_v19 = vld [vmem:[#allocation2 + $0x3c] sm:$0xf] }
 0x233   : > { %13088 = vmatprep.mubr.bf16.mxu0 %v14254_v61  ;;  %13117 = vmatpush3.bf16.msra.mxu0 %v14259_v54  ;;  %v11799_v54 = vrot.slane %v5331_v11, 9  ;;  %v5453_v61 = vrot.slane %v5451_v6, 4  ;;  %v4689_v34 = vshrl.u32 %v4577_v19, 16  ;;  %v15997_v11 = vld [vmem:[#allocation2 + $0x44] sm:$0x1] }
 0x234   : > { %13118 = vmatprep.subr.bf16.mxu0 %v14262_v35  ;;  %18373 = vst [vmem:[#allocation11_spill] sm:$0xff] %v15997_v11 }
 0x235   : > { %v15963_v39 = vsel %vm15090_vm2, %v11799_v54, %v5451_v6  ;;  %v15972_v2 = vsel %vm15090_vm2, %v5453_v61, %v5454_v49  ;;  %v4580_v6 = vld [vmem:[#allocation2 + $0x48] sm:$0xf]  ;;  %v5467_v54 = vrot.slane %v5465_v0, 4  ;;  %v4684_v61 = vshll.u32 %v15980_v3, 16 }
 0x236   : > { %18371 = vst [vmem:[#allocation9_spill] sm:$0xff] %v15963_v39  ;;  %18372 = vst [vmem:[#allocation10_spill] sm:$0xff] %v15972_v2 }
 0x237   : > { %13119 = vmatpush3.bf16.msra.mxu0 %v14262_v35  ;;  %v15957_v35 = vrot.slane %v4647_v59, 4  ;;  %v15995_v59 = vrot.slane %v4674_v37, 5  ;;  %v14263_v37 = vld [vmem:[#allocation2 + $0xa8] sm:$0xff]  }
 0x238   : > { %13120 = vmatprep.subr.bf16.mxu0 %v14265_v21 }
 0x23a   : > { %13089 = vmatmul.mubr.bf16.gmra.mrb[12].mxu0 %v14255_v17  ;;  %v15988_v17 = vld [vmem:[#allocation2 + $0xa4] sm:$0x1] }
 0x23b   : > { %13092 = vmatprep.mubr.bf16.mxu0 %v14257_v51  ;;  %13121 = vmatpush3.bf16.msra.mxu0 %v14265_v21  ;;  %v4692_v21 = vshll.u32 %v4577_v19, 16  ;;  %v5461_v51 = vrot.slane %v15984_v47, 5  ;;  %v5468_v42 = vrot.slane %v15988_v17, 5  ;;  %v14261_v19 = vld [vmem:[#allocation2 + $0x9c] sm:$0xff]  }
 0x23c   : > { %13122 = vmatprep.subr.bf16.mxu0 %v14268_v32 }
 0x23d   : > { %v16008_v7 = vsel %vm15090_vm2, %v5460_v58, %v5461_v51  ;;  %v16014_v10 = vrot.slane %v4692_v21, 5  ;;  %v4708_v51 = vshll.u32 %v15997_v11, 16  ;;  %v4671_v58 = vor.u32 %v4670_v28, %v15967_v26 }
 0x23e   : > { %18375 = vst [vmem:[#allocation13_spill] sm:$0xff] %v16008_v7  ;;  %v4681_v21 = vor.u32 %v4680_v13, %v15995_v59  ;;  %v4716_v26 = vshll.u32 %v4580_v6, 16  ;;  %v11802_v28 = vrot.slane %v5334_v25, 9  ;;  %v11803_v13 = vrot.slane %v5335_v40, 9 }
 0x23f   : > { %13123 = vmatpush3.bf16.msra.mxu0 %v14268_v32  ;;  %v11800_v32 = vrot.slane %v5332_v50, 9  ;;  %v16016_v50 = vrot.slane %v4698_v33, 5  ;;  %v4629_v33 = vsel %vm14684_vm11, %v15951_v15, %v15913_v9  ;;  %v16054_v7 = vrot.slane %v4671_v58, 4  ;;  %v14266_v58 = vld [vmem:[#allocation2 + $0xc0] sm:$0xff]  }
 0x240   : > { %13156 = vmatprep.subr.bf16.mxu0 %v15947_v8  ;;  %v16062_v2 = vrot.slane %v4681_v21, 4  ;;  %v4746_v11 = vshll.u32 %v15874_v18, 16 }
 0x241   : > { %v16001_v49 = vsel %vm15090_vm2, %v11800_v32, %v5458_v53  ;;  %v4702_v32 = vshrl.u32 %v15976_v29, 16  ;;  %v4639_v53 = vsel %vm14684_vm11, %v15953_v12, %v15955_v22  ;;  %v4726_v12 = vshrl.u32 %v16026_v20, 16 }
 0x242   : > { %13093 = vmatmul.mubr.bf16.gmra.mrb[16].mxu0 %v14258_v57  ;;  %18374 = vst [vmem:[#allocation12_spill] sm:$0xff] %v16001_v49  ;;  %v16004_v57 = vrot.slane %v4689_v34, 4  ;;  %v16022_v34 = vsel %vm15090_vm2, %v5467_v54, %v5468_v42  ;;  %v16037_v42 = vld [vmem:[#allocation2 + $0xb0] sm:$0x1]  ;;  %v16039_v54 = vld [vmem:[#allocation2 + $0xb8] sm:$0xf] }
 0x243   : > { %13096 = vmatprep.mubr.bf16.mxu0 %v14260_v1  ;;  %v16012_v1 = vsel %vm15090_vm2, %v11801_v60, %v5465_v0  ;;  %18377 = vst [vmem:[#allocation15_spill] sm:$0xff] %v16022_v34  ;;  %v4713_v0 = vshrl.u32 %v4580_v6, 16  ;;  %v16035_v60 = vld [vmem:[#allocation2 + $0xac] sm:$0xf]  ;;  %v5475_v15 = vrot.slane %v16037_v42, 5  ;;  %v5482_v34 = vrot.slane %v16046_v48, 5 }
 0x244   : > { %18376 = vst [vmem:[#allocation14_spill] sm:$0xff] %v16012_v1  ;;  %v5472_v9 = vrot.slane %v16035_v60, 5  ;;  %v4722_v1 = vshll.u32 %v16026_v20, 16  ;;  %v16056_v49 = vrot.slane %v4684_v61, 5  ;;  %v14264_v6 = vld [vmem:[#allocation2 + $0xb4] sm:$0xff]   ;;  %v4704_v39 = vrot.slane %v4702_v32, 4 }
 0x245   : > { %v16072_v61 = vrot.slane %v4708_v51, 5  ;;  %v4715_v56 = vrot.slane %v4713_v0, 4  ;;  %v16080_v32 = vld [vmem:[#allocation2 + $0x50] sm:$0x1]  ;;  %v11766_v51 = vcombine.low %v4629_v33, %v4639_v53  ;;  %v4653_v0 = vsel %vm14684_vm11, %v15957_v35, %v15923_v41  ;;  %v16107_v53 = vld [vmem:[#allocation2 + $0xd4] sm:$0x1] }
 0x246   : > { %v5474_v22 = vrot.slane %v5472_v9, 4  ;;  %18383 = vst [vmem:[#allocation23_spill] sm:$0xff] %v16080_v32  ;;  %v4677_v41 = vsel %vm14684_vm11, %v16054_v7, %v15995_v59  ;;  %v4705_v35 = vor.u32 %v4704_v39, %v16016_v50  ;;  %v4732_v59 = vshll.u32 %v16080_v32, 16  ;;  %v4586_v7 = vld [vmem:[#allocation2 + $0x60] sm:$0xf] }
 0x247   : > { %v16151_v32 = vrot.slane %v4746_v11, 5  ;;  %v4798_v11 = vshrl.u32 %v15902_v16, 16 }
 0x248   : > { %v16066_v43 = vsel %vm15090_vm2, %v5474_v22, %v5475_v15  ;;  %v4718_v15 = vrot.slane %v4716_v26, 5  ;;  %v4728_v22 = vrot.slane %v4726_v12, 4  ;;  %v4695_v26 = vor.u32 %v16014_v10, %v16004_v57  ;;  %v16098_v12 = vld [vmem:[#allocation2 + $0xc8] sm:$0x1] }
 0x249   : > { %18380 = vst [vmem:[#allocation18_spill] sm:$0xff] %v16066_v43  ;;  %v5489_v57 = vrot.slane %v16098_v12, 5  ;;  %v4737_v10 = vshrl.u32 %v4583_v52, 16  ;;  %v4740_v43 = vshll.u32 %v4583_v52, 16  ;;  %v4761_v52 = vshrl.u32 %v4586_v7, 16 }
 0x24a   : > { %13097 = vmatmul.mubr.bf16.gmra.mrb[20].mxu0 %v14261_v19  ;;  %v5479_v19 = vrot.slane %v16039_v54, 5 }
 0x24b   : > { %13100 = vmatprep.mubr.bf16.mxu0 %v14263_v37  ;;  %v16060_v37 = vsel %vm15090_vm2, %v11802_v28, %v5472_v9  ;;  %v16082_v28 = vrot.slane %v4722_v1, 5  ;;  %v16096_v1 = vld [vmem:[#allocation2 + $0xc4] sm:$0xf]  ;;  %v4719_v9 = vor.u32 %v4718_v15, %v4715_v56  ;;  %v4750_v56 = vshrl.u32 %v15874_v18, 16 }
 0x24c   : > { %18379 = vst [vmem:[#allocation17_spill] sm:$0xff] %v16060_v37  ;;  %v5481_v25 = vrot.slane %v5479_v19, 4  ;;  %v16070_v40 = vsel %vm15090_vm2, %v11803_v13, %v5479_v19  ;;  %v16100_v13 = vld [vmem:[#allocation2 + $0xd0] sm:$0xf]  ;;  %v5496_v19 = vrot.slane %v16107_v53, 5  ;;  %v4687_v18 = vsel %vm14684_vm11, %v16062_v2, %v16056_v49 }
 0x24d   : > { %18381 = vst [vmem:[#allocation21_spill] sm:$0xff] %v16070_v40  ;;  %v4729_v40 = vor.u32 %v4728_v22, %v16082_v28  ;;  %v16115_v37 = vld [vmem:[#allocation2 + $0x64] sm:$0xf]  ;;  %v4752_v2 = vrot.slane %v4750_v56, 4  ;;  %v4763_v20 = vrot.slane %v4761_v52, 4 }
 0x24e   : > { %v16078_v21 = vsel %vm15090_vm2, %v5481_v25, %v5482_v34  ;;  %v4663_v34 = vsel %vm14684_vm11, %v15965_v4, %v15959_v55  ;;  %v5336_v55 = vld [vmem:[#allocation2 + $0xc0] sm:$0xe]  ;;  %v5486_v4 = vrot.slane %v16096_v1, 5  ;;  %v5337_v25 = vld [vmem:[#allocation2 + $0xcc] sm:$0xe]  ;;  %18384 = vst [vmem:[#allocation24_spill] sm:$0xff] %v16115_v37 }
 0x24f   : > { %18382 = vst [vmem:[#allocation22_spill] sm:$0xff] %v16078_v21  ;;  %v11804_v33 = vrot.slane %v5336_v55, 9  ;;  %v11805_v21 = vrot.slane %v5337_v25, 9  ;;  %v4764_v25 = vshll.u32 %v4586_v7, 16  ;;  %v16148_v7 = vrot.slane %v4732_v59, 5 }
 0x250   : > { %v5488_v39 = vrot.slane %v5486_v4, 4  ;;  %v4730_v49 = vrot.slane %v4729_v40, 4  ;;  %v16154_v59 = vld [vmem:[#allocation2 + $0x68] sm:$0x1]  ;;  %v16170_v56 = vld [vmem:[#allocation2 + $0x7c] sm:$0xf] }
 0x252   : > { %13101 = vmatmul.mubr.bf16.gmra.mrb[24].mxu0 %v14264_v6  ;;  %v5493_v6 = vrot.slane %v16100_v13, 5  ;;  %v16125_v15 = vsel %vm15090_vm2, %v5488_v39, %v5489_v57  ;;  %v16141_v57 = vrot.slane %v4695_v26, 4  ;;  %v4770_v39 = vshll.u32 %v16115_v37, 16 }
 0x253   : > { %13104 = vmatprep.mubr.bf16.mxu0 %v14266_v58  ;;  %v16119_v58 = vsel %vm15090_vm2, %v11804_v33, %v5486_v4  ;;  %18386 = vst [vmem:[#allocation26_spill] sm:$0xff] %v16125_v15  ;;  %v4739_v4 = vrot.slane %v4737_v10, 4  ;;  %v4720_v15 = vrot.slane %v4719_v9, 4  ;;  %v4756_v26 = vshll.u32 %v15876_v14, 16 }
 0x254   : > { %18385 = vst [vmem:[#allocation25_spill] sm:$0xff] %v16119_v58  ;;  %v5495_v55 = vrot.slane %v5493_v6, 4  ;;  %v16129_v22 = vsel %vm15090_vm2, %v11805_v21, %v5493_v6  ;;  %v16146_v6 = vrot.slane %v4705_v35, 4  ;;  %v4742_v58 = vrot.slane %v4740_v43, 5 }
 0x255   : > { %18387 = vst [vmem:[#allocation27_spill] sm:$0xff] %v16129_v22  ;;  %v4766_v21 = vrot.slane %v4764_v25, 5  ;;  %v11767_v35 = vcombine.low %v4653_v0, %v4663_v34  ;;  %v16156_v10 = vrot.slane %v4770_v39, 5  ;;  %v4794_v43 = vshll.u32 %v15902_v16, 16  ;;  %v14270_v25 = vld [vmem:[%s18195_s1 + $0x208] sm:$0xff]  }
 0x256   : > { %v16135_v33 = vsel %vm15090_vm2, %v5495_v55, %v5496_v19  ;;  %v4774_v19 = vshrl.u32 %v16115_v37, 16  ;;  %v4589_v55 = vld [vmem:[#allocation2 + $0x6c] sm:$0xf]  ;;  %v4592_v37 = vld [vmem:[#allocation2 + $0x78] sm:$0xf]  ;;  %v4701_v14 = vsel %vm14684_vm11, %v16141_v57, %v16016_v50  ;;  %v4711_v40 = vsel %vm14684_vm11, %v16146_v6, %v16072_v61 }
 0x257   : > { %18388 = vst [vmem:[#allocation28_spill] sm:$0xff] %v16135_v33  ;;  %v11768_v33 = vcombine.low %v4677_v41, %v4687_v18  ;;  %v4785_v22 = vshrl.u32 %v4589_v55, 16  ;;  %v4788_v9 = vshll.u32 %v4589_v55, 16  ;;  %v4753_v0 = vor.u32 %v4752_v2, %v16151_v32  ;;  %v4595_v39 = vld [vmem:[#allocation2 + $0x84] sm:$0xf]  ;;  %v14271_v2 = vld [vmem:[%s18195_s1 + $0x210] sm:$0xff]  }
 0x258   : > { %v4767_v34 = vor.u32 %v4766_v21, %v4763_v20  ;;  %v4780_v41 = vshll.u32 %v16154_v59, 16  ;;  %v4809_v52 = vshrl.u32 %v4592_v37, 16  ;;  %v4812_v16 = vshll.u32 %v4592_v37, 16 }
 0x259   : > { %v4725_v50 = vsel %vm14684_vm11, %v4720_v15, %v16082_v28  ;;  %v4735_v61 = vsel %vm14684_vm11, %v4730_v49, %v16148_v7  ;;  %v4787_v20 = vrot.slane %v4785_v22, 4  ;;  %v4790_v18 = vrot.slane %v4788_v9, 5 }
 0x25a   : > { %13105 = vmatmul.mubr.bf16.gmra.mrb[28].mxu0 %v14267_v38  ;;  %v4776_v38 = vrot.slane %v4774_v19, 4  ;;  %v16184_v57 = vrot.slane %v4794_v43, 5  ;;  %v4800_v37 = vrot.slane %v4798_v11, 4  ;;  %v4754_v6 = vrot.slane %v4753_v0, 4 }
 0x25b   : > { %13124 = vmatprep.mubr.bf16.mxu0 %v11766_v51  ;;  %v4743_v51 = vor.u32 %v4742_v58, %v4739_v4  ;;  %v16181_v58 = vrot.slane %v4756_v26, 5  ;;  %v4818_v19 = vshll.u32 %v16170_v56, 16  ;;  %v4822_v28 = vshrl.u32 %v16170_v56, 16 }
 0x25c   : > { %v4777_v4 = vor.u32 %v4776_v38, %v16156_v10  ;;  %v4768_v15 = vrot.slane %v4767_v34, 4  ;;  %v4782_v7 = vrot.slane %v4780_v41, 5  ;;  %v4811_v22 = vrot.slane %v4809_v52, 4 }
 0x25d   : > { %v4744_v21 = vrot.slane %v4743_v51, 4  ;;  %v4814_v55 = vrot.slane %v4812_v16, 5  ;;  %v4833_v49 = vshrl.u32 %v4595_v39, 16  ;;  %v4836_v26 = vshll.u32 %v4595_v39, 16  ;;  %v16207_v16 = vld [vmem:[#allocation2 + $0x80] sm:$0x1] }
 0x25e   : > { %v4846_v38 = vshrl.u32 %v15937_v62, 16  ;;  %v4778_v9 = vrot.slane %v4777_v4, 4  ;;  %v4791_v43 = vor.u32 %v4790_v18, %v4787_v20  ;;  %v11769_v11 = vcombine.low %v4701_v14, %v4711_v40  ;;  %v4598_v14 = vld [vmem:[#allocation2 + $0x90] sm:$0xf]  ;;  %v14272_v40 = vld [vmem:[%s18195_s1 + $0x218] sm:$0xff]  }
 0x25f   : > { %v11770_v51 = vcombine.low %v4725_v50, %v4735_v61  ;;  %v16196_v0 = vrot.slane %v4818_v19, 5  ;;  %v4824_v34 = vrot.slane %v4822_v28, 4  ;;  %v4749_v41 = vsel %vm14684_vm11, %v4744_v21, %v16151_v32 }
 0x260   : > { %v4773_v52 = vsel %vm14684_vm11, %v4768_v15, %v16156_v10  ;;  %v4838_v50 = vrot.slane %v4836_v26, 5  ;;  %v4848_v61 = vrot.slane %v4846_v38, 4  ;;  %v4792_v20 = vrot.slane %v4791_v43, 4 }
 0x261   : > { %v4825_v18 = vor.u32 %v4824_v34, %v16196_v0  ;;  %v4857_v39 = vshrl.u32 %v4598_v14, 16  ;;  %v4860_v21 = vshll.u32 %v4598_v14, 16  ;;  %v4870_v19 = vshrl.u32 %v15982_v44, 16 }
 0x262   : > { %13125 = vmatmul.mubr.bf16.vlgmr.msra.gmra.mrb[0].mxu0 %v11767_v35  ;;  %v4842_v35 = vshll.u32 %v15937_v62, 16  ;;  %v4759_v62 = vsel %vm14684_vm11, %v4754_v6, %v16181_v58  ;;  %v4783_v58 = vsel %vm14684_vm11, %v4778_v9, %v4782_v7  ;;  %v4866_v6 = vshll.u32 %v15982_v44, 16 }
 0x263   : > { %13157 = vmatpush3.bf16.msra.mxu0 %v15947_v8  ;;  %13128 = vmatprep.mubr.bf16.mxu0 %v11768_v33  ;;  %v4801_v8 = vor.u32 %v4800_v37, %v16184_v57  ;;  %v4804_v33 = vshll.u32 %v15904_v63, 16  ;;  %v4815_v63 = vor.u32 %v4814_v55, %v4811_v22  ;;  %v4828_v37 = vshll.u32 %v16207_v16, 16  ;;  %v14273_v55 = vld [vmem:[%s18195_s1 + $0x220] sm:$0xff]  }
 0x264   : > { %13158 = vmatprep.subr.bf16.mxu0 %v14270_v25  ;;  %v16212_v32 = vrot.slane %v4842_v35, 5  ;;  %v4852_v22 = vshll.u32 %v15939_v27, 16  ;;  %v11771_v26 = vcombine.low %v4749_v41, %v4759_v62  ;;  %v11772_v35 = vcombine.low %v4773_v52, %v4783_v58 }
 0x265   : > { %v4802_v4 = vrot.slane %v4801_v8, 4  ;;  %v4806_v10 = vrot.slane %v4804_v33, 5  ;;  %v4816_v28 = vrot.slane %v4815_v63, 4  ;;  %v4826_v38 = vrot.slane %v4825_v18, 4  ;;  %v4604_v33 = vld [vmem:[#allocation2 + $0xa8] sm:$0xf] }
 0x266   : > { %v4849_v7 = vor.u32 %v4848_v61, %v16212_v32  ;;  %v4830_v9 = vrot.slane %v4828_v37, 5  ;;  %v4859_v43 = vrot.slane %v4857_v39, 4  ;;  %v4862_v8 = vrot.slane %v4860_v21, 5  ;;  %v14274_v63 = vld [vmem:[%s18195_s1 + $0x228] sm:$0xff]  }
 0x267   : > { %13159 = vmatpush3.bf16.msra.mxu0 %v14270_v25  ;;  %v4835_v25 = vrot.slane %v4833_v49, 4  ;;  %v4601_v49 = vld [vmem:[#allocation2 + $0x9c] sm:$0xf]  ;;  %v4807_v44 = vsel %vm14684_vm11, %v4802_v4, %v4806_v10  ;;  %v16230_v27 = vrot.slane %v4866_v6, 5  ;;  %v4821_v41 = vsel %vm14684_vm11, %v4816_v28, %v16196_v0 }
 0x268   : > { %13160 = vmatprep.subr.bf16.mxu0 %v14271_v2  ;;  %v4884_v34 = vshll.u32 %v4601_v49, 16  ;;  %v4854_v52 = vrot.slane %v4852_v22, 5  ;;  %v4890_v14 = vshll.u32 %v15986_v31, 16  ;;  %v4831_v61 = vsel %vm14684_vm11, %v4826_v38, %v4830_v9  ;;  %v14276_v38 = vld [vmem:[%s18195_s1 + $0x238] sm:$0xff]  }
 0x269   : > { %v4839_v15 = vor.u32 %v4838_v50, %v4835_v25  ;;  %v4905_v25 = vshrl.u32 %v4604_v33, 16  ;;  %v4908_v50 = vshll.u32 %v4604_v33, 16  ;;  %v4876_v0 = vshll.u32 %v15984_v47, 16  ;;  %v14275_v47 = vld [vmem:[%s18195_s1 + $0x230] sm:$0xff]  }
 0x26a   : > { %13129 = vmatmul.mubr.bf16.gmra.mrb[4].mxu0 %v11769_v11  ;;  %v4872_v11 = vrot.slane %v4870_v19, 4  ;;  %v4914_v58 = vshll.u32 %v16035_v60, 16  ;;  %v4863_v4 = vor.u32 %v4862_v8, %v4859_v43  ;;  %v4886_v37 = vrot.slane %v4884_v34, 5 }
 0x26b   : > { %13132 = vmatprep.mubr.bf16.mxu0 %v11770_v51  ;;  %13161 = vmatpush3.bf16.msra.mxu0 %v14271_v2  ;;  %v4797_v2 = vsel %vm14684_vm11, %v4792_v20, %v16184_v57  ;;  %v4881_v51 = vshrl.u32 %v4601_v49, 16  ;;  %v4840_v62 = vrot.slane %v4839_v15, 4  ;;  %v4850_v57 = vrot.slane %v4849_v7, 4  ;;  %v4607_v49 = vld [vmem:[#allocation2 + $0xb4] sm:$0xf] }
 0x26c   : > { %13162 = vmatprep.subr.bf16.mxu0 %v14272_v40  ;;  %v4918_v20 = vshrl.u32 %v16035_v60, 16  ;;  %v4873_v10 = vor.u32 %v4872_v11, %v16230_v27  ;;  %v16254_v60 = vrot.slane %v4890_v14, 5  ;;  %v4907_v19 = vrot.slane %v4905_v25, 4  ;;  %v4610_v11 = vld [vmem:[#allocation2 + $0xc0] sm:$0xf] }
 0x26d   : > { %v4883_v18 = vrot.slane %v4881_v51, 4  ;;  %v4845_v39 = vsel %vm14684_vm11, %v4840_v62, %v16212_v32  ;;  %v4855_v21 = vsel %vm14684_vm11, %v4850_v57, %v4854_v52  ;;  %v4910_v28 = vrot.slane %v4908_v50, 5 }
 0x26e   : > { %v11774_v15 = vcombine.low %v4821_v41, %v4831_v61  ;;  %v4878_v7 = vrot.slane %v4876_v0, 5  ;;  %v16256_v22 = vrot.slane %v4914_v58, 5  ;;  %v4864_v32 = vrot.slane %v4863_v4, 4 }
 0x26f   : > { %13163 = vmatpush3.bf16.msra.mxu0 %v14272_v40  ;;  %v4894_v40 = vshrl.u32 %v15986_v31, 16  ;;  %v11773_v31 = vcombine.low %v4797_v2, %v4807_v44  ;;  %v4900_v2 = vshll.u32 %v15988_v17, 16  ;;  %v11775_v44 = vcombine.low %v4845_v39, %v4855_v21  ;;  %v4613_v21 = vld [vmem:[#allocation2 + $0xcc] sm:$0xf] }
 0x270   : > { %13164 = vmatprep.subr.bf16.mxu0 %v14273_v55  ;;  %v4911_v43 = vor.u32 %v4910_v28, %v4907_v19  ;;  %v4924_v8 = vshll.u32 %v16037_v42, 16  ;;  %v4929_v33 = vshrl.u32 %v4607_v49, 16  ;;  %v4932_v34 = vshll.u32 %v4607_v49, 16 }
 0x271   : > { %v4896_v6 = vrot.slane %v4894_v40, 4  ;;  %v4938_v17 = vshll.u32 %v16039_v54, 16  ;;  %v4942_v41 = vshrl.u32 %v16039_v54, 16  ;;  %v4869_v62 = vsel %vm14684_vm11, %v4864_v32, %v16230_v27 }
 0x272   : > { %13133 = vmatmul.mubr.bf16.gmra.mrb[8].mxu0 %v11771_v26  ;;  %v4874_v26 = vrot.slane %v4873_v10, 4  ;;  %v4902_v42 = vrot.slane %v4900_v2, 5  ;;  %v4956_v14 = vshll.u32 %v4610_v11, 16  ;;  %v4962_v40 = vshll.u32 %v16096_v1, 16 }
 0x273   : > { %13136 = vmatprep.mubr.bf16.mxu0 %v11772_v35  ;;  %13165 = vmatpush3.bf16.msra.mxu0 %v14273_v55  ;;  %v4920_v55 = vrot.slane %v4918_v20, 4  ;;  %v4887_v35 = vor.u32 %v4886_v37, %v4883_v18  ;;  %v4897_v9 = vor.u32 %v4896_v6, %v16254_v60  ;;  %v4966_v25 = vshrl.u32 %v16096_v1, 16 }
 0x274   : > { %13166 = vmatprep.subr.bf16.mxu0 %v14274_v63  ;;  %v4879_v57 = vsel %vm14684_vm11, %v4874_v26, %v4878_v7  ;;  %v4912_v54 = vrot.slane %v4911_v43, 4  ;;  %v4926_v61 = vrot.slane %v4924_v8, 5  ;;  %v4931_v0 = vrot.slane %v4929_v33, 4 }
 0x275   : > { %v4921_v51 = vor.u32 %v4920_v55, %v16256_v22  ;;  %v4888_v52 = vrot.slane %v4887_v35, 4  ;;  %v4898_v50 = vrot.slane %v4897_v9, 4  ;;  %v4934_v20 = vrot.slane %v4932_v34, 5 }
 0x276   : > { %v4940_v27 = vrot.slane %v4938_v17, 5  ;;  %v4944_v4 = vrot.slane %v4942_v41, 4  ;;  %v11776_v10 = vcombine.low %v4869_v62, %v4879_v57  ;;  %v4958_v37 = vrot.slane %v4956_v14, 5  ;;  %v5322_v14 = vld [vmem:[#allocation2 + $0x18] sm:$0xe] }
 0x277   : > { %13167 = vmatpush3.bf16.msra.mxu0 %v14274_v63  ;;  %v4953_v63 = vshrl.u32 %v4610_v11, 16  ;;  %v4922_v58 = vrot.slane %v4921_v51, 4  ;;  %v4968_v39 = vrot.slane %v4966_v25, 4  ;;  %v4893_v1 = vsel %vm14684_vm11, %v4888_v52, %v16254_v60 }
 0x278   : > { %13168 = vmatprep.subr.bf16.mxu0 %v14275_v47  ;;  %v4948_v6 = vshll.u32 %v16046_v48, 16  ;;  %v4917_v19 = vsel %vm14684_vm11, %v4912_v54, %v16256_v22  ;;  %v4945_v7 = vor.u32 %v4944_v4, %v4940_v27  ;;  %v4977_v55 = vshrl.u32 %v4613_v21, 16 }
 0x279   : > { %v4955_v18 = vrot.slane %v4953_v63, 4  ;;  %v4927_v28 = vsel %vm14684_vm11, %v4922_v58, %v4926_v61  ;;  %v4980_v49 = vshll.u32 %v4613_v21, 16  ;;  %v4986_v60 = vshll.u32 %v16100_v13, 16 }
 0x27a   : > { %13137 = vmatmul.mubr.bf16.gmra.mrb[12].mxu0 %v11773_v31  ;;  %v4964_v31 = vrot.slane %v4962_v40, 5  ;;  %v4990_v32 = vshrl.u32 %v16100_v13, 16  ;;  %v4972_v48 = vshll.u32 %v16098_v12, 16  ;;  %v4946_v22 = vrot.slane %v4945_v7, 4 }
 0x27b   : > { %13140 = vmatprep.mubr.bf16.mxu0 %v11774_v15  ;;  %13169 = vmatpush3.bf16.msra.mxu0 %v14275_v47  ;;  %v4903_v47 = vsel %vm14684_vm11, %v4898_v50, %v4902_v42  ;;  %v4935_v15 = vor.u32 %v4934_v20, %v4931_v0  ;;  %v4959_v26 = vor.u32 %v4958_v37, %v4955_v18  ;;  %v4950_v9 = vrot.slane %v4948_v6, 5  ;;  %v5323_v18 = vld [vmem:[#allocation2 + $0x24] sm:$0xe] }
 0x27c   : > { %13170 = vmatprep.subr.bf16.mxu0 %v14276_v38  ;;  %v4969_v35 = vor.u32 %v4968_v39, %v4964_v31  ;;  %v11777_v2 = vcombine.low %v4893_v1, %v4903_v47  ;;  %v4979_v43 = vrot.slane %v4977_v55, 4  ;;  %v4982_v8 = vrot.slane %v4980_v49, 5  ;;  %v5325_v55 = vld [vmem:[#allocation2 + $0x3c] sm:$0xe]  ;;  %v18389_v49 = vld [vmem:[#allocation16_spill] sm:$0xff] }
 0x27d   : > { %v4988_v33 = vrot.slane %v4986_v60, 5  ;;  %v4992_v11 = vrot.slane %v4990_v32, 4  ;;  %v4960_v51 = vrot.slane %v4959_v26, 4  ;;  %v4974_v17 = vrot.slane %v4972_v48, 5 }
 0x27e   : > { %v4970_v34 = vrot.slane %v4969_v35, 4  ;;  %v4951_v12 = vsel %vm14684_vm11, %v4946_v22, %v4950_v9  ;;  %v4983_v41 = vor.u32 %v4982_v8, %v4979_v43  ;;  %v4996_v57 = vshll.u32 %v16107_v53, 16  ;;  %v18391_v9 = vld [vmem:[#allocation23_spill] sm:$0xff] }
 0x27f   : > { %13171 = vmatpush3.bf16.msra.mxu0 %v14276_v38  ;;  %v4936_v38 = vrot.slane %v4935_v15, 4  ;;  %v4993_v62 = vor.u32 %v4992_v11, %v4988_v33  ;;  %v4965_v52 = vsel %vm14684_vm11, %v4960_v51, %v4964_v31  ;;  %v5388_v63 = vrot.slane %v15883_v45, 5  ;;  %v18392_v51 = vld [vmem:[#allocation24_spill] sm:$0xff] }
 0x280   : > { %v4975_v42 = vsel %vm14684_vm11, %v4970_v34, %v4974_v17  ;;  %v4984_v50 = vrot.slane %v4983_v41, 4  ;;  %v4998_v61 = vrot.slane %v4996_v57, 5  ;;  %v11790_v0 = vrot.slane %v5322_v14, 9  ;;  %v5328_v17 = vld [vmem:[#allocation2 + $0x60] sm:$0xe] }
 0x281   : > { %v4941_v13 = vsel %vm14684_vm11, %v4936_v38, %v4940_v27  ;;  %v11780_v25 = vcombine.low %v4965_v52, %v4975_v42  ;;  %v4994_v54 = vrot.slane %v4993_v62, 4  ;;  %v5390_v58 = vrot.slane %v5388_v63, 4  ;;  %v5330_v14 = vld [vmem:[#allocation2 + $0x78] sm:$0xe] }
 0x282   : > { %13141 = vmatmul.mubr.bf16.gmra.mrb[16].mxu0 %v11775_v44  ;;  %v11778_v44 = vcombine.low %v4917_v19, %v4927_v28  ;;  %v11779_v40 = vcombine.low %v4941_v13, %v4951_v12  ;;  %v5391_v20 = vrot.slane %v15915_v36, 5  ;;  %v4989_v53 = vsel %vm14684_vm11, %v4984_v50, %v4988_v33  ;;  %v5324_v36 = vld [vmem:[#allocation2 + $0x30] sm:$0xe] }
 0x283   : > { %13144 = vmatprep.mubr.bf16.mxu0 %v11776_v10  ;;  %v4999_v27 = vsel %vm14684_vm11, %v4994_v54, %v4998_v61  ;;  %v5395_v45 = vrot.slane %v15896_v24, 5  ;;  %v5389_v4 = vsel %vm15090_vm2, %v11790_v0, %v5388_v63  ;;  %v5402_v37 = vrot.slane %v15949_v23, 5  ;;  %v18393_v61 = vld [vmem:[#allocation19_spill] sm:$0xff]  ;;  %v18394_v0 = vld [vmem:[#allocation20_spill] sm:$0xff] }
 0x284   : > { %v5392_v10 = vsel %vm15090_vm2, %v5390_v58, %v5391_v20  ;;  %v11781_v31 = vcombine.low %v4989_v53, %v4999_v27  ;;  %v11791_v21 = vrot.slane %v5323_v18, 9  ;;  %v5398_v47 = vrot.slane %v15921_v46, 5  ;;  %v18396_v27 = vld [vmem:[#allocation7_spill] sm:$0xff]  ;;  %v18402_v18 = vld [vmem:[#allocation12_spill] sm:$0xff] }
 0x285   : > { %v11822_v39 = vcombine.low %v5389_v4, %v5392_v10  ;;  %v5397_v1 = vrot.slane %v5395_v45, 4  ;;  %v11792_v6 = vrot.slane %v5324_v36, 9  ;;  %v5404_v19 = vrot.slane %v5402_v37, 4  ;;  %v18399_v4 = vld [vmem:[#allocation9_spill] sm:$0xff]  ;;  %v18400_v10 = vld [vmem:[#allocation10_spill] sm:$0xff] }
 0x286   : > { %v5405_v24 = vrot.slane %v15980_v3, 5  ;;  %v5396_v28 = vsel %vm15090_vm2, %v11791_v21, %v5395_v45  ;;  %v5409_v23 = vrot.slane %v15976_v29, 5  ;;  %v5416_v60 = vrot.slane %v18389_v49, 5  ;;  %v5326_v3 = vld [vmem:[#allocation2 + $0x48] sm:$0xe] }
 0x287   : > { %v5399_v15 = vsel %vm15090_vm2, %v5397_v1, %v5398_v47  ;;  %v5403_v7 = vsel %vm15090_vm2, %v11792_v6, %v5402_v37  ;;  %v11793_v35 = vrot.slane %v5325_v55, 9  ;;  %v11794_v38 = vrot.slane %v5326_v3, 9  ;;  %v18403_v37 = vld [vmem:[#allocation13_spill] sm:$0xff]  ;;  %v18409_v47 = vld [vmem:[#allocation18_spill] sm:$0xff]  ;;  %v18418_v55 = vld [vmem:[#allocation28_spill] sm:$0xff] }
 0x288   : > { %v5406_v46 = vsel %vm15090_vm2, %v5404_v19, %v5405_v24  ;;  %v11823_v32 = vcombine.low %v5396_v28, %v5399_v15  ;;  %v5411_v48 = vrot.slane %v5409_v23, 4  ;;  %v5418_v22 = vrot.slane %v5416_v60, 4  ;;  %v18408_v1 = vld [vmem:[#allocation17_spill] sm:$0xff]  ;;  %v18412_v24 = vld [vmem:[#allocation22_spill] sm:$0xff]  ;;  %v14278_v3 = vld [vmem:[%s18197_s3 + $0x48] sm:$0xff]  }
 0x289   : > { %v11824_v26 = vcombine.low %v5403_v7, %v5406_v46  ;;  %v5419_v29 = vrot.slane %v18391_v9, 5  ;;  %v5410_v43 = vsel %vm15090_vm2, %v11793_v35, %v5409_v23  ;;  %v5417_v33 = vsel %vm15090_vm2, %v11794_v38, %v5416_v60  ;;  %v18411_v19 = vld [vmem:[#allocation21_spill] sm:$0xff]  ;;  %v18415_v23 = vld [vmem:[#allocation26_spill] sm:$0xff]  ;;  %v18417_v46 = vld [vmem:[#allocation27_spill] sm:$0xff] }
 0x28a   : > { %13145 = vmatmul.mubr.bf16.gmra.mrb[20].mxu0 %v11777_v2  ;;  %v18390_v2 = vld [vmem:[#allocation11_spill] sm:$0xff]  ;;  %v5430_v34 = vrot.slane %v18392_v51, 5  ;;  %v11796_v41 = vrot.slane %v5328_v17, 9  ;;  %v5433_v57 = vrot.slane %v16154_v59, 5  ;;  %v5444_v63 = vrot.slane %v16170_v56, 5  ;;  %v18397_v56 = vld [vmem:[#allocation8_spill] sm:$0xff] }
 0x28b   : > { %13148 = vmatprep.mubr.bf16.mxu0 %v11778_v44  ;;  %v5412_v44 = vrot.slane %v18390_v2, 5  ;;  %v5420_v11 = vsel %vm15090_vm2, %v5418_v22, %v5419_v29  ;;  %v5447_v54 = vrot.slane %v16207_v16, 5  ;;  %v18395_v58 = vcombine.low %v18393_v61, %v18394_v0  ;;  %v18414_v15 = vld [vmem:[#allocation25_spill] sm:$0xff]  ;;  %v14277_v60 = vld [vmem:[%s18197_s3 + $0x40] sm:$0xff]   ;;  %v14283_v2 = vld [vmem:[%s18197_s3 + $0x70] sm:$0xff]  }
 0x28c   : > { %v11826_v12 = vcombine.low %v5417_v33, %v5420_v11  ;;  %v5432_v62 = vrot.slane %v5430_v34, 4  ;;  %v5431_v52 = vsel %vm15090_vm2, %v11796_v41, %v5430_v34  ;;  %v5446_v50 = vrot.slane %v5444_v63, 4  ;;  %13204 = vmatprep.subr.bf16.mxu1 %v14277_v60  ;;  %v14281_v35 = vld [vmem:[%s18197_s3 + $0x60] sm:$0xff]   ;;  %v6421_v38 = vld [vmem:[#allocation3 + $0x4] sm:$0xf] }
 0x28d   : > { %v5413_v8 = vsel %vm15090_vm2, %v5411_v48, %v5412_v44  ;;  %v18398_v45 = vcombine.low %v18396_v27, %v18397_v56  ;;  %v18401_v16 = vcombine.low %v18399_v4, %v18400_v10  ;;  %v18404_v36 = vcombine.low %v18402_v18, %v18403_v37  ;;  %13205 = vmatpush3.bf16.msra.mxu1 %v14277_v60  ;;  %v14282_v48 = vld [vmem:[%s18197_s3 + $0x68] sm:$0xff]   ;;  %v6420_v44 = vld [vmem:[#allocation3] sm:$0xf]  ;;  %v6468_v34 = vld [vmem:[#allocation3 + $0x8] sm:$0x1] }
 0x28e   : > { %v11825_v13 = vcombine.low %v5410_v43, %v5413_v8  ;;  %v5434_v42 = vsel %vm15090_vm2, %v5432_v62, %v5433_v57  ;;  %v5448_v20 = vsel %vm15090_vm2, %v5446_v50, %v5447_v54  ;;  %v18410_v6 = vcombine.low %v18408_v1, %v18409_v47  ;;  %13206 = vmatprep.subr.bf16.mxu1 %v14278_v3  ;;  %v14284_v8 = vld [vmem:[%s18197_s3 + $0x78] sm:$0xff]  }
 0x28f   : > { %v18413_v28 = vcombine.low %v18411_v19, %v18412_v24  ;;  %v18416_v7 = vcombine.low %v18414_v15, %v18415_v23  ;;  %v18419_v49 = vcombine.low %v18417_v46, %v18418_v55  ;;  %v6485_v22 = vshrl.u32 %v6420_v44, 16  ;;  %v6315_v15 = vld [vmem:[#allocation3 + $0x18] sm:$0xf] }
 0x290   : > { %v6488_v9 = vshll.u32 %v6420_v44, 16  ;;  %v6494_v29 = vshll.u32 %v6421_v38, 16  ;;  %v6498_v43 = vshrl.u32 %v6421_v38, 16  ;;  %v6319_v38 = vld [vmem:[#allocation3 + $0x20] sm:$0x1] }
 0x291   : > { %13207 = vmatpush3.bf16.msra.mxu1 %v14278_v3  ;;  %v6487_v33 = vrot.slane %v6485_v22, 4 }
 0x292   : > { %13149 = vmatmul.mubr.bf16.gmra.mrb[24].mxu0 %v11779_v40  ;;  %v11828_v40 = vcombine.low %v5431_v52, %v5434_v42  ;;  %v6490_v11 = vrot.slane %v6488_v9, 5  ;;  %v6496_v51 = vrot.slane %v6494_v29, 5  ;;  %v6500_v17 = vrot.slane %v6498_v43, 4 }
 0x293   : > { %13152 = vmatprep.mubr.bf16.mxu0 %v11780_v25  ;;  %v11798_v25 = vrot.slane %v5330_v14, 9 }
 0x294   : > { %v6501_v41 = vor.u32 %v6500_v17, %v6496_v51 }
 0x295   : > { %v5445_v59 = vsel %vm15090_vm2, %v11798_v25, %v5444_v63  ;;  %v16407_v25 = vld [vmem:[%s18196_s2] ss:$0 sm:$0xff] }
 0x296   : > { %v11830_v53 = vcombine.low %v5445_v59, %v5448_v20  ;;  %v6502_v52 = vrot.slane %v6501_v41, 4 }
 0x29a   : > { %13153 = vmatmul.mubr.bf16.gmra.mrb[28].mxu0 %v11781_v31  ;;  %v18405_v31 = vld [vmem:[#allocation14_spill] sm:$0xff] }
 0x29b   : > { %13172 = vmatprep.mubr.bf16.mxu0 %v11822_v39  ;;  %v18406_v39 = vld [vmem:[#allocation15_spill] sm:$0xff] }
 0x29c   : > { %v18407_v21 = vcombine.low %v18405_v31, %v18406_v39 }
 0x2a2   : > { %13173 = vmatmul.mubr.bf16.vlgmr.msra.gmra.mrb[0].mxu0 %v11823_v32  ;;  %v14279_v32 = vld [vmem:[%s18197_s3 + $0x50] sm:$0xff]  }
 0x2a3   : > { %13176 = vmatprep.mubr.bf16.mxu0 %v11824_v26  ;;  %13208 = vmatprep.subr.bf16.mxu1 %v14279_v32  ;;  %v14280_v26 = vld [vmem:[%s18197_s3 + $0x58] sm:$0xff]  }
 0x2a4   : > { %13209 = vmatpush3.bf16.msra.mxu1 %v14279_v32  ;;  %v6308_v32 = vld [vmem:[#allocation3 + $0xc] sm:$0xf] }
 0x2a5   : > { %13210 = vmatprep.subr.bf16.mxu1 %v14280_v26 }
 0x2a8   : > { %13211 = vmatpush3.bf16.msra.mxu1 %v14280_v26 }
 0x2a9   : > { %13212 = vmatprep.subr.bf16.mxu1 %v14281_v35 }
 0x2aa   : > { %13177 = vmatmul.mubr.bf16.gmra.mrb[4].mxu0 %v11825_v13  ;;  %v6491_v13 = vor.u32 %v6490_v11, %v6487_v33  ;;  %v6312_v11 = vld [vmem:[#allocation3 + $0x14] sm:$0x1] }
 0x2ab   : > { %13180 = vmatprep.mubr.bf16.mxu0 %v11826_v12  ;;  %v6504_v12 = vshll.u32 %v6468_v34, 16 }
 0x2ac   : > { %13213 = vmatpush3.bf16.msra.mxu1 %v14281_v35  ;;  %v6492_v62 = vrot.slane %v6491_v13, 4 }
 0x2ad   : > { %13214 = vmatprep.subr.bf16.mxu1 %v14282_v48  ;;  %v6506_v57 = vrot.slane %v6504_v12, 5 }
 0x2ae   : > { %v6497_v42 = vsel %vm14684_vm11, %v6492_v62, %v6496_v51 }
 0x2af   : > { %v6507_v63 = vsel %vm14684_vm11, %v6502_v52, %v6506_v57 }
 0x2b0   : > { %13215 = vmatpush3.bf16.msra.mxu1 %v14282_v48  ;;  %v11895_v14 = vcombine.low %v6497_v42, %v6507_v63 }
 0x2b1   : > { %13216 = vmatprep.subr.bf16.mxu1 %v14283_v2 }
 0x2b2   : > { %13181 = vmatmul.mubr.bf16.gmra.mrb[8].mxu0 %v18395_v58  ;;  %13220 = vmatprep.mubr.bf16.mxu1 %v11895_v14 }
 0x2b3   : > { %13184 = vmatprep.mubr.bf16.mxu0 %v11828_v40  ;;  %v16401_v40 = vld [vmem:[%s18197_s3] sm:$0xff]  }
 0x2b4   : > { %13217 = vmatpush3.bf16.msra.mxu1 %v14283_v2 }
 0x2b5   : > { %13218 = vmatprep.subr.bf16.mxu1 %v14284_v8 }
 0x2b8   : > { %13219 = vmatpush3.bf16.msra.mxu1 %v14284_v8 }
 0x2b9   : > { %13252 = vmatprep.subr.bf16.mxu1 %v16401_v40 }
 0x2ba   : > { %13185 = vmatmul.mubr.bf16.gmra.mrb[12].mxu0 %v18398_v45 }
 0x2bb   : > { %13188 = vmatprep.mubr.bf16.mxu0 %v11830_v53 }
 0x2c2   : > { %13189 = vmatmul.mubr.bf16.gmra.mrb[16].mxu0 %v18401_v16 }
 0x2c3   : > { %13192 = vmatprep.mubr.bf16.mxu0 %v18404_v36 }
 0x2ca   : > { %13193 = vmatmul.mubr.bf16.gmra.mrb[20].mxu0 %v18407_v21 }
 0x2cb   : > { %13196 = vmatprep.mubr.bf16.mxu0 %v18410_v6 }
 0x2d2   : > { %13197 = vmatmul.mubr.bf16.gmra.mrb[24].mxu0 %v18413_v28 }
 0x2d3   : > { %13200 = vmatprep.mubr.bf16.mxu0 %v18416_v7 }
 0x2da   : > { %13201 = vmatmul.mubr.bf16.gmra.mrb[28].mxu0 %v18419_v49 }
 0x375   : > { %v13174_v50 = vpop.f32.mrb[0].mxu0 }
 0x376   : > { %v5829_v54 = vadd.f32 %v13174_v50, %v16407_v25  ;;  %v5661_v61 = vpop.f32.mrb[1].mxu0 }
 0x377   : > { %v5827_v0 = vadd.f32 %v16407_v25, %v5661_v61  ;;  %v13175_v58 = vpop.f32.mrb[2].mxu0 }
 0x378   : > { %v5861_v59 = vmax.f32 %v5829_v54, 0.0  ;;  %v5830_v20 = vadd.f32 %v13175_v58, %v16407_v25  ;;  %v5664_v53 = vpop.f32.mrb[3].mxu0 }
 0x379   : > { %v5859_v27 = vmax.f32 %v5827_v0, 0.0  ;;  %v5828_v56 = vadd.f32 %v16407_v25, %v5664_v53 }
 0x37a   : > { %v12310_v45 = vpack.c.bf16 %v5861_v59, %v5861_v59  ;;  %v5862_v4 = vmax.f32 %v5830_v20, 0.0 }
 0x37b   : > { %v12308_v10 = vpack.c.bf16 %v5859_v27, %v5859_v27  ;;  %v5860_v16 = vmax.f32 %v5828_v56, 0.0  ;;  %v6329_v27 = vld [vmem:[#allocation3 + $0x30] sm:$0xf] }
 0x37c   : > { %v6005_v18 = vshrl.u32 %v12310_v45, 16  ;;  %v12311_v37 = vpack.c.bf16 %v5862_v4, %v5862_v4  ;;  %v6008_v36 = vshll.u32 %v12310_v45, 16 }
 0x37d   : > { %v5988_v31 = vshrl.u32 %v12308_v10, 16  ;;  %v5991_v39 = vshll.u32 %v12308_v10, 16  ;;  %v12309_v21 = vpack.c.bf16 %v5860_v16, %v5860_v16  ;;  %v13178_v1 = vpop.f32.mrb[4].mxu0 }
 0x37e   : > { %v6007_v47 = vrot.slane %v6005_v18, 7  ;;  %v6013_v6 = vshrl.u32 %v12311_v37, 16  ;;  %v6016_v19 = vshll.u32 %v12311_v37, 16  ;;  %v5833_v24 = vadd.f32 %v13178_v1, %v16407_v25  ;;  %v5677_v28 = vpop.f32.mrb[5].mxu0  ;;  %v6322_v37 = vld [vmem:[#allocation3 + $0x24] sm:$0xf] }
 0x37f   : > { %v5990_v23 = vrot.slane %v5988_v31, 7  ;;  %v5996_v7 = vshrl.u32 %v12309_v21, 16  ;;  %v5999_v46 = vshll.u32 %v12309_v21, 16  ;;  %v5831_v55 = vadd.f32 %v16407_v25, %v5677_v28  ;;  %v13179_v49 = vpop.f32.mrb[6].mxu0 }
 0x380   : > { %v6010_v60 = vor.u32 %v6008_v36, %v6007_v47  ;;  %v6011_v3 = vrot.slane %v6007_v47, 4  ;;  %v6015_v26 = vrot.slane %v6013_v6, 7  ;;  %v5865_v35 = vmax.f32 %v5833_v24, 0.0  ;;  %v5680_v48 = vpop.f32.mrb[7].mxu0 }
 0x381   : > { %v5993_v2 = vor.u32 %v5991_v39, %v5990_v23  ;;  %v5994_v44 = vrot.slane %v5990_v23, 4  ;;  %v5998_v22 = vrot.slane %v5996_v7, 7  ;;  %v5863_v9 = vmax.f32 %v5831_v55, 0.0 }
 0x382   : > { %v6316_v43 = vsel %vm14700_vm14, %v6010_v60, %v6315_v15  ;;  %v6018_v8 = vor.u32 %v6016_v19, %v6015_v26  ;;  %v6020_v33 = vrot.slane %v6015_v26, 4  ;;  %v12314_v51 = vpack.c.bf16 %v5865_v35, %v5865_v35  ;;  %v6333_v26 = vld [vmem:[#allocation3 + $0x38] sm:$0x1]  ;;  %v6326_v35 = vld [vmem:[#allocation3 + $0x2c] sm:$0x1] }
 0x383   : > { %6317 = vst [vmem:[#allocation3 + $0x18] sm:$0xf] %v6316_v43  ;;  %v6309_v34 = vsel %vm14700_vm14, %v5993_v2, %v6308_v32  ;;  %v6001_v17 = vor.u32 %v5999_v46, %v5998_v22  ;;  %v6003_v13 = vrot.slane %v5998_v22, 4  ;;  %v12312_v12 = vpack.c.bf16 %v5863_v9, %v5863_v9 }
 0x384   : > { %6310 = vst [vmem:[#allocation3 + $0xc] sm:$0xf] %v6309_v34  ;;  %v6019_v62 = vsel %vm14708_vm15, %v6011_v3, %v6018_v8  ;;  %v6320_v52 = vsel %vm14690_vm13, %v6020_v33, %v6319_v38  ;;  %v6039_v42 = vshrl.u32 %v12314_v51, 16  ;;  %v6042_v50 = vshll.u32 %v12314_v51, 16  ;;  %v6343_v34 = vld [vmem:[#allocation3 + $0x48] sm:$0xf] }
 0x385   : > { %6318 = vst [vmem:[#allocation3 + $0x1c] sm:$0xf] %v6019_v62  ;;  %6321 = vst [vmem:[#allocation3 + $0x20] sm:$0x1] %v6320_v52  ;;  %v6002_v63 = vsel %vm14708_vm15, %v5994_v44, %v6001_v17  ;;  %v6313_v14 = vsel %vm14690_vm13, %v6003_v13, %v6312_v11  ;;  %v6022_v54 = vshrl.u32 %v12312_v12, 16  ;;  %v13182_v61 = vpop.f32.mrb[8].mxu0  ;;  %v5834_v58 = vadd.f32 %v13179_v49, %v16407_v25 }
 0x386   : > { %6311 = vst [vmem:[#allocation3 + $0x10] sm:$0xf] %v6002_v63  ;;  %6314 = vst [vmem:[#allocation3 + $0x14] sm:$0x1] %v6313_v14  ;;  %v16427_v0 = vrot.slane %v6039_v42, 7  ;;  %v5832_v59 = vadd.f32 %v16407_v25, %v5680_v48  ;;  %v5837_v20 = vadd.f32 %v13182_v61, %v16407_v25  ;;  %v5693_v53 = vpop.f32.mrb[9].mxu0 }
 0x387   : > { %v6024_v56 = vrot.slane %v6022_v54, 7  ;;  %v6025_v45 = vshll.u32 %v12312_v12, 16  ;;  %v5835_v4 = vadd.f32 %v16407_v25, %v5693_v53  ;;  %v13183_v10 = vpop.f32.mrb[10].mxu0  ;;  %v5866_v36 = vmax.f32 %v5834_v58, 0.0 }
 0x388   : > { %v6044_v16 = vor.u32 %v6042_v50, %v16427_v0  ;;  %v6045_v18 = vrot.slane %v16427_v0, 4  ;;  %v5864_v31 = vmax.f32 %v5832_v59, 0.0  ;;  %v5696_v39 = vpop.f32.mrb[11].mxu0  ;;  %v5869_v47 = vmax.f32 %v5837_v20, 0.0  ;;  %v6336_v50 = vld [vmem:[#allocation3 + $0x3c] sm:$0xf] }
 0x389   : > { %v6027_v21 = vor.u32 %v6025_v45, %v6024_v56  ;;  %v6028_v1 = vrot.slane %v6024_v56, 4  ;;  %v5867_v6 = vmax.f32 %v5835_v4, 0.0  ;;  %v12315_v24 = vpack.c.bf16 %v5866_v36, %v5866_v36 }
 0x38a   : > { %v6330_v19 = vsel %vm14700_vm14, %v6044_v16, %v6329_v27  ;;  %v12313_v28 = vpack.c.bf16 %v5864_v31, %v5864_v31  ;;  %v5838_v15 = vadd.f32 %v13183_v10, %v16407_v25  ;;  %v12318_v7 = vpack.c.bf16 %v5869_v47, %v5869_v47 }
 0x38b   : > { %6331 = vst [vmem:[#allocation3 + $0x30] sm:$0xf] %v6330_v19  ;;  %v6323_v23 = vsel %vm14700_vm14, %v6027_v21, %v6322_v37  ;;  %v12316_v46 = vpack.c.bf16 %v5867_v6, %v5867_v6  ;;  %v5836_v55 = vadd.f32 %v16407_v25, %v5696_v39  ;;  %v6047_v49 = vshrl.u32 %v12315_v24, 16  ;;  %v6347_v19 = vld [vmem:[#allocation3 + $0x50] sm:$0x1] }
 0x38c   : > { %6324 = vst [vmem:[#allocation3 + $0x24] sm:$0xf] %v6323_v23  ;;  %v6050_v60 = vshll.u32 %v12315_v24, 16  ;;  %v6030_v3 = vshrl.u32 %v12313_v28, 16  ;;  %v6033_v32 = vshll.u32 %v12313_v28, 16  ;;  %v6073_v48 = vshrl.u32 %v12318_v7, 16 }
 0x38d   : > { %v6076_v2 = vshll.u32 %v12318_v7, 16  ;;  %v6056_v44 = vshrl.u32 %v12316_v46, 16  ;;  %v6059_v38 = vshll.u32 %v12316_v46, 16  ;;  %v13186_v22 = vpop.f32.mrb[12].mxu0  ;;  %v6049_v9 = vrot.slane %v6047_v49, 7 }
 0x38e   : > { %v6032_v43 = vrot.slane %v6030_v3, 7  ;;  %v5870_v8 = vmax.f32 %v5838_v15, 0.0  ;;  %v5868_v33 = vmax.f32 %v5836_v55, 0.0  ;;  %v5709_v11 = vpop.f32.mrb[13].mxu0  ;;  %v16441_v51 = vrot.slane %v6073_v48, 7 }
 0x38f   : > { %v16443_v17 = vrot.slane %v6056_v44, 7  ;;  %v5841_v13 = vadd.f32 %v13186_v22, %v16407_v25  ;;  %v5839_v12 = vadd.f32 %v16407_v25, %v5709_v11  ;;  %v13187_v62 = vpop.f32.mrb[14].mxu0  ;;  %v6052_v52 = vor.u32 %v6050_v60, %v6049_v9  ;;  %v6340_v49 = vld [vmem:[#allocation3 + $0x44] sm:$0x1] }
 0x390   : > { %v6054_v42 = vrot.slane %v6049_v9, 4  ;;  %v6035_v63 = vor.u32 %v6033_v32, %v6032_v43  ;;  %v6037_v14 = vrot.slane %v6032_v43, 4  ;;  %v5712_v54 = vpop.f32.mrb[15].mxu0  ;;  %v6078_v61 = vor.u32 %v6076_v2, %v16441_v51 }
 0x391   : > { %v6079_v0 = vrot.slane %v16441_v51, 4  ;;  %v6061_v58 = vor.u32 %v6059_v38, %v16443_v17  ;;  %v6062_v59 = vrot.slane %v16443_v17, 4  ;;  %v6053_v20 = vsel %vm14708_vm15, %v6045_v18, %v6052_v52  ;;  %v6350_v52 = vld [vmem:[#allocation3 + $0x54] sm:$0xf] }
 0x392   : > { %v6334_v53 = vsel %vm14690_vm13, %v6054_v42, %v6333_v26  ;;  %v6036_v27 = vsel %vm14708_vm15, %v6028_v1, %v6035_v63  ;;  %v6327_v56 = vsel %vm14690_vm13, %v6037_v14, %v6326_v35  ;;  %6332 = vst [vmem:[#allocation3 + $0x34] sm:$0xf] %v6053_v20  ;;  %v6344_v45 = vsel %vm14700_vm14, %v6078_v61, %v6343_v34 }
 0x393   : > { %6335 = vst [vmem:[#allocation3 + $0x38] sm:$0x1] %v6334_v53  ;;  %6325 = vst [vmem:[#allocation3 + $0x28] sm:$0xf] %v6036_v27  ;;  %v6337_v4 = vsel %vm14700_vm14, %v6061_v58, %v6336_v50  ;;  %v12319_v10 = vpack.c.bf16 %v5870_v8, %v5870_v8  ;;  %v12317_v16 = vpack.c.bf16 %v5868_v33, %v5868_v33  ;;  %v5873_v18 = vmax.f32 %v5841_v13, 0.0 }
 0x394   : > { %6328 = vst [vmem:[#allocation3 + $0x2c] sm:$0x1] %v6327_v56  ;;  %6345 = vst [vmem:[#allocation3 + $0x48] sm:$0xf] %v6344_v45  ;;  %v5871_v37 = vmax.f32 %v5839_v12, 0.0  ;;  %v5842_v36 = vadd.f32 %v13187_v62, %v16407_v25  ;;  %v5840_v31 = vadd.f32 %v16407_v25, %v5712_v54 }
 0x395   : > { %6338 = vst [vmem:[#allocation3 + $0x3c] sm:$0xf] %v6337_v4  ;;  %v6081_v39 = vshrl.u32 %v12319_v10, 16  ;;  %v6084_v21 = vshll.u32 %v12319_v10, 16  ;;  %v6064_v1 = vshrl.u32 %v12317_v16, 16  ;;  %v6067_v47 = vshll.u32 %v12317_v16, 16 }
 0x396   : > { %v13190_v6 = vpop.f32.mrb[16].mxu0  ;;  %v12322_v24 = vpack.c.bf16 %v5873_v18, %v5873_v18  ;;  %v12320_v28 = vpack.c.bf16 %v5871_v37, %v5871_v37  ;;  %v5874_v15 = vmax.f32 %v5842_v36, 0.0  ;;  %v5872_v23 = vmax.f32 %v5840_v31, 0.0  ;;  %v6357_v62 = vld [vmem:[#allocation3 + $0x60] sm:$0xf] }
 0x397   : > { %v5725_v7 = vpop.f32.mrb[17].mxu0  ;;  %v6083_v46 = vrot.slane %v6081_v39, 7  ;;  %v6066_v55 = vrot.slane %v6064_v1, 7  ;;  %v5845_v60 = vadd.f32 %v13190_v6, %v16407_v25  ;;  %v6422_v54 = vld [vmem:[#allocation3 + $0xc] sm:$0xf] }
 0x398   : > { %v5843_v3 = vadd.f32 %v16407_v25, %v5725_v7  ;;  %v13191_v32 = vpop.f32.mrb[18].mxu0  ;;  %v6107_v26 = vshrl.u32 %v12322_v24, 16  ;;  %v6110_v35 = vshll.u32 %v12322_v24, 16  ;;  %v6090_v48 = vshrl.u32 %v12320_v28, 16  ;;  %v6361_v56 = vld [vmem:[#allocation3 + $0x68] sm:$0x1] }
 0x399   : > { %v6093_v2 = vshll.u32 %v12320_v28, 16  ;;  %v5728_v44 = vpop.f32.mrb[19].mxu0  ;;  %v6086_v38 = vor.u32 %v6084_v21, %v6083_v46  ;;  %v6088_v22 = vrot.slane %v6083_v46, 4  ;;  %v6069_v9 = vor.u32 %v6067_v47, %v6066_v55  ;;  %v6354_v37 = vld [vmem:[#allocation3 + $0x5c] sm:$0x1] }
 0x39a   : > { %v6071_v43 = vrot.slane %v6066_v55, 4  ;;  %v6109_v8 = vrot.slane %v6107_v26, 7  ;;  %v6092_v33 = vrot.slane %v6090_v48, 7  ;;  %v12323_v11 = vpack.c.bf16 %v5874_v15, %v5874_v15  ;;  %v6423_v47 = vld [vmem:[#allocation3 + $0x10] sm:$0xf] }
 0x39b   : > { %v12321_v51 = vpack.c.bf16 %v5872_v23, %v5872_v23  ;;  %v6087_v34 = vsel %vm14708_vm15, %v6079_v0, %v6086_v38  ;;  %v6348_v17 = vsel %vm14690_vm13, %v6088_v22, %v6347_v19  ;;  %v6070_v13 = vsel %vm14708_vm15, %v6062_v59, %v6069_v9  ;;  %v6371_v48 = vld [vmem:[#allocation3 + $0x78] sm:$0xf] }
 0x39c   : > { %v6341_v12 = vsel %vm14690_vm13, %v6071_v43, %v6340_v49  ;;  %6346 = vst [vmem:[#allocation3 + $0x4c] sm:$0xf] %v6087_v34  ;;  %6349 = vst [vmem:[#allocation3 + $0x50] sm:$0x1] %v6348_v17  ;;  %v6112_v42 = vor.u32 %v6110_v35, %v6109_v8  ;;  %v6113_v63 = vrot.slane %v6109_v8, 4  ;;  %v6095_v14 = vor.u32 %v6093_v2, %v6092_v33 }
 0x39d   : > { %6339 = vst [vmem:[#allocation3 + $0x40] sm:$0xf] %v6070_v13  ;;  %6342 = vst [vmem:[#allocation3 + $0x44] sm:$0x1] %v6341_v12  ;;  %v6096_v50 = vrot.slane %v6092_v33, 4  ;;  %v6115_v61 = vshrl.u32 %v12323_v11, 16  ;;  %v5846_v36 = vadd.f32 %v13191_v32, %v16407_v25  ;;  %v5844_v31 = vadd.f32 %v16407_v25, %v5728_v44 }
 0x39e   : > { %v6118_v0 = vshll.u32 %v12323_v11, 16  ;;  %v6098_v58 = vshrl.u32 %v12321_v51, 16  ;;  %v6101_v20 = vshll.u32 %v12321_v51, 16  ;;  %v16475_v53 = vpop.f32.mrb[20].mxu0  ;;  %v6358_v59 = vsel %vm14700_vm14, %v6112_v42, %v6357_v62  ;;  %v6364_v2 = vld [vmem:[#allocation3 + $0x6c] sm:$0xf] }
 0x39f   : > { %v6351_v27 = vsel %vm14700_vm14, %v6095_v14, %v6350_v52  ;;  %v5877_v45 = vmax.f32 %v5845_v60, 0.0  ;;  %v5875_v4 = vmax.f32 %v5843_v3, 0.0  ;;  %v16481_v10 = vpop.f32.mrb[21].mxu0  ;;  %6359 = vst [vmem:[#allocation3 + $0x60] sm:$0xf] %v6358_v59  ;;  %v6117_v16 = vrot.slane %v6115_v61, 7 }
 0x3a0   : > { %6352 = vst [vmem:[#allocation3 + $0x54] sm:$0xf] %v6351_v27  ;;  %v6100_v18 = vrot.slane %v6098_v58, 7  ;;  %v16485_v39 = vpop.f32.mrb[22].mxu0  ;;  %v6509_v6 = vshrl.u32 %v6422_v54, 16  ;;  %v6512_v19 = vshll.u32 %v6422_v54, 16 }
 0x3a1   : > { %v12326_v21 = vpack.c.bf16 %v5877_v45, %v5877_v45  ;;  %v12324_v1 = vpack.c.bf16 %v5875_v4, %v5875_v4  ;;  %v16487_v24 = vpop.f32.mrb[23].mxu0  ;;  %v6120_v28 = vor.u32 %v6118_v0, %v6117_v16  ;;  %v6122_v15 = vrot.slane %v6117_v16, 4  ;;  %v6469_v43 = vld [vmem:[#allocation3 + $0x14] sm:$0x1]  ;;  %v6425_v59 = vld [vmem:[#allocation3 + $0x1c] sm:$0xf] }
 0x3a2   : > { %v6103_v23 = vor.u32 %v6101_v20, %v6100_v18  ;;  %v6105_v7 = vrot.slane %v6100_v18, 4  ;;  %v5878_v22 = vmax.f32 %v5846_v36, 0.0  ;;  %v5876_v9 = vmax.f32 %v5844_v31, 0.0 }
 0x3a3   : > { %v6141_v46 = vshrl.u32 %v12326_v21, 16  ;;  %v6144_v55 = vshll.u32 %v12326_v21, 16  ;;  %v6124_v49 = vshrl.u32 %v12324_v1, 16  ;;  %v6127_v60 = vshll.u32 %v12324_v1, 16  ;;  %v6375_v1 = vld [vmem:[#allocation3 + $0x80] sm:$0x1] }
 0x3a4   : > { %v6121_v3 = vsel %vm14708_vm15, %v6113_v63, %v6120_v28  ;;  %v6362_v32 = vsel %vm14690_vm13, %v6122_v15, %v6361_v56  ;;  %v6104_v26 = vsel %vm14708_vm15, %v6096_v50, %v6103_v23  ;;  %v6355_v35 = vsel %vm14690_vm13, %v6105_v7, %v6354_v37  ;;  %v6424_v50 = vld [vmem:[#allocation3 + $0x18] sm:$0xf]  ;;  %v6368_v28 = vld [vmem:[#allocation3 + $0x74] sm:$0x1] }
 0x3a5   : > { %6360 = vst [vmem:[#allocation3 + $0x64] sm:$0xf] %v6121_v3  ;;  %6363 = vst [vmem:[#allocation3 + $0x68] sm:$0x1] %v6362_v32  ;;  %v6143_v44 = vrot.slane %v6141_v46, 7  ;;  %v6126_v38 = vrot.slane %v6124_v49, 7  ;;  %v12327_v52 = vpack.c.bf16 %v5878_v22, %v5878_v22  ;;  %v12325_v42 = vpack.c.bf16 %v5876_v9, %v5876_v9 }
 0x3a6   : > { %6353 = vst [vmem:[#allocation3 + $0x58] sm:$0xf] %v6104_v26  ;;  %6356 = vst [vmem:[#allocation3 + $0x5c] sm:$0x1] %v6355_v35  ;;  %v6511_v8 = vrot.slane %v6509_v6, 4  ;;  %v6514_v33 = vrot.slane %v6512_v19, 5 }
 0x3a7   : > { %v6518_v11 = vshll.u32 %v6423_v47, 16  ;;  %v6522_v51 = vshrl.u32 %v6423_v47, 16  ;;  %v16497_v34 = vpop.f32.mrb[24].mxu0  ;;  %v6146_v17 = vor.u32 %v6144_v55, %v6143_v44  ;;  %v6147_v13 = vrot.slane %v6143_v44, 4  ;;  %v6470_v32 = vld [vmem:[#allocation3 + $0x20] sm:$0x1] }
 0x3a8   : > { %v6129_v12 = vor.u32 %v6127_v60, %v6126_v38  ;;  %v16499_v62 = vpop.f32.mrb[25].mxu0  ;;  %v6515_v63 = vor.u32 %v6514_v33, %v6511_v8  ;;  %v6528_v20 = vshll.u32 %v6469_v43, 16  ;;  %v6130_v56 = vrot.slane %v6126_v38, 4  ;;  %v6426_v38 = vld [vmem:[#allocation3 + $0x24] sm:$0xf] }
 0x3a9   : > { %v6520_v14 = vrot.slane %v6518_v11, 5  ;;  %v16501_v54 = vpop.f32.mrb[26].mxu0  ;;  %v6372_v61 = vsel %vm14700_vm14, %v6146_v17, %v6371_v48  ;;  %v6524_v58 = vrot.slane %v6522_v51, 4  ;;  %v6149_v45 = vshrl.u32 %v12327_v52, 16 }
 0x3aa   : > { %v6365_v0 = vsel %vm14700_vm14, %v6129_v12, %v6364_v2  ;;  %v16507_v27 = vpop.f32.mrb[27].mxu0  ;;  %6373 = vst [vmem:[#allocation3 + $0x78] sm:$0xf] %v6372_v61  ;;  %v6152_v4 = vshll.u32 %v12327_v52, 16  ;;  %v6132_v16 = vshrl.u32 %v12325_v42, 16  ;;  %v6135_v18 = vshll.u32 %v12325_v42, 16 }
 0x3ab   : > { %6366 = vst [vmem:[#allocation3 + $0x6c] sm:$0xf] %v6365_v0  ;;  %v6516_v37 = vrot.slane %v6515_v63, 4  ;;  %v6525_v36 = vor.u32 %v6524_v58, %v6520_v14  ;;  %v6530_v31 = vrot.slane %v6528_v20, 5  ;;  %v6151_v21 = vrot.slane %v6149_v45, 7 }
 0x3ac   : > { %v6134_v47 = vrot.slane %v6132_v16, 7  ;;  %v6533_v6 = vshrl.u32 %v6424_v50, 16  ;;  %v6536_v19 = vshll.u32 %v6424_v50, 16  ;;  %v6542_v7 = vshll.u32 %v6425_v59, 16  ;;  %v6427_v0 = vld [vmem:[#allocation3 + $0x28] sm:$0xf] }
 0x3ad   : > { %v6521_v15 = vsel %vm14684_vm11, %v6516_v37, %v6520_v14  ;;  %v6526_v23 = vrot.slane %v6525_v36, 4  ;;  %v6546_v46 = vshrl.u32 %v6425_v59, 16  ;;  %v6154_v55 = vor.u32 %v6152_v4, %v6151_v21  ;;  %v16511_v26 = vpop.f32.mrb[28].mxu0 }
 0x3ae   : > { %v6156_v49 = vrot.slane %v6151_v21, 4  ;;  %v6137_v60 = vor.u32 %v6135_v18, %v6134_v47  ;;  %v6139_v3 = vrot.slane %v6134_v47, 4  ;;  %v6535_v48 = vrot.slane %v6533_v6, 4  ;;  %v16515_v22 = vpop.f32.mrb[29].mxu0 }
 0x3af   : > { %v6531_v35 = vsel %vm14684_vm11, %v6526_v23, %v6530_v31  ;;  %v6538_v2 = vrot.slane %v6536_v19, 5  ;;  %v6544_v44 = vrot.slane %v6542_v7, 5  ;;  %v6155_v9 = vsel %vm14708_vm15, %v6147_v13, %v6154_v55  ;;  %v16525_v11 = vpop.f32.mrb[30].mxu0  ;;  %v14286_v13 = vld [vmem:[%s18197_s3 + $0x8] sm:$0xff]  }
 0x3b0   : > { %v6376_v43 = vsel %vm14690_vm13, %v6156_v49, %v6375_v1  ;;  %v6138_v8 = vsel %vm14708_vm15, %v6130_v56, %v6137_v60  ;;  %v6369_v33 = vsel %vm14690_vm13, %v6139_v3, %v6368_v28  ;;  %6374 = vst [vmem:[#allocation3 + $0x7c] sm:$0xf] %v6155_v9  ;;  %v11896_v51 = vcombine.low %v6521_v15, %v6531_v35  ;;  %v16530_v42 = vpop.f32.mrb[31].mxu0  ;;  %v6378_v49 = vld [vmem:[#allocation3 + $0x84] sm:$0xf] }
 0x3b1   : > { %6377 = vst [vmem:[#allocation3 + $0x80] sm:$0x1] %v6376_v43  ;;  %6367 = vst [vmem:[#allocation3 + $0x70] sm:$0xf] %v6138_v8  ;;  %v6539_v17 = vor.u32 %v6538_v2, %v6535_v48  ;;  %v6548_v12 = vrot.slane %v6546_v46, 4  ;;  %v6552_v52 = vshll.u32 %v6470_v32, 16  ;;  %v5849_v63 = vadd.f32 %v16475_v53, %v16407_v25 }
 0x3b2   : > { %6370 = vst [vmem:[#allocation3 + $0x74] sm:$0x1] %v6369_v33  ;;  %v5847_v14 = vadd.f32 %v16407_v25, %v16481_v10  ;;  %v5850_v50 = vadd.f32 %v16485_v39, %v16407_v25  ;;  %v5848_v61 = vadd.f32 %v16407_v25, %v16487_v24  ;;  %13221 = vmatmul.mubr.bf16.vlgmr.msra.gmra.mrb[0].mxu1 %v11896_v51  ;;  %v6557_v56 = vshrl.u32 %v6426_v38, 16  ;;  %v14287_v24 = vld [vmem:[%s18197_s3 + $0x10] sm:$0xff]   ;;  %v6385_v46 = vld [vmem:[#allocation3 + $0x90] sm:$0xf] }
 0x3b3   : > { %v6540_v58 = vrot.slane %v6539_v17, 4  ;;  %v6549_v20 = vor.u32 %v6548_v12, %v6544_v44  ;;  %v6554_v59 = vrot.slane %v6552_v52, 5  ;;  %13253 = vmatpush3.bf16.msra.mxu1 %v16401_v40  ;;  %v5881_v45 = vmax.f32 %v5849_v63, 0.0  ;;  %v14288_v35 = vld [vmem:[%s18197_s3 + $0x18] sm:$0xff]   ;;  %v6382_v9 = vld [vmem:[#allocation3 + $0x8c] sm:$0x1] }
 0x3b4   : > { %v5879_v4 = vmax.f32 %v5847_v14, 0.0  ;;  %v5882_v53 = vmax.f32 %v5850_v50, 0.0  ;;  %v5880_v16 = vmax.f32 %v5848_v61, 0.0  ;;  %v6559_v39 = vrot.slane %v6557_v56, 4  ;;  %13254 = vmatprep.subr.bf16.mxu1 %v14286_v13  ;;  %v14289_v12 = vld [vmem:[%s18197_s3 + $0x20] sm:$0xff]  }
 0x3b5   : > { %v6545_v10 = vsel %vm14684_vm11, %v6540_v58, %v6544_v44  ;;  %v6550_v18 = vrot.slane %v6549_v20, 4  ;;  %v6560_v37 = vshll.u32 %v6426_v38, 16  ;;  %v12330_v36 = vpack.c.bf16 %v5881_v45, %v5881_v45  ;;  %v6389_v44 = vld [vmem:[#allocation3 + $0x98] sm:$0x1]  ;;  %v6471_v20 = vld [vmem:[#allocation3 + $0x2c] sm:$0x1] }
 0x3b6   : > { %v12328_v31 = vpack.c.bf16 %v5879_v4, %v5879_v4  ;;  %v12331_v21 = vpack.c.bf16 %v5882_v53, %v5882_v53  ;;  %v12329_v1 = vpack.c.bf16 %v5880_v16, %v5880_v16  ;;  %v6566_v6 = vshll.u32 %v6427_v0, 16  ;;  %v16560_v16 = vld [vmem:[#allocation3 + $0x34] sm:$0xf] }
 0x3b7   : > { %v6555_v40 = vsel %vm14684_vm11, %v6550_v18, %v6554_v59  ;;  %v6562_v47 = vrot.slane %v6560_v37, 5  ;;  %v6570_v19 = vshrl.u32 %v6427_v0, 16  ;;  %v6175_v15 = vshrl.u32 %v12330_v36, 16  ;;  %13255 = vmatpush3.bf16.msra.mxu1 %v14286_v13  ;;  %v16554_v59 = vld [vmem:[#allocation3 + $0x30] sm:$0xf] }
 0x3b8   : > { %v11897_v28 = vcombine.low %v6545_v10, %v6555_v40  ;;  %v6178_v23 = vshll.u32 %v12330_v36, 16  ;;  %v6158_v7 = vshrl.u32 %v12328_v31, 16  ;;  %v6161_v55 = vshll.u32 %v12328_v31, 16  ;;  %13256 = vmatprep.subr.bf16.mxu1 %v14287_v24  ;;  %v6472_v10 = vld [vmem:[#allocation3 + $0x38] sm:$0x1] }
 0x3b9   : > { %v6183_v60 = vshrl.u32 %v12331_v21, 16  ;;  %v6186_v3 = vshll.u32 %v12331_v21, 16  ;;  %v6166_v32 = vshrl.u32 %v12329_v1, 16  ;;  %v6177_v48 = vrot.slane %v6175_v15, 7 }
 0x3ba   : > { %13224 = vmatprep.mubr.bf16.mxu1 %v11897_v28  ;;  %v6160_v2 = vrot.slane %v6158_v7, 7  ;;  %v6169_v38 = vshll.u32 %v12329_v1, 16  ;;  %v6563_v43 = vor.u32 %v6562_v47, %v6559_v39  ;;  %v6568_v51 = vrot.slane %v6566_v6, 5  ;;  %v14290_v28 = vld [vmem:[%s18197_s3 + $0x28] sm:$0xff]  }
 0x3bb   : > { %v6185_v8 = vrot.slane %v6183_v60, 7  ;;  %v6168_v33 = vrot.slane %v6166_v32, 7  ;;  %v6572_v17 = vrot.slane %v6570_v19, 4  ;;  %v6180_v52 = vor.u32 %v6178_v23, %v6177_v48  ;;  %13257 = vmatpush3.bf16.msra.mxu1 %v14287_v24  ;;  %v16583_v32 = vld [vmem:[#allocation3 + $0x3c] sm:$0xf] }
 0x3bc   : > { %v6181_v13 = vrot.slane %v6177_v48, 4  ;;  %v6163_v63 = vor.u32 %v6161_v55, %v6160_v2  ;;  %v6164_v14 = vrot.slane %v6160_v2, 4  ;;  %13258 = vmatprep.subr.bf16.mxu1 %v14288_v35  ;;  %v6564_v4 = vrot.slane %v6563_v43, 4  ;;  %v14291_v43 = vld [vmem:[%s18197_s3 + $0x30] sm:$0xff]  }
 0x3bd   : > { %v6188_v50 = vor.u32 %v6186_v3, %v6185_v8  ;;  %v6190_v61 = vrot.slane %v6185_v8, 4  ;;  %v6171_v0 = vor.u32 %v6169_v38, %v6168_v33  ;;  %v6173_v58 = vrot.slane %v6168_v33, 4 }
 0x3be   : > { %v6386_v56 = vsel %vm14700_vm14, %v6180_v52, %v6385_v46  ;;  %v6379_v45 = vsel %vm14700_vm14, %v6163_v63, %v6378_v49  ;;  %v6573_v53 = vor.u32 %v6572_v17, %v6568_v51  ;;  %v6569_v36 = vsel %vm14684_vm11, %v6564_v4, %v6568_v51  ;;  %v14292_v4 = vld [vmem:[%s18197_s3 + $0x38] sm:$0xff]  }
 0x3bf   : > { %6387 = vst [vmem:[#allocation3 + $0x90] sm:$0xf] %v6386_v56  ;;  %6380 = vst [vmem:[#allocation3 + $0x84] sm:$0xf] %v6379_v45  ;;  %v6189_v18 = vsel %vm14708_vm15, %v6181_v13, %v6188_v50  ;;  %v6390_v39 = vsel %vm14690_vm13, %v6190_v61, %v6389_v44  ;;  %v6172_v37 = vsel %vm14708_vm15, %v6164_v14, %v6171_v0  ;;  %v6576_v21 = vshll.u32 %v6471_v20, 16 }
 0x3c0   : > { %v6383_v24 = vsel %vm14690_vm13, %v6173_v58, %v6382_v9  ;;  %6388 = vst [vmem:[#allocation3 + $0x94] sm:$0xf] %v6189_v18  ;;  %6391 = vst [vmem:[#allocation3 + $0x98] sm:$0x1] %v6390_v39  ;;  %v6574_v31 = vrot.slane %v6573_v53, 4  ;;  %v6581_v1 = vshrl.u32 %v16554_v59, 16  ;;  %13259 = vmatpush3.bf16.msra.mxu1 %v14288_v35  ;;  %v5853_v7 = vadd.f32 %v16497_v34, %v16407_v25 }
 0x3c1   : > { %6381 = vst [vmem:[#allocation3 + $0x88] sm:$0xf] %v6172_v37  ;;  %6384 = vst [vmem:[#allocation3 + $0x8c] sm:$0x1] %v6383_v24  ;;  %v6584_v40 = vshll.u32 %v16554_v59, 16  ;;  %v6590_v47 = vshll.u32 %v16560_v16, 16  ;;  %13260 = vmatprep.subr.bf16.mxu1 %v14289_v12  ;;  %v5851_v46 = vadd.f32 %v16407_v25, %v16499_v62  ;;  %v5854_v44 = vadd.f32 %v16501_v54, %v16407_v25 }
 0x3c2   : > { %v6594_v6 = vshrl.u32 %v16560_v16, 16  ;;  %v6600_v19 = vshll.u32 %v6472_v10, 16  ;;  %v6578_v15 = vrot.slane %v6576_v21, 5  ;;  %v6583_v23 = vrot.slane %v6581_v1, 4  ;;  %v6399_v0 = vld [vmem:[#allocation3 + $0xa8] sm:$0xf] }
 0x3c3   : > { %v6586_v55 = vrot.slane %v6584_v40, 5  ;;  %v6592_v49 = vrot.slane %v6590_v47, 5  ;;  %v5885_v48 = vmax.f32 %v5853_v7, 0.0  ;;  %v5883_v2 = vmax.f32 %v5851_v46, 0.0  ;;  %v6392_v58 = vld [vmem:[#allocation3 + $0x9c] sm:$0xf] }
 0x3c4   : > { %v6596_v60 = vrot.slane %v6594_v6, 4  ;;  %v6602_v3 = vrot.slane %v6600_v19, 5  ;;  %v6579_v35 = vsel %vm14684_vm11, %v6574_v31, %v6578_v15  ;;  %13261 = vmatpush3.bf16.msra.mxu1 %v14289_v12  ;;  %v5852_v62 = vadd.f32 %v16407_v25, %v16507_v27  ;;  %v16600_v45 = vld [vmem:[#allocation3 + $0x40] sm:$0xf]  ;;  %v6473_v39 = vld [vmem:[#allocation3 + $0x44] sm:$0x1] }
 0x3c5   : > { %v11898_v38 = vcombine.low %v6569_v36, %v6579_v35  ;;  %v6587_v34 = vor.u32 %v6586_v55, %v6583_v23  ;;  %13262 = vmatprep.subr.bf16.mxu1 %v14290_v28  ;;  %v12334_v8 = vpack.c.bf16 %v5885_v48, %v5885_v48  ;;  %v12332_v33 = vpack.c.bf16 %v5883_v2, %v5883_v2  ;;  %v6403_v19 = vld [vmem:[#allocation3 + $0xb0] sm:$0x1]  ;;  %v16609_v46 = vld [vmem:[%s18197_s3 + $0x80] sm:$0xff]  }
 0x3c6   : > { %v6597_v9 = vor.u32 %v6596_v60, %v6592_v49  ;;  %v5886_v51 = vmax.f32 %v5854_v44, 0.0  ;;  %v6605_v17 = vshrl.u32 %v16583_v32, 16  ;;  %v5884_v12 = vmax.f32 %v5852_v62, 0.0  ;;  %v6396_v60 = vld [vmem:[#allocation3 + $0xa4] sm:$0x1] }
 0x3c7   : > { %13225 = vmatmul.mubr.bf16.gmra.mrb[4].mxu1 %v11898_v38  ;;  %v6588_v52 = vrot.slane %v6587_v34, 4  ;;  %v6608_v13 = vshll.u32 %v16583_v32, 16  ;;  %v6209_v63 = vshrl.u32 %v12334_v8, 16  ;;  %v6212_v14 = vshll.u32 %v12334_v8, 16  ;;  %v16616_v34 = vld [vmem:[#allocation3 + $0x48] sm:$0xf] }
 0x3c8   : > { %v6598_v54 = vrot.slane %v6597_v9, 4  ;;  %v6192_v50 = vshrl.u32 %v12332_v33, 16  ;;  %v6195_v25 = vshll.u32 %v12332_v33, 16  ;;  %13263 = vmatpush3.bf16.msra.mxu1 %v14290_v28  ;;  %v12335_v20 = vpack.c.bf16 %v5886_v51, %v5886_v51  ;;  %v16618_v9 = vld [vmem:[#allocation3 + $0x4c] sm:$0xf] }
 0x3c9   : > { %v6593_v27 = vsel %vm14684_vm11, %v6588_v52, %v6592_v49  ;;  %v12333_v56 = vpack.c.bf16 %v5884_v12, %v5884_v12  ;;  %13264 = vmatprep.subr.bf16.mxu1 %v14291_v43  ;;  %v6211_v10 = vrot.slane %v6209_v63, 7  ;;  %v6607_v37 = vrot.slane %v6605_v17, 4  ;;  %v16620_v51 = vld [vmem:[#allocation3 + $0x50] sm:$0x1] }
 0x3ca   : > { %v6603_v61 = vsel %vm14684_vm11, %v6598_v54, %v6602_v3  ;;  %v6194_v18 = vrot.slane %v6192_v50, 7  ;;  %v6217_v24 = vshrl.u32 %v12335_v20, 16  ;;  %v6220_v36 = vshll.u32 %v12335_v20, 16 }
 0x3cb   : > { %v11899_v53 = vcombine.low %v6593_v27, %v6603_v61  ;;  %v6200_v31 = vshrl.u32 %v12333_v56, 16  ;;  %v6203_v21 = vshll.u32 %v12333_v56, 16  ;;  %v6214_v1 = vor.u32 %v6212_v14, %v6211_v10 }
 0x3cc   : > { %v6215_v40 = vrot.slane %v6211_v10, 4  ;;  %v6197_v47 = vor.u32 %v6195_v25, %v6194_v18  ;;  %v6198_v6 = vrot.slane %v6194_v18, 4  ;;  %13265 = vmatpush3.bf16.msra.mxu1 %v14291_v43  ;;  %v6219_v28 = vrot.slane %v6217_v24, 7  ;;  %v16642_v24 = vld [vmem:[#allocation3 + $0x54] sm:$0xf] }
 0x3cd   : > { %13228 = vmatprep.mubr.bf16.mxu1 %v11899_v53  ;;  %v6202_v15 = vrot.slane %v6200_v31, 7  ;;  %v6610_v23 = vrot.slane %v6608_v13, 5  ;;  %v6614_v7 = vshll.u32 %v16600_v45, 16  ;;  %13266 = vmatprep.subr.bf16.mxu1 %v14292_v4  ;;  %v6400_v55 = vsel %vm14700_vm14, %v6214_v1, %v6399_v0  ;;  %v14424_v0 = vld [vmem:[%s18196_s2] ss:$0 sm:$0xff] }
 0x3ce   : > { %v6393_v49 = vsel %vm14700_vm14, %v6197_v47, %v6392_v58  ;;  %v6618_v3 = vshrl.u32 %v16600_v45, 16  ;;  %v6624_v35 = vshll.u32 %v6473_v39, 16  ;;  %6401 = vst [vmem:[#allocation3 + $0xa8] sm:$0xf] %v6400_v55  ;;  %v6222_v48 = vor.u32 %v6220_v36, %v6219_v28 }
 0x3cf   : > { %6394 = vst [vmem:[#allocation3 + $0x9c] sm:$0xf] %v6393_v49  ;;  %v6224_v2 = vrot.slane %v6219_v28, 4  ;;  %v6205_v44 = vor.u32 %v6203_v21, %v6202_v15  ;;  %v6207_v38 = vrot.slane %v6202_v15, 4  ;;  %v6611_v62 = vor.u32 %v6610_v23, %v6607_v37 }
 0x3d0   : > { %v6616_v43 = vrot.slane %v6614_v7, 5  ;;  %v6620_v8 = vrot.slane %v6618_v3, 4  ;;  %v6626_v33 = vrot.slane %v6624_v35, 5  ;;  %13267 = vmatpush3.bf16.msra.mxu1 %v14292_v4  ;;  %v6223_v17 = vsel %vm14708_vm15, %v6215_v40, %v6222_v48  ;;  %v6413_v3 = vld [vmem:[#allocation3 + $0xc0] sm:$0xf] }
 0x3d1   : > { %v6404_v52 = vsel %vm14690_vm13, %v6224_v2, %v6403_v19  ;;  %v6206_v54 = vsel %vm14708_vm15, %v6198_v6, %v6205_v44  ;;  %v6397_v12 = vsel %vm14690_vm13, %v6207_v38, %v6396_v60  ;;  %13300 = vmatprep.subr.bf16.mxu1 %v16609_v46  ;;  %6402 = vst [vmem:[#allocation3 + $0xac] sm:$0xf] %v6223_v17  ;;  %v6612_v13 = vrot.slane %v6611_v62, 4  ;;  %v16654_v38 = vld [vmem:[#allocation3 + $0x58] sm:$0xf] }
 0x3d2   : > { %6405 = vst [vmem:[#allocation3 + $0xb0] sm:$0x1] %v6404_v52  ;;  %6395 = vst [vmem:[#allocation3 + $0xa0] sm:$0xf] %v6206_v54  ;;  %v6621_v63 = vor.u32 %v6620_v8, %v6616_v43  ;;  %v6629_v14 = vshrl.u32 %v16616_v34, 16  ;;  %v6632_v50 = vshll.u32 %v16616_v34, 16  ;;  %v5857_v58 = vadd.f32 %v14424_v0, %v16511_v26 }
 0x3d3   : > { %6398 = vst [vmem:[#allocation3 + $0xa4] sm:$0x1] %v6397_v12  ;;  %v6638_v25 = vshll.u32 %v16618_v9, 16  ;;  %v6642_v27 = vshrl.u32 %v16618_v9, 16  ;;  %v6648_v61 = vshll.u32 %v16620_v51, 16  ;;  %v6617_v20 = vsel %vm14684_vm11, %v6612_v13, %v6616_v43 }
 0x3d4   : > { %v6622_v56 = vrot.slane %v6621_v63, 4  ;;  %v6631_v4 = vrot.slane %v6629_v14, 4  ;;  %v6634_v53 = vrot.slane %v6632_v50, 5  ;;  %v5889_v37 = vmax.f32 %v5857_v58, 0.0  ;;  %v6406_v14 = vld [vmem:[#allocation3 + $0xb4] sm:$0xf] }
 0x3d5   : > { %v6640_v10 = vrot.slane %v6638_v25, 5  ;;  %v6644_v18 = vrot.slane %v6642_v27, 4  ;;  %v6650_v39 = vrot.slane %v6648_v61, 5  ;;  %v5855_v21 = vadd.f32 %v14424_v0, %v16515_v22 }
 0x3d6   : > { %v6627_v36 = vsel %vm14684_vm11, %v6622_v56, %v6626_v33  ;;  %v6635_v31 = vor.u32 %v6634_v53, %v6631_v4  ;;  %v5858_v26 = vadd.f32 %v14424_v0, %v16525_v11  ;;  %v12338_v47 = vpack.c.bf16 %v5889_v37, %v5889_v37  ;;  %v16661_v37 = vld [vmem:[#allocation3 + $0x5c] sm:$0x1] }
 0x3d7   : > { %v11900_v1 = vcombine.low %v6617_v20, %v6627_v36  ;;  %v6645_v40 = vor.u32 %v6644_v18, %v6640_v10  ;;  %v5856_v6 = vadd.f32 %v14424_v0, %v16530_v42  ;;  %v5887_v28 = vmax.f32 %v5855_v21, 0.0  ;;  %v6417_v0 = vld [vmem:[#allocation3 + $0xc8] sm:$0x1] }
 0x3d8   : > { %v6636_v19 = vrot.slane %v6635_v31, 4  ;;  %v5890_v15 = vmax.f32 %v5858_v26, 0.0  ;;  %v6653_v23 = vshrl.u32 %v16642_v24, 16  ;;  %v6243_v55 = vshrl.u32 %v12338_v47, 16 }
 0x3d9   : > { %13229 = vmatmul.mubr.bf16.gmra.mrb[8].mxu1 %v11900_v1  ;;  %v6646_v7 = vrot.slane %v6645_v40, 4  ;;  %v6246_v49 = vshll.u32 %v12338_v47, 16  ;;  %v5888_v60 = vmax.f32 %v5856_v6, 0.0  ;;  %v12336_v11 = vpack.c.bf16 %v5887_v28, %v5887_v28  ;;  %v16663_v1 = vld [vmem:[#allocation3 + $0x60] sm:$0xf] }
 0x3da   : > { %v6641_v22 = vsel %vm14684_vm11, %v6636_v19, %v6640_v10  ;;  %v12339_v35 = vpack.c.bf16 %v5890_v15, %v5890_v15  ;;  %v6655_v48 = vrot.slane %v6653_v23, 4  ;;  %v6245_v2 = vrot.slane %v6243_v55, 7  ;;  %v16665_v40 = vld [vmem:[#allocation3 + $0x64] sm:$0xf]  ;;  %v16673_v15 = vld [vmem:[#allocation3 + $0x68] sm:$0x1] }
 0x3db   : > { %v6651_v42 = vsel %vm14684_vm11, %v6646_v7, %v6650_v39  ;;  %v12337_v44 = vpack.c.bf16 %v5888_v60, %v5888_v60  ;;  %v6656_v62 = vshll.u32 %v16642_v24, 16  ;;  %v6226_v8 = vshrl.u32 %v12336_v11, 16  ;;  %v6410_v39 = vld [vmem:[#allocation3 + $0xbc] sm:$0x1] }
 0x3dc   : > { %v11901_v43 = vcombine.low %v6641_v22, %v6651_v42  ;;  %v6229_v33 = vshll.u32 %v12336_v11, 16  ;;  %v6251_v17 = vshrl.u32 %v12339_v35, 16  ;;  %v6248_v52 = vor.u32 %v6246_v49, %v6245_v2  ;;  %v16680_v49 = vld [vmem:[#allocation3 + $0x6c] sm:$0xf] }
 0x3dd   : > { %v6249_v54 = vrot.slane %v6245_v2, 4  ;;  %v6254_v12 = vshll.u32 %v12339_v35, 16  ;;  %v6234_v13 = vshrl.u32 %v12337_v44, 16  ;;  %v6228_v63 = vrot.slane %v6226_v8, 7  ;;  %v16685_v35 = vld [vmem:[#allocation3 + $0x70] sm:$0xf] }
 0x3de   : > { %13232 = vmatprep.mubr.bf16.mxu1 %v11901_v43  ;;  %v6253_v50 = vrot.slane %v6251_v17, 7  ;;  %v6237_v25 = vshll.u32 %v12337_v44, 16  ;;  %v6658_v27 = vrot.slane %v6656_v62, 5  ;;  %v6414_v61 = vsel %vm14700_vm14, %v6248_v52, %v6413_v3  ;;  %v16691_v8 = vld [vmem:[#allocation3 + $0x74] sm:$0x1] }
 0x3df   : > { %v6236_v58 = vrot.slane %v6234_v13, 7  ;;  %v6662_v20 = vshll.u32 %v16654_v38, 16  ;;  %v6666_v56 = vshrl.u32 %v16654_v38, 16  ;;  %6415 = vst [vmem:[#allocation3 + $0xc0] sm:$0xf] %v6414_v61  ;;  %v6231_v4 = vor.u32 %v6229_v33, %v6228_v63 }
 0x3e0   : > { %v6232_v53 = vrot.slane %v6228_v63, 4  ;;  %v6256_v10 = vor.u32 %v6254_v12, %v6253_v50  ;;  %v6258_v18 = vrot.slane %v6253_v50, 4  ;;  %v6659_v21 = vor.u32 %v6658_v27, %v6655_v48  ;;  %v16693_v33 = vld [vmem:[#allocation3 + $0x78] sm:$0xf] }
 0x3e1   : > { %v6239_v36 = vor.u32 %v6237_v25, %v6236_v58  ;;  %v6241_v31 = vrot.slane %v6236_v58, 4  ;;  %v6664_v26 = vrot.slane %v6662_v20, 5  ;;  %v6407_v47 = vsel %vm14700_vm14, %v6231_v4, %v6406_v14  ;;  %v16701_v25 = vld [vmem:[#allocation3 + $0x7c] sm:$0xf] }
 0x3e2   : > { %v6257_v6 = vsel %vm14708_vm15, %v6249_v54, %v6256_v10  ;;  %v6418_v19 = vsel %vm14690_vm13, %v6258_v18, %v6417_v0  ;;  %v6668_v28 = vrot.slane %v6666_v56, 4  ;;  %6408 = vst [vmem:[#allocation3 + $0xb4] sm:$0xf] %v6407_v47  ;;  %v6660_v29 = vrot.slane %v6659_v21, 4 }
 0x3e3   : > { %6416 = vst [vmem:[#allocation3 + $0xc4] sm:$0xf] %v6257_v6  ;;  %6419 = vst [vmem:[#allocation3 + $0xc8] sm:$0x1] %v6418_v19  ;;  %v6240_v23 = vsel %vm14708_vm15, %v6232_v53, %v6239_v36  ;;  %v6411_v7 = vsel %vm14690_vm13, %v6241_v31, %v6410_v39  ;;  %v6672_v55 = vshll.u32 %v16661_v37, 16  ;;  %v6677_v22 = vshrl.u32 %v16663_v1, 16 }
 0x3e4   : > { %6409 = vst [vmem:[#allocation3 + $0xb8] sm:$0xf] %v6240_v23  ;;  %6412 = vst [vmem:[#allocation3 + $0xbc] sm:$0x1] %v6411_v7  ;;  %v6669_v60 = vor.u32 %v6668_v28, %v6664_v26  ;;  %v6680_v3 = vshll.u32 %v16663_v1, 16  ;;  %v6686_v11 = vshll.u32 %v16665_v40, 16  ;;  %v6665_v41 = vsel %vm14684_vm11, %v6660_v29, %v6664_v26 }
 0x3e5   : > { %v6674_v57 = vrot.slane %v6672_v55, 5  ;;  %v6690_v48 = vshrl.u32 %v16665_v40, 16  ;;  %v6696_v42 = vshll.u32 %v16673_v15, 16  ;;  %v6679_v44 = vrot.slane %v6677_v22, 4  ;;  %v16704_v39 = vld [vmem:[#allocation3 + $0x80] sm:$0x1] }
 0x3e6   : > { %v6670_v2 = vrot.slane %v6669_v60, 4  ;;  %v6682_v62 = vrot.slane %v6680_v3, 5  ;;  %v6688_v43 = vrot.slane %v6686_v11, 5  ;;  %v6701_v54 = vshrl.u32 %v16680_v49, 16  ;;  %v16711_v19 = vld [vmem:[#allocation3 + $0x84] sm:$0xf] }
 0x3e7   : > { %v6692_v17 = vrot.slane %v6690_v48, 4  ;;  %v6698_v52 = vrot.slane %v6696_v42, 5  ;;  %v6704_v12 = vshll.u32 %v16680_v49, 16  ;;  %v6710_v14 = vshll.u32 %v16685_v35, 16  ;;  %v16713_v28 = vld [vmem:[#allocation3 + $0x88] sm:$0xf] }
 0x3e8   : > { %v6675_v13 = vsel %vm14684_vm11, %v6670_v2, %v6674_v57  ;;  %v6683_v63 = vor.u32 %v6682_v62, %v6679_v44  ;;  %v6714_v50 = vshrl.u32 %v16685_v35, 16  ;;  %v6703_v0 = vrot.slane %v6701_v54, 4  ;;  %v16722_v2 = vld [vmem:[#allocation3 + $0x90] sm:$0xf] }
 0x3e9   : > { %v11902_v27 = vcombine.low %v6665_v41, %v6675_v13  ;;  %v6693_v61 = vor.u32 %v6692_v17, %v6688_v43  ;;  %v6706_v58 = vrot.slane %v6704_v12, 5  ;;  %v6712_v56 = vrot.slane %v6710_v14, 5  ;;  %v16730_v14 = vld [vmem:[#allocation3 + $0x94] sm:$0xf] }
 0x3ea   : > { %v6684_v20 = vrot.slane %v6683_v63, 4  ;;  %v6716_v4 = vrot.slane %v6714_v50, 4  ;;  %v6720_v53 = vshll.u32 %v16691_v8, 16  ;;  %v6725_v36 = vshrl.u32 %v16693_v33, 16 }
 0x3eb   : > { %13233 = vmatmul.mubr.bf16.gmra.mrb[12].mxu1 %v11902_v27  ;;  %v6694_v10 = vrot.slane %v6693_v61, 4  ;;  %v6707_v18 = vor.u32 %v6706_v58, %v6703_v0  ;;  %v6728_v31 = vshll.u32 %v16693_v33, 16  ;;  %v6734_v6 = vshll.u32 %v16701_v25, 16 }
 0x3ec   : > { %v6689_v21 = vsel %vm14684_vm11, %v6684_v20, %v6688_v43  ;;  %v6717_v26 = vor.u32 %v6716_v4, %v6712_v56  ;;  %v6722_v47 = vrot.slane %v6720_v53, 5  ;;  %v6727_v29 = vrot.slane %v6725_v36, 4  ;;  %v16726_v43 = vld [vmem:[#allocation3 + $0x8c] sm:$0x1]  ;;  %v16738_v36 = vld [vmem:[#allocation3 + $0x98] sm:$0x1] }
 0x3ed   : > { %v6699_v23 = vsel %vm14684_vm11, %v6694_v10, %v6698_v52  ;;  %v6708_v7 = vrot.slane %v6707_v18, 4  ;;  %v6730_v55 = vrot.slane %v6728_v31, 5  ;;  %v6736_v3 = vrot.slane %v6734_v6, 5 }
 0x3ee   : > { %v11903_v60 = vcombine.low %v6689_v21, %v6699_v23  ;;  %v6718_v22 = vrot.slane %v6717_v26, 4  ;;  %v6738_v11 = vshrl.u32 %v16701_v25, 16  ;;  %v6744_v48 = vshll.u32 %v16704_v39, 16  ;;  %v16742_v23 = vld [vmem:[#allocation3 + $0x9c] sm:$0xf] }
 0x3ef   : > { %v6713_v41 = vsel %vm14684_vm11, %v6708_v7, %v6712_v56  ;;  %v6731_v57 = vor.u32 %v6730_v55, %v6727_v29  ;;  %v6749_v42 = vshrl.u32 %v16711_v19, 16  ;;  %v6752_v17 = vshll.u32 %v16711_v19, 16 }
 0x3f0   : > { %13236 = vmatprep.mubr.bf16.mxu1 %v11903_v60  ;;  %v6723_v44 = vsel %vm14684_vm11, %v6718_v22, %v6722_v47  ;;  %v6740_v62 = vrot.slane %v6738_v11, 4  ;;  %v6758_v52 = vshll.u32 %v16713_v28, 16  ;;  %v6746_v13 = vrot.slane %v6744_v48, 5  ;;  %v16746_v22 = vld [vmem:[#allocation3 + $0xa0] sm:$0xf] }
 0x3f1   : > { %v11904_v54 = vcombine.low %v6713_v41, %v6723_v44  ;;  %v6732_v12 = vrot.slane %v6731_v57, 4  ;;  %v6751_v63 = vrot.slane %v6749_v42, 4  ;;  %v6754_v27 = vrot.slane %v6752_v17, 5  ;;  %v16749_v48 = vld [vmem:[#allocation3 + $0xa8] sm:$0xf] }
 0x3f2   : > { %v6741_v50 = vor.u32 %v6740_v62, %v6736_v3  ;;  %v6760_v61 = vrot.slane %v6758_v52, 5  ;;  %v6762_v0 = vshrl.u32 %v16713_v28, 16  ;;  %v6768_v20 = vshll.u32 %v16726_v43, 16 }
 0x3f3   : > { %13237 = vmatmul.mubr.bf16.gmra.mrb[16].mxu1 %v11904_v54  ;;  %v6737_v58 = vsel %vm14684_vm11, %v6732_v12, %v6736_v3  ;;  %v6773_v56 = vshrl.u32 %v16722_v2, 16  ;;  %v6776_v4 = vshll.u32 %v16722_v2, 16  ;;  %v6755_v10 = vor.u32 %v6754_v27, %v6751_v63 }
 0x3f4   : > { %v6742_v53 = vrot.slane %v6741_v50, 4  ;;  %v6764_v18 = vrot.slane %v6762_v0, 4  ;;  %v6782_v31 = vshll.u32 %v16730_v14, 16  ;;  %v6770_v21 = vrot.slane %v6768_v20, 5 }
 0x3f5   : > { %v6775_v26 = vrot.slane %v6773_v56, 4  ;;  %v6778_v47 = vrot.slane %v6776_v4, 5  ;;  %v6786_v6 = vshrl.u32 %v16730_v14, 16  ;;  %v6756_v29 = vrot.slane %v6755_v10, 4  ;;  %v16765_v10 = vld [vmem:[#allocation3 + $0xb0] sm:$0x1] }
 0x3f6   : > { %v6747_v7 = vsel %vm14684_vm11, %v6742_v53, %v6746_v13  ;;  %v6765_v55 = vor.u32 %v6764_v18, %v6760_v61  ;;  %v6784_v60 = vrot.slane %v6782_v31, 5  ;;  %v6792_v57 = vshll.u32 %v16738_v36, 16  ;;  %v16755_v13 = vld [vmem:[#allocation3 + $0xa4] sm:$0x1]  ;;  %v16767_v18 = vld [vmem:[#allocation3 + $0xb4] sm:$0xf] }
 0x3f7   : > { %v11905_v3 = vcombine.low %v6737_v58, %v6747_v7  ;;  %v6779_v11 = vor.u32 %v6778_v47, %v6775_v26  ;;  %v6788_v41 = vrot.slane %v6786_v6, 4  ;;  %v6761_v42 = vsel %vm14684_vm11, %v6756_v29, %v6760_v61  ;;  %v16761_v58 = vld [vmem:[#allocation3 + $0xac] sm:$0xf]  ;;  %v16771_v6 = vld [vmem:[#allocation3 + $0xb8] sm:$0xf] }
 0x3f8   : > { %v6766_v44 = vrot.slane %v6765_v55, 4  ;;  %v6797_v62 = vshrl.u32 %v16742_v23, 16  ;;  %v6800_v17 = vshll.u32 %v16742_v23, 16  ;;  %v6794_v12 = vrot.slane %v6792_v57, 5 }
 0x3f9   : > { %13240 = vmatprep.mubr.bf16.mxu1 %v11905_v3  ;;  %v6780_v52 = vrot.slane %v6779_v11, 4  ;;  %v6789_v54 = vor.u32 %v6788_v41, %v6784_v60  ;;  %v6806_v63 = vshll.u32 %v16746_v22, 16  ;;  %v6810_v61 = vshrl.u32 %v16746_v22, 16 }
 0x3fa   : > { %v6771_v50 = vsel %vm14684_vm11, %v6766_v44, %v6770_v21  ;;  %v6799_v27 = vrot.slane %v6797_v62, 4  ;;  %v6802_v0 = vrot.slane %v6800_v17, 5  ;;  %v6816_v21 = vshll.u32 %v16755_v13, 16 }
 0x3fb   : > { %v11906_v20 = vcombine.low %v6761_v42, %v6771_v50  ;;  %v6785_v56 = vsel %vm14684_vm11, %v6780_v52, %v6784_v60  ;;  %v6790_v4 = vrot.slane %v6789_v54, 4  ;;  %v6808_v53 = vrot.slane %v6806_v63, 5 }
 0x3fc   : > { %v6803_v31 = vor.u32 %v6802_v0, %v6799_v27  ;;  %v6812_v26 = vrot.slane %v6810_v61, 4  ;;  %v6821_v47 = vshrl.u32 %v16749_v48, 16  ;;  %v6824_v29 = vshll.u32 %v16749_v48, 16  ;;  %v16782_v0 = vld [vmem:[#allocation3 + $0xbc] sm:$0x1] }
 0x3fd   : > { %13241 = vmatmul.mubr.bf16.gmra.mrb[20].mxu1 %v11906_v20  ;;  %v6795_v7 = vsel %vm14684_vm11, %v6790_v4, %v6794_v12  ;;  %v6830_v55 = vshll.u32 %v16761_v58, 16  ;;  %v6834_v60 = vshrl.u32 %v16761_v58, 16  ;;  %v6818_v57 = vrot.slane %v6816_v21, 5 }
 0x3fe   : > { %v11907_v3 = vcombine.low %v6785_v56, %v6795_v7  ;;  %v6804_v11 = vrot.slane %v6803_v31, 4  ;;  %v6813_v41 = vor.u32 %v6812_v26, %v6808_v53  ;;  %v6823_v42 = vrot.slane %v6821_v47, 4 }
 0x3ff   : > { %v6826_v44 = vrot.slane %v6824_v29, 5  ;;  %v6832_v62 = vrot.slane %v6830_v55, 5  ;;  %v6836_v17 = vrot.slane %v6834_v60, 4  ;;  %v6840_v12 = vshll.u32 %v16765_v10, 16 }
 0x400   : > { %13244 = vmatprep.mubr.bf16.mxu1 %v11907_v3  ;;  %v6809_v52 = vsel %vm14684_vm11, %v6804_v11, %v6808_v53  ;;  %v6814_v54 = vrot.slane %v6813_v41, 4  ;;  %v6845_v63 = vshrl.u32 %v16767_v18, 16  ;;  %v6848_v61 = vshll.u32 %v16767_v18, 16 }
 0x401   : > { %v6827_v50 = vor.u32 %v6826_v44, %v6823_v42  ;;  %v6837_v27 = vor.u32 %v6836_v17, %v6832_v62  ;;  %v6854_v20 = vshll.u32 %v16771_v6, 16  ;;  %v6842_v4 = vrot.slane %v6840_v12, 5  ;;  %v14425_v17 = vld [vmem:[#allocation3] sm:$0xf] }
 0x402   : > { %v6819_v56 = vsel %vm14684_vm11, %v6814_v54, %v6818_v57  ;;  %v6847_v31 = vrot.slane %v6845_v63, 4  ;;  %v6858_v53 = vshrl.u32 %v16771_v6, 16  ;;  %v6850_v7 = vrot.slane %v6848_v61, 5 }
 0x403   : > { %v11908_v26 = vcombine.low %v6809_v52, %v6819_v56  ;;  %v6828_v21 = vrot.slane %v6827_v50, 4  ;;  %v6838_v47 = vrot.slane %v6837_v27, 4  ;;  %v6856_v29 = vrot.slane %v6854_v20, 5  ;;  %v16794_v52 = vld [vmem:[#allocation3 + $0x4] sm:$0xf] }
 0x404   : > { %v6860_v55 = vrot.slane %v6858_v53, 4  ;;  %v6864_v60 = vshll.u32 %v16782_v0, 16  ;;  %v6851_v41 = vor.u32 %v6850_v7, %v6847_v31  ;;  %v11919_v54 = vcombine.low %v14425_v17, %v16794_v52  ;;  %v14427_v7 = vld [vmem:[#allocation3 + $0xc] sm:$0xf]  ;;  %v14301_v17 = vld [vmem:[%s18197_s3 + $0x90] sm:$0xff]  }
 0x405   : > { %13245 = vmatmul.mubr.bf16.gmra.mrb[24].mxu1 %v11908_v26  ;;  %v6833_v3 = vsel %vm14684_vm11, %v6828_v21, %v6832_v62  ;;  %v6843_v11 = vsel %vm14684_vm11, %v6838_v47, %v6842_v4  ;;  %v11926_v50 = vcombine.low %v16642_v24, %v16654_v38  ;;  %v11927_v62 = vcombine.low %v16663_v1, %v16665_v40  ;;  %v7473_v26 = vld [vmem:[#allocation3 + $0x78] sm:$0xe]  ;;  %v7463_v1 = vld [vmem:[#allocation3] sm:$0xe] }
 0x406   : > { %v11909_v57 = vcombine.low %v6833_v3, %v6843_v11  ;;  %v6861_v42 = vor.u32 %v6860_v55, %v6856_v29  ;;  %v6852_v44 = vrot.slane %v6851_v41, 4  ;;  %v6866_v63 = vrot.slane %v6864_v60, 5  ;;  %v14298_v60 = vld [vmem:[%s18197_s3 + $0x88] sm:$0xff]   ;;  %v14429_v3 = vld [vmem:[#allocation3 + $0x18] sm:$0xf] }
 0x407   : > { %v11928_v61 = vcombine.low %v16680_v49, %v16685_v35  ;;  %v11929_v20 = vcombine.low %v16693_v33, %v16701_v25  ;;  %v11930_v56 = vcombine.low %v16711_v19, %v16713_v28  ;;  %v16825_v11 = vld [vmem:[#allocation3 + $0x1c] sm:$0xf]  ;;  %v7572_v47 = vrot.slane %v16673_v15, 5 }
 0x408   : > { %13248 = vmatprep.mubr.bf16.mxu1 %v11909_v57  ;;  %v6862_v12 = vrot.slane %v6861_v42, 4  ;;  %v6857_v27 = vsel %vm14684_vm11, %v6852_v44, %v6856_v29  ;;  %v16819_v29 = vld [vmem:[#allocation3 + $0x10] sm:$0xf]  ;;  %v11921_v41 = vcombine.low %v14429_v3, %v16825_v11  ;;  %v7470_v57 = vld [vmem:[#allocation3 + $0x54] sm:$0xe]  ;;  %v7562_v44 = vrot.slane %v16654_v38, 5 }
 0x409   : > { %v11920_v55 = vcombine.low %v14427_v7, %v16819_v29  ;;  %v7471_v42 = vld [vmem:[#allocation3 + $0x60] sm:$0xe]  ;;  %v11923_v3 = vcombine.low %v16554_v59, %v16560_v16  ;;  %v7576_v59 = vrot.slane %v16685_v35, 5  ;;  %v7474_v16 = vld [vmem:[#allocation3 + $0x84] sm:$0xe]  ;;  %v18423_v24 = vcombine.low %v16722_v2, %v16730_v14 }
 0x40a   : > { %v6867_v4 = vsel %vm14684_vm11, %v6862_v12, %v6866_v63  ;;  %v7569_v12 = vrot.slane %v16665_v40, 5  ;;  %v7472_v63 = vld [vmem:[#allocation3 + $0x6c] sm:$0xe]  ;;  %v7564_v7 = vrot.slane %v7562_v44, 4  ;;  %v7513_v38 = vrot.slane %v16794_v52, 5 }
 0x40b   : > { %v11910_v21 = vcombine.low %v6857_v27, %v6867_v4  ;;  %v14431_v27 = vld [vmem:[#allocation3 + $0x24] sm:$0xf]  ;;  %v16834_v4 = vld [vmem:[#allocation3 + $0x28] sm:$0xf]  ;;  %v18424_v35 = vcombine.low %v16742_v23, %v16746_v22  ;;  %v18425_v33 = vcombine.low %v16749_v48, %v16761_v58  ;;  %v7527_v2 = vrot.slane %v16825_v11, 5 }
 0x40c   : > { %v14433_v40 = vld [vmem:[#allocation3 + $0x8] sm:$0x1]  ;;  %v7515_v49 = vrot.slane %v7513_v38, 4  ;;  %v18426_v23 = vcombine.low %v16767_v18, %v16771_v6  ;;  %v14434_v48 = vld [vmem:[#allocation3 + $0x14] sm:$0x1]  ;;  %v7534_v11 = vrot.slane %v16834_v4, 5 }
 0x40d   : > { %13249 = vmatmul.mubr.bf16.gmra.mrb[28].mxu1 %v11910_v21  ;;  %v11922_v21 = vcombine.low %v14431_v27, %v16834_v4  ;;  %v7578_v27 = vrot.slane %v7576_v59, 4  ;;  %v14436_v18 = vld [vmem:[#allocation3 + $0x34] sm:$0xf]  ;;  %v7466_v4 = vld [vmem:[#allocation3 + $0x24] sm:$0xe] }
 0x40e   : > { %13268 = vmatprep.mubr.bf16.mxu1 %v11919_v54  ;;  %v11950_v54 = vrot.slane %v7470_v57, 9  ;;  %v7571_v57 = vrot.slane %v7569_v12, 4 }
 0x415   : > { %13269 = vmatmul.mubr.bf16.vlgmr.msra.gmra.mrb[0].mxu1 %v11920_v55  ;;  %v7565_v55 = vrot.slane %v16661_v37, 5 }
 0x416   : > { %13272 = vmatprep.mubr.bf16.mxu1 %v11921_v41  ;;  %13301 = vmatpush3.bf16.msra.mxu1 %v16609_v46  ;;  %v11951_v46 = vrot.slane %v7471_v42, 9  ;;  %v16842_v41 = vsel %vm15090_vm2, %v11950_v54, %v7562_v44  ;;  %v11952_v42 = vrot.slane %v7472_v63, 9  ;;  %v14304_v44 = vld [vmem:[%s18197_s3 + $0x98] sm:$0xff]   ;;  %v7579_v54 = vrot.slane %v16691_v8, 5  ;;  %v7477_v63 = vld [vmem:[#allocation3 + $0xa8] sm:$0xe] }
 0x417   : > { %13302 = vmatprep.subr.bf16.mxu1 %v14298_v60  ;;  %v16847_v53 = vsel %vm15090_vm2, %v7564_v7, %v7565_v55  ;;  %v11953_v7 = vrot.slane %v7473_v26, 9  ;;  %v7586_v55 = vrot.slane %v16704_v39, 5  ;;  %v7593_v39 = vrot.slane %v16726_v43, 5 }
 0x418   : > { %v16851_v37 = vsel %vm15090_vm2, %v11951_v46, %v7569_v12  ;;  %v7583_v12 = vrot.slane %v16701_v25, 5  ;;  %v7475_v46 = vld [vmem:[#allocation3 + $0x90] sm:$0xe]  ;;  %v16870_v15 = vsel %vm15090_vm2, %v11952_v42, %v7576_v59  ;;  %v16875_v8 = vsel %vm15090_vm2, %v7578_v27, %v7579_v54  ;;  %v14307_v42 = vld [vmem:[%s18197_s3 + $0xa0] sm:$0xff]   ;;  %v7476_v54 = vld [vmem:[#allocation3 + $0x9c] sm:$0xe] }
 0x419   : > { %v11924_v43 = vcombine.low %v16583_v32, %v16600_v45  ;;  %v7604_v32 = vrot.slane %v16746_v22, 5  ;;  %v7618_v45 = vrot.slane %v16771_v6, 5  ;;  %v7464_v22 = vld [vmem:[#allocation3 + $0xc] sm:$0xe]  ;;  %v7541_v6 = vrot.slane %v14436_v18, 5 }
 0x41a   : > { %13303 = vmatpush3.bf16.msra.mxu1 %v14298_v60  ;;  %v16861_v60 = vsel %vm15090_vm2, %v7571_v57, %v7572_v47  ;;  %v7585_v31 = vrot.slane %v7583_v12, 4  ;;  %v11954_v47 = vrot.slane %v7474_v16, 9  ;;  %v7590_v57 = vrot.slane %v16713_v28, 5 }
 0x41b   : > { %13304 = vmatprep.subr.bf16.mxu1 %v14301_v17  ;;  %v16879_v26 = vsel %vm15090_vm2, %v11953_v7, %v7583_v12  ;;  %v11955_v16 = vrot.slane %v7475_v46, 9  ;;  %v7600_v7 = vrot.slane %v16738_v36, 5  ;;  %v11956_v46 = vrot.slane %v7476_v54, 9 }
 0x41c   : > { %v7592_v59 = vrot.slane %v7590_v57, 4  ;;  %v7614_v54 = vrot.slane %v16765_v10, 5  ;;  %v7520_v28 = vrot.slane %v16819_v29, 5 }
 0x41d   : > { %13273 = vmatmul.mubr.bf16.gmra.mrb[4].mxu1 %v11922_v21  ;;  %v7597_v21 = vrot.slane %v16730_v14, 5  ;;  %v16929_v12 = vsel %vm15090_vm2, %v11956_v46, %v7604_v32  ;;  %v14313_v46 = vld [vmem:[%s18197_s3 + $0xb0] sm:$0xff]  }
 0x41e   : > { %13276 = vmatprep.mubr.bf16.mxu1 %v11923_v3  ;;  %13305 = vmatpush3.bf16.msra.mxu1 %v14301_v17  ;;  %v16890_v3 = vsel %vm15090_vm2, %v7585_v31, %v7586_v55  ;;  %v16899_v17 = vsel %vm15090_vm2, %v11954_v47, %v7590_v57  ;;  %v16903_v31 = vsel %vm15090_vm2, %v7592_v59, %v7593_v39  ;;  %v7611_v47 = vrot.slane %v16761_v58, 5  ;;  %v7478_v57 = vld [vmem:[#allocation3 + $0xb4] sm:$0xe] }
 0x41f   : > { %13306 = vmatprep.subr.bf16.mxu1 %v14304_v44  ;;  %v7599_v27 = vrot.slane %v7597_v21, 4  ;;  %v16907_v55 = vsel %vm15090_vm2, %v11955_v16, %v7597_v21  ;;  %v14310_v39 = vld [vmem:[%s18197_s3 + $0xa8] sm:$0xff]   ;;  %v7607_v59 = vrot.slane %v16755_v13, 5  ;;  %v11957_v16 = vrot.slane %v7477_v63, 9 }
 0x420   : > { %v11958_v63 = vrot.slane %v7478_v57, 9  ;;  %v7522_v52 = vrot.slane %v7520_v28, 4  ;;  %v7523_v58 = vrot.slane %v14434_v48, 5  ;;  %v7468_v48 = vld [vmem:[#allocation3 + $0x3c] sm:$0xe] }
 0x421   : > { %v16914_v36 = vsel %vm15090_vm2, %v7599_v27, %v7600_v7  ;;  %v11925_v27 = vcombine.low %v16616_v34, %v16618_v9  ;;  %v7613_v7 = vrot.slane %v7611_v47, 4  ;;  %v16937_v13 = vsel %vm15090_vm2, %v11957_v16, %v7611_v47 }
 0x422   : > { %13307 = vmatpush3.bf16.msra.mxu1 %v14304_v44  ;;  %v7606_v44 = vrot.slane %v7604_v32, 4  ;;  %v7621_v32 = vrot.slane %v16782_v0, 5  ;;  %v14316_v0 = vld [vmem:[%s18197_s3 + $0xb8] sm:$0xff]   ;;  %v7524_v29 = vsel %vm15090_vm2, %v7522_v52, %v7523_v58  ;;  %v18440_v47 = vcombine.low %v16899_v17, %v16903_v31  ;;  %v9099_v17 = vld [vmem:[#allocation3 + $0xb4] sm:$0xe] }
 0x423   : > { %13308 = vmatprep.subr.bf16.mxu1 %v14307_v42  ;;  %v16943_v10 = vsel %vm15090_vm2, %v7613_v7, %v7614_v54 }
 0x424   : > { %v16933_v21 = vsel %vm15090_vm2, %v7606_v44, %v7607_v59  ;;  %v11944_v59 = vrot.slane %v7464_v22, 9 }
 0x425   : > { %13277 = vmatmul.mubr.bf16.gmra.mrb[8].mxu1 %v11924_v43  ;;  %v7620_v43 = vrot.slane %v7618_v45, 4 }
 0x426   : > { %13280 = vmatprep.mubr.bf16.mxu1 %v11925_v27  ;;  %13309 = vmatpush3.bf16.msra.mxu1 %v14307_v42  ;;  %v16953_v42 = vsel %vm15090_vm2, %v11958_v63, %v7618_v45  ;;  %v14317_v45 = vld [vmem:[%s18197_s3 + $0xc0] sm:$0xff]   ;;  %v7521_v7 = vsel %vm15090_vm2, %v11944_v59, %v7520_v28  ;;  %v7555_v28 = vrot.slane %v16618_v9, 5  ;;  %v14440_v9 = vld [vmem:[#allocation3 + $0x44] sm:$0x1] }
 0x427   : > { %13310 = vmatprep.subr.bf16.mxu1 %v14310_v39  ;;  %v16957_v57 = vsel %vm15090_vm2, %v7620_v43, %v7621_v32  ;;  %v11976_v54 = vcombine.low %v7521_v7, %v7524_v29  ;;  %v14318_v43 = vld [vmem:[%s18197_s3 + $0xc8] sm:$0xff]   ;;  %v14321_v59 = vld [vmem:[%s18197_s3 + $0xe0] sm:$0xff]   ;;  %v11948_v29 = vrot.slane %v7468_v48, 9 }
 0x428   : > { %v7557_v58 = vrot.slane %v7555_v28, 4  ;;  %v14322_v7 = vld [vmem:[%s18197_s3 + $0xe8] sm:$0xff]  }
 0x42a   : > { %13311 = vmatpush3.bf16.msra.mxu1 %v14310_v39 }
 0x42b   : > { %13312 = vmatprep.subr.bf16.mxu1 %v14313_v46 }
 0x42d   : > { %13281 = vmatmul.mubr.bf16.gmra.mrb[12].mxu1 %v11926_v50  ;;  %v7516_v50 = vrot.slane %v14433_v40, 5  ;;  %v14438_v40 = vld [vmem:[#allocation3 + $0x38] sm:$0x1] }
 0x42e   : > { %13284 = vmatprep.mubr.bf16.mxu1 %v11927_v62  ;;  %13313 = vmatpush3.bf16.msra.mxu1 %v14313_v46  ;;  %v11943_v62 = vrot.slane %v7463_v1, 9  ;;  %v7536_v46 = vrot.slane %v7534_v11, 4  ;;  %v7467_v1 = vld [vmem:[#allocation3 + $0x30] sm:$0xe] }
 0x42f   : > { %13314 = vmatprep.subr.bf16.mxu1 %v14316_v0  ;;  %v7517_v19 = vsel %vm15090_vm2, %v7515_v49, %v7516_v50  ;;  %v7544_v50 = vrot.slane %v14438_v40, 5  ;;  %v11946_v49 = vrot.slane %v7466_v4, 9  ;;  %v17053_v4 = vld [vmem:[#allocation3 + $0x34] sm:$0xf]  ;;  %v18427_v40 = vcombine.low %v16842_v41, %v16847_v53  ;;  %v17074_v53 = vld [vmem:[%s18197_s3 + $0x100] sm:$0xff]  }
 0x430   : > { %v7514_v25 = vsel %vm15090_vm2, %v11943_v62, %v7513_v38  ;;  %v14319_v62 = vld [vmem:[%s18197_s3 + $0xd0] sm:$0xff]   ;;  %v17076_v41 = vld [vmem:[#allocation3 + $0x50] sm:$0x1] }
 0x431   : > { %v11975_v14 = vcombine.low %v7514_v25, %v7517_v19  ;;  %v11947_v19 = vrot.slane %v7467_v1, 9 }
 0x432   : > { %13315 = vmatpush3.bf16.msra.mxu1 %v14316_v0  ;;  %v7543_v0 = vrot.slane %v7541_v6, 4 }
 0x433   : > { %13348 = vmatprep.subr.bf16.mxu1 %v14317_v45  ;;  %v7542_v52 = vsel %vm15090_vm2, %v11947_v19, %v7541_v6 }
 0x435   : > { %13285 = vmatmul.mubr.bf16.gmra.mrb[16].mxu1 %v11928_v61  ;;  %v7529_v61 = vrot.slane %v7527_v2, 4 }
 0x436   : > { %13288 = vmatprep.mubr.bf16.mxu1 %v11929_v20  ;;  %v7465_v20 = vld [vmem:[#allocation3 + $0x18] sm:$0xe] }
 0x437   : > { %v11945_v16 = vrot.slane %v7465_v20, 9  ;;  %v7551_v20 = vrot.slane %v14440_v9, 5 }
 0x439   : > { %v7528_v63 = vsel %vm15090_vm2, %v11945_v16, %v7527_v2  ;;  %v7535_v2 = vsel %vm15090_vm2, %v11946_v49, %v7534_v11  ;;  %v9088_v49 = vld [vmem:[#allocation3 + $0x30] sm:$0xe] }
 0x43d   : > { %13289 = vmatmul.mubr.bf16.gmra.mrb[20].mxu1 %v11930_v56  ;;  %v14435_v56 = vld [vmem:[#allocation3 + $0x20] sm:$0x1] }
 0x43e   : > { %13292 = vmatprep.mubr.bf16.mxu1 %v18423_v24  ;;  %v7530_v39 = vrot.slane %v14435_v56, 5  ;;  %v14437_v24 = vld [vmem:[#allocation3 + $0x2c] sm:$0x1]  ;;  %v7469_v56 = vld [vmem:[#allocation3 + $0x48] sm:$0xe] }
 0x43f   : > { %v7537_v38 = vrot.slane %v14437_v24, 5  ;;  %v11949_v16 = vrot.slane %v7469_v56, 9  ;;  %v17055_v24 = vld [vmem:[#allocation3 + $0x38] sm:$0x1]  ;;  %v17095_v56 = vld [vmem:[#allocation3 + $0x64] sm:$0xf] }
 0x440   : > { %v7531_v27 = vsel %vm15090_vm2, %v7529_v61, %v7530_v39  ;;  %v7558_v39 = vrot.slane %v16620_v51, 5 }
 0x441   : > { %v11977_v32 = vcombine.low %v7528_v63, %v7531_v27  ;;  %v7556_v51 = vsel %vm15090_vm2, %v11949_v16, %v7555_v28  ;;  %v14323_v63 = vld [vmem:[%s18197_s3 + $0xf0] sm:$0xff]   ;;  %v9172_v28 = vrot.slane %v17053_v4, 5 }
 0x442   : > { %v7559_v27 = vsel %vm15090_vm2, %v7557_v58, %v7558_v39 }
 0x443   : > { %v9174_v48 = vrot.slane %v9172_v28, 4 }
 0x445   : > { %13293 = vmatmul.mubr.bf16.gmra.mrb[24].mxu1 %v18424_v35  ;;  %v7538_v35 = vsel %vm15090_vm2, %v7536_v46, %v7537_v38  ;;  %v14324_v46 = vld [vmem:[%s18197_s3 + $0xf8] sm:$0xff]  }
 0x446   : > { %13296 = vmatprep.mubr.bf16.mxu1 %v18425_v33  ;;  %v14439_v33 = vld [vmem:[#allocation3 + $0x40] sm:$0xf] }
 0x447   : > { %v7548_v25 = vrot.slane %v14439_v33, 5  ;;  %v17057_v38 = vld [vmem:[#allocation3 + $0x40] sm:$0xf] }
 0x448   : > { %v9179_v9 = vrot.slane %v17057_v38, 5 }
 0x449   : > { %v7550_v61 = vrot.slane %v7548_v25, 4  ;;  %v7549_v18 = vsel %vm15090_vm2, %v11948_v29, %v7548_v25 }
 0x44b   : > { %v7552_v11 = vsel %vm15090_vm2, %v7550_v61, %v7551_v20  ;;  %v9091_v20 = vld [vmem:[#allocation3 + $0x54] sm:$0xe] }
 0x44c   : > { %v11980_v6 = vcombine.low %v7549_v18, %v7552_v11  ;;  %v9181_v18 = vrot.slane %v9179_v9, 4 }
 0x44d   : > { %13297 = vmatmul.mubr.bf16.gmra.mrb[28].mxu1 %v18426_v23  ;;  %v14320_v23 = vld [vmem:[%s18197_s3 + $0xd8] sm:$0xff]  }
 0x44e   : > { %13316 = vmatprep.mubr.bf16.mxu1 %v11975_v14  ;;  %v11978_v14 = vcombine.low %v7535_v2, %v7538_v35  ;;  %v18428_v35 = vcombine.low %v16851_v37, %v16861_v60  ;;  %v9090_v2 = vld [vmem:[#allocation3 + $0x48] sm:$0xe]  ;;  %v17081_v37 = vld [vmem:[#allocation3 + $0x5c] sm:$0x1] }
 0x44f   : > { %v12084_v29 = vrot.slane %v9090_v2, 9 }
 0x455   : > { %13317 = vmatmul.mubr.bf16.vlgmr.msra.gmra.mrb[0].mxu1 %v11976_v54  ;;  %v11981_v54 = vcombine.low %v7556_v51, %v7559_v27  ;;  %v9092_v51 = vld [vmem:[#allocation3 + $0x60] sm:$0xe] }
 0x456   : > { %13320 = vmatprep.mubr.bf16.mxu1 %v11977_v32  ;;  %13349 = vmatpush3.bf16.msra.mxu1 %v14317_v45  ;;  %v7545_v45 = vsel %vm15090_vm2, %v7543_v0, %v7544_v50  ;;  %v17048_v32 = vld [vmem:[#allocation3 + $0x2c] sm:$0x1]  ;;  %v9087_v0 = vld [vmem:[#allocation3 + $0x24] sm:$0xe]  ;;  %v17063_v50 = vld [vmem:[#allocation3 + $0x44] sm:$0x1] }
 0x457   : > { %13350 = vmatprep.subr.bf16.mxu1 %v14318_v43  ;;  %v11979_v22 = vcombine.low %v7542_v52, %v7545_v45  ;;  %v12081_v33 = vrot.slane %v9087_v0, 9  ;;  %v9168_v19 = vrot.slane %v17048_v32, 5  ;;  %v9089_v45 = vld [vmem:[#allocation3 + $0x3c] sm:$0xe] }
 0x458   : > { %v12083_v58 = vrot.slane %v9089_v45, 9  ;;  %v18431_v45 = vcombine.low %v16879_v26, %v16890_v3 }
 0x45a   : > { %13351 = vmatpush3.bf16.msra.mxu1 %v14318_v43  ;;  %v17046_v43 = vld [vmem:[#allocation3 + $0x28] sm:$0xf]  ;;  %v17110_v27 = vsel %vm15090_vm2, %v12083_v58, %v9179_v9  ;;  %v17146_v58 = vld [vmem:[#allocation3 + $0x80] sm:$0x1] }
 0x45b   : > { %13352 = vmatprep.subr.bf16.mxu1 %v14319_v62  ;;  %v9165_v1 = vrot.slane %v17046_v43, 5 }
 0x45d   : > { %13321 = vmatmul.mubr.bf16.gmra.mrb[4].mxu1 %v11978_v14  ;;  %v9167_v25 = vrot.slane %v9165_v1, 4  ;;  %v17079_v14 = vld [vmem:[#allocation3 + $0x58] sm:$0xf]  ;;  %v17085_v60 = vsel %vm15090_vm2, %v12081_v33, %v9165_v1  ;;  %v18429_v1 = vcombine.low %v16870_v15, %v16875_v8  ;;  %v9196_v33 = vrot.slane %v17081_v37, 5  ;;  %v17136_v15 = vld [vmem:[#allocation3 + $0x7c] sm:$0xf] }
 0x45e   : > { %13324 = vmatprep.mubr.bf16.mxu1 %v11979_v22  ;;  %13353 = vmatpush3.bf16.msra.mxu1 %v14319_v62  ;;  %v17065_v62 = vld [vmem:[#allocation3 + $0x4c] sm:$0xf]  ;;  %v9175_v22 = vrot.slane %v17055_v24, 5  ;;  %v9193_v0 = vrot.slane %v17079_v14, 5  ;;  %v17182_v8 = vld [vmem:[#allocation3 + $0xa0] sm:$0xf] }
 0x45f   : > { %13354 = vmatprep.subr.bf16.mxu1 %v14320_v23  ;;  %v17089_v52 = vsel %vm15090_vm2, %v9167_v25, %v9168_v19  ;;  %v9186_v11 = vrot.slane %v17065_v62, 5  ;;  %v9200_v25 = vrot.slane %v17095_v56, 5  ;;  %v9093_v19 = vld [vmem:[#allocation3 + $0x6c] sm:$0xe] }
 0x460   : > { %v17106_v16 = vsel %vm15090_vm2, %v9174_v48, %v9175_v22  ;;  %v9195_v2 = vrot.slane %v9193_v0, 4  ;;  %v9094_v22 = vld [vmem:[#allocation3 + $0x78] sm:$0xe]  ;;  %v17144_v48 = vld [vmem:[#allocation3 + $0x74] sm:$0x1] }
 0x461   : > { %v9202_v9 = vrot.slane %v9200_v25, 4  ;;  %v9210_v26 = vrot.slane %v17144_v48, 5 }
 0x462   : > { %13355 = vmatpush3.bf16.msra.mxu1 %v14320_v23  ;;  %v12082_v23 = vrot.slane %v9088_v49, 9 }
 0x463   : > { %13356 = vmatprep.subr.bf16.mxu1 %v14321_v59 }
 0x464   : > { %v17099_v39 = vsel %vm15090_vm2, %v12082_v23, %v9172_v28  ;;  %v12086_v23 = vrot.slane %v9092_v51, 9 }
 0x465   : > { %13325 = vmatmul.mubr.bf16.gmra.mrb[8].mxu1 %v11980_v6  ;;  %v9189_v6 = vrot.slane %v17076_v41, 5 }
 0x466   : > { %13328 = vmatprep.mubr.bf16.mxu1 %v11981_v54  ;;  %13357 = vmatpush3.bf16.msra.mxu1 %v14321_v59  ;;  %v9182_v59 = vrot.slane %v17063_v50, 5 }
 0x467   : > { %13358 = vmatprep.subr.bf16.mxu1 %v14322_v7 }
 0x468   : > { %v17125_v49 = vsel %vm15090_vm2, %v9181_v18, %v9182_v59  ;;  %v17155_v59 = vld [vmem:[#allocation3 + $0x88] sm:$0xf]  ;;  %v17163_v18 = vsel %vm15090_vm2, %v12086_v23, %v9200_v25  ;;  %v8369_v25 = vld [vmem:[#allocation3 + $0xa4] sm:$0x1] }
 0x469   : > { %18435 = vst [vmem:[#allocation19_spill] sm:$0xff] %v17163_v18  ;;  %v9221_v54 = vrot.slane %v17155_v59, 5 }
 0x46a   : > { %13359 = vmatpush3.bf16.msra.mxu1 %v14322_v7  ;;  %v17113_v7 = vld [vmem:[#allocation3 + $0x68] sm:$0x1] }
 0x46b   : > { %13360 = vmatprep.subr.bf16.mxu1 %v14323_v63 }
 0x46d   : > { %13329 = vmatmul.mubr.bf16.gmra.mrb[12].mxu1 %v18427_v40  ;;  %v17121_v40 = vld [vmem:[#allocation3 + $0x70] sm:$0xf] }
 0x46e   : > { %13332 = vmatprep.mubr.bf16.mxu1 %v18428_v35  ;;  %13361 = vmatpush3.bf16.msra.mxu1 %v14323_v63  ;;  %v9188_v63 = vrot.slane %v9186_v11, 4  ;;  %v17129_v35 = vsel %vm15090_vm2, %v12084_v29, %v9186_v11  ;;  %v8363_v29 = vld [vmem:[#allocation3 + $0x8c] sm:$0x1]  ;;  %v17159_v11 = vsel %vm15090_vm2, %v9195_v2, %v9196_v33  ;;  %v9207_v51 = vrot.slane %v17121_v40, 5  ;;  %v8366_v2 = vld [vmem:[#allocation3 + $0x98] sm:$0x1] }
 0x46f   : > { %13362 = vmatprep.subr.bf16.mxu1 %v14324_v46  ;;  %18430 = vst [vmem:[#allocation16_spill] sm:$0xff] %v17129_v35  ;;  %18434 = vst [vmem:[#allocation24_spill] sm:$0xff] %v17159_v11  ;;  %v9214_v33 = vrot.slane %v17136_v15, 5  ;;  %v9224_v61 = vrot.slane %v8363_v29, 5  ;;  %v18442_v29 = vcombine.low %v16907_v55, %v16914_v36  ;;  %v17209_v11 = vld [vmem:[#allocation3 + $0xb8] sm:$0xf] }
 0x470   : > { %v17142_v28 = vsel %vm15090_vm2, %v9188_v63, %v9189_v6  ;;  %v12087_v6 = vrot.slane %v9093_v19, 9  ;;  %v17166_v63 = vld [vmem:[#allocation3 + $0x94] sm:$0xf]  ;;  %v9209_v23 = vrot.slane %v9207_v51, 4  ;;  %v9235_v36 = vrot.slane %v17182_v8, 5 }
 0x471   : > { %18432 = vst [vmem:[#allocation11_spill] sm:$0xff] %v17142_v28  ;;  %v9228_v44 = vrot.slane %v17166_v63, 5 }
 0x472   : > { %13363 = vmatpush3.bf16.msra.mxu1 %v14324_v46  ;;  %v12085_v46 = vrot.slane %v9091_v20, 9  ;;  %v9203_v20 = vrot.slane %v17113_v7, 5  ;;  %v17179_v19 = vsel %vm15090_vm2, %v12087_v6, %v9207_v51  ;;  %v17192_v6 = vsel %vm15090_vm2, %v9209_v23, %v9210_v26  ;;  %v9097_v26 = vld [vmem:[#allocation3 + $0x9c] sm:$0xe]  ;;  %v9098_v23 = vld [vmem:[#allocation3 + $0xa8] sm:$0xe] }
 0x473   : > { %13396 = vmatprep.subr.bf16.mxu1 %v17074_v53  ;;  %18437 = vst [vmem:[#allocation7_spill] sm:$0xff] %v17179_v19  ;;  %18439 = vst [vmem:[#allocation9_spill] sm:$0xff] %v17192_v6  ;;  %v9230_v31 = vrot.slane %v9228_v44, 4 }
 0x474   : > { %v17152_v3 = vsel %vm15090_vm2, %v12085_v46, %v9193_v0  ;;  %v17172_v0 = vsel %vm15090_vm2, %v9202_v9, %v9203_v20  ;;  %v9096_v46 = vld [vmem:[#allocation3 + $0x90] sm:$0xe]  ;;  %v9216_v9 = vrot.slane %v9214_v33, 4  ;;  %v9217_v20 = vrot.slane %v17146_v58, 5 }
 0x475   : > { %13333 = vmatmul.mubr.bf16.gmra.mrb[16].mxu1 %v18429_v1  ;;  %18433 = vst [vmem:[#allocation23_spill] sm:$0xff] %v17152_v3  ;;  %18436 = vst [vmem:[#allocation20_spill] sm:$0xff] %v17172_v0  ;;  %v12088_v1 = vrot.slane %v9094_v22, 9  ;;  %v9223_v0 = vrot.slane %v9221_v54, 4  ;;  %v12090_v18 = vrot.slane %v9096_v46, 9 }
 0x476   : > { %13336 = vmatprep.mubr.bf16.mxu1 %v18431_v45  ;;  %v9095_v45 = vld [vmem:[#allocation3 + $0x84] sm:$0xe]  ;;  %v17202_v34 = vsel %vm15090_vm2, %v9216_v9, %v9217_v20  ;;  %v8355_v3 = vld [vmem:[#allocation3 + $0x6c] sm:$0xf] }
 0x477   : > { %v17186_v22 = vsel %vm15090_vm2, %v12088_v1, %v9214_v33  ;;  %v12089_v51 = vrot.slane %v9095_v45, 9  ;;  %v8371_v1 = vld [vmem:[#allocation3 + $0xac] sm:$0xf]  ;;  %18441 = vst [vmem:[#allocation10_spill] sm:$0xff] %v17202_v34  ;;  %v8372_v45 = vld [vmem:[#allocation3 + $0xb0] sm:$0x1]  ;;  %v17217_v46 = vsel %vm15090_vm2, %v9223_v0, %v9224_v61  ;;  %v17221_v55 = vsel %vm15090_vm2, %v12090_v18, %v9228_v44 }
 0x478   : > { %18438 = vst [vmem:[#allocation8_spill] sm:$0xff] %v17186_v22  ;;  %v8375_v33 = vld [vmem:[#allocation3 + $0xbc] sm:$0x1]  ;;  %18444 = vst [vmem:[#allocation13_spill] sm:$0xff] %v17217_v46  ;;  %v8377_v20 = vld [vmem:[#allocation3 + $0xc4] sm:$0xf]  ;;  %v18451_v61 = vcombine.low %v16929_v12, %v16933_v21 }
 0x479   : > { %v17213_v9 = vsel %vm15090_vm2, %v12089_v51, %v9221_v54  ;;  %18445 = vst [vmem:[#allocation14_spill] sm:$0xff] %v17221_v55  ;;  %v12091_v54 = vrot.slane %v9097_v26, 9  ;;  %v9242_v51 = vrot.slane %v8371_v1, 5  ;;  %v8378_v34 = vld [vmem:[#allocation3 + $0xc8] sm:$0x1]  ;;  %v9237_v0 = vrot.slane %v9235_v36, 4 }
 0x47a   : > { %18443 = vst [vmem:[#allocation12_spill] sm:$0xff] %v17213_v9  ;;  %v9238_v44 = vrot.slane %v8369_v25, 5  ;;  %v12092_v18 = vrot.slane %v9098_v23, 9  ;;  %v9249_v46 = vrot.slane %v17209_v11, 5  ;;  %v9256_v25 = vrot.slane %v8377_v20, 5  ;;  %v14338_v9 = vld [vmem:[#allocation3 + $0x78] sm:$0xff]  }
 0x47b   : > { %v17234_v22 = vsel %vm15090_vm2, %v12091_v54, %v9235_v36  ;;  %v9244_v6 = vrot.slane %v9242_v51, 4  ;;  %v9252_v54 = vrot.slane %v8375_v33, 5  ;;  %v18452_v20 = vcombine.low %v16937_v13, %v16943_v10  ;;  %v14325_v10 = vld [vmem:[#allocation3 + $0xc] sm:$0xff]  }
 0x47c   : > { %18447 = vst [vmem:[#allocation17_spill] sm:$0xff] %v17234_v22  ;;  %v17239_v1 = vsel %vm15090_vm2, %v9237_v0, %v9238_v44  ;;  %v17243_v26 = vsel %vm15090_vm2, %v12092_v18, %v9242_v51  ;;  %v9258_v44 = vrot.slane %v9256_v25, 4  ;;  %v14328_v18 = vld [vmem:[#allocation3 + $0x24] sm:$0xff]   ;;  %v17295_v0 = vld [vmem:[#allocation3 + $0x14] sm:$0x1] }
 0x47d   : > { %13337 = vmatmul.mubr.bf16.gmra.mrb[20].mxu1 %v18440_v47  ;;  %v9231_v47 = vrot.slane %v8366_v2, 5  ;;  %v9245_v2 = vrot.slane %v8372_v45, 5  ;;  %18448 = vst [vmem:[#allocation18_spill] sm:$0xff] %v17239_v1  ;;  %18449 = vst [vmem:[#allocation21_spill] sm:$0xff] %v17243_v26  ;;  %v9251_v45 = vrot.slane %v9249_v46, 4  ;;  %v8461_v1 = vshll.u32 %v17053_v4, 16 }
 0x47e   : > { %13340 = vmatprep.mubr.bf16.mxu1 %v18442_v29 }
 0x47f   : > { %v17228_v29 = vsel %vm15090_vm2, %v9230_v31, %v9231_v47  ;;  %v9100_v31 = vld [vmem:[#allocation3 + $0xc0] sm:$0xe]  ;;  %v12093_v47 = vrot.slane %v9099_v17, 9  ;;  %v17249_v36 = vsel %vm15090_vm2, %v9244_v6, %v9245_v2  ;;  %v9259_v17 = vrot.slane %v8378_v34, 5  ;;  %v14326_v2 = vld [vmem:[#allocation3 + $0x18] sm:$0xff]  }
 0x480   : > { %18446 = vst [vmem:[#allocation15_spill] sm:$0xff] %v17228_v29  ;;  %18450 = vst [vmem:[#allocation22_spill] sm:$0xff] %v17249_v36  ;;  %v12094_v51 = vrot.slane %v9100_v31, 9  ;;  %v17265_v33 = vsel %vm15090_vm2, %v9251_v45, %v9252_v54  ;;  %v14333_v31 = vld [vmem:[%s18197_s3 + $0x110] sm:$0xff]  }
 0x481   : > { %v17261_v6 = vsel %vm15090_vm2, %v12093_v47, %v9249_v46  ;;  %18454 = vst [vmem:[#allocation26_spill] sm:$0xff] %v17265_v33  ;;  %v17275_v34 = vsel %vm15090_vm2, %v9258_v44, %v9259_v17  ;;  %v18457_v46 = vcombine.low %v16953_v42, %v16957_v57  ;;  %v8331_v47 = vld [vmem:[#allocation3 + $0xc] sm:$0xf]  ;;  %v14329_v44 = vld [vmem:[#allocation3 + $0x30] sm:$0xff]   ;;  %v14336_v17 = vld [vmem:[%s18197_s3 + $0x118] sm:$0xff]   ;;  %v8437_v33 = vshll.u32 %v17046_v43, 16 }
 0x482   : > { %18453 = vst [vmem:[#allocation25_spill] sm:$0xff] %v17261_v6  ;;  %v17271_v21 = vsel %vm15090_vm2, %v12094_v51, %v9256_v25  ;;  %18456 = vst [vmem:[#allocation28_spill] sm:$0xff] %v17275_v34  ;;  %v8332_v25 = vld [vmem:[#allocation3 + $0x10] sm:$0xf]  ;;  %v8380_v42 = vshrl.u32 %v8331_v47, 16  ;;  %v8383_v57 = vshll.u32 %v8331_v47, 16 }
 0x483   : > { %18455 = vst [vmem:[#allocation27_spill] sm:$0xff] %v17271_v21  ;;  %v8389_v45 = vshll.u32 %v8332_v25, 16  ;;  %v8393_v54 = vshrl.u32 %v8332_v25, 16  ;;  %v8334_v51 = vld [vmem:[#allocation3 + $0x18] sm:$0xf]  ;;  %v14339_v25 = vld [vmem:[%s18197_s3 + $0x120] sm:$0xff]  }
 0x484   : > { %v17303_v21 = vld [vmem:[#allocation3 + $0x20] sm:$0x1] }
 0x485   : > { %13341 = vmatmul.mubr.bf16.gmra.mrb[24].mxu1 %v18451_v61  ;;  %v14330_v61 = vld [vmem:[%s18197_s3 + $0x108] sm:$0xff]   ;;  %v8395_v47 = vrot.slane %v8393_v54, 4 }
 0x486   : > { %13344 = vmatprep.mubr.bf16.mxu1 %v18452_v20  ;;  %v8335_v20 = vld [vmem:[#allocation3 + $0x1c] sm:$0xf]  ;;  %v14334_v54 = vld [vmem:[#allocation3 + $0x54] sm:$0xff]  }
 0x487   : > { %v8413_v13 = vshll.u32 %v8335_v20, 16  ;;  %v8417_v12 = vshrl.u32 %v8335_v20, 16  ;;  %v8399_v20 = vshll.u32 %v17295_v0, 16 }
 0x489   : > { %v8401_v6 = vrot.slane %v8399_v20, 5 }
 0x48d   : > { %13345 = vmatmul.mubr.bf16.gmra.mrb[28].mxu1 %v18457_v46  ;;  %v8407_v46 = vshll.u32 %v8334_v51, 16 }
 0x48e   : > { %13364 = vmatprep.mubr.bf16.mxu1 %v14325_v10  ;;  %v8404_v10 = vshrl.u32 %v8334_v51, 16 }
 0x48f   : > { %v8409_v34 = vrot.slane %v8407_v46, 5 }
 0x490   : > { %v8406_v23 = vrot.slane %v8404_v10, 4 }
 0x495   : > { %13365 = vmatmul.mubr.bf16.vlgmr.msra.gmra.mrb[0].mxu1 %v14326_v2  ;;  %v8382_v2 = vrot.slane %v8380_v42, 4  ;;  %v14342_v42 = vld [vmem:[%s18197_s3 + $0x128] sm:$0xff]  }
 0x496   : > { %13368 = vmatprep.mubr.bf16.mxu1 %v14328_v18  ;;  %13397 = vmatpush3.bf16.msra.mxu1 %v17074_v53  ;;  %v14331_v53 = vld [vmem:[#allocation3 + $0x3c] sm:$0xff]   ;;  %v8391_v18 = vrot.slane %v8389_v45, 5  ;;  %v8419_v45 = vrot.slane %v8417_v12, 4 }
 0x497   : > { %13398 = vmatprep.subr.bf16.mxu1 %v14330_v61 }
 0x49a   : > { %13399 = vmatpush3.bf16.msra.mxu1 %v14330_v61  ;;  %v8385_v61 = vrot.slane %v8383_v57, 5  ;;  %v17300_v57 = vrot.slane %v8413_v13, 5  ;;  %v14345_v13 = vld [vmem:[%s18197_s3 + $0x130] sm:$0xff]  }
 0x49b   : > { %13400 = vmatprep.subr.bf16.mxu1 %v14333_v31 }
 0x49c   : > { %v8386_v51 = vor.u32 %v8385_v61, %v8382_v2  ;;  %v8420_v12 = vor.u32 %v8419_v45, %v17300_v57  ;;  %v14335_v45 = vld [vmem:[#allocation3 + $0x60] sm:$0xff]  }
 0x49d   : > { %13369 = vmatmul.mubr.bf16.gmra.mrb[4].mxu1 %v14329_v44  ;;  %v8337_v44 = vld [vmem:[#allocation3 + $0x24] sm:$0xf] }
 0x49e   : > { %13372 = vmatprep.mubr.bf16.mxu1 %v14331_v53  ;;  %13401 = vmatpush3.bf16.msra.mxu1 %v14333_v31  ;;  %v8396_v53 = vor.u32 %v8395_v47, %v8391_v18  ;;  %v14332_v31 = vld [vmem:[#allocation3 + $0x48] sm:$0xff]   ;;  %v8428_v10 = vshrl.u32 %v8337_v44, 16  ;;  %v8431_v46 = vshll.u32 %v8337_v44, 16  ;;  %v8387_v2 = vrot.slane %v8386_v51, 4 }
 0x49f   : > { %13402 = vmatprep.subr.bf16.mxu1 %v14336_v17  ;;  %v8423_v47 = vshll.u32 %v17303_v21, 16  ;;  %v8421_v20 = vrot.slane %v8420_v12, 4  ;;  %v8465_v12 = vshrl.u32 %v17053_v4, 16  ;;  %v8509_v4 = vshll.u32 %v17065_v62, 16 }
 0x4a0   : > { %v8397_v61 = vrot.slane %v8396_v53, 4  ;;  %v8430_v36 = vrot.slane %v8428_v10, 4  ;;  %v8433_v44 = vrot.slane %v8431_v46, 5  ;;  %v8392_v51 = vsel %vm14684_vm11, %v8387_v2, %v8391_v18 }
 0x4a1   : > { %v8425_v10 = vrot.slane %v8423_v47, 5  ;;  %v17319_v46 = vrot.slane %v8437_v33, 5  ;;  %v8489_v47 = vshrl.u32 %v17057_v38, 16 }
 0x4a2   : > { %13403 = vmatpush3.bf16.msra.mxu1 %v14336_v17  ;;  %v8410_v17 = vor.u32 %v8409_v34, %v8406_v23  ;;  %v8441_v23 = vshrl.u32 %v17046_v43, 16  ;;  %v8402_v53 = vsel %vm14684_vm11, %v8397_v61, %v8401_v6  ;;  %v8447_v43 = vshll.u32 %v17048_v32, 16 }
 0x4a3   : > { %13404 = vmatprep.subr.bf16.mxu1 %v14339_v25  ;;  %v17322_v6 = vcombine.low %v8392_v51, %v8402_v53  ;;  %v8491_v55 = vrot.slane %v8489_v47, 4 }
 0x4a4   : > { %v8411_v34 = vrot.slane %v8410_v17, 4  ;;  %v8434_v17 = vor.u32 %v8433_v44, %v8430_v36  ;;  %v8443_v26 = vrot.slane %v8441_v23, 4  ;;  %v8485_v36 = vshll.u32 %v17057_v38, 16  ;;  %v8346_v44 = vld [vmem:[#allocation3 + $0x48] sm:$0xf] }
 0x4a5   : > { %13373 = vmatmul.mubr.bf16.gmra.mrb[8].mxu1 %v14332_v31  ;;  %v8343_v31 = vld [vmem:[#allocation3 + $0x3c] sm:$0xf]  ;;  %v8426_v23 = vsel %vm14684_vm11, %v8421_v20, %v8425_v10  ;;  %v8467_v20 = vrot.slane %v8465_v12, 4  ;;  %v8500_v10 = vshrl.u32 %v8346_v44, 16  ;;  %v8533_v12 = vshll.u32 %v17079_v14, 16 }
 0x4a6   : > { %13376 = vmatprep.mubr.bf16.mxu1 %v14334_v54  ;;  %13405 = vmatpush3.bf16.msra.mxu1 %v14339_v25  ;;  %v8340_v25 = vld [vmem:[#allocation3 + $0x30] sm:$0xf]  ;;  %v14348_v54 = vld [vmem:[%s18197_s3 + $0x138] sm:$0xff]   ;;  %v8416_v61 = vsel %vm14684_vm11, %v8411_v34, %v17300_v57  ;;  %v8476_v33 = vshrl.u32 %v8343_v31, 16  ;;  %v8479_v32 = vshll.u32 %v8343_v31, 16  ;;  %v17336_v57 = vld [vmem:[%s18197_s3 + $0x140] sm:$0xff]   ;;  %v8444_v38 = vor.u32 %v8443_v26, %v17319_v46 }
 0x4a7   : > { %13406 = vmatprep.subr.bf16.mxu1 %v14342_v42  ;;  %v8452_v18 = vshrl.u32 %v8340_v25, 16  ;;  %v8455_v2 = vshll.u32 %v8340_v25, 16  ;;  %v17338_v34 = vrot.slane %v8447_v43, 5  ;;  %v17342_v25 = vrot.slane %v8434_v17, 4  ;;  %v8349_v31 = vld [vmem:[#allocation3 + $0x54] sm:$0xf] }
 0x4a8   : > { %v8478_v22 = vrot.slane %v8476_v33, 4  ;;  %v8481_v43 = vrot.slane %v8479_v32, 5  ;;  %v17347_v29 = vrot.slane %v8485_v36, 5  ;;  %v8524_v17 = vshrl.u32 %v8349_v31, 16 }
 0x4a9   : > { %v8454_v51 = vrot.slane %v8452_v18, 4  ;;  %v8457_v53 = vrot.slane %v8455_v2, 5  ;;  %v8527_v18 = vshll.u32 %v8349_v31, 16  ;;  %v14340_v2 = vld [vmem:[#allocation3 + $0x84] sm:$0xff]   ;;  %v8537_v33 = vshrl.u32 %v17079_v14, 16 }
 0x4aa   : > { %13407 = vmatpush3.bf16.msra.mxu1 %v14342_v42  ;;  %v14337_v42 = vld [vmem:[#allocation3 + $0x6c] sm:$0xff]   ;;  %v8445_v32 = vrot.slane %v8444_v38, 4  ;;  %v8471_v36 = vshll.u32 %v17055_v24, 16  ;;  %v8502_v47 = vrot.slane %v8500_v10, 4  ;;  %v8495_v31 = vshll.u32 %v17063_v50, 16 }
 0x4ab   : > { %13408 = vmatprep.subr.bf16.mxu1 %v14345_v13  ;;  %v8526_v19 = vrot.slane %v8524_v17, 4  ;;  %v8529_v14 = vrot.slane %v8527_v18, 5  ;;  %v8539_v38 = vrot.slane %v8537_v33, 4  ;;  %v14343_v33 = vld [vmem:[#allocation3 + $0x9c] sm:$0xff]  }
 0x4ac   : > { %v8450_v50 = vsel %vm14684_vm11, %v8445_v32, %v17338_v34  ;;  %v8497_v17 = vrot.slane %v8495_v31, 5  ;;  %v8572_v31 = vshrl.u32 %v8355_v3, 16 }
 0x4ad   : > { %13377 = vmatmul.mubr.bf16.gmra.mrb[12].mxu1 %v14335_v45  ;;  %v17345_v45 = vrot.slane %v8461_v1, 5  ;;  %v17352_v1 = vcombine.low %v8416_v61, %v8426_v23  ;;  %v8492_v23 = vor.u32 %v8491_v55, %v17347_v29  ;;  %v8473_v55 = vrot.slane %v8471_v36, 5 }
 0x4ae   : > { %13380 = vmatprep.mubr.bf16.mxu1 %v14337_v42  ;;  %13409 = vmatpush3.bf16.msra.mxu1 %v14345_v13  ;;  %v8513_v13 = vshrl.u32 %v17065_v62, 16  ;;  %v8503_v42 = vshll.u32 %v8346_v44, 16  ;;  %v17350_v62 = vrot.slane %v8509_v4, 5  ;;  %v8352_v4 = vld [vmem:[#allocation3 + $0x60] sm:$0xf] }
 0x4af   : > { %13410 = vmatprep.subr.bf16.mxu1 %v14348_v54  ;;  %v8468_v61 = vor.u32 %v8467_v20, %v17345_v45  ;;  %v8548_v24 = vshrl.u32 %v8352_v4, 16  ;;  %v8551_v10 = vshll.u32 %v8352_v4, 16  ;;  %v8493_v20 = vrot.slane %v8492_v23, 4 }
 0x4b0   : > { %v8515_v26 = vrot.slane %v8513_v13, 4  ;;  %v8505_v44 = vrot.slane %v8503_v42, 5  ;;  %v8458_v13 = vor.u32 %v8457_v53, %v8454_v51  ;;  %v8557_v51 = vshll.u32 %v17095_v56, 16 }
 0x4b1   : > { %v8561_v53 = vshrl.u32 %v17095_v56, 16  ;;  %v8553_v4 = vrot.slane %v8551_v10, 5  ;;  %v17402_v10 = vld [vmem:[#allocation3 + $0x78] sm:$0xf] }
 0x4b2   : > { %13411 = vmatpush3.bf16.msra.mxu1 %v14348_v54  ;;  %v8440_v54 = vsel %vm14684_vm11, %v17342_v25, %v17319_v46  ;;  %v8482_v46 = vor.u32 %v8481_v43, %v8478_v22  ;;  %v8516_v25 = vor.u32 %v8515_v26, %v17350_v62  ;;  %v8506_v42 = vor.u32 %v8505_v44, %v8502_v47  ;;  %v14341_v43 = vld [vmem:[#allocation3 + $0x90] sm:$0xff]  }
 0x4b3   : > { %13444 = vmatprep.subr.bf16.mxu1 %v17336_v57  ;;  %v8469_v22 = vrot.slane %v8468_v61, 4  ;;  %v8459_v26 = vrot.slane %v8458_v13, 4  ;;  %v8550_v44 = vrot.slane %v8548_v24, 4  ;;  %v17374_v35 = vrot.slane %v8557_v51, 5 }
 0x4b4   : > { %v8517_v18 = vrot.slane %v8516_v25, 4  ;;  %v8483_v47 = vrot.slane %v8482_v46, 4  ;;  %v8507_v56 = vrot.slane %v8506_v42, 4  ;;  %v8563_v34 = vrot.slane %v8561_v53, 4 }
 0x4b5   : > { %13381 = vmatmul.mubr.bf16.gmra.mrb[16].mxu1 %v14338_v9  ;;  %v17365_v9 = vrot.slane %v8533_v12, 5  ;;  %v8530_v12 = vor.u32 %v8529_v14, %v8526_v19  ;;  %v17376_v32 = vcombine.low %v8440_v54, %v8450_v50  ;;  %v8474_v36 = vsel %vm14684_vm11, %v8469_v22, %v8473_v55  ;;  %v17413_v50 = vld [vmem:[#allocation3 + $0x20] sm:$0x1]  ;;  %v14344_v22 = vld [vmem:[#allocation3 + $0xa8] sm:$0xff]  }
 0x4b6   : > { %13384 = vmatprep.mubr.bf16.mxu1 %v14340_v2  ;;  %v8519_v2 = vshll.u32 %v17076_v41, 16  ;;  %v8498_v19 = vsel %vm14684_vm11, %v8493_v20, %v8497_v17  ;;  %v8543_v13 = vshll.u32 %v17081_v37, 16  ;;  %v8575_v46 = vshll.u32 %v8355_v3, 16  ;;  %18458 = vst [vmem:[#allocation5_spill] sm:$0xff] %v17413_v50  ;;  %v14346_v17 = vld [vmem:[#allocation3 + $0xb4] sm:$0xff]  }
 0x4b7   : > { %v8540_v41 = vor.u32 %v8539_v38, %v17365_v9  ;;  %v17385_v23 = vrot.slane %v8530_v12, 4  ;;  %v8464_v54 = vsel %vm14684_vm11, %v8459_v26, %v17345_v45  ;;  %v8554_v14 = vor.u32 %v8553_v4, %v8550_v44  ;;  %v17404_v45 = vld [vmem:[#allocation3 + $0x1c] sm:$0xf]  ;;  %v10724_v26 = vld [vmem:[#allocation3 + $0x18] sm:$0xe] }
 0x4b8   : > { %v8521_v28 = vrot.slane %v8519_v2, 5  ;;  %v8581_v38 = vshll.u32 %v17121_v40, 16  ;;  %v17393_v24 = vcombine.low %v8464_v54, %v8474_v36  ;;  %v8488_v37 = vsel %vm14684_vm11, %v8483_v47, %v17347_v29  ;;  %v17415_v29 = vld [vmem:[#allocation3 + $0x28] sm:$0xf]  ;;  %v17434_v47 = vld [vmem:[#allocation3 + $0x34] sm:$0xf] }
 0x4b9   : > { %v17390_v25 = vrot.slane %v8540_v41, 4  ;;  %v8564_v3 = vor.u32 %v8563_v34, %v17374_v35  ;;  %v17406_v42 = vcombine.low %v8488_v37, %v8498_v19  ;;  %v17410_v51 = vrot.slane %v8543_v13, 5  ;;  %18459 = vst [vmem:[#allocation6_spill] sm:$0xff] %v17415_v29  ;;  %18460 = vst [vmem:[#allocation4_spill] sm:$0xff] %v17434_v47  ;;  %v10725_v44 = vld [vmem:[#allocation3 + $0x24] sm:$0xe] }
 0x4ba   : > { %v8522_v61 = vsel %vm14684_vm11, %v8517_v18, %v8521_v28  ;;  %v8512_v28 = vsel %vm14684_vm11, %v8507_v56, %v17350_v62  ;;  %v17421_v55 = vrot.slane %v8572_v31, 4  ;;  %v17423_v20 = vrot.slane %v8575_v46, 5  ;;  %v17442_v36 = vld [vmem:[#allocation3 + $0x2c] sm:$0x1]  ;;  %v17444_v19 = vld [vmem:[#allocation3 + $0x38] sm:$0x1] }
 0x4bb   : > { %v17408_v2 = vcombine.low %v8512_v28, %v8522_v61  ;;  %v17430_v12 = vrot.slane %v8554_v14, 4  ;;  %v10790_v41 = vrot.slane %v17404_v45, 5  ;;  %v17437_v4 = vrot.slane %v8564_v3, 4  ;;  %18461 = vst [vmem:[#allocation29_spill] sm:$0xff] %v17442_v36  ;;  %18462 = vst [vmem:[#allocation30_spill] sm:$0xff] %v17444_v19  ;;  %v14347_v37 = vld [vmem:[#allocation3 + $0xc0] sm:$0xff]  }
 0x4bc   : > { %v8596_v56 = vshrl.u32 %v17402_v10, 16  ;;  %v17446_v13 = vld [vmem:[#allocation3 + $0x40] sm:$0xf]  ;;  %v12215_v61 = vrot.slane %v10724_v26, 9  ;;  %v10793_v46 = vrot.slane %v17413_v50, 5  ;;  %v10797_v54 = vrot.slane %v17415_v29, 5 }
 0x4bd   : > { %13385 = vmatmul.mubr.bf16.gmra.mrb[20].mxu1 %v14341_v43  ;;  %v8585_v43 = vshrl.u32 %v17121_v40, 16  ;;  %18463 = vst [vmem:[#allocation31_spill] sm:$0xff] %v17446_v13  ;;  %v10792_v31 = vrot.slane %v10790_v41, 4  ;;  %v12216_v28 = vrot.slane %v10725_v44, 9  ;;  %v10726_v3 = vld [vmem:[#allocation3 + $0x30] sm:$0xe] }
 0x4be   : > { %13388 = vmatprep.mubr.bf16.mxu1 %v14343_v33  ;;  %v17432_v33 = vrot.slane %v8581_v38, 5  ;;  %v10799_v40 = vrot.slane %v10797_v54, 4  ;;  %v10800_v53 = vrot.slane %v17442_v36, 5  ;;  %v10727_v62 = vld [vmem:[#allocation3 + $0x3c] sm:$0xe]  ;;  %v10811_v34 = vrot.slane %v17446_v13, 5 }
 0x4bf   : > { %v17452_v38 = vrot.slane %v8585_v43, 4  ;;  %v17463_v26 = vsel %vm15090_vm2, %v10792_v31, %v10793_v46  ;;  %v17466_v43 = vrot.slane %v8596_v56, 4  ;;  %v17469_v44 = vld [vmem:[#allocation3 + $0x44] sm:$0x1]  ;;  %v17476_v31 = vsel %vm15090_vm2, %v12216_v28, %v10797_v54  ;;  %v10728_v18 = vld [vmem:[#allocation3 + $0x48] sm:$0xe] }
 0x4c0   : > { %18466 = vst [vmem:[#allocation34_spill] sm:$0xff] %v17463_v26  ;;  %18467 = vst [vmem:[#allocation35_spill] sm:$0xff] %v17469_v44  ;;  %v17480_v46 = vsel %vm15090_vm2, %v10799_v40, %v10800_v53  ;;  %v12217_v56 = vrot.slane %v10726_v3, 9  ;;  %v17483_v36 = vld [vmem:[#allocation3 + $0x58] sm:$0xf]  ;;  %v10813_v40 = vrot.slane %v10811_v34, 4 }
 0x4c1   : > { %18468 = vst [vmem:[#allocation36_spill] sm:$0xff] %v17476_v31  ;;  %18469 = vst [vmem:[#allocation37_spill] sm:$0xff] %v17480_v46  ;;  %v17490_v28 = vld [vmem:[#allocation3 + $0x5c] sm:$0x1]  ;;  %v10814_v3 = vrot.slane %v17469_v44, 5  ;;  %v12219_v54 = vrot.slane %v10728_v18, 9 }
 0x4c2   : > { %18470 = vst [vmem:[#allocation38_spill] sm:$0xff] %v17483_v36  ;;  %18471 = vst [vmem:[#allocation39_spill] sm:$0xff] %v17490_v28  ;;  %v10729_v13 = vld [vmem:[#allocation3 + $0x54] sm:$0xe]  ;;  %v17497_v50 = vld [vmem:[#allocation3 + $0x64] sm:$0xf] }
 0x4c3   : > { %18473 = vst [vmem:[#allocation41_spill] sm:$0xff] %v17497_v50  ;;  %v17509_v31 = vld [vmem:[#allocation3 + $0x70] sm:$0xf]  ;;  %v9993_v29 = vld [vmem:[#allocation3 + $0x74] sm:$0x1] }
 0x4c4   : > { %18476 = vst [vmem:[#allocation44_spill] sm:$0xff] %v17509_v31 }
 0x4c5   : > { %13389 = vmatmul.mubr.bf16.gmra.mrb[24].mxu1 %v14344_v22  ;;  %v17455_v22 = vld [vmem:[#allocation3 + $0x4c] sm:$0xf] }
 0x4c6   : > { %13392 = vmatprep.mubr.bf16.mxu1 %v14346_v17  ;;  %18464 = vst [vmem:[#allocation32_spill] sm:$0xff] %v17455_v22  ;;  %v17459_v17 = vsel %vm15090_vm2, %v12215_v61, %v10790_v41  ;;  %v10804_v41 = vrot.slane %v17434_v47, 5  ;;  %v9984_v61 = vld [vmem:[#allocation3 + $0x50] sm:$0x1]  ;;  %v12218_v47 = vrot.slane %v10727_v62, 9  ;;  %v10818_v46 = vrot.slane %v17455_v22, 5 }
 0x4c7   : > { %18465 = vst [vmem:[#allocation33_spill] sm:$0xff] %v17459_v17  ;;  %v10807_v17 = vrot.slane %v17444_v19, 5  ;;  %v12220_v22 = vrot.slane %v10729_v13, 9  ;;  %v10731_v19 = vld [vmem:[#allocation3 + $0x6c] sm:$0xe] }
 0x4c8   : > { %v10806_v26 = vrot.slane %v10804_v41, 4  ;;  %v17494_v53 = vsel %vm15090_vm2, %v12217_v56, %v10804_v41  ;;  %v17505_v62 = vsel %vm15090_vm2, %v12218_v47, %v10811_v34  ;;  %v10730_v41 = vld [vmem:[#allocation3 + $0x60] sm:$0xe]  ;;  %v9990_v56 = vld [vmem:[#allocation3 + $0x68] sm:$0x1]  ;;  %v10825_v47 = vrot.slane %v17483_v36, 5 }
 0x4c9   : > { %18472 = vst [vmem:[#allocation40_spill] sm:$0xff] %v17494_v53  ;;  %18475 = vst [vmem:[#allocation43_spill] sm:$0xff] %v17505_v62  ;;  %v9995_v34 = vld [vmem:[#allocation3 + $0x7c] sm:$0xf]  ;;  %v10820_v44 = vrot.slane %v10818_v46, 4  ;;  %v10835_v18 = vrot.slane %v9990_v56, 5 }
 0x4ca   : > { %v17501_v14 = vsel %vm15090_vm2, %v10806_v26, %v10807_v17  ;;  %v17515_v17 = vsel %vm15090_vm2, %v10813_v40, %v10814_v3  ;;  %v10821_v26 = vrot.slane %v9984_v61, 5  ;;  %v12221_v40 = vrot.slane %v10730_v41, 9  ;;  %v9996_v3 = vld [vmem:[#allocation3 + $0x80] sm:$0x1]  ;;  %v10732_v62 = vld [vmem:[#allocation3 + $0x78] sm:$0xe] }
 0x4cb   : > { %18474 = vst [vmem:[#allocation42_spill] sm:$0xff] %v17501_v14  ;;  %18477 = vst [vmem:[#allocation45_spill] sm:$0xff] %v17515_v17  ;;  %v10827_v14 = vrot.slane %v10825_v47, 4  ;;  %v10832_v61 = vrot.slane %v17497_v50, 5  ;;  %v17532_v13 = vsel %vm15090_vm2, %v12220_v22, %v10825_v47  ;;  %v10839_v17 = vrot.slane %v17509_v31, 5  ;;  %v14350_v22 = vld [vmem:[%s18197_s3 + $0x148] sm:$0xff]  }
 0x4cc   : > { %v17528_v53 = vsel %vm15090_vm2, %v10820_v44, %v10821_v26  ;;  %v12222_v44 = vrot.slane %v10731_v19, 9  ;;  %v10842_v31 = vrot.slane %v9993_v29, 5  ;;  %v10734_v36 = vld [vmem:[#allocation3 + $0x90] sm:$0xe]  ;;  %v10002_v56 = vld [vmem:[#allocation3 + $0x98] sm:$0x1] }
 0x4cd   : > { %13393 = vmatmul.mubr.bf16.gmra.mrb[28].mxu1 %v14347_v37  ;;  %v17523_v37 = vsel %vm15090_vm2, %v12219_v54, %v10818_v46  ;;  %18479 = vst [vmem:[#allocation47_spill] sm:$0xff] %v17528_v53  ;;  %v9999_v46 = vld [vmem:[#allocation3 + $0x8c] sm:$0x1]  ;;  %v10834_v50 = vrot.slane %v10832_v61, 4  ;;  %v17548_v26 = vsel %vm15090_vm2, %v12221_v40, %v10832_v61  ;;  %v10841_v47 = vrot.slane %v10839_v17, 4  ;;  %v14351_v29 = vld [vmem:[%s18197_s3 + $0x150] sm:$0xff]  }
 0x4ce   : > { %13412 = vmatprep.mubr.bf16.mxu1 %v17322_v6  ;;  %v10828_v6 = vrot.slane %v17490_v28, 5  ;;  %18478 = vst [vmem:[#allocation46_spill] sm:$0xff] %v17523_v37  ;;  %v9998_v28 = vld [vmem:[#allocation3 + $0x88] sm:$0xf]  ;;  %18480 = vst [vmem:[#allocation48_spill] sm:$0xff] %v17548_v26  ;;  %v17556_v19 = vsel %vm15090_vm2, %v12222_v44, %v10839_v17  ;;  %v10846_v37 = vrot.slane %v9995_v34, 5 }
 0x4cf   : > { %v10733_v54 = vld [vmem:[#allocation3 + $0x84] sm:$0xe]  ;;  %v10001_v53 = vld [vmem:[#allocation3 + $0x94] sm:$0xf]  ;;  %18482 = vst [vmem:[#allocation50_spill] sm:$0xff] %v17556_v19  ;;  %v17563_v61 = vsel %vm15090_vm2, %v10841_v47, %v10842_v31  ;;  %v10856_v34 = vrot.slane %v9999_v46, 5 }
 0x4d0   : > { %v17539_v41 = vsel %vm15090_vm2, %v10827_v14, %v10828_v6  ;;  %v17552_v14 = vsel %vm15090_vm2, %v10834_v50, %v10835_v18  ;;  %v12223_v6 = vrot.slane %v10732_v62, 9  ;;  %v10004_v40 = vld [vmem:[#allocation3 + $0xa0] sm:$0xf]  ;;  %18483 = vst [vmem:[#allocation51_spill] sm:$0xff] %v17563_v61  ;;  %v10849_v50 = vrot.slane %v9996_v3, 5 }
 0x4d1   : > { %18481 = vst [vmem:[#allocation49_spill] sm:$0xff] %v17552_v14  ;;  %v10853_v18 = vrot.slane %v9998_v28, 5  ;;  %v10848_v17 = vrot.slane %v10846_v37, 4  ;;  %v10735_v44 = vld [vmem:[#allocation3 + $0x9c] sm:$0xe]  ;;  %v12225_v3 = vrot.slane %v10734_v36, 9 }
 0x4d2   : > { %v10005_v31 = vld [vmem:[#allocation3 + $0xa4] sm:$0x1]  ;;  %v17574_v28 = vsel %vm15090_vm2, %v12223_v6, %v10846_v37  ;;  %v10007_v47 = vld [vmem:[#allocation3 + $0xac] sm:$0xf]  ;;  %v10008_v14 = vld [vmem:[#allocation3 + $0xb0] sm:$0x1] }
 0x4d3   : > { %v10863_v62 = vrot.slane %v10002_v56, 5  ;;  %v10867_v61 = vrot.slane %v10004_v40, 5  ;;  %v10010_v19 = vld [vmem:[#allocation3 + $0xb8] sm:$0xf]  ;;  %v12226_v6 = vrot.slane %v10735_v44, 9 }
 0x4d4   : > { %v10736_v26 = vld [vmem:[#allocation3 + $0xa8] sm:$0xe]  ;;  %v10013_v37 = vld [vmem:[#allocation3 + $0xc4] sm:$0xf] }
 0x4d5   : > { %13413 = vmatmul.mubr.bf16.vlgmr.msra.gmra.mrb[0].mxu1 %v17352_v1  ;;  %v12224_v1 = vrot.slane %v10733_v54, 9  ;;  %v17578_v54 = vsel %vm15090_vm2, %v10848_v17, %v10849_v50  ;;  %v18487_v50 = vshll.u32 %v17136_v15, 16  ;;  %v10869_v40 = vrot.slane %v10867_v61, 4  ;;  %v18556_v30 = vld [vmem:[#allocation46_spill] sm:$0xff] }
 0x4d6   : > { %13416 = vmatprep.mubr.bf16.mxu1 %v17376_v32  ;;  %13445 = vmatpush3.bf16.msra.mxu1 %v17336_v57  ;;  %v10855_v32 = vrot.slane %v10853_v18, 4  ;;  %v10860_v57 = vrot.slane %v10001_v53, 5  ;;  %18484 = vst [vmem:[#allocation52_spill] sm:$0xff] %v17578_v54  ;;  %v10881_v54 = vrot.slane %v10010_v19, 5  ;;  %v8361_v19 = vld [vmem:[#allocation3 + $0x84] sm:$0xf] }
 0x4d7   : > { %13446 = vmatprep.subr.bf16.mxu1 %v14350_v22  ;;  %v17582_v46 = vsel %vm15090_vm2, %v12224_v1, %v10853_v18  ;;  %v17592_v17 = vrot.slane %v18487_v50, 5  ;;  %v10870_v18 = vrot.slane %v10005_v31, 5  ;;  %v10737_v1 = vld [vmem:[#allocation3 + $0xb4] sm:$0xe]  ;;  %v17609_v50 = vsel %vm15090_vm2, %v12226_v6, %v10867_v61 }
 0x4d8   : > { %18485 = vst [vmem:[#allocation53_spill] sm:$0xff] %v17582_v46  ;;  %v17588_v36 = vsel %vm15090_vm2, %v10855_v32, %v10856_v34  ;;  %v10862_v53 = vrot.slane %v10860_v57, 4  ;;  %v14352_v34 = vld [vmem:[%s18197_s3 + $0x158] sm:$0xff]   ;;  %v10011_v32 = vld [vmem:[#allocation3 + $0xbc] sm:$0x1]  ;;  %v10874_v31 = vrot.slane %v10007_v47, 5 }
 0x4d9   : > { %18486 = vst [vmem:[#allocation54_spill] sm:$0xff] %v17588_v36  ;;  %v17615_v36 = vsel %vm15090_vm2, %v10869_v40, %v10870_v18  ;;  %v12227_v46 = vrot.slane %v10736_v26, 9  ;;  %v10877_v61 = vrot.slane %v10008_v14, 5  ;;  %v12228_v6 = vrot.slane %v10737_v1, 9 }
 0x4da   : > { %13447 = vmatpush3.bf16.msra.mxu1 %v14350_v22  ;;  %v17601_v22 = vsel %vm15090_vm2, %v12225_v3, %v10860_v57  ;;  %v17605_v44 = vsel %vm15090_vm2, %v10862_v53, %v10863_v62  ;;  %v10738_v3 = vld [vmem:[#allocation3 + $0xc0] sm:$0xe]  ;;  %v10014_v57 = vld [vmem:[#allocation3 + $0xc8] sm:$0x1]  ;;  %v10876_v53 = vrot.slane %v10874_v31, 4  ;;  %v18488_v47 = vshrl.u32 %v17136_v15, 16 }
 0x4db   : > { %13448 = vmatprep.subr.bf16.mxu1 %v14351_v29  ;;  %v10883_v40 = vrot.slane %v10881_v54, 4  ;;  %v10884_v18 = vrot.slane %v10011_v32, 5  ;;  %v10888_v26 = vrot.slane %v10013_v37, 5  ;;  %v17628_v62 = vsel %vm15090_vm2, %v12227_v46, %v10874_v31 }
 0x4dc   : > { %v8611_v56 = vrot.slane %v18488_v47, 4  ;;  %v17636_v15 = vsel %vm15090_vm2, %v12228_v6, %v10881_v54  ;;  %v12229_v14 = vrot.slane %v10738_v3, 9  ;;  %v10891_v32 = vrot.slane %v10014_v57, 5 }
 0x4dd   : > { %13417 = vmatmul.mubr.bf16.gmra.mrb[4].mxu1 %v17393_v24  ;;  %v14353_v24 = vld [vmem:[%s18197_s3 + $0x160] sm:$0xff]   ;;  %v17642_v37 = vsel %vm15090_vm2, %v10883_v40, %v10884_v18  ;;  %v10890_v1 = vrot.slane %v10888_v26, 4  ;;  %v18489_v46 = vshll.u32 %v17402_v10, 16  ;;  %v8620_v3 = vshrl.u32 %v8361_v19, 16 }
 0x4de   : > { %13420 = vmatprep.mubr.bf16.mxu1 %v17406_v42  ;;  %13449 = vmatpush3.bf16.msra.mxu1 %v14351_v29  ;;  %v17632_v42 = vsel %vm15090_vm2, %v10876_v53, %v10877_v61  ;;  %v8629_v53 = vshll.u32 %v17155_v59, 16  ;;  %v8633_v61 = vshrl.u32 %v17155_v59, 16  ;;  %v12260_v54 = vcombine.low %v17636_v15, %v17642_v37 }
 0x4df   : > { %13450 = vmatprep.subr.bf16.mxu1 %v14352_v34  ;;  %v12259_v29 = vcombine.low %v17628_v62, %v17632_v42  ;;  %v8601_v31 = vrot.slane %v18489_v46, 5  ;;  %v8623_v6 = vshll.u32 %v8361_v19, 16  ;;  %v17652_v47 = vsel %vm15090_vm2, %v12229_v14, %v10888_v26  ;;  %v14354_v26 = vld [vmem:[%s18197_s3 + $0x168] sm:$0xff]   ;;  %v11261_v62 = vld [vmem:[%s14518_s24] sm:$0xff] }
 0x4e0   : > { %v17656_v57 = vsel %vm15090_vm2, %v10890_v1, %v10891_v32  ;;  %v18490_v10 = vor.u32 %v17423_v20, %v17421_v55  ;;  %v18491_v59 = vor.u32 %v17452_v38, %v17432_v33  ;;  %v18492_v55 = vsel %vm14684_vm11, %v17390_v25, %v17410_v51  ;;  %v8364_v25 = vld [vmem:[#allocation3 + $0x90] sm:$0xf] }
 0x4e1   : > { %v12261_v19 = vcombine.low %v17652_v47, %v17656_v57  ;;  %v18493_v20 = vsel %vm14684_vm11, %v17385_v23, %v17365_v9  ;;  %v18495_v1 = vshll.u32 %v17144_v48, 16  ;;  %v8615_v46 = vshll.u32 %v17146_v58, 16  ;;  %v11262_v57 = vld [vmem:[%s14518_s24 + $0x8] sm:$0xff] }
 0x4e2   : > { %13451 = vmatpush3.bf16.msra.mxu1 %v14352_v34  ;;  %v8579_v40 = vrot.slane %v18490_v10, 4  ;;  %v8589_v18 = vrot.slane %v18491_v59, 4  ;;  %v8612_v34 = vor.u32 %v8611_v56, %v17592_v17  ;;  %v12061_v38 = vcombine.low %v18493_v20, %v18492_v55 }
 0x4e3   : > { %13452 = vmatprep.subr.bf16.mxu1 %v14353_v24  ;;  %v18494_v56 = vshll.u32 %v17113_v7, 16  ;;  %v8593_v32 = vrot.slane %v18495_v1, 5  ;;  %v17686_v10 = vrot.slane %v8629_v53, 5  ;;  %v8635_v59 = vrot.slane %v8633_v61, 4  ;;  %v14356_v1 = vld [vmem:[%s18197_s3 + $0x178] sm:$0xff]  }
 0x4e4   : > { %v8560_v9 = vsel %vm14684_vm11, %v17430_v12, %v17374_v35  ;;  %v8602_v7 = vor.u32 %v8601_v31, %v17466_v43  ;;  %v8622_v23 = vrot.slane %v8620_v3, 4  ;;  %v8625_v51 = vrot.slane %v8623_v6, 5  ;;  %v14355_v35 = vld [vmem:[%s18197_s3 + $0x170] sm:$0xff]  }
 0x4e5   : > { %v8569_v14 = vrot.slane %v18494_v56, 5  ;;  %13421 = vmatmul.mubr.bf16.gmra.mrb[8].mxu1 %v17408_v2  ;;  %v8584_v58 = vsel %vm14684_vm11, %v8579_v40, %v17432_v33  ;;  %v8594_v2 = vsel %vm14684_vm11, %v8589_v18, %v8593_v32  ;;  %v8613_v53 = vrot.slane %v8612_v34, 4 }
 0x4e6   : > { %13424 = vmatprep.mubr.bf16.mxu1 %v12061_v38  ;;  %13453 = vmatpush3.bf16.msra.mxu1 %v14353_v24  ;;  %v8644_v12 = vshrl.u32 %v8364_v25, 16  ;;  %v8647_v43 = vshll.u32 %v8364_v25, 16  ;;  %v8653_v24 = vshll.u32 %v17166_v63, 16  ;;  %v8657_v31 = vshrl.u32 %v17166_v63, 16  ;;  %v14441_v38 = vld [vmem:[#allocation3 + $0x8c] sm:$0x1] }
 0x4e7   : > { %v8570_v48 = vsel %vm14684_vm11, %v17437_v4, %v8569_v14  ;;  %13454 = vmatprep.subr.bf16.mxu1 %v14354_v26  ;;  %v8367_v4 = vld [vmem:[#allocation3 + $0x9c] sm:$0xf]  ;;  %v8617_v61 = vrot.slane %v8615_v46, 5  ;;  %v8636_v3 = vor.u32 %v8635_v59, %v17686_v10  ;;  %v8677_v33 = vshll.u32 %v17182_v8, 16 }
 0x4e8   : > { %v8681_v6 = vshrl.u32 %v17182_v8, 16  ;;  %v12062_v40 = vcombine.low %v8560_v9, %v8570_v48  ;;  %v12063_v18 = vcombine.low %v8584_v58, %v8594_v2  ;;  %v8603_v34 = vrot.slane %v8602_v7, 4 }
 0x4e9   : > { %v8626_v55 = vor.u32 %v8625_v51, %v8622_v23  ;;  %v8618_v20 = vsel %vm14684_vm11, %v8613_v53, %v8617_v61  ;;  %v8639_v56 = vshll.u32 %v14441_v38, 16  ;;  %v8668_v14 = vshrl.u32 %v8367_v4, 16  ;;  %v8370_v53 = vld [vmem:[#allocation3 + $0xa8] sm:$0xf] }
 0x4ea   : > { %13455 = vmatpush3.bf16.msra.mxu1 %v14354_v26  ;;  %v8671_v63 = vshll.u32 %v8367_v4, 16  ;;  %v8646_v32 = vrot.slane %v8644_v12, 4  ;;  %v8649_v46 = vrot.slane %v8647_v43, 5  ;;  %v17714_v8 = vrot.slane %v8653_v24, 5  ;;  %v17724_v12 = vld [vmem:[%s18197_s3 + $0x180] sm:$0xff]  }
 0x4eb   : > { %13456 = vmatprep.subr.bf16.mxu1 %v14355_v35  ;;  %v8659_v59 = vrot.slane %v8657_v31, 4  ;;  %v8637_v25 = vrot.slane %v8636_v3, 4  ;;  %v17716_v26 = vrot.slane %v8677_v33, 5  ;;  %v8683_v9 = vrot.slane %v8681_v6, 4  ;;  %v14442_v31 = vld [vmem:[#allocation3 + $0xac] sm:$0xf] }
 0x4ec   : > { %v8608_v7 = vsel %vm14684_vm11, %v8603_v34, %v17592_v17  ;;  %v8627_v23 = vrot.slane %v8626_v55, 4  ;;  %v8641_v48 = vrot.slane %v8639_v56, 5  ;;  %v8670_v58 = vrot.slane %v8668_v14, 4  ;;  %v8373_v17 = vld [vmem:[#allocation3 + $0xb4] sm:$0xf] }
 0x4ed   : > { %13425 = vmatmul.mubr.bf16.gmra.mrb[12].mxu1 %v12062_v40  ;;  %v12064_v51 = vcombine.low %v8608_v7, %v8618_v20  ;;  %v8673_v2 = vrot.slane %v8671_v63, 5  ;;  %v8650_v43 = vor.u32 %v8649_v46, %v8646_v32  ;;  %v8660_v24 = vor.u32 %v8659_v59, %v17714_v8  ;;  %v14444_v56 = vld [vmem:[#allocation3 + $0xa4] sm:$0x1] }
 0x4ee   : > { %13428 = vmatprep.mubr.bf16.mxu1 %v12063_v18  ;;  %13457 = vmatpush3.bf16.msra.mxu1 %v14355_v35  ;;  %v8701_v4 = vshll.u32 %v14442_v31, 16  ;;  %v8705_v61 = vshrl.u32 %v14442_v31, 16  ;;  %v8642_v35 = vsel %vm14684_vm11, %v8637_v25, %v8641_v48  ;;  %v8684_v3 = vor.u32 %v8683_v9, %v17716_v26  ;;  %v14443_v18 = vld [vmem:[#allocation3 + $0x98] sm:$0x1] }
 0x4ef   : > { %13458 = vmatprep.subr.bf16.mxu1 %v14356_v1  ;;  %v8725_v33 = vshll.u32 %v17209_v11, 16  ;;  %v8729_v6 = vshrl.u32 %v17209_v11, 16  ;;  %v8632_v40 = vsel %vm14684_vm11, %v8627_v23, %v17686_v10  ;;  %v8663_v34 = vshll.u32 %v14443_v18, 16 }
 0x4f0   : > { %v8692_v55 = vshrl.u32 %v8370_v53, 16  ;;  %v8695_v20 = vshll.u32 %v8370_v53, 16  ;;  %v8674_v38 = vor.u32 %v8673_v2, %v8670_v58  ;;  %v8687_v14 = vshll.u32 %v14444_v56, 16 }
 0x4f1   : > { %v8716_v63 = vshrl.u32 %v8373_v17, 16  ;;  %v8719_v32 = vshll.u32 %v8373_v17, 16  ;;  %v12065_v46 = vcombine.low %v8632_v40, %v8642_v35  ;;  %v8661_v59 = vrot.slane %v8660_v24, 4  ;;  %v8376_v17 = vld [vmem:[#allocation3 + $0xc0] sm:$0xf] }
 0x4f2   : > { %13459 = vmatpush3.bf16.msra.mxu1 %v14356_v1  ;;  %v8703_v25 = vrot.slane %v8701_v4, 5  ;;  %v8707_v11 = vrot.slane %v8705_v61, 4  ;;  %v8651_v9 = vrot.slane %v8650_v43, 4  ;;  %v8685_v7 = vrot.slane %v8684_v3, 4  ;;  %v14445_v4 = vld [vmem:[#allocation3 + $0xc4] sm:$0xf] }
 0x4f3   : > { %13492 = vmatprep.subr.bf16.mxu1 %v17724_v12  ;;  %v8727_v10 = vrot.slane %v8725_v33, 5  ;;  %v8731_v23 = vrot.slane %v8729_v6, 4  ;;  %v8665_v48 = vrot.slane %v8663_v34, 5  ;;  %v8694_v53 = vrot.slane %v8692_v55, 4  ;;  %v14446_v40 = vld [vmem:[#allocation3 + $0xb0] sm:$0x1] }
 0x4f4   : > { %v8697_v1 = vrot.slane %v8695_v20, 5  ;;  %v8675_v58 = vrot.slane %v8674_v38, 4  ;;  %v8689_v2 = vrot.slane %v8687_v14, 5  ;;  %v8718_v31 = vrot.slane %v8716_v63, 4  ;;  %v14447_v63 = vld [vmem:[#allocation3 + $0xbc] sm:$0x1] }
 0x4f5   : > { %13429 = vmatmul.mubr.bf16.gmra.mrb[16].mxu1 %v12064_v51  ;;  %v8721_v18 = vrot.slane %v8719_v32, 5  ;;  %v8666_v35 = vsel %vm14684_vm11, %v8661_v59, %v8665_v48  ;;  %v8708_v24 = vor.u32 %v8707_v11, %v8703_v25  ;;  %v8749_v61 = vshll.u32 %v14445_v4, 16 }
 0x4f6   : > { %13432 = vmatprep.mubr.bf16.mxu1 %v12065_v46  ;;  %v8753_v51 = vshrl.u32 %v14445_v4, 16  ;;  %v8656_v43 = vsel %vm14684_vm11, %v8651_v9, %v17714_v8  ;;  %v8690_v3 = vsel %vm14684_vm11, %v8685_v7, %v8689_v2  ;;  %v8732_v33 = vor.u32 %v8731_v23, %v8727_v10  ;;  %v14449_v4 = vld [vmem:[#allocation3 + $0xc8] sm:$0x1] }
 0x4f7   : > { %v8698_v6 = vor.u32 %v8697_v1, %v8694_v53  ;;  %v8711_v34 = vshll.u32 %v14446_v40, 16  ;;  %v8740_v55 = vshrl.u32 %v8376_v17, 16  ;;  %v8743_v20 = vshll.u32 %v8376_v17, 16 }
 0x4f8   : > { %v12066_v38 = vcombine.low %v8656_v43, %v8666_v35  ;;  %v8680_v56 = vsel %vm14684_vm11, %v8675_v58, %v17716_v26  ;;  %v8722_v14 = vor.u32 %v8721_v18, %v8718_v31  ;;  %v8735_v32 = vshll.u32 %v14447_v63, 16  ;;  %v14448_v31 = vld [vmem:[#allocation3 + $0x10] sm:$0xf] }
 0x4f9   : > { %v12067_v46 = vcombine.low %v8680_v56, %v8690_v3  ;;  %v8709_v59 = vrot.slane %v8708_v24, 4  ;;  %v8751_v8 = vrot.slane %v8749_v61, 5  ;;  %v8755_v11 = vrot.slane %v8753_v51, 4 }
 0x4fa   : > { %v8733_v9 = vrot.slane %v8732_v33, 4  ;;  %v8699_v7 = vrot.slane %v8698_v6, 4  ;;  %v8713_v23 = vrot.slane %v8711_v34, 5  ;;  %v8742_v48 = vrot.slane %v8740_v55, 4  ;;  %v9085_v55 = vld [vmem:[#allocation3 + $0xc] sm:$0xe] }
 0x4fb   : > { %v8745_v53 = vrot.slane %v8743_v20, 5  ;;  %v8723_v1 = vrot.slane %v8722_v14, 4  ;;  %v8737_v2 = vrot.slane %v8735_v32, 5  ;;  %v8756_v26 = vor.u32 %v8755_v11, %v8751_v8 }
 0x4fc   : > { %v8714_v17 = vsel %vm14684_vm11, %v8709_v59, %v8713_v23  ;;  %v9151_v18 = vrot.slane %v14448_v31, 5  ;;  %v8704_v35 = vsel %vm14684_vm11, %v8699_v7, %v8703_v25  ;;  %v8759_v61 = vshll.u32 %v14449_v4, 16  ;;  %v18503_v31 = vld [vmem:[#allocation24_spill] sm:$0xff] }
 0x4fd   : > { %13433 = vmatmul.mubr.bf16.gmra.mrb[20].mxu1 %v12066_v38  ;;  %v8738_v58 = vsel %vm14684_vm11, %v8733_v9, %v8737_v2  ;;  %v8746_v24 = vor.u32 %v8745_v53, %v8742_v48  ;;  %v12068_v51 = vcombine.low %v8704_v35, %v8714_v17  ;;  %v8728_v43 = vsel %vm14684_vm11, %v8723_v1, %v8727_v10  ;;  %v14450_v38 = vld [vmem:[#allocation3 + $0x1c] sm:$0xf]  ;;  %v14360_v2 = vld [vmem:[%s18197_s3 + $0x198] sm:$0xff]   ;;  %v18505_v35 = vld [vmem:[#allocation19_spill] sm:$0xff] }
 0x4fe   : > { %13436 = vmatprep.mubr.bf16.mxu1 %v12067_v46  ;;  %v12069_v3 = vcombine.low %v8728_v43, %v8738_v58  ;;  %v8757_v33 = vrot.slane %v8756_v26, 4  ;;  %v9153_v6 = vrot.slane %v9151_v18, 4  ;;  %v8761_v34 = vrot.slane %v8759_v61, 5  ;;  %v18499_v26 = vld [vmem:[#allocation16_spill] sm:$0xff]  ;;  %v18500_v58 = vld [vmem:[#allocation11_spill] sm:$0xff] }
 0x4ff   : > { %v8747_v40 = vrot.slane %v8746_v24, 4  ;;  %v9154_v20 = vrot.slane %v17295_v0, 5  ;;  %v9158_v56 = vrot.slane %v14450_v38, 5  ;;  %v12079_v14 = vrot.slane %v9085_v55, 9  ;;  %v9086_v0 = vld [vmem:[#allocation3 + $0x18] sm:$0xe] }
 0x500   : > { %v8762_v25 = vsel %vm14684_vm11, %v8757_v33, %v8761_v34  ;;  %v9161_v9 = vrot.slane %v17303_v21, 5  ;;  %v12080_v7 = vrot.slane %v9086_v0, 9  ;;  %v18496_v1 = vcombine.low %v17085_v60, %v17089_v52  ;;  %v14359_v21 = vld [vmem:[%s18197_s3 + $0x190] sm:$0xff]   ;;  %v14361_v52 = vld [vmem:[%s18197_s3 + $0x1a0] sm:$0xff]   ;;  %v18508_v61 = vld [vmem:[#allocation7_spill] sm:$0xff] }
 0x501   : > { %v9155_v63 = vsel %vm15090_vm2, %v9153_v6, %v9154_v20  ;;  %v8752_v10 = vsel %vm14684_vm11, %v8747_v40, %v8751_v8  ;;  %v9152_v46 = vsel %vm15090_vm2, %v12079_v14, %v9151_v18  ;;  %v9160_v11 = vrot.slane %v9158_v56, 4  ;;  %v14358_v8 = vld [vmem:[%s18197_s3 + $0x188] sm:$0xff]   ;;  %v14364_v18 = vld [vmem:[%s18197_s3 + $0x1b8] sm:$0xff]   ;;  %v18506_v24 = vld [vmem:[#allocation20_spill] sm:$0xff] }
 0x502   : > { %v12070_v32 = vcombine.low %v8752_v10, %v8762_v25  ;;  %v12111_v59 = vcombine.low %v9152_v46, %v9155_v63  ;;  %v9159_v48 = vsel %vm15090_vm2, %v12080_v7, %v9158_v56  ;;  %v18497_v17 = vcombine.low %v17099_v39, %v17106_v16  ;;  %v18502_v16 = vld [vmem:[#allocation23_spill] sm:$0xff]  ;;  %v18511_v33 = vld [vmem:[#allocation8_spill] sm:$0xff]  ;;  %v18512_v6 = vld [vmem:[#allocation10_spill] sm:$0xff] }
 0x503   : > { %v9162_v23 = vsel %vm15090_vm2, %v9160_v11, %v9161_v9  ;;  %v18498_v60 = vcombine.low %v17110_v27, %v17125_v49  ;;  %v18501_v39 = vcombine.low %v18499_v26, %v18500_v58  ;;  %v18504_v27 = vcombine.low %v18502_v16, %v18503_v31  ;;  %v14363_v49 = vld [vmem:[%s18197_s3 + $0x1b0] sm:$0xff]   ;;  %v18515_v55 = vld [vmem:[#allocation13_spill] sm:$0xff]  ;;  %v18517_v25 = vld [vmem:[#allocation14_spill] sm:$0xff] }
 0x504   : > { %v12112_v53 = vcombine.low %v9159_v48, %v9162_v23  ;;  %v18507_v4 = vcombine.low %v18505_v35, %v18506_v24  ;;  %v18513_v40 = vcombine.low %v18511_v33, %v18512_v6  ;;  %v18514_v34 = vld [vmem:[#allocation12_spill] sm:$0xff]  ;;  %v18518_v38 = vld [vmem:[#allocation15_spill] sm:$0xff]  ;;  %v18520_v14 = vld [vmem:[#allocation17_spill] sm:$0xff]  ;;  %v10028_v24 = vshll.u32 %v17404_v45, 16 }
 0x505   : > { %13437 = vmatmul.mubr.bf16.gmra.mrb[24].mxu1 %v12068_v51  ;;  %v18509_v51 = vld [vmem:[#allocation9_spill] sm:$0xff]  ;;  %v18516_v20 = vcombine.low %v18514_v34, %v18515_v55  ;;  %v18519_v56 = vcombine.low %v18517_v25, %v18518_v38  ;;  %v18521_v63 = vld [vmem:[#allocation18_spill] sm:$0xff]  ;;  %v14365_v7 = vld [vmem:[#allocation3 + $0x18] sm:$0xff]  }
 0x506   : > { %13440 = vmatprep.mubr.bf16.mxu1 %v12069_v3  ;;  %v18510_v43 = vcombine.low %v18508_v61, %v18509_v51  ;;  %v14367_v3 = vld [vmem:[%s18197_s3 + $0x1c0] sm:$0xff]   ;;  %v18522_v10 = vcombine.low %v18520_v14, %v18521_v63  ;;  %v18526_v11 = vld [vmem:[#allocation25_spill] sm:$0xff]  ;;  %v18529_v23 = vld [vmem:[#allocation27_spill] sm:$0xff]  ;;  %v10030_v6 = vrot.slane %v10028_v24, 5 }
 0x507   : > { %v18524_v46 = vld [vmem:[#allocation22_spill] sm:$0xff]  ;;  %v18530_v48 = vld [vmem:[#allocation28_spill] sm:$0xff]  ;;  %v14382_v58 = vld [vmem:[%s18197_s3 + $0x1e8] sm:$0xff]  }
 0x508   : > { %v18527_v0 = vld [vmem:[#allocation26_spill] sm:$0xff]  ;;  %v14372_v26 = vld [vmem:[#allocation3 + $0x54] sm:$0xff]   ;;  %v9973_v61 = vld [vmem:[#allocation3 + $0x24] sm:$0xf] }
 0x509   : > { %v18528_v9 = vcombine.low %v18526_v11, %v18527_v0  ;;  %v14385_v16 = vld [vmem:[%s18197_s3 + $0x1f0] sm:$0xff]   ;;  %v14375_v31 = vld [vmem:[#allocation3 + $0x6c] sm:$0xff]   ;;  %v14378_v51 = vld [vmem:[#allocation3 + $0x84] sm:$0xff]   ;;  %v10043_v34 = vshrl.u32 %v9973_v61, 16  ;;  %v10046_v55 = vshll.u32 %v9973_v61, 16 }
 0x50a   : > { %v9970_v35 = vld [vmem:[#allocation3 + $0x18] sm:$0xf]  ;;  %v14380_v33 = vld [vmem:[#allocation3 + $0x90] sm:$0xff]   ;;  %v18532_v38 = vld [vmem:[#allocation6_spill] sm:$0xff] }
 0x50b   : > { %v10048_v63 = vrot.slane %v10046_v55, 5  ;;  %v18533_v11 = vld [vmem:[#allocation5_spill] sm:$0xff] }
 0x50c   : > { %v10038_v0 = vshll.u32 %v18533_v11, 16 }
 0x50d   : > { %13441 = vmatmul.mubr.bf16.gmra.mrb[28].mxu1 %v12070_v32  ;;  %v18523_v32 = vld [vmem:[#allocation21_spill] sm:$0xff] }
 0x50e   : > { %13460 = vmatprep.mubr.bf16.mxu1 %v12111_v59  ;;  %v18525_v59 = vcombine.low %v18523_v32, %v18524_v46  ;;  %v9976_v32 = vld [vmem:[#allocation3 + $0x30] sm:$0xf]  ;;  %v14381_v46 = vld [vmem:[#allocation3 + $0x9c] sm:$0xff]  }
 0x515   : > { %13461 = vmatmul.mubr.bf16.vlgmr.msra.gmra.mrb[0].mxu1 %v12112_v53  ;;  %v18531_v53 = vcombine.low %v18529_v23, %v18530_v48  ;;  %v10067_v23 = vshrl.u32 %v9976_v32, 16 }
 0x516   : > { %13464 = vmatprep.mubr.bf16.mxu1 %v18496_v1  ;;  %13493 = vmatpush3.bf16.msra.mxu1 %v17724_v12  ;;  %v14362_v12 = vld [vmem:[%s18197_s3 + $0x1a8] sm:$0xff]  }
 0x517   : > { %13494 = vmatprep.subr.bf16.mxu1 %v14358_v8  ;;  %v14370_v1 = vld [vmem:[%s18197_s3 + $0x1c8] sm:$0xff]  }
 0x51a   : > { %13495 = vmatpush3.bf16.msra.mxu1 %v14358_v8  ;;  %v14366_v8 = vld [vmem:[#allocation3 + $0x24] sm:$0xff]  }
 0x51b   : > { %13496 = vmatprep.subr.bf16.mxu1 %v14359_v21 }
 0x51d   : > { %13465 = vmatmul.mubr.bf16.gmra.mrb[4].mxu1 %v18497_v17  ;;  %v14369_v17 = vld [vmem:[#allocation3 + $0x3c] sm:$0xff]  }
 0x51e   : > { %13468 = vmatprep.mubr.bf16.mxu1 %v18498_v60  ;;  %13497 = vmatpush3.bf16.msra.mxu1 %v14359_v21  ;;  %v14368_v21 = vld [vmem:[#allocation3 + $0x30] sm:$0xff]   ;;  %v14376_v60 = vld [vmem:[%s18197_s3 + $0x1d8] sm:$0xff]  }
 0x51f   : > { %13498 = vmatprep.subr.bf16.mxu1 %v14360_v2 }
 0x522   : > { %13499 = vmatpush3.bf16.msra.mxu1 %v14360_v2  ;;  %v14373_v2 = vld [vmem:[%s18197_s3 + $0x1d0] sm:$0xff]  }
 0x523   : > { %13500 = vmatprep.subr.bf16.mxu1 %v14361_v52 }
 0x525   : > { %13469 = vmatmul.mubr.bf16.gmra.mrb[8].mxu1 %v18501_v39  ;;  %v14374_v39 = vld [vmem:[#allocation3 + $0x60] sm:$0xff]  }
 0x526   : > { %13472 = vmatprep.mubr.bf16.mxu1 %v18504_v27  ;;  %13501 = vmatpush3.bf16.msra.mxu1 %v14361_v52  ;;  %v14371_v52 = vld [vmem:[#allocation3 + $0x48] sm:$0xff]   ;;  %v14388_v27 = vld [vmem:[%s18197_s3 + $0x1f8] sm:$0xff]  }
 0x527   : > { %13502 = vmatprep.subr.bf16.mxu1 %v14362_v12 }
 0x52a   : > { %13503 = vmatpush3.bf16.msra.mxu1 %v14362_v12  ;;  %v14379_v12 = vld [vmem:[%s18197_s3 + $0x1e0] sm:$0xff]  }
 0x52b   : > { %13504 = vmatprep.subr.bf16.mxu1 %v14363_v49 }
 0x52d   : > { %13473 = vmatmul.mubr.bf16.gmra.mrb[12].mxu1 %v18507_v4  ;;  %v10032_v4 = vshrl.u32 %v17404_v45, 16  ;;  %v10045_v45 = vrot.slane %v10043_v34, 4 }
 0x52e   : > { %13476 = vmatprep.mubr.bf16.mxu1 %v18510_v43  ;;  %13505 = vmatpush3.bf16.msra.mxu1 %v14363_v49  ;;  %v14377_v49 = vld [vmem:[#allocation3 + $0x78] sm:$0xff]   ;;  %v10019_v43 = vshrl.u32 %v9970_v35, 16 }
 0x52f   : > { %13506 = vmatprep.subr.bf16.mxu1 %v14364_v18 }
 0x532   : > { %13507 = vmatpush3.bf16.msra.mxu1 %v14364_v18  ;;  %v17859_v18 = vld [vmem:[%s18197_s3 + $0x200] sm:$0xff]  }
 0x533   : > { %13540 = vmatprep.subr.bf16.mxu1 %v14367_v3 }
 0x535   : > { %13477 = vmatmul.mubr.bf16.gmra.mrb[16].mxu1 %v18513_v40  ;;  %v10034_v40 = vrot.slane %v10032_v4, 4  ;;  %v14384_v4 = vld [vmem:[#allocation3 + $0xb4] sm:$0xff]  }
 0x536   : > { %13480 = vmatprep.mubr.bf16.mxu1 %v18516_v20  ;;  %v10021_v20 = vrot.slane %v10019_v43, 4  ;;  %v18536_v43 = vld [vmem:[#allocation30_spill] sm:$0xff] }
 0x537   : > { %v10035_v14 = vor.u32 %v10034_v40, %v10030_v6  ;;  %v14386_v40 = vld [vmem:[#allocation3 + $0xc0] sm:$0xff]  }
 0x539   : > { %v10036_v48 = vrot.slane %v10035_v14, 4 }
 0x53d   : > { %13481 = vmatmul.mubr.bf16.gmra.mrb[20].mxu1 %v18519_v56  ;;  %v10052_v56 = vshll.u32 %v18532_v38, 16 }
 0x53e   : > { %13484 = vmatprep.mubr.bf16.mxu1 %v18522_v10  ;;  %v10056_v10 = vshrl.u32 %v18532_v38, 16 }
 0x545   : > { %13485 = vmatmul.mubr.bf16.gmra.mrb[24].mxu1 %v18525_v59 }
 0x546   : > { %13488 = vmatprep.mubr.bf16.mxu1 %v18528_v9  ;;  %v14383_v9 = vld [vmem:[#allocation3 + $0xa8] sm:$0xff]  }
 0x54d   : > { %13489 = vmatmul.mubr.bf16.gmra.mrb[28].mxu1 %v18531_v53  ;;  %v10049_v53 = vor.u32 %v10048_v63, %v10045_v45  ;;  %v18538_v63 = vld [vmem:[#allocation32_spill] sm:$0xff] }
 0x54e   : > { %13508 = vmatprep.mubr.bf16.mxu1 %v14365_v7  ;;  %v17867_v7 = vrot.slane %v10052_v56, 5  ;;  %v9982_v56 = vld [vmem:[#allocation3 + $0x48] sm:$0xf]  ;;  %v10128_v11 = vshrl.u32 %v18538_v63, 16 }
 0x555   : > { %13509 = vmatmul.mubr.bf16.vlgmr.msra.gmra.mrb[0].mxu1 %v14366_v8  ;;  %v10058_v8 = vrot.slane %v10056_v10, 4  ;;  %v10124_v10 = vshll.u32 %v18538_v63, 16 }
 0x556   : > { %13512 = vmatprep.mubr.bf16.mxu1 %v14368_v21  ;;  %13541 = vmatpush3.bf16.msra.mxu1 %v14367_v3  ;;  %v10022_v3 = vshll.u32 %v9970_v35, 16  ;;  %v18534_v21 = vld [vmem:[#allocation4_spill] sm:$0xff] }
 0x557   : > { %13542 = vmatprep.subr.bf16.mxu1 %v14370_v1 }
 0x558   : > { %v10024_v25 = vrot.slane %v10022_v3, 5  ;;  %v10086_v3 = vshll.u32 %v18536_v43, 16 }
 0x55a   : > { %13543 = vmatpush3.bf16.msra.mxu1 %v14370_v1  ;;  %v10025_v59 = vor.u32 %v10024_v25, %v10021_v20  ;;  %v10070_v1 = vshll.u32 %v9976_v32, 16  ;;  %v18537_v20 = vld [vmem:[#allocation31_spill] sm:$0xff] }
 0x55b   : > { %13544 = vmatprep.subr.bf16.mxu1 %v14373_v2  ;;  %v10100_v25 = vshll.u32 %v18537_v20, 16  ;;  %v10104_v38 = vshrl.u32 %v18537_v20, 16  ;;  %v17891_v32 = vld [vmem:[#allocation3 + $0xd0] sm:$0xf] }
 0x55d   : > { %13513 = vmatmul.mubr.bf16.gmra.mrb[4].mxu1 %v14369_v17  ;;  %v10080_v17 = vshrl.u32 %v18534_v21, 16 }
 0x55e   : > { %13516 = vmatprep.mubr.bf16.mxu1 %v14371_v52  ;;  %13545 = vmatpush3.bf16.msra.mxu1 %v14373_v2  ;;  %v10076_v2 = vshll.u32 %v18534_v21, 16  ;;  %v10040_v52 = vrot.slane %v10038_v0, 5  ;;  %v10739_v0 = vld [vmem:[#allocation3 + $0xcc] sm:$0xe] }
 0x55f   : > { %13546 = vmatprep.subr.bf16.mxu1 %v14376_v60  ;;  %v10082_v24 = vrot.slane %v10080_v17, 4  ;;  %v12230_v21 = vrot.slane %v10739_v0, 9  ;;  %v17901_v17 = vrot.slane %v10100_v25, 5 }
 0x560   : > { %v17877_v35 = vrot.slane %v10076_v2, 5 }
 0x562   : > { %13547 = vmatpush3.bf16.msra.mxu1 %v14376_v60  ;;  %v10026_v60 = vrot.slane %v10025_v59, 4  ;;  %v10083_v59 = vor.u32 %v10082_v24, %v17877_v35 }
 0x563   : > { %13548 = vmatprep.subr.bf16.mxu1 %v14379_v12 }
 0x564   : > { %v10031_v61 = vsel %vm14684_vm11, %v10026_v60, %v10030_v6  ;;  %v10106_v60 = vrot.slane %v10104_v38, 4  ;;  %v10084_v25 = vrot.slane %v10083_v59, 4  ;;  %v18540_v38 = vld [vmem:[#allocation35_spill] sm:$0xff] }
 0x565   : > { %13517 = vmatmul.mubr.bf16.gmra.mrb[8].mxu1 %v14372_v26 }
 0x566   : > { %13520 = vmatprep.mubr.bf16.mxu1 %v14374_v39  ;;  %13549 = vmatpush3.bf16.msra.mxu1 %v14379_v12  ;;  %v18535_v12 = vld [vmem:[#allocation29_spill] sm:$0xff]  ;;  %v9979_v39 = vld [vmem:[#allocation3 + $0x3c] sm:$0xf]  ;;  %v10107_v63 = vor.u32 %v10106_v60, %v17901_v17 }
 0x567   : > { %13550 = vmatprep.subr.bf16.mxu1 %v14382_v58  ;;  %v10062_v26 = vshll.u32 %v18535_v12, 16  ;;  %v10094_v55 = vshll.u32 %v9979_v39, 16  ;;  %v14387_v12 = vld [vmem:[#allocation3 + $0xcc] sm:$0xff]  }
 0x569   : > { %v10096_v2 = vrot.slane %v10094_v55, 5 }
 0x56a   : > { %13551 = vmatpush3.bf16.msra.mxu1 %v14382_v58  ;;  %v10069_v58 = vrot.slane %v10067_v23, 4 }
 0x56b   : > { %13552 = vmatprep.subr.bf16.mxu1 %v14385_v16 }
 0x56d   : > { %13521 = vmatmul.mubr.bf16.gmra.mrb[12].mxu1 %v14375_v31  ;;  %v17874_v31 = vrot.slane %v10049_v53, 4  ;;  %v18539_v53 = vld [vmem:[#allocation38_spill] sm:$0xff] }
 0x56e   : > { %13524 = vmatprep.mubr.bf16.mxu1 %v14377_v49  ;;  %13553 = vmatpush3.bf16.msra.mxu1 %v14385_v16  ;;  %v10041_v16 = vsel %vm14684_vm11, %v10036_v48, %v10040_v52  ;;  %v10072_v49 = vrot.slane %v10070_v1, 5  ;;  %v10152_v1 = vshrl.u32 %v18539_v53, 16 }
 0x56f   : > { %13554 = vmatprep.subr.bf16.mxu1 %v14388_v27  ;;  %v12191_v34 = vcombine.low %v10031_v61, %v10041_v16  ;;  %v10055_v14 = vsel %vm14684_vm11, %v17874_v31, %v17867_v7  ;;  %v10130_v31 = vrot.slane %v10128_v11, 4 }
 0x570   : > { %v10073_v45 = vor.u32 %v10072_v49, %v10069_v58  ;;  %v10118_v58 = vshll.u32 %v9982_v56, 16  ;;  %v10154_v43 = vrot.slane %v10152_v1, 4 }
 0x572   : > { %13555 = vmatpush3.bf16.msra.mxu1 %v14388_v27  ;;  %v10059_v27 = vor.u32 %v10058_v8, %v17867_v7  ;;  %v9985_v7 = vld [vmem:[#allocation3 + $0x54] sm:$0xf]  ;;  %v10148_v8 = vshll.u32 %v18539_v53, 16  ;;  %v10074_v20 = vrot.slane %v10073_v45, 4 }
 0x573   : > { %13588 = vmatprep.subr.bf16.mxu1 %v17859_v18  ;;  %v10142_v49 = vshll.u32 %v9985_v7, 16 }
 0x574   : > { %v10060_v6 = vrot.slane %v10059_v27, 4  ;;  %v10139_v27 = vshrl.u32 %v9985_v7, 16  ;;  %v17913_v61 = vrot.slane %v10148_v8, 5  ;;  %v14451_v8 = vld [vmem:[#allocation3 + $0x50] sm:$0x1] }
 0x575   : > { %13525 = vmatmul.mubr.bf16.gmra.mrb[16].mxu1 %v14378_v51  ;;  %v17881_v51 = vrot.slane %v10062_v26, 5  ;;  %v10115_v26 = vshrl.u32 %v9982_v56, 16  ;;  %v10110_v56 = vshll.u32 %v18540_v38, 16  ;;  %v10134_v1 = vshll.u32 %v14451_v8, 16 }
 0x576   : > { %13528 = vmatprep.mubr.bf16.mxu1 %v14380_v33  ;;  %v10091_v33 = vshrl.u32 %v9979_v39, 16  ;;  %v17903_v39 = vrot.slane %v10124_v10, 5  ;;  %v10120_v10 = vrot.slane %v10118_v58, 5  ;;  %v10141_v0 = vrot.slane %v10139_v27, 4 }
 0x577   : > { %v10065_v55 = vsel %vm14684_vm11, %v10060_v6, %v17881_v51  ;;  %v10155_v7 = vor.u32 %v10154_v43, %v17913_v61  ;;  %v18541_v51 = vld [vmem:[#allocation41_spill] sm:$0xff]  ;;  %v10112_v60 = vrot.slane %v10110_v56, 5 }
 0x578   : > { %v10093_v48 = vrot.slane %v10091_v33, 4  ;;  %v9988_v33 = vld [vmem:[#allocation3 + $0x60] sm:$0xf]  ;;  %v10131_v11 = vor.u32 %v10130_v31, %v17903_v39  ;;  %v10172_v6 = vshll.u32 %v18541_v51, 16  ;;  %v10176_v45 = vshrl.u32 %v18541_v51, 16 }
 0x579   : > { %v10166_v53 = vshll.u32 %v9988_v33, 16  ;;  %v12192_v59 = vcombine.low %v10055_v14, %v10065_v55  ;;  %v14390_v14 = vld [vmem:[%s18197_s3 + $0x208] sm:$0xff]  }
 0x57a   : > { %v10097_v5 = vor.u32 %v10096_v2, %v10093_v48  ;;  %v10079_v48 = vsel %vm14684_vm11, %v10074_v20, %v17877_v35  ;;  %v10108_v2 = vrot.slane %v10107_v63, 4  ;;  %v10132_v58 = vrot.slane %v10131_v11, 4  ;;  %v9994_v11 = vld [vmem:[#allocation3 + $0x78] sm:$0xf] }
 0x57b   : > { %v10156_v35 = vrot.slane %v10155_v7, 4  ;;  %v10168_v43 = vrot.slane %v10166_v53, 5  ;;  %v10136_v20 = vrot.slane %v10134_v1, 5  ;;  %v10214_v8 = vshll.u32 %v9994_v11, 16 }
 0x57d   : > { %13529 = vmatmul.mubr.bf16.gmra.mrb[20].mxu1 %v14381_v46  ;;  %v17893_v46 = vld [vmem:[#allocation3 + $0xd4] sm:$0x1] }
 0x57e   : > { %13532 = vmatprep.mubr.bf16.mxu1 %v14383_v9  ;;  %v10895_v9 = vrot.slane %v17891_v32, 5  ;;  %v10898_v23 = vrot.slane %v17893_v46, 5 }
 0x580   : > { %v10897_v52 = vrot.slane %v10895_v9, 4  ;;  %v17907_v16 = vsel %vm15090_vm2, %v12230_v21, %v10895_v9  ;;  %v10144_v9 = vrot.slane %v10142_v49, 5  ;;  %v10098_v21 = vrot.slane %v10097_v5, 4  ;;  %v9991_v49 = vld [vmem:[#allocation3 + $0x6c] sm:$0xf] }
 0x582   : > { %v17911_v24 = vsel %vm15090_vm2, %v10897_v52, %v10898_v23  ;;  %v10163_v23 = vshrl.u32 %v9988_v33, 16  ;;  %v18542_v52 = vld [vmem:[#allocation39_spill] sm:$0xff]  ;;  %v10145_v31 = vor.u32 %v10144_v9, %v10141_v0  ;;  %v17935_v33 = vrot.slane %v10172_v6, 5 }
 0x583   : > { %v10103_v5 = vsel %vm14684_vm11, %v10098_v21, %v17901_v17  ;;  %v10113_v0 = vsel %vm14684_vm11, %v10108_v2, %v10112_v60  ;;  %v14391_v17 = vld [vmem:[%s18197_s3 + $0x210] sm:$0xff]  }
 0x584   : > { %v10165_v27 = vrot.slane %v10163_v23, 4  ;;  %v10137_v23 = vsel %vm14684_vm11, %v10132_v58, %v10136_v20  ;;  %v10146_v7 = vrot.slane %v10145_v31, 4  ;;  %v14453_v2 = vld [vmem:[#allocation3 + $0x7c] sm:$0xf] }
 0x585   : > { %13533 = vmatmul.mubr.bf16.gmra.mrb[24].mxu1 %v14384_v4  ;;  %v10088_v4 = vrot.slane %v10086_v3, 5  ;;  %v10117_v3 = vrot.slane %v10115_v26, 4  ;;  %v10220_v60 = vshll.u32 %v14453_v2, 16 }
 0x586   : > { %13536 = vmatprep.mubr.bf16.mxu1 %v14386_v40  ;;  %v12262_v40 = vcombine.low %v17907_v16, %v17911_v24  ;;  %v10169_v51 = vor.u32 %v10168_v43, %v10165_v27  ;;  %v10151_v58 = vsel %vm14684_vm11, %v10146_v7, %v17913_v61  ;;  %v14392_v43 = vld [vmem:[%s18197_s3 + $0x218] sm:$0xff]  }
 0x587   : > { %v10121_v26 = vor.u32 %v10120_v10, %v10117_v3  ;;  %v10187_v3 = vshrl.u32 %v9991_v49, 16  ;;  %v10190_v10 = vshll.u32 %v9991_v49, 16 }
 0x588   : > { %v10170_v49 = vrot.slane %v10169_v51, 4  ;;  %v14456_v51 = vld [vmem:[#allocation3 + $0x94] sm:$0xf] }
 0x589   : > { %v10122_v9 = vrot.slane %v10121_v26, 4  ;;  %v10189_v1 = vrot.slane %v10187_v3, 4  ;;  %v10192_v21 = vrot.slane %v10190_v10, 5 }
 0x58b   : > { %v10127_v26 = vsel %vm14684_vm11, %v10122_v9, %v17903_v39  ;;  %v10216_v39 = vrot.slane %v10214_v8, 5 }
 0x58c   : > { %v12195_v31 = vcombine.low %v10127_v26, %v10137_v23  ;;  %v14393_v23 = vld [vmem:[%s18197_s3 + $0x220] sm:$0xff]  }
 0x58d   : > { %13537 = vmatmul.mubr.bf16.gmra.mrb[28].mxu1 %v14387_v12  ;;  %v10158_v12 = vshll.u32 %v18542_v52, 16  ;;  %v10224_v52 = vshrl.u32 %v14453_v2, 16  ;;  %v14457_v2 = vld [vmem:[#allocation3 + $0x80] sm:$0x1] }
 0x58e   : > { %13556 = vmatprep.mubr.bf16.mxu1 %v12191_v34  ;;  %v10089_v34 = vsel %vm14684_vm11, %v10084_v25, %v10088_v4  ;;  %v10178_v4 = vrot.slane %v10176_v45, 4  ;;  %v18543_v25 = vld [vmem:[#allocation44_spill] sm:$0xff] }
 0x58f   : > { %v12193_v55 = vcombine.low %v10079_v48, %v10089_v34  ;;  %v10196_v38 = vshll.u32 %v18543_v25, 16  ;;  %v10200_v56 = vshrl.u32 %v18543_v25, 16  ;;  %v10160_v63 = vrot.slane %v10158_v12, 5 }
 0x590   : > { %v10179_v6 = vor.u32 %v10178_v4, %v17935_v33  ;;  %v10211_v34 = vshrl.u32 %v9994_v11, 16  ;;  %v12194_v12 = vcombine.low %v10103_v5, %v10113_v0  ;;  %v9997_v4 = vld [vmem:[#allocation3 + $0x84] sm:$0xf]  ;;  %v17965_v5 = vrot.slane %v10220_v60, 5  ;;  %v14455_v11 = vld [vmem:[#allocation3 + $0x88] sm:$0xf] }
 0x591   : > { %v10161_v53 = vsel %vm14684_vm11, %v10156_v35, %v10160_v63  ;;  %v10202_v48 = vrot.slane %v10200_v56, 4  ;;  %v14454_v56 = vld [vmem:[#allocation3 + $0x74] sm:$0x1]  ;;  %v10226_v63 = vrot.slane %v10224_v52, 4  ;;  %v10235_v3 = vshrl.u32 %v9997_v4, 16 }
 0x592   : > { %v12196_v27 = vcombine.low %v10151_v58, %v10161_v53  ;;  %v10213_v25 = vrot.slane %v10211_v34, 4  ;;  %v10206_v61 = vshll.u32 %v14454_v56, 16  ;;  %v10238_v10 = vshll.u32 %v9997_v4, 16 }
 0x593   : > { %v10244_v0 = vshll.u32 %v14455_v11, 16  ;;  %v10248_v9 = vshrl.u32 %v14455_v11, 16  ;;  %v10230_v60 = vshll.u32 %v14457_v2, 16  ;;  %v10237_v52 = vrot.slane %v10235_v3, 4 }
 0x594   : > { %v10217_v34 = vor.u32 %v10216_v39, %v10213_v25 }
 0x595   : > { %13557 = vmatmul.mubr.bf16.vlgmr.msra.gmra.mrb[0].mxu1 %v12192_v59  ;;  %v17953_v59 = vrot.slane %v10196_v38, 5  ;;  %v10193_v38 = vor.u32 %v10192_v21, %v10189_v1  ;;  %v10208_v1 = vrot.slane %v10206_v61, 5  ;;  %v10227_v21 = vor.u32 %v10226_v63, %v17965_v5 }
 0x596   : > { %13560 = vmatprep.mubr.bf16.mxu1 %v12193_v55  ;;  %13589 = vmatpush3.bf16.msra.mxu1 %v17859_v18  ;;  %v14452_v18 = vld [vmem:[#allocation3 + $0x68] sm:$0x1]  ;;  %v10180_v55 = vrot.slane %v10179_v6, 4  ;;  %v10268_v6 = vshll.u32 %v14456_v51, 16  ;;  %v17976_v26 = vrot.slane %v10244_v0, 5  ;;  %v10250_v58 = vrot.slane %v10248_v9, 4 }
 0x597   : > { %13590 = vmatprep.subr.bf16.mxu1 %v14390_v14  ;;  %v10182_v45 = vshll.u32 %v14452_v18, 16  ;;  %v10203_v20 = vor.u32 %v10202_v48, %v17953_v59  ;;  %v10272_v18 = vshrl.u32 %v14456_v51, 16  ;;  %v10194_v8 = vrot.slane %v10193_v38, 4  ;;  %v14458_v9 = vld [vmem:[#allocation3 + $0x8c] sm:$0x1] }
 0x598   : > { %v17978_v4 = vrot.slane %v10268_v6, 5  ;;  %v10218_v25 = vrot.slane %v10217_v34, 4  ;;  %v10251_v56 = vor.u32 %v10250_v58, %v17976_v26  ;;  %v10006_v6 = vld [vmem:[#allocation3 + $0xa8] sm:$0xf] }
 0x599   : > { %v10184_v35 = vrot.slane %v10182_v45, 5  ;;  %v10175_v45 = vsel %vm14684_vm11, %v10170_v49, %v17935_v33  ;;  %v10204_v48 = vrot.slane %v10203_v20, 4  ;;  %v10199_v39 = vsel %vm14684_vm11, %v10194_v8, %v17953_v59 }
 0x59a   : > { %13591 = vmatpush3.bf16.msra.mxu1 %v14390_v14  ;;  %v10000_v14 = vld [vmem:[#allocation3 + $0x90] sm:$0xf]  ;;  %v10223_v59 = vsel %vm14684_vm11, %v10218_v25, %v17965_v5  ;;  %v10310_v58 = vshll.u32 %v10006_v6, 16 }
 0x59b   : > { %13592 = vmatprep.subr.bf16.mxu1 %v14391_v17  ;;  %v10259_v7 = vshrl.u32 %v10000_v14, 16  ;;  %v10262_v53 = vshll.u32 %v10000_v14, 16  ;;  %v10228_v14 = vrot.slane %v10227_v21, 4  ;;  %v10252_v21 = vrot.slane %v10251_v56, 4 }
 0x59d   : > { %13561 = vmatmul.mubr.bf16.gmra.mrb[4].mxu1 %v12194_v12  ;;  %v10240_v12 = vrot.slane %v10238_v10, 5  ;;  %v10261_v33 = vrot.slane %v10259_v7, 4  ;;  %v10264_v49 = vrot.slane %v10262_v53, 5  ;;  %v10232_v10 = vrot.slane %v10230_v60, 5  ;;  %v14459_v53 = vld [vmem:[#allocation3 + $0xa0] sm:$0xf] }
 0x59e   : > { %13564 = vmatprep.mubr.bf16.mxu1 %v12195_v31  ;;  %13593 = vmatpush3.bf16.msra.mxu1 %v14391_v17  ;;  %v10185_v17 = vsel %vm14684_vm11, %v10180_v55, %v10184_v35  ;;  %v10003_v31 = vld [vmem:[#allocation3 + $0x9c] sm:$0xf]  ;;  %v10274_v35 = vrot.slane %v10272_v18, 4  ;;  %v14394_v55 = vld [vmem:[%s18197_s3 + $0x228] sm:$0xff]   ;;  %v10254_v7 = vshll.u32 %v14458_v9, 16  ;;  %v10296_v51 = vshrl.u32 %v14459_v53, 16 }
 0x59f   : > { %13594 = vmatprep.subr.bf16.mxu1 %v14392_v43  ;;  %v12197_v20 = vcombine.low %v10175_v45, %v10185_v17  ;;  %v10241_v38 = vor.u32 %v10240_v12, %v10237_v52  ;;  %v10283_v61 = vshrl.u32 %v10003_v31, 16  ;;  %v10286_v63 = vshll.u32 %v10003_v31, 16  ;;  %v14460_v45 = vld [vmem:[#allocation3 + $0x98] sm:$0x1]  ;;  %v14396_v31 = vld [vmem:[%s18197_s3 + $0x238] sm:$0xff]  }
 0x5a0   : > { %v10265_v11 = vor.u32 %v10264_v49, %v10261_v33  ;;  %v10275_v0 = vor.u32 %v10274_v35, %v17978_v4  ;;  %v10233_v18 = vsel %vm14684_vm11, %v10228_v14, %v10232_v10  ;;  %v10278_v17 = vshll.u32 %v14460_v45, 16  ;;  %v14463_v9 = vld [vmem:[#allocation3 + $0xb8] sm:$0xf] }
 0x5a1   : > { %v10285_v2 = vrot.slane %v10283_v61, 4  ;;  %v10288_v60 = vrot.slane %v10286_v63, 5  ;;  %v10307_v12 = vshrl.u32 %v10006_v6, 16  ;;  %v12199_v33 = vcombine.low %v10223_v59, %v10233_v18  ;;  %v14462_v61 = vld [vmem:[#allocation3 + $0xa4] sm:$0x1] }
 0x5a2   : > { %13595 = vmatpush3.bf16.msra.mxu1 %v14392_v43  ;;  %v10209_v43 = vsel %vm14684_vm11, %v10204_v48, %v10208_v1  ;;  %v14461_v48 = vld [vmem:[#allocation3 + $0xac] sm:$0xf]  ;;  %v10242_v1 = vrot.slane %v10241_v38, 4  ;;  %v10266_v5 = vrot.slane %v10265_v11, 4  ;;  %v10276_v52 = vrot.slane %v10275_v0, 4 }
 0x5a3   : > { %13596 = vmatprep.subr.bf16.mxu1 %v14393_v23  ;;  %v12198_v3 = vcombine.low %v10199_v39, %v10209_v43  ;;  %v10316_v34 = vshll.u32 %v14461_v48, 16  ;;  %v10320_v8 = vshrl.u32 %v14461_v48, 16  ;;  %v10256_v49 = vrot.slane %v10254_v7, 5  ;;  %v14464_v6 = vld [vmem:[#allocation3 + $0xc4] sm:$0xf] }
 0x5a4   : > { %v10280_v43 = vrot.slane %v10278_v17, 5  ;;  %v10247_v14 = vsel %vm14684_vm11, %v10242_v1, %v17976_v26  ;;  %v10289_v56 = vor.u32 %v10288_v60, %v10285_v2  ;;  %v10302_v63 = vshll.u32 %v14462_v61, 16  ;;  %v14465_v1 = vld [vmem:[#allocation3 + $0xb0] sm:$0x1] }
 0x5a5   : > { %13565 = vmatmul.mubr.bf16.gmra.mrb[8].mxu1 %v12196_v27  ;;  %v14395_v27 = vld [vmem:[%s18197_s3 + $0x230] sm:$0xff]   ;;  %v18003_v25 = vrot.slane %v10316_v34, 5  ;;  %v10322_v39 = vrot.slane %v10320_v8, 4  ;;  %v10257_v38 = vsel %vm14684_vm11, %v10252_v21, %v10256_v49  ;;  %v10309_v11 = vrot.slane %v10307_v12, 4 }
 0x5a6   : > { %13568 = vmatprep.mubr.bf16.mxu1 %v12197_v20  ;;  %13597 = vmatpush3.bf16.msra.mxu1 %v14393_v23  ;;  %v10292_v23 = vshll.u32 %v14459_v53, 16  ;;  %v10298_v20 = vrot.slane %v10296_v51, 4  ;;  %v10281_v10 = vsel %vm14684_vm11, %v10276_v52, %v10280_v43  ;;  %v10312_v0 = vrot.slane %v10310_v58, 5 }
 0x5a7   : > { %13598 = vmatprep.subr.bf16.mxu1 %v14394_v55  ;;  %v10340_v7 = vshll.u32 %v14463_v9, 16  ;;  %v10344_v53 = vshrl.u32 %v14463_v9, 16  ;;  %v10323_v51 = vor.u32 %v10322_v39, %v18003_v25  ;;  %v10364_v18 = vshll.u32 %v14464_v6, 16  ;;  %v14466_v9 = vld [vmem:[#allocation3 + $0xbc] sm:$0x1] }
 0x5a8   : > { %v18001_v35 = vrot.slane %v10292_v23, 5  ;;  %v10012_v23 = vld [vmem:[#allocation3 + $0xc0] sm:$0xf]  ;;  %v10368_v45 = vshrl.u32 %v14464_v6, 16  ;;  %v10290_v48 = vrot.slane %v10289_v56, 4  ;;  %v10304_v34 = vrot.slane %v10302_v63, 5 }
 0x5a9   : > { %v10313_v8 = vor.u32 %v10312_v0, %v10309_v11  ;;  %v10326_v21 = vshll.u32 %v14465_v1, 16  ;;  %v10355_v2 = vshrl.u32 %v10012_v23, 16  ;;  %v10358_v60 = vshll.u32 %v10012_v23, 16 }
 0x5aa   : > { %13599 = vmatpush3.bf16.msra.mxu1 %v14394_v55  ;;  %v10009_v55 = vld [vmem:[#allocation3 + $0xb4] sm:$0xf]  ;;  %v10299_v59 = vor.u32 %v10298_v20, %v18001_v35  ;;  %v10342_v58 = vrot.slane %v10340_v7, 5  ;;  %v10324_v49 = vrot.slane %v10323_v51, 4  ;;  %v10366_v43 = vrot.slane %v10364_v18, 5 }
 0x5ab   : > { %13600 = vmatprep.subr.bf16.mxu1 %v14395_v27  ;;  %v10331_v26 = vshrl.u32 %v10009_v55, 16  ;;  %v10370_v39 = vrot.slane %v10368_v45, 4  ;;  %v10314_v56 = vrot.slane %v10313_v8, 4  ;;  %v10328_v61 = vrot.slane %v10326_v21, 5  ;;  %v14467_v45 = vld [vmem:[#allocation3 + $0xc8] sm:$0x1] }
 0x5ac   : > { %v10300_v52 = vrot.slane %v10299_v59, 4  ;;  %v10357_v63 = vrot.slane %v10355_v2, 4  ;;  %v10350_v7 = vshll.u32 %v14466_v9, 16  ;;  %v18554_v9 = vld [vmem:[#allocation45_spill] sm:$0xff] }
 0x5ad   : > { %13569 = vmatmul.mubr.bf16.gmra.mrb[12].mxu1 %v12198_v3  ;;  %v10271_v3 = vsel %vm14684_vm11, %v10266_v5, %v17978_v4  ;;  %v12200_v4 = vcombine.low %v10247_v14, %v10257_v38  ;;  %v10015_v5 = vld [vmem:[#allocation3 + $0xcc] sm:$0xf]  ;;  %v10333_v12 = vrot.slane %v10331_v26, 4  ;;  %v10392_v38 = vshrl.u32 %v17891_v32, 16 }
 0x5ae   : > { %13572 = vmatprep.mubr.bf16.mxu1 %v12199_v33  ;;  %13601 = vmatpush3.bf16.msra.mxu1 %v14395_v27  ;;  %v10334_v27 = vshll.u32 %v10009_v55, 16  ;;  %v12201_v17 = vcombine.low %v10271_v3, %v10281_v10  ;;  %v10346_v33 = vrot.slane %v10344_v53, 4  ;;  %v10379_v55 = vshrl.u32 %v10015_v5, 16 }
 0x5af   : > { %13602 = vmatprep.subr.bf16.mxu1 %v14396_v31  ;;  %v10382_v14 = vshll.u32 %v10015_v5, 16  ;;  %v10360_v3 = vrot.slane %v10358_v60, 5  ;;  %v10295_v10 = vsel %vm14684_vm11, %v10290_v48, %v18001_v35  ;;  %v10305_v11 = vsel %vm14684_vm11, %v10300_v52, %v10304_v34 }
 0x5b0   : > { %v10336_v20 = vrot.slane %v10334_v27, 5  ;;  %v10347_v0 = vor.u32 %v10346_v33, %v10342_v58  ;;  %v10329_v59 = vsel %vm14684_vm11, %v10324_v49, %v10328_v61  ;;  %v10371_v53 = vor.u32 %v10370_v39, %v10366_v43  ;;  %v18544_v61 = vld [vmem:[#allocation33_spill] sm:$0xff] }
 0x5b1   : > { %v10384_v23 = vrot.slane %v10382_v14, 5  ;;  %v10394_v27 = vrot.slane %v10392_v38, 4  ;;  %v12202_v6 = vcombine.low %v10295_v10, %v10305_v11  ;;  %v10319_v35 = vsel %vm14684_vm11, %v10314_v56, %v18003_v25  ;;  %v18548_v10 = vld [vmem:[#allocation37_spill] sm:$0xff] }
 0x5b2   : > { %13603 = vmatpush3.bf16.msra.mxu1 %v14396_v31  ;;  %v10388_v31 = vshll.u32 %v17891_v32, 16  ;;  %v10337_v26 = vor.u32 %v10336_v20, %v10333_v12  ;;  %v10381_v32 = vrot.slane %v10379_v55, 4  ;;  %v10361_v18 = vor.u32 %v10360_v3, %v10357_v63  ;;  %v18547_v3 = vld [vmem:[#allocation36_spill] sm:$0xff] }
 0x5b3   : > { %v10348_v48 = vrot.slane %v10347_v0, 4  ;;  %v10352_v34 = vrot.slane %v10350_v7, 5  ;;  %v10372_v8 = vrot.slane %v10371_v53, 4  ;;  %v10398_v60 = vshll.u32 %v17893_v46, 16  ;;  %v18551_v0 = vld [vmem:[#allocation42_spill] sm:$0xff]  ;;  %v18557_v53 = vld [vmem:[#allocation47_spill] sm:$0xff] }
 0x5b4   : > { %v10390_v51 = vrot.slane %v10388_v31, 5  ;;  %v10338_v1 = vrot.slane %v10337_v26, 4  ;;  %v10385_v21 = vor.u32 %v10384_v23, %v10381_v32  ;;  %v10362_v5 = vrot.slane %v10361_v18, 4  ;;  %v18553_v26 = vld [vmem:[#allocation43_spill] sm:$0xff] }
 0x5b5   : > { %13573 = vmatmul.mubr.bf16.gmra.mrb[16].mxu1 %v12200_v4  ;;  %v10374_v4 = vshll.u32 %v14467_v45, 16  ;;  %v10353_v12 = vsel %vm14684_vm11, %v10348_v48, %v10352_v34  ;;  %v10400_v39 = vrot.slane %v10398_v60, 5  ;;  %v18549_v11 = vcombine.low %v18547_v3, %v18548_v10  ;;  %v18564_v18 = vld [vmem:[#allocation51_spill] sm:$0xff]  ;;  %v18568_v48 = vld [vmem:[#allocation53_spill] sm:$0xff]  ;;  %v18569_v34 = vld [vmem:[#allocation54_spill] sm:$0xff] }
 0x5b6   : > { %13576 = vmatprep.mubr.bf16.mxu1 %v12201_v17  ;;  %v12203_v17 = vcombine.low %v10319_v35, %v10329_v59  ;;  %v10395_v2 = vor.u32 %v10394_v27, %v10390_v51  ;;  %v10343_v33 = vsel %vm14684_vm11, %v10338_v1, %v10342_v58  ;;  %v10386_v49 = vrot.slane %v10385_v21, 4  ;;  %v18545_v58 = vld [vmem:[#allocation34_spill] sm:$0xff]  ;;  %v18561_v27 = vld [vmem:[#allocation49_spill] sm:$0xff]  ;;  %v11267_v21 = vld [vmem:[%s14518_s24 + $0x30] sm:$0xff] }
 0x5b7   : > { %v10376_v52 = vrot.slane %v10374_v4, 5  ;;  %v12204_v55 = vcombine.low %v10343_v33, %v10353_v12  ;;  %v10367_v14 = vsel %vm14684_vm11, %v10362_v5, %v10366_v43  ;;  %v18546_v63 = vcombine.low %v18544_v61, %v18545_v58  ;;  %v18550_v43 = vld [vmem:[#allocation40_spill] sm:$0xff]  ;;  %v18563_v35 = vld [vmem:[#allocation50_spill] sm:$0xff] }
 0x5b8   : > { %v10396_v20 = vrot.slane %v10395_v2, 4  ;;  %v10391_v46 = vsel %vm14684_vm11, %v10386_v49, %v10390_v51  ;;  %v18552_v59 = vcombine.low %v18550_v43, %v18551_v0  ;;  %v18555_v7 = vcombine.low %v18553_v26, %v18554_v9  ;;  %v18560_v51 = vld [vmem:[#allocation48_spill] sm:$0xff]  ;;  %v11265_v5 = vld [vmem:[%s14518_s24 + $0x20] sm:$0xff]  ;;  %v11270_v26 = vld [vmem:[%s14518_s24 + $0x48] sm:$0xff] }
 0x5b9   : > { %v10377_v25 = vsel %vm14684_vm11, %v10372_v8, %v10376_v52  ;;  %v18558_v32 = vcombine.low %v18556_v30, %v18557_v53  ;;  %v18559_v23 = vcombine.low %v17532_v13, %v17539_v41  ;;  %v18565_v45 = vcombine.low %v18563_v35, %v18564_v18  ;;  %v18566_v4 = vld [vmem:[#allocation52_spill] sm:$0xff] }
 0x5ba   : > { %v12205_v31 = vcombine.low %v10367_v14, %v10377_v25  ;;  %v10401_v38 = vsel %vm14684_vm11, %v10396_v20, %v10400_v39  ;;  %v18570_v8 = vcombine.low %v18568_v48, %v18569_v34  ;;  %v18571_v13 = vcombine.low %v17601_v22, %v17605_v44  ;;  %v11263_v22 = vld [vmem:[%s14518_s24 + $0x10] sm:$0xff]  ;;  %v11268_v25 = vld [vmem:[%s14518_s24 + $0x38] sm:$0xff]  ;;  %v11266_v39 = vld [vmem:[%s14518_s24 + $0x28] sm:$0xff] }
 0x5bb   : > { %v12206_v56 = vcombine.low %v10391_v46, %v10401_v38  ;;  %v18572_v41 = vcombine.low %v17609_v50, %v17615_v36  ;;  %v11274_v34 = vld [vmem:[%s14518_s24 + $0x68] sm:$0xff] }
 0x5bd   : > { %13577 = vmatmul.mubr.bf16.gmra.mrb[20].mxu1 %v12202_v6  ;;  %v18562_v6 = vcombine.low %v18560_v51, %v18561_v27 }
 0x5be   : > { %13580 = vmatprep.mubr.bf16.mxu1 %v12203_v17  ;;  %v18567_v17 = vcombine.low %v17574_v28, %v18566_v4  ;;  %v18093_v28 = vld [vmem:[%s18198_s4] ss:$0 sm:$0xff] }
 0x5c5   : > { %13581 = vmatmul.mubr.bf16.gmra.mrb[24].mxu1 %v12204_v55 }
 0x5c6   : > { %13584 = vmatprep.mubr.bf16.mxu1 %v12205_v31 }
 0x5cd   : > { %13585 = vmatmul.mubr.bf16.gmra.mrb[28].mxu1 %v12206_v56  ;;  %v11271_v56 = vld [vmem:[%s14518_s24 + $0x50] sm:$0xff] }
 0x5ce   : > { %13604 = vmatprep.mubr.bf16.mxu1 %v18546_v63  ;;  %v11269_v63 = vld [vmem:[%s14518_s24 + $0x40] sm:$0xff] }
 0x5d5   : > { %13605 = vmatmul.mubr.bf16.vlgmr.msra.gmra.mrb[0].mxu1 %v18549_v11  ;;  %v11272_v11 = vld [vmem:[%s14518_s24 + $0x58] sm:$0xff] }
 0x5d6   : > { %13608 = vmatprep.mubr.bf16.mxu1 %v18552_v59 }
 0x5dd   : > { %13609 = vmatmul.mubr.bf16.gmra.mrb[4].mxu1 %v18555_v7 }
 0x5de   : > { %13612 = vmatprep.mubr.bf16.mxu1 %v18558_v32 }
 0x5e5   : > { %13613 = vmatmul.mubr.bf16.gmra.mrb[8].mxu1 %v18559_v23  ;;  %v11275_v23 = vld [vmem:[%s14518_s24 + $0x70] sm:$0xff] }
 0x5e6   : > { %13616 = vmatprep.mubr.bf16.mxu1 %v18562_v6  ;;  %v11273_v6 = vld [vmem:[%s14518_s24 + $0x60] sm:$0xff] }
 0x5ed   : > { %13617 = vmatmul.mubr.bf16.gmra.mrb[12].mxu1 %v18565_v45  ;;  %v11276_v45 = vld [vmem:[%s14518_s24 + $0x78] sm:$0xff] }
 0x5ee   : > { %13620 = vmatprep.mubr.bf16.mxu1 %v18567_v17 }
 0x5f5   : > { %13621 = vmatmul.mubr.bf16.gmra.mrb[16].mxu1 %v18570_v8 }
 0x5f6   : > { %13624 = vmatprep.mubr.bf16.mxu1 %v18571_v13 }
 0x5fd   : > { %13625 = vmatmul.mubr.bf16.gmra.mrb[20].mxu1 %v18572_v41 }
 0x5fe   : > { %13628 = vmatprep.mubr.bf16.mxu1 %v12259_v29  ;;  %v11264_v29 = vld [vmem:[%s14518_s24 + $0x18] sm:$0xff] }
 0x605   : > { %13629 = vmatmul.mubr.bf16.gmra.mrb[24].mxu1 %v12260_v54 }
 0x606   : > { %13632 = vmatprep.mubr.bf16.mxu1 %v12261_v19 }
 0x60d   : > { %13633 = vmatmul.mubr.bf16.gmra.mrb[28].mxu1 %v12262_v40 }
 0x6a8   : > { %v13606_v36 = vpop.f32.mrb[0].mxu1 }
 0x6a9   : > { %v11231_v44 = vadd.f32 %v13606_v36, %v18093_v28  ;;  %v11063_v50 = vpop.f32.mrb[1].mxu1 }
 0x6aa   : > { %v11229_v42 = vadd.f32 %v18093_v28, %v11063_v50  ;;  %v13607_v15 = vpop.f32.mrb[2].mxu1 }
 0x6ab   : > { %v11295_v37 = vadd.f32 %v11263_v22, %v11231_v44  ;;  %v11232_v54 = vadd.f32 %v13607_v15, %v18093_v28  ;;  %v11066_v47 = vpop.f32.mrb[3].mxu1  ;;  %v11279_v44 = vld [vmem:[%s14518_s24 + $0x90] sm:$0xff] }
 0x6ac   : > { %v11293_v19 = vadd.f32 %v11261_v62, %v11229_v42  ;;  %v11230_v16 = vadd.f32 %v18093_v28, %v11066_v47  ;;  %v11277_v42 = vld [vmem:[%s14518_s24 + $0x80] sm:$0xff] }
 0x6ad   : > { %11327 = vst [vmem:[%s14523_s27 + $0x10] sm:$0xff] %v11295_v37  ;;  %v11296_v24 = vadd.f32 %v11264_v29, %v11232_v54  ;;  %v11280_v37 = vld [vmem:[%s14518_s24 + $0x98] sm:$0xff] }
 0x6ae   : > { %11325 = vst [vmem:[%s14523_s27] sm:$0xff] %v11293_v19  ;;  %v11294_v40 = vadd.f32 %v11262_v57, %v11230_v16  ;;  %v11278_v19 = vld [vmem:[%s14518_s24 + $0x88] sm:$0xff] }
 0x6af   : > { %11328 = vst [vmem:[%s14523_s27 + $0x18] sm:$0xff] %v11296_v24 }
 0x6b0   : > { %11326 = vst [vmem:[%s14523_s27 + $0x8] sm:$0xff] %v11294_v40  ;;  %v13610_v1 = vpop.f32.mrb[4].mxu1 }
 0x6b1   : > { %v11235_v2 = vadd.f32 %v13610_v1, %v18093_v28  ;;  %v11079_v60 = vpop.f32.mrb[5].mxu1 }
 0x6b2   : > { %v11233_v52 = vadd.f32 %v18093_v28, %v11079_v60  ;;  %v13611_v12 = vpop.f32.mrb[6].mxu1 }
 0x6b3   : > { %v11299_v33 = vadd.f32 %v11267_v21, %v11235_v2  ;;  %v11236_v49 = vadd.f32 %v13611_v12, %v18093_v28  ;;  %v11082_v20 = vpop.f32.mrb[7].mxu1  ;;  %v11283_v2 = vld [vmem:[%s14518_s24 + $0xb0] sm:$0xff] }
 0x6b4   : > { %v11297_v55 = vadd.f32 %v11265_v5, %v11233_v52  ;;  %v11234_v14 = vadd.f32 %v18093_v28, %v11082_v20  ;;  %v11281_v52 = vld [vmem:[%s14518_s24 + $0xa0] sm:$0xff] }
 0x6b5   : > { %11331 = vst [vmem:[%s14523_s27 + $0x30] sm:$0xff] %v11299_v33  ;;  %v11300_v31 = vadd.f32 %v11268_v25, %v11236_v49  ;;  %v11284_v33 = vld [vmem:[%s14518_s24 + $0xb8] sm:$0xff] }
 0x6b6   : > { %11329 = vst [vmem:[%s14523_s27 + $0x20] sm:$0xff] %v11297_v55  ;;  %v11298_v46 = vadd.f32 %v11266_v39, %v11234_v14  ;;  %v11282_v55 = vld [vmem:[%s14518_s24 + $0xa8] sm:$0xff] }
 0x6b7   : > { %11332 = vst [vmem:[%s14523_s27 + $0x38] sm:$0xff] %v11300_v31 }
 0x6b8   : > { %11330 = vst [vmem:[%s14523_s27 + $0x28] sm:$0xff] %v11298_v46  ;;  %v13614_v38 = vpop.f32.mrb[8].mxu1 }
 0x6b9   : > { %v11239_v61 = vadd.f32 %v13614_v38, %v18093_v28  ;;  %v11095_v58 = vpop.f32.mrb[9].mxu1 }
 0x6ba   : > { %v11237_v3 = vadd.f32 %v18093_v28, %v11095_v58  ;;  %v13615_v10 = vpop.f32.mrb[10].mxu1 }
 0x6bb   : > { %v11303_v43 = vadd.f32 %v11271_v56, %v11239_v61  ;;  %v11240_v0 = vadd.f32 %v13615_v10, %v18093_v28  ;;  %v11098_v59 = vpop.f32.mrb[11].mxu1  ;;  %v11287_v61 = vld [vmem:[%s14518_s24 + $0xd0] sm:$0xff] }
 0x6bc   : > { %v11301_v9 = vadd.f32 %v11269_v63, %v11237_v3  ;;  %v11238_v7 = vadd.f32 %v18093_v28, %v11098_v59  ;;  %v11285_v3 = vld [vmem:[%s14518_s24 + $0xc0] sm:$0xff] }
 0x6bd   : > { %11335 = vst [vmem:[%s14523_s27 + $0x50] sm:$0xff] %v11303_v43  ;;  %v11304_v30 = vadd.f32 %v11272_v11, %v11240_v0  ;;  %v11288_v43 = vld [vmem:[%s14518_s24 + $0xd8] sm:$0xff] }
 0x6be   : > { %11333 = vst [vmem:[%s14523_s27 + $0x40] sm:$0xff] %v11301_v9  ;;  %v11302_v53 = vadd.f32 %v11270_v26, %v11238_v7  ;;  %v11286_v9 = vld [vmem:[%s14518_s24 + $0xc8] sm:$0xff] }
 0x6bf   : > { %11336 = vst [vmem:[%s14523_s27 + $0x58] sm:$0xff] %v11304_v30 }
 0x6c0   : > { %11334 = vst [vmem:[%s14523_s27 + $0x48] sm:$0xff] %v11302_v53  ;;  %v13618_v32 = vpop.f32.mrb[12].mxu1 }
 0x6c1   : > { %v11243_v51 = vadd.f32 %v13618_v32, %v18093_v28  ;;  %v11111_v27 = vpop.f32.mrb[13].mxu1 }
 0x6c2   : > { %v11241_v35 = vadd.f32 %v18093_v28, %v11111_v27  ;;  %v13619_v18 = vpop.f32.mrb[14].mxu1 }
 0x6c3   : > { %v11307_v4 = vadd.f32 %v11275_v23, %v11243_v51  ;;  %v11244_v17 = vadd.f32 %v13619_v18, %v18093_v28  ;;  %v11114_v48 = vpop.f32.mrb[15].mxu1  ;;  %v11291_v51 = vld [vmem:[%s14518_s24 + $0xf0] sm:$0xff] }
 0x6c4   : > { %v11305_v8 = vadd.f32 %v11273_v6, %v11241_v35  ;;  %v11242_v13 = vadd.f32 %v18093_v28, %v11114_v48  ;;  %v11289_v35 = vld [vmem:[%s14518_s24 + $0xe0] sm:$0xff] }
 0x6c5   : > { %11339 = vst [vmem:[%s14523_s27 + $0x70] sm:$0xff] %v11307_v4  ;;  %v11308_v41 = vadd.f32 %v11276_v45, %v11244_v17  ;;  %v11292_v4 = vld [vmem:[%s14518_s24 + $0xf8] sm:$0xff] }
 0x6c6   : > { %11337 = vst [vmem:[%s14523_s27 + $0x60] sm:$0xff] %v11305_v8  ;;  %v11306_v36 = vadd.f32 %v11274_v34, %v11242_v13  ;;  %v11290_v8 = vld [vmem:[%s14518_s24 + $0xe8] sm:$0xff] }
 0x6c7   : > { %11340 = vst [vmem:[%s14523_s27 + $0x78] sm:$0xff] %v11308_v41 }
 0x6c8   : > { %11338 = vst [vmem:[%s14523_s27 + $0x68] sm:$0xff] %v11306_v36  ;;  %v13622_v22 = vpop.f32.mrb[16].mxu1 }
 0x6c9   : > { %v11247_v50 = vadd.f32 %v13622_v22, %v18093_v28  ;;  %v11127_v62 = vpop.f32.mrb[17].mxu1 }
 0x6ca   : > { %v11245_v15 = vadd.f32 %v18093_v28, %v11127_v62  ;;  %v13623_v29 = vpop.f32.mrb[18].mxu1 }
 0x6cb   : > { %v11311_v54 = vadd.f32 %v11279_v44, %v11247_v50  ;;  %v11248_v47 = vadd.f32 %v13623_v29, %v18093_v28  ;;  %v11130_v57 = vpop.f32.mrb[19].mxu1 }
 0x6cc   : > { %v11309_v16 = vadd.f32 %v11277_v42, %v11245_v15  ;;  %v11246_v24 = vadd.f32 %v18093_v28, %v11130_v57 }
 0x6cd   : > { %11343 = vst [vmem:[%s14523_s27 + $0x90] sm:$0xff] %v11311_v54  ;;  %v11312_v40 = vadd.f32 %v11280_v37, %v11248_v47 }
 0x6ce   : > { %11341 = vst [vmem:[%s14523_s27 + $0x80] sm:$0xff] %v11309_v16  ;;  %v11310_v1 = vadd.f32 %v11278_v19, %v11246_v24 }
 0x6cf   : > { %11344 = vst [vmem:[%s14523_s27 + $0x98] sm:$0xff] %v11312_v40 }
 0x6d0   : > { %11342 = vst [vmem:[%s14523_s27 + $0x88] sm:$0xff] %v11310_v1  ;;  %v13626_v21 = vpop.f32.mrb[20].mxu1 }
 0x6d1   : > { %v11251_v60 = vadd.f32 %v13626_v21, %v18093_v28  ;;  %v11143_v5 = vpop.f32.mrb[21].mxu1 }
 0x6d2   : > { %v11249_v12 = vadd.f32 %v18093_v28, %v11143_v5  ;;  %v13627_v25 = vpop.f32.mrb[22].mxu1 }
 0x6d3   : > { %v11315_v49 = vadd.f32 %v11283_v2, %v11251_v60  ;;  %v11252_v20 = vadd.f32 %v13627_v25, %v18093_v28  ;;  %v11146_v39 = vpop.f32.mrb[23].mxu1 }
 0x6d4   : > { %v11313_v14 = vadd.f32 %v11281_v52, %v11249_v12  ;;  %v11250_v31 = vadd.f32 %v18093_v28, %v11146_v39 }
 0x6d5   : > { %11347 = vst [vmem:[%s14523_s27 + $0xb0] sm:$0xff] %v11315_v49  ;;  %v11316_v46 = vadd.f32 %v11284_v33, %v11252_v20 }
 0x6d6   : > { %11345 = vst [vmem:[%s14523_s27 + $0xa0] sm:$0xff] %v11313_v14  ;;  %v11314_v38 = vadd.f32 %v11282_v55, %v11250_v31 }
 0x6d7   : > { %11348 = vst [vmem:[%s14523_s27 + $0xb8] sm:$0xff] %v11316_v46 }
 0x6d8   : > { %11346 = vst [vmem:[%s14523_s27 + $0xa8] sm:$0xff] %v11314_v38  ;;  %v13630_v56 = vpop.f32.mrb[24].mxu1 }
 0x6d9   : > { %v11255_v58 = vadd.f32 %v13630_v56, %v18093_v28  ;;  %v11159_v63 = vpop.f32.mrb[25].mxu1 }
 0x6da   : > { %v11253_v10 = vadd.f32 %v18093_v28, %v11159_v63  ;;  %v13631_v11 = vpop.f32.mrb[26].mxu1 }
 0x6db   : > { %v11319_v0 = vadd.f32 %v11287_v61, %v11255_v58  ;;  %v11256_v59 = vadd.f32 %v13631_v11, %v18093_v28  ;;  %v11162_v26 = vpop.f32.mrb[27].mxu1 }
 0x6dc   : > { %v11317_v7 = vadd.f32 %v11285_v3, %v11253_v10  ;;  %v11254_v30 = vadd.f32 %v18093_v28, %v11162_v26 }
 0x6dd   : > { %11351 = vst [vmem:[%s14523_s27 + $0xd0] sm:$0xff] %v11319_v0  ;;  %v11320_v53 = vadd.f32 %v11288_v43, %v11256_v59 }
 0x6de   : > { %11349 = vst [vmem:[%s14523_s27 + $0xc0] sm:$0xff] %v11317_v7  ;;  %v11318_v32 = vadd.f32 %v11286_v9, %v11254_v30 }
 0x6df   : > { %11352 = vst [vmem:[%s14523_s27 + $0xd8] sm:$0xff] %v11320_v53 }
 0x6e0   : > { %11350 = vst [vmem:[%s14523_s27 + $0xc8] sm:$0xff] %v11318_v32  ;;  %v13634_v23 = vpop.f32.mrb[28].mxu1 }
 0x6e1   : > { %v11259_v27 = vadd.f32 %v13634_v23, %v18093_v28  ;;  %v11175_v6 = vpop.f32.mrb[29].mxu1 }
 0x6e2   : > { %v11257_v18 = vadd.f32 %v18093_v28, %v11175_v6  ;;  %v13635_v45 = vpop.f32.mrb[30].mxu1 }
 0x6e3   : > { %v11323_v17 = vadd.f32 %v11291_v51, %v11259_v27  ;;  %v11260_v48 = vadd.f32 %v13635_v45, %v18093_v28  ;;  %v11178_v34 = vpop.f32.mrb[31].mxu1 }
 0x6e4   : > { %v11321_v13 = vadd.f32 %v11289_v35, %v11257_v18  ;;  %v11258_v41 = vadd.f32 %v18093_v28, %v11178_v34 }
 0x6e5   : > { %11355 = vst [vmem:[%s14523_s27 + $0xf0] sm:$0xff] %v11323_v17  ;;  %v11324_v36 = vadd.f32 %v11292_v4, %v11260_v48 }
 0x6e6   : > { %11353 = vst [vmem:[%s14523_s27 + $0xe0] sm:$0xff] %v11321_v13  ;;  %v11322_v22 = vadd.f32 %v11290_v8, %v11258_v41 }
 0x6e7   : > { %11356 = vst [vmem:[%s14523_s27 + $0xf8] sm:$0xff] %v11324_v36 }
 0x6e8   : > { %11354 = vst [vmem:[%s14523_s27 + $0xe8] sm:$0xff] %v11322_v22 }
 0x6e9 PF: > { %s15_s18 = sadd.s32 1, %s14474_s18  }
 0x6ea   : > { %p12_p5 = scmp.ge.s32.totalorder %s15_s18, 4  }
 0x6ec   :  { %14 = sbr.rel (!%p12_p5) target bundleno = 1 (0x1), region = 98 }

</bundles_post_ra>
